<compile_context>
chip_gen: v6e
topology: v6e:2x2x1
jax: 0.10.0
libtpu: 0.0.40
codegen_flags: <defaults>
</compile_context>

<pallas_src>
import functools
import math

import jax
import jax.numpy as jnp
from jax import lax
from jax.experimental import pallas as pl
from jax.experimental.pallas import tpu as pltpu


_VMEM_LIMIT = 32 * 1024 * 1024  # fits v7x (64 MiB); plenty of headroom on v5e/v6e


def _round_up(x, m):
    return ((x + m - 1) // m) * m


# --------------------------------------------------------------------------- #
# Kernel 1: fused 3x3 stride-1 conv + folded BN + (residual) + leaky_relu.
#
# Activation arrives in "wide" layout: (H, W, C) zero-padded to (H+4, W+2, C)
# (2 rows top/bottom, 1 col left/right) and flattened to ((H+4)*Wp, C), Wp = W+2;
# valid pixel (h, w) sits at row (h+2)*Wp + (w+1).
# Output is the "band" layout (H*Wp, Cout): valid pixel (h, w) at row h*Wp + (w+1),
# horizontal-pad columns forced to zero, so one row-pad turns it into the next
# conv's wide layout.  For tap (kh, kw) the contribution to band row r is
#   x_wide[r + (kh+1)*Wp + (kw-1)] @ W[kh, kw]
# i.e. the whole conv is 9 statically-shifted matmuls over one VMEM-resident slab.
# --------------------------------------------------------------------------- #

def _conv3x3_band_kernel(*refs, Wp, W, leaky, has_residual):
    if has_residual:
        x_ref, w_ref, s_ref, b_ref, r_ref, o_ref = refs
    else:
        x_ref, w_ref, s_ref, b_ref, o_ref = refs
        r_ref = None
    M, tn = o_ref.shape  # M = H * Wp

    acc = jnp.zeros((M, tn), jnp.float32)
    for kh in range(3):
        for kw in range(3):
            off = (kh + 1) * Wp + (kw - 1)          # static shift, always in-bounds
            slab = x_ref[off:off + M, :]            # (M, Cin_p), matmul dtype
            acc = acc + jnp.dot(slab, w_ref[kh * 3 + kw],
                                preferred_element_type=jnp.float32)

    y = acc * s_ref[...] + b_ref[...]               # folded BatchNorm affine (f32)
    if has_residual:
        y = y + r_ref[...].astype(jnp.float32)
    if leaky:
        y = jnp.where(y > 0.0, y, 0.02 * y)
    # Zero the horizontal-pad columns so the band can be row-padded straight into the
    # next conv's wide layout (and cross-row garbage never leaks into valid outputs).
    col = lax.broadcasted_iota(jnp.int32, (M, tn), 0) % Wp
    y = jnp.where((col >= 1) & (col <= W), y, 0.0)
    o_ref[...] = y.astype(o_ref.dtype)


def conv3x3_bn_act(x_wide, w9, scale, shift, H, W, residual_band=None,
                   leaky=True, out_dtype=jnp.float32):
    """x_wide: (N, (H+4)*(W+2), Cin_p); w9: (9, Cin_p, Cout_p) -> band (N, H*(W+2), Cout_p)."""
    N, rin, cin_p = x_wide.shape
    Wp = W + 2
    M = H * Wp
    assert rin == (H + 4) * Wp and cin_p % 128 == 0
    cout_p = w9.shape[2]
    assert cout_p % 128 == 0

    tn = cout_p if cout_p <= 512 else (256 if cout_p % 256 == 0 else 128)
    s = jnp.pad(scale, (0, cout_p - scale.shape[0])).reshape(1, cout_p).astype(jnp.float32)
    b = jnp.pad(shift, (0, cout_p - shift.shape[0])).reshape(1, cout_p).astype(jnp.float32)

    in_specs = [
        pl.BlockSpec((None, rin, cin_p), lambda n, j: (n, 0, 0)),   # activation (per batch)
        pl.BlockSpec((9, cin_p, tn), lambda n, j: (0, 0, j)),       # 9 conv taps
        pl.BlockSpec((1, tn), lambda n, j: (0, j)),                 # BN scale
        pl.BlockSpec((1, tn), lambda n, j: (0, j)),                 # BN shift
    ]
    args = [x_wide, w9, s, b]
    if residual_band is not None:
        in_specs.append(pl.BlockSpec((None, M, tn), lambda n, j: (n, 0, j)))
        args.append(residual_band)

    kernel = functools.partial(_conv3x3_band_kernel, Wp=Wp, W=W, leaky=leaky,
                               has_residual=residual_band is not None)
    # TODO(synk): add a spatial (row) grid axis with halo rows once the per-batch slab
    # no longer fits VMEM; split M when N == 1 so v7x's 2nd TensorCore has work.
    return pl.pallas_call(
        kernel,
        out_shape=jax.ShapeDtypeStruct((N, M, cout_p), out_dtype),
        grid_spec=pltpu.PrefetchScalarGridSpec(
            num_scalar_prefetch=0,
            grid=(N, cout_p // tn),
            in_specs=in_specs,
            out_specs=pl.BlockSpec((None, M, tn), lambda n, j: (n, 0, j)),
        ),
        compiler_params=pltpu.CompilerParams(
            dimension_semantics=("parallel", "parallel"),
            vmem_limit_bytes=_VMEM_LIMIT,
        ),
    )(*args)


# --------------------------------------------------------------------------- #
# Kernel 2: single-pass (M, K) @ (K, Cout_p) matmul + folded BN (+ leaky).
# Used only for the projection branch's stride-2 ops (full-K panel, no reduction
# grid axis, no scratch; weights/scale/bias are DMA'd exactly once per Cout tile).
# --------------------------------------------------------------------------- #

def _matmul_bn_act_kernel(p_ref, w_ref, s_ref, b_ref, o_ref, *, leaky):
    y = jnp.dot(p_ref[...], w_ref[...], preferred_element_type=jnp.float32)
    y = y * s_ref[...] + b_ref[...]
    if leaky:
        y = jnp.where(y > 0.0, y, 0.02 * y)
    o_ref[...] = y.astype(o_ref.dtype)


def matmul_bn_act(p, w, scale, shift, leaky, out_dtype):
    M, K = p.shape
    cout_p = w.shape[1]
    assert K % 128 == 0 and cout_p % 128 == 0
    tm = _round_up(min(M, 512), 16)          # 16-row multiple: safe for bf16 packing
    Mp = _round_up(M, tm)
    if Mp != M:
        p = jnp.pad(p, ((0, Mp - M), (0, 0)))
    tn = cout_p if cout_p <= 512 else (256 if cout_p % 256 == 0 else 128)
    s = jnp.pad(scale, (0, cout_p - scale.shape[0])).reshape(1, cout_p).astype(jnp.float32)
    b = jnp.pad(shift, (0, cout_p - shift.shape[0])).reshape(1, cout_p).astype(jnp.float32)

    out = pl.pallas_call(
        functools.partial(_matmul_bn_act_kernel, leaky=leaky),
        out_shape=jax.ShapeDtypeStruct((Mp, cout_p), out_dtype),
        grid_spec=pltpu.PrefetchScalarGridSpec(
            num_scalar_prefetch=0,
            grid=(Mp // tm, cout_p // tn),
            in_specs=[pl.BlockSpec((tm, K), lambda i, j: (i, 0)),
                      pl.BlockSpec((K, tn), lambda i, j: (0, j)),
                      pl.BlockSpec((1, tn), lambda i, j: (0, j)),
                      pl.BlockSpec((1, tn), lambda i, j: (0, j))],
            out_specs=pl.BlockSpec((tm, tn), lambda i, j: (i, j)),
        ),
        compiler_params=pltpu.CompilerParams(
            dimension_semantics=("parallel", "parallel"),
            vmem_limit_bytes=_VMEM_LIMIT,
        ),
    )(p, w, s, b)
    return out[:M] if Mp != M else out


# ------------------------------ parameter glue ------------------------------ #

def _xavier_uniform(key, cout, cin, k):
    fan_in = cin * k * k
    fan_out = cout * k * k
    bound = math.sqrt(6.0 / (fan_in + fan_out))
    return jax.random.uniform(key, (cout, cin, k, k), jnp.float32, -bound, bound)


def _bn_fold(gamma, beta, mean, var, eps=1e-5):
    scale = gamma / jnp.sqrt(var + eps)
    return scale, beta - mean * scale


def _fold_w3x3(w_oihw, cin_p, cout_p, dtype):
    cout, cin = w_oihw.shape[0], w_oihw.shape[1]
    w = jnp.transpose(w_oihw, (2, 3, 1, 0)).astype(dtype)        # (3,3,Cin,Cout)
    w = jnp.pad(w, ((0, 0), (0, 0), (0, cin_p - cin), (0, cout_p - cout)))
    return w.reshape(9, cin_p, cout_p)


class ResnetBlockPallas:
    """Mirrors modelSVR.resnet_block (is_training=False / eval mode)."""

    def __init__(self, key, dim_in, dim_out, matmul_dtype=jnp.bfloat16):
        self.dim_in = dim_in
        self.dim_out = dim_out
        self.matmul_dtype = matmul_dtype
        k1, k2, k3 = jax.random.split(key, 3)
        self.w1 = _xavier_uniform(k1, dim_out, dim_in, 3)
        self.w2 = _xavier_uniform(k2, dim_out, dim_out, 3)
        self.ws = None if dim_in == dim_out else _xavier_uniform(k3, dim_out, dim_in, 1)
        ones = jnp.ones((dim_out,), jnp.float32)
        zeros = jnp.zeros((dim_out,), jnp.float32)
        self.bn1 = _bn_fold(ones, zeros, zeros, ones)   # fresh BatchNorm2d, eval mode
        self.bn2 = _bn_fold(ones, zeros, zeros, ones)
        self.bns = None if self.ws is None else _bn_fold(ones, zeros, zeros, ones)

    def __call__(self, x_nchw):
        x = jnp.transpose(x_nchw, (0, 2, 3, 1))          # NHWC: channels on lanes
        if self.dim_in == self.dim_out:
            return self._forward_identity(x)
        return self._forward_projection(x)

    # dim_in == dim_out: conv3x3/s1 -> bn -> lrelu -> conv3x3/s1 -> bn -> +x -> lrelu
    def _forward_identity(self, x):
        N, H, W, C = x.shape
        cp = _round_up(C, 128)
        md = self.matmul_dtype
        Wp = W + 2

        # cast to matmul dtype BEFORE padding; channel-pad once on the activation
        x_md = jnp.pad(x.astype(md), ((0, 0), (0, 0), (0, 0), (0, cp - C)))
        x_wide = jnp.pad(x_md, ((0, 0), (2, 2), (1, 1), (0, 0))
                         ).reshape(N, (H + 4) * Wp, cp)

        w1 = _fold_w3x3(self.w1, cp, cp, md)
        w2 = _fold_w3x3(self.w2, cp, cp, md)

        # conv_1 + bn_1 + leaky -> narrow (bf16 by default) intermediate
        h1_band = conv3x3_bn_act(x_wide, w1, *self.bn1, H, W, leaky=True, out_dtype=md)
        # band -> wide layout for conv_2 with one row pad (pad columns already zero)
        h1_wide = jnp.pad(h1_band, ((0, 0), (2 * Wp, 2 * Wp), (0, 0)))

        # identity residual, streamed in its native f32, laid out as a band
        res_band = jnp.pad(x, ((0, 0), (0, 0), (1, 1), (0, cp - C))
                           ).reshape(N, H * Wp, cp)

        out_band = conv3x3_bn_act(h1_wide, w2, *self.bn2, H, W,
                                  residual_band=res_band, leaky=True,
                                  out_dtype=jnp.float32)
        out = out_band.reshape(N, H, Wp, cp)[:, :, 1:1 + W, :C]
        return jnp.transpose(out, (0, 3, 1, 2))

    # dim_in != dim_out: conv3x3/s2 .. conv3x3/s1 .. + conv1x1/s2 shortcut
    def _forward_projection(self, x):
        N, H, W, Cin = x.shape
        Cout = self.dim_out
        cin_p = _round_up(Cin, 128)
        cout_p = _round_up(Cout, 128)
        md = self.matmul_dtype
        Ho = (H - 1) // 2 + 1
        Wo = (W - 1) // 2 + 1
        Wp2 = Wo + 2

        x_md = jnp.pad(x.astype(md), ((0, 0), (0, 0), (0, 0), (0, cin_p - Cin)))

        # conv_1: 3x3 stride-2 via light im2col (bf16 + channel-padded BEFORE expansion)
        # TODO(synk): 4-phase decomposition to feed the fused kernel and drop this too.
        xp = jnp.pad(x_md, ((0, 0), (1, 1), (1, 1), (0, 0)))
        cols = [xp[:, kh:kh + 2 * Ho:2, kw:kw + 2 * Wo:2, :]
                for kh in range(3) for kw in range(3)]
        patches = jnp.concatenate(cols, axis=-1).reshape(N * Ho * Wo, 9 * cin_p)
        w1m = _fold_w3x3(self.w1, cin_p, cout_p, md).reshape(9 * cin_p, cout_p)
        h1 = matmul_bn_act(patches, w1m, *self.bn1, leaky=True, out_dtype=md)
        h1_wide = jnp.pad(h1.reshape(N, Ho, Wo, cout_p),
                          ((0, 0), (2, 2), (1, 1), (0, 0))
                          ).reshape(N, (Ho + 4) * Wp2, cout_p)

        # shortcut: 1x1 stride-2 conv + bn (no activation), f32 band layout
        xs = x_md[:, ::2, ::2, :].reshape(N * Ho * Wo, cin_p)
        wsm = jnp.pad(jnp.transpose(self.ws, (2, 3, 1, 0)).reshape(Cin, Cout).astype(md),
                      ((0, cin_p - Cin), (0, cout_p - Cout)))
        sc = matmul_bn_act(xs, wsm, *self.bns, leaky=False, out_dtype=jnp.float32)
        res_band = jnp.pad(sc.reshape(N, Ho, Wo, cout_p),
                           ((0, 0), (0, 0), (1, 1), (0, 0))
                           ).reshape(N, Ho * Wp2, cout_p)

        # conv_2 + bn_2 + residual + leaky (fused)
        w2 = _fold_w3x3(self.w2, cout_p, cout_p, md)
        out_band = conv3x3_bn_act(h1_wide, w2, *self.bn2, Ho, Wo,
                                  residual_band=res_band, leaky=True,
                                  out_dtype=jnp.float32)
        out = out_band.reshape(N, Ho, Wp2, cout_p)[:, :, 1:1 + Wo, :Cout]
        return jnp.transpose(out, (0, 3, 1, 2))


# ------------------------- pure-JAX reference check ------------------------- #

def _ref_forward(block, x_nchw):
    def conv(x, w, stride, pad):
        return lax.conv_general_dilated(
            x, w, (stride, stride), [(pad, pad), (pad, pad)],
            dimension_numbers=("NCHW", "OIHW", "NCHW"),
            precision=lax.Precision.HIGHEST)

    def bn(y, fold):
        scale, shift = fold
        return y * scale.reshape(1, -1, 1, 1) + shift.reshape(1, -1, 1, 1)

    def lrelu(y):
        return jnp.where(y > 0, y, 0.02 * y)

    if block.dim_in == block.dim_out:
        o = lrelu(bn(conv(x_nchw, block.w1, 1, 1), block.bn1))
        o = bn(conv(o, block.w2, 1, 1), block.bn2) + x_nchw
        return lrelu(o)
    o = lrelu(bn(conv(x_nchw, block.w1, 2, 1), block.bn1))
    o = bn(conv(o, block.w2, 1, 1), block.bn2)
    s = bn(conv(x_nchw, block.ws, 2, 0), block.bns)
    return lrelu(o + s)


# ----------------------------------- main ----------------------------------- #

if __name__ == "__main__":
    key = jax.random.PRNGKey(0)
    kx, kb1, kb2 = jax.random.split(key, 3)
    x = jax.random.normal(kx, (2, 4, 16, 16), jnp.float32)   # NCHW, as in PyTorch

    # f32 matmul path: near-exact check of both branches.
    blk_same_f32 = ResnetBlockPallas(kb1, 4, 4, matmul_dtype=jnp.float32)
    y = jax.block_until_ready(jax.jit(blk_same_f32.__call__)(x))
    r = _ref_forward(blk_same_f32, x)
    assert y.shape == (2, 4, 16, 16)
    assert jnp.allclose(y, r, atol=1e-3, rtol=1e-3), "identity branch (f32) mismatch"

    blk_down_f32 = ResnetBlockPallas(kb2, 4, 8, matmul_dtype=jnp.float32)
    y = jax.block_until_ready(jax.jit(blk_down_f32.__call__)(x))
    r = _ref_forward(blk_down_f32, x)
    assert y.shape == (2, 8, 8, 8)
    assert jnp.allclose(y, r, atol=1e-3, rtol=1e-3), "projection branch (f32) mismatch"

    # default bf16 MXU-input path (f32 accumulation / f32 epilogue): looser tolerance.
    blk_same = ResnetBlockPallas(kb1, 4, 4)
    y = jax.block_until_ready(jax.jit(blk_same.__call__)(x))
    assert jnp.allclose(y, _ref_forward(blk_same, x), atol=5e-2, rtol=5e-2), \
        "identity branch (bf16) mismatch"

    blk_down = ResnetBlockPallas(kb2, 4, 8)
    y = jax.block_until_ready(jax.jit(blk_down.__call__)(x))
    assert jnp.allclose(y, _ref_forward(blk_down, x), atol=5e-2, rtol=5e-2), \
        "projection branch (bf16) mismatch"

    print("KERNEL_OK")
</pallas_src>

<mosaic_0001>
module attributes {stable_mosaic.version = 11 : i64} {
  func.func @_conv3x3_band_kernel(%arg0: i32, %arg1: i32, %arg2: memref<1x360x128xf32, #tpu.memory_space<vmem>>, %arg3: memref<9x128x128xf32, #tpu.memory_space<vmem>>, %arg4: memref<1x128xf32, #tpu.memory_space<vmem>>, %arg5: memref<1x128xf32, #tpu.memory_space<vmem>>, %arg6: memref<1x288x128xf32, #tpu.memory_space<vmem>>) attributes {dimension_semantics = [#tpu.dimension_semantics<parallel>, #tpu.dimension_semantics<parallel>], iteration_bounds = array<i64: 2, 1>, scalar_prefetch = 0 : i64, scratch_operands = 0 : i64, tpu.core_type = #tpu.core_type<tc>, window_params = [{transform_indices = @transform_0, window_bounds = array<i64: 1, 360, 128>}, {transform_indices = @transform_1, window_bounds = array<i64: 9, 128, 128>}, {transform_indices = @transform_2, window_bounds = array<i64: 1, 128>}, {transform_indices = @transform_3, window_bounds = array<i64: 1, 128>}, {transform_indices = @transform_4, window_bounds = array<i64: 1, 288, 128>}]} {
    %cst = arith.constant 0.000000e+00 : f32
    %0 = vector.broadcast %cst : f32 to vector<288x128xf32>
    %c0 = arith.constant 0 : index
    %c17 = arith.constant 17 : index
    %c0_0 = arith.constant 0 : index
    %1 = vector.load %arg2[%c0, %c17, %c0_0] : memref<1x360x128xf32, #tpu.memory_space<vmem>>, vector<1x288x128xf32>
    %2 = vector.shape_cast %1 : vector<1x288x128xf32> to vector<288x128xf32>
    %c0_1 = arith.constant 0 : index
    %c0_2 = arith.constant 0 : index
    %c0_3 = arith.constant 0 : index
    %3 = vector.load %arg3[%c0_1, %c0_2, %c0_3] : memref<9x128x128xf32, #tpu.memory_space<vmem>>, vector<1x128x128xf32>
    %4 = vector.shape_cast %3 : vector<1x128x128xf32> to vector<128x128xf32>
    %cst_4 = arith.constant dense<0.000000e+00> : vector<288x128xf32>
    %5 = tpu.matmul %2, %4, %cst_4 {dimension_numbers = #tpu.dot_dimension_numbers<[1], [0], [0], [1], [0, 0, 1, 1], [], []>} : vector<288x128xf32>, vector<128x128xf32>, vector<288x128xf32> -> vector<288x128xf32>
    %6 = arith.addf %0, %5 : vector<288x128xf32>
    %c0_5 = arith.constant 0 : index
    %c18 = arith.constant 18 : index
    %c0_6 = arith.constant 0 : index
    %7 = vector.load %arg2[%c0_5, %c18, %c0_6] : memref<1x360x128xf32, #tpu.memory_space<vmem>>, vector<1x288x128xf32>
    %8 = vector.shape_cast %7 : vector<1x288x128xf32> to vector<288x128xf32>
    %c1 = arith.constant 1 : index
    %c0_7 = arith.constant 0 : index
    %c0_8 = arith.constant 0 : index
    %9 = vector.load %arg3[%c1, %c0_7, %c0_8] : memref<9x128x128xf32, #tpu.memory_space<vmem>>, vector<1x128x128xf32>
    %10 = vector.shape_cast %9 : vector<1x128x128xf32> to vector<128x128xf32>
    %cst_9 = arith.constant dense<0.000000e+00> : vector<288x128xf32>
    %11 = tpu.matmul %8, %10, %cst_9 {dimension_numbers = #tpu.dot_dimension_numbers<[1], [0], [0], [1], [0, 0, 1, 1], [], []>} : vector<288x128xf32>, vector<128x128xf32>, vector<288x128xf32> -> vector<288x128xf32>
    %12 = arith.addf %6, %11 : vector<288x128xf32>
    %c0_10 = arith.constant 0 : index
    %c19 = arith.constant 19 : index
    %c0_11 = arith.constant 0 : index
    %13 = vector.load %arg2[%c0_10, %c19, %c0_11] : memref<1x360x128xf32, #tpu.memory_space<vmem>>, vector<1x288x128xf32>
    %14 = vector.shape_cast %13 : vector<1x288x128xf32> to vector<288x128xf32>
    %c2 = arith.constant 2 : index
    %c0_12 = arith.constant 0 : index
    %c0_13 = arith.constant 0 : index
    %15 = vector.load %arg3[%c2, %c0_12, %c0_13] : memref<9x128x128xf32, #tpu.memory_space<vmem>>, vector<1x128x128xf32>
    %16 = vector.shape_cast %15 : vector<1x128x128xf32> to vector<128x128xf32>
    %cst_14 = arith.constant dense<0.000000e+00> : vector<288x128xf32>
    %17 = tpu.matmul %14, %16, %cst_14 {dimension_numbers = #tpu.dot_dimension_numbers<[1], [0], [0], [1], [0, 0, 1, 1], [], []>} : vector<288x128xf32>, vector<128x128xf32>, vector<288x128xf32> -> vector<288x128xf32>
    %18 = arith.addf %12, %17 : vector<288x128xf32>
    %c0_15 = arith.constant 0 : index
    %c35 = arith.constant 35 : index
    %c0_16 = arith.constant 0 : index
    %19 = vector.load %arg2[%c0_15, %c35, %c0_16] : memref<1x360x128xf32, #tpu.memory_space<vmem>>, vector<1x288x128xf32>
    %20 = vector.shape_cast %19 : vector<1x288x128xf32> to vector<288x128xf32>
    %c3 = arith.constant 3 : index
    %c0_17 = arith.constant 0 : index
    %c0_18 = arith.constant 0 : index
    %21 = vector.load %arg3[%c3, %c0_17, %c0_18] : memref<9x128x128xf32, #tpu.memory_space<vmem>>, vector<1x128x128xf32>
    %22 = vector.shape_cast %21 : vector<1x128x128xf32> to vector<128x128xf32>
    %cst_19 = arith.constant dense<0.000000e+00> : vector<288x128xf32>
    %23 = tpu.matmul %20, %22, %cst_19 {dimension_numbers = #tpu.dot_dimension_numbers<[1], [0], [0], [1], [0, 0, 1, 1], [], []>} : vector<288x128xf32>, vector<128x128xf32>, vector<288x128xf32> -> vector<288x128xf32>
    %24 = arith.addf %18, %23 : vector<288x128xf32>
    %c0_20 = arith.constant 0 : index
    %c36 = arith.constant 36 : index
    %c0_21 = arith.constant 0 : index
    %25 = vector.load %arg2[%c0_20, %c36, %c0_21] : memref<1x360x128xf32, #tpu.memory_space<vmem>>, vector<1x288x128xf32>
    %26 = vector.shape_cast %25 : vector<1x288x128xf32> to vector<288x128xf32>
    %c4 = arith.constant 4 : index
    %c0_22 = arith.constant 0 : index
    %c0_23 = arith.constant 0 : index
    %27 = vector.load %arg3[%c4, %c0_22, %c0_23] : memref<9x128x128xf32, #tpu.memory_space<vmem>>, vector<1x128x128xf32>
    %28 = vector.shape_cast %27 : vector<1x128x128xf32> to vector<128x128xf32>
    %cst_24 = arith.constant dense<0.000000e+00> : vector<288x128xf32>
    %29 = tpu.matmul %26, %28, %cst_24 {dimension_numbers = #tpu.dot_dimension_numbers<[1], [0], [0], [1], [0, 0, 1, 1], [], []>} : vector<288x128xf32>, vector<128x128xf32>, vector<288x128xf32> -> vector<288x128xf32>
    %30 = arith.addf %24, %29 : vector<288x128xf32>
    %c0_25 = arith.constant 0 : index
    %c37 = arith.constant 37 : index
    %c0_26 = arith.constant 0 : index
    %31 = vector.load %arg2[%c0_25, %c37, %c0_26] : memref<1x360x128xf32, #tpu.memory_space<vmem>>, vector<1x288x128xf32>
    %32 = vector.shape_cast %31 : vector<1x288x128xf32> to vector<288x128xf32>
    %c5 = arith.constant 5 : index
    %c0_27 = arith.constant 0 : index
    %c0_28 = arith.constant 0 : index
    %33 = vector.load %arg3[%c5, %c0_27, %c0_28] : memref<9x128x128xf32, #tpu.memory_space<vmem>>, vector<1x128x128xf32>
    %34 = vector.shape_cast %33 : vector<1x128x128xf32> to vector<128x128xf32>
    %cst_29 = arith.constant dense<0.000000e+00> : vector<288x128xf32>
    %35 = tpu.matmul %32, %34, %cst_29 {dimension_numbers = #tpu.dot_dimension_numbers<[1], [0], [0], [1], [0, 0, 1, 1], [], []>} : vector<288x128xf32>, vector<128x128xf32>, vector<288x128xf32> -> vector<288x128xf32>
    %36 = arith.addf %30, %35 : vector<288x128xf32>
    %c0_30 = arith.constant 0 : index
    %c53 = arith.constant 53 : index
    %c0_31 = arith.constant 0 : index
    %37 = vector.load %arg2[%c0_30, %c53, %c0_31] : memref<1x360x128xf32, #tpu.memory_space<vmem>>, vector<1x288x128xf32>
    %38 = vector.shape_cast %37 : vector<1x288x128xf32> to vector<288x128xf32>
    %c6 = arith.constant 6 : index
    %c0_32 = arith.constant 0 : index
    %c0_33 = arith.constant 0 : index
    %39 = vector.load %arg3[%c6, %c0_32, %c0_33] : memref<9x128x128xf32, #tpu.memory_space<vmem>>, vector<1x128x128xf32>
    %40 = vector.shape_cast %39 : vector<1x128x128xf32> to vector<128x128xf32>
    %cst_34 = arith.constant dense<0.000000e+00> : vector<288x128xf32>
    %41 = tpu.matmul %38, %40, %cst_34 {dimension_numbers = #tpu.dot_dimension_numbers<[1], [0], [0], [1], [0, 0, 1, 1], [], []>} : vector<288x128xf32>, vector<128x128xf32>, vector<288x128xf32> -> vector<288x128xf32>
    %42 = arith.addf %36, %41 : vector<288x128xf32>
    %c0_35 = arith.constant 0 : index
    %c54 = arith.constant 54 : index
    %c0_36 = arith.constant 0 : index
    %43 = vector.load %arg2[%c0_35, %c54, %c0_36] : memref<1x360x128xf32, #tpu.memory_space<vmem>>, vector<1x288x128xf32>
    %44 = vector.shape_cast %43 : vector<1x288x128xf32> to vector<288x128xf32>
    %c7 = arith.constant 7 : index
    %c0_37 = arith.constant 0 : index
    %c0_38 = arith.constant 0 : index
    %45 = vector.load %arg3[%c7, %c0_37, %c0_38] : memref<9x128x128xf32, #tpu.memory_space<vmem>>, vector<1x128x128xf32>
    %46 = vector.shape_cast %45 : vector<1x128x128xf32> to vector<128x128xf32>
    %cst_39 = arith.constant dense<0.000000e+00> : vector<288x128xf32>
    %47 = tpu.matmul %44, %46, %cst_39 {dimension_numbers = #tpu.dot_dimension_numbers<[1], [0], [0], [1], [0, 0, 1, 1], [], []>} : vector<288x128xf32>, vector<128x128xf32>, vector<288x128xf32> -> vector<288x128xf32>
    %48 = arith.addf %42, %47 : vector<288x128xf32>
    %c0_40 = arith.constant 0 : index
    %c55 = arith.constant 55 : index
    %c0_41 = arith.constant 0 : index
    %49 = vector.load %arg2[%c0_40, %c55, %c0_41] : memref<1x360x128xf32, #tpu.memory_space<vmem>>, vector<1x288x128xf32>
    %50 = vector.shape_cast %49 : vector<1x288x128xf32> to vector<288x128xf32>
    %c8 = arith.constant 8 : index
    %c0_42 = arith.constant 0 : index
    %c0_43 = arith.constant 0 : index
    %51 = vector.load %arg3[%c8, %c0_42, %c0_43] : memref<9x128x128xf32, #tpu.memory_space<vmem>>, vector<1x128x128xf32>
    %52 = vector.shape_cast %51 : vector<1x128x128xf32> to vector<128x128xf32>
    %cst_44 = arith.constant dense<0.000000e+00> : vector<288x128xf32>
    %53 = tpu.matmul %50, %52, %cst_44 {dimension_numbers = #tpu.dot_dimension_numbers<[1], [0], [0], [1], [0, 0, 1, 1], [], []>} : vector<288x128xf32>, vector<128x128xf32>, vector<288x128xf32> -> vector<288x128xf32>
    %54 = arith.addf %48, %53 : vector<288x128xf32>
    %c0_45 = arith.constant 0 : index
    %c0_46 = arith.constant 0 : index
    %55 = vector.load %arg4[%c0_45, %c0_46] : memref<1x128xf32, #tpu.memory_space<vmem>>, vector<1x128xf32>
    %56 = vector.broadcast %55 : vector<1x128xf32> to vector<288x128xf32>
    %57 = arith.mulf %54, %56 : vector<288x128xf32>
    %c0_47 = arith.constant 0 : index
    %c0_48 = arith.constant 0 : index
    %58 = vector.load %arg5[%c0_47, %c0_48] : memref<1x128xf32, #tpu.memory_space<vmem>>, vector<1x128xf32>
    %59 = vector.broadcast %58 : vector<1x128xf32> to vector<288x128xf32>
    %60 = arith.addf %57, %59 : vector<288x128xf32>
    %cst_49 = arith.constant 0.000000e+00 : f32
    %61 = vector.broadcast %cst_49 : f32 to vector<288x128xf32>
    %62 = arith.cmpf ogt, %60, %61 : vector<288x128xf32>
    %cst_50 = arith.constant 2.000000e-02 : f32
    %63 = vector.broadcast %cst_50 : f32 to vector<288x128xf32>
    %64 = arith.mulf %63, %60 : vector<288x128xf32>
    %65 = arith.select %62, %60, %64 : vector<288x128xi1>, vector<288x128xf32>
    %66 = tpu.iota {dimensions = array<i32: 0>} : vector<288x128xi32>
    %c18_i32 = arith.constant 18 : i32
    %c0_i32 = arith.constant 0 : i32
    %67 = arith.cmpi eq, %c18_i32, %c0_i32 : i32
    %c1_i32 = arith.constant 1 : i32
    %68 = arith.select %67, %c1_i32, %c18_i32 : i32
    %69 = vector.broadcast %68 : i32 to vector<288x128xi32>
    %70 = arith.remsi %66, %69 : vector<288x128xi32>
    %c0_i32_51 = arith.constant 0 : i32
    %71 = vector.broadcast %c0_i32_51 : i32 to vector<288x128xi32>
    %72 = arith.cmpi ne, %70, %71 : vector<288x128xi32>
    %c0_i32_52 = arith.constant 0 : i32
    %73 = vector.broadcast %c0_i32_52 : i32 to vector<288x128xi32>
    %74 = arith.cmpi slt, %70, %73 : vector<288x128xi32>
    %c0_i32_53 = arith.constant 0 : i32
    %75 = arith.cmpi slt, %68, %c0_i32_53 : i32
    %76 = vector.broadcast %75 : i1 to vector<288x128xi1>
    %77 = vector.broadcast %76 : vector<288x128xi1> to vector<288x128xi1>
    %78 = arith.xori %74, %77 : vector<288x128xi1>
    %79 = arith.andi %78, %72 : vector<288x128xi1>
    %80 = vector.broadcast %68 : i32 to vector<288x128xi32>
    %81 = arith.addi %70, %80 : vector<288x128xi32>
    %82 = arith.select %79, %81, %70 : vector<288x128xi1>, vector<288x128xi32>
    %c1_i32_54 = arith.constant 1 : i32
    %83 = vector.broadcast %c1_i32_54 : i32 to vector<288x128xi32>
    %84 = arith.cmpi sge, %82, %83 : vector<288x128xi32>
    %c16_i32 = arith.constant 16 : i32
    %85 = vector.broadcast %c16_i32 : i32 to vector<288x128xi32>
    %86 = arith.cmpi sle, %82, %85 : vector<288x128xi32>
    %87 = arith.andi %84, %86 : vector<288x128xi1>
    %cst_55 = arith.constant 0.000000e+00 : f32
    %88 = vector.broadcast %cst_55 : f32 to vector<288x128xf32>
    %89 = arith.select %87, %65, %88 : vector<288x128xi1>, vector<288x128xf32>
    %c0_56 = arith.constant 0 : index
    %c0_57 = arith.constant 0 : index
    %c0_58 = arith.constant 0 : index
    %90 = vector.load %arg6[%c0_56, %c0_57, %c0_58] : memref<1x288x128xf32, #tpu.memory_space<vmem>>, vector<1x288x128xf32>
    %91 = vector.shape_cast %90 : vector<1x288x128xf32> to vector<288x128xf32>
    %92 = vector.shape_cast %89 : vector<288x128xf32> to vector<1x288x128xf32>
    tpu.vector_store %arg6[%c0_56, %c0_57, %c0_58], %92 {strides = array<i32>} : memref<1x288x128xf32, #tpu.memory_space<vmem>>, vector<1x288x128xf32>,
    return
  }
  func.func @transform_0(%arg0: i32, %arg1: i32) -> (i32, i32, i32) {
    %c0_i32 = arith.constant 0 : i32
    %c0_i32_0 = arith.constant 0 : i32
    %c0_i32_1 = arith.constant 0 : i32
    return %arg0, %c0_i32, %c0_i32_0 : i32, i32, i32
  }
  func.func @transform_1(%arg0: i32, %arg1: i32) -> (i32, i32, i32) {
    %c0_i32 = arith.constant 0 : i32
    %c0_i32_0 = arith.constant 0 : i32
    %c0_i32_1 = arith.constant 0 : i32
    return %c0_i32, %c0_i32_0, %arg1 : i32, i32, i32
  }
  func.func @transform_2(%arg0: i32, %arg1: i32) -> (i32, i32) {
    %c0_i32 = arith.constant 0 : i32
    %c0_i32_0 = arith.constant 0 : i32
    return %c0_i32, %arg1 : i32, i32
  }
  func.func @transform_3(%arg0: i32, %arg1: i32) -> (i32, i32) {
    %c0_i32 = arith.constant 0 : i32
    %c0_i32_0 = arith.constant 0 : i32
    return %c0_i32, %arg1 : i32, i32
  }
  func.func @transform_4(%arg0: i32, %arg1: i32) -> (i32, i32, i32) {
    %c0_i32 = arith.constant 0 : i32
    %c0_i32_0 = arith.constant 0 : i32
    return %arg0, %c0_i32, %arg1 : i32, i32, i32
  }
}

module attributes {stable_mosaic.version = 11 : i64} {
  func.func @_conv3x3_band_kernel(%arg0: i32, %arg1: i32, %arg2: memref<1x360x128xf32, #tpu.memory_space<vmem>>, %arg3: memref<9x128x128xf32, #tpu.memory_space<vmem>>, %arg4: memref<1x128xf32, #tpu.memory_space<vmem>>, %arg5: memref<1x128xf32, #tpu.memory_space<vmem>>, %arg6: memref<1x288x128xf32, #tpu.memory_space<vmem>>, %arg7: memref<1x288x128xf32, #tpu.memory_space<vmem>>) attributes {dimension_semantics = [#tpu.dimension_semantics<parallel>, #tpu.dimension_semantics<parallel>], iteration_bounds = array<i64: 2, 1>, scalar_prefetch = 0 : i64, scratch_operands = 0 : i64, tpu.core_type = #tpu.core_type<tc>, window_params = [{transform_indices = @transform_0, window_bounds = array<i64: 1, 360, 128>}, {transform_indices = @transform_1, window_bounds = array<i64: 9, 128, 128>}, {transform_indices = @transform_2, window_bounds = array<i64: 1, 128>}, {transform_indices = @transform_3, window_bounds = array<i64: 1, 128>}, {transform_indices = @transform_4, window_bounds = array<i64: 1, 288, 128>}, {transform_indices = @transform_5, window_bounds = array<i64: 1, 288, 128>}]} {
    %cst = arith.constant 0.000000e+00 : f32
    %0 = vector.broadcast %cst : f32 to vector<288x128xf32>
    %c0 = arith.constant 0 : index
    %c17 = arith.constant 17 : index
    %c0_0 = arith.constant 0 : index
    %1 = vector.load %arg2[%c0, %c17, %c0_0] : memref<1x360x128xf32, #tpu.memory_space<vmem>>, vector<1x288x128xf32>
    %2 = vector.shape_cast %1 : vector<1x288x128xf32> to vector<288x128xf32>
    %c0_1 = arith.constant 0 : index
    %c0_2 = arith.constant 0 : index
    %c0_3 = arith.constant 0 : index
    %3 = vector.load %arg3[%c0_1, %c0_2, %c0_3] : memref<9x128x128xf32, #tpu.memory_space<vmem>>, vector<1x128x128xf32>
    %4 = vector.shape_cast %3 : vector<1x128x128xf32> to vector<128x128xf32>
    %cst_4 = arith.constant dense<0.000000e+00> : vector<288x128xf32>
    %5 = tpu.matmul %2, %4, %cst_4 {dimension_numbers = #tpu.dot_dimension_numbers<[1], [0], [0], [1], [0, 0, 1, 1], [], []>} : vector<288x128xf32>, vector<128x128xf32>, vector<288x128xf32> -> vector<288x128xf32>
    %6 = arith.addf %0, %5 : vector<288x128xf32>
    %c0_5 = arith.constant 0 : index
    %c18 = arith.constant 18 : index
    %c0_6 = arith.constant 0 : index
    %7 = vector.load %arg2[%c0_5, %c18, %c0_6] : memref<1x360x128xf32, #tpu.memory_space<vmem>>, vector<1x288x128xf32>
    %8 = vector.shape_cast %7 : vector<1x288x128xf32> to vector<288x128xf32>
    %c1 = arith.constant 1 : index
    %c0_7 = arith.constant 0 : index
    %c0_8 = arith.constant 0 : index
    %9 = vector.load %arg3[%c1, %c0_7, %c0_8] : memref<9x128x128xf32, #tpu.memory_space<vmem>>, vector<1x128x128xf32>
    %10 = vector.shape_cast %9 : vector<1x128x128xf32> to vector<128x128xf32>
    %cst_9 = arith.constant dense<0.000000e+00> : vector<288x128xf32>
    %11 = tpu.matmul %8, %10, %cst_9 {dimension_numbers = #tpu.dot_dimension_numbers<[1], [0], [0], [1], [0, 0, 1, 1], [], []>} : vector<288x128xf32>, vector<128x128xf32>, vector<288x128xf32> -> vector<288x128xf32>
    %12 = arith.addf %6, %11 : vector<288x128xf32>
    %c0_10 = arith.constant 0 : index
    %c19 = arith.constant 19 : index
    %c0_11 = arith.constant 0 : index
    %13 = vector.load %arg2[%c0_10, %c19, %c0_11] : memref<1x360x128xf32, #tpu.memory_space<vmem>>, vector<1x288x128xf32>
    %14 = vector.shape_cast %13 : vector<1x288x128xf32> to vector<288x128xf32>
    %c2 = arith.constant 2 : index
    %c0_12 = arith.constant 0 : index
    %c0_13 = arith.constant 0 : index
    %15 = vector.load %arg3[%c2, %c0_12, %c0_13] : memref<9x128x128xf32, #tpu.memory_space<vmem>>, vector<1x128x128xf32>
    %16 = vector.shape_cast %15 : vector<1x128x128xf32> to vector<128x128xf32>
    %cst_14 = arith.constant dense<0.000000e+00> : vector<288x128xf32>
    %17 = tpu.matmul %14, %16, %cst_14 {dimension_numbers = #tpu.dot_dimension_numbers<[1], [0], [0], [1], [0, 0, 1, 1], [], []>} : vector<288x128xf32>, vector<128x128xf32>, vector<288x128xf32> -> vector<288x128xf32>
    %18 = arith.addf %12, %17 : vector<288x128xf32>
    %c0_15 = arith.constant 0 : index
    %c35 = arith.constant 35 : index
    %c0_16 = arith.constant 0 : index
    %19 = vector.load %arg2[%c0_15, %c35, %c0_16] : memref<1x360x128xf32, #tpu.memory_space<vmem>>, vector<1x288x128xf32>
    %20 = vector.shape_cast %19 : vector<1x288x128xf32> to vector<288x128xf32>
    %c3 = arith.constant 3 : index
    %c0_17 = arith.constant 0 : index
    %c0_18 = arith.constant 0 : index
    %21 = vector.load %arg3[%c3, %c0_17, %c0_18] : memref<9x128x128xf32, #tpu.memory_space<vmem>>, vector<1x128x128xf32>
    %22 = vector.shape_cast %21 : vector<1x128x128xf32> to vector<128x128xf32>
    %cst_19 = arith.constant dense<0.000000e+00> : vector<288x128xf32>
    %23 = tpu.matmul %20, %22, %cst_19 {dimension_numbers = #tpu.dot_dimension_numbers<[1], [0], [0], [1], [0, 0, 1, 1], [], []>} : vector<288x128xf32>, vector<128x128xf32>, vector<288x128xf32> -> vector<288x128xf32>
    %24 = arith.addf %18, %23 : vector<288x128xf32>
    %c0_20 = arith.constant 0 : index
    %c36 = arith.constant 36 : index
    %c0_21 = arith.constant 0 : index
    %25 = vector.load %arg2[%c0_20, %c36, %c0_21] : memref<1x360x128xf32, #tpu.memory_space<vmem>>, vector<1x288x128xf32>
    %26 = vector.shape_cast %25 : vector<1x288x128xf32> to vector<288x128xf32>
    %c4 = arith.constant 4 : index
    %c0_22 = arith.constant 0 : index
    %c0_23 = arith.constant 0 : index
    %27 = vector.load %arg3[%c4, %c0_22, %c0_23] : memref<9x128x128xf32, #tpu.memory_space<vmem>>, vector<1x128x128xf32>
    %28 = vector.shape_cast %27 : vector<1x128x128xf32> to vector<128x128xf32>
    %cst_24 = arith.constant dense<0.000000e+00> : vector<288x128xf32>
    %29 = tpu.matmul %26, %28, %cst_24 {dimension_numbers = #tpu.dot_dimension_numbers<[1], [0], [0], [1], [0, 0, 1, 1], [], []>} : vector<288x128xf32>, vector<128x128xf32>, vector<288x128xf32> -> vector<288x128xf32>
    %30 = arith.addf %24, %29 : vector<288x128xf32>
    %c0_25 = arith.constant 0 : index
    %c37 = arith.constant 37 : index
    %c0_26 = arith.constant 0 : index
    %31 = vector.load %arg2[%c0_25, %c37, %c0_26] : memref<1x360x128xf32, #tpu.memory_space<vmem>>, vector<1x288x128xf32>
    %32 = vector.shape_cast %31 : vector<1x288x128xf32> to vector<288x128xf32>
    %c5 = arith.constant 5 : index
    %c0_27 = arith.constant 0 : index
    %c0_28 = arith.constant 0 : index
    %33 = vector.load %arg3[%c5, %c0_27, %c0_28] : memref<9x128x128xf32, #tpu.memory_space<vmem>>, vector<1x128x128xf32>
    %34 = vector.shape_cast %33 : vector<1x128x128xf32> to vector<128x128xf32>
    %cst_29 = arith.constant dense<0.000000e+00> : vector<288x128xf32>
    %35 = tpu.matmul %32, %34, %cst_29 {dimension_numbers = #tpu.dot_dimension_numbers<[1], [0], [0], [1], [0, 0, 1, 1], [], []>} : vector<288x128xf32>, vector<128x128xf32>, vector<288x128xf32> -> vector<288x128xf32>
    %36 = arith.addf %30, %35 : vector<288x128xf32>
    %c0_30 = arith.constant 0 : index
    %c53 = arith.constant 53 : index
    %c0_31 = arith.constant 0 : index
    %37 = vector.load %arg2[%c0_30, %c53, %c0_31] : memref<1x360x128xf32, #tpu.memory_space<vmem>>, vector<1x288x128xf32>
    %38 = vector.shape_cast %37 : vector<1x288x128xf32> to vector<288x128xf32>
    %c6 = arith.constant 6 : index
    %c0_32 = arith.constant 0 : index
    %c0_33 = arith.constant 0 : index
    %39 = vector.load %arg3[%c6, %c0_32, %c0_33] : memref<9x128x128xf32, #tpu.memory_space<vmem>>, vector<1x128x128xf32>
    %40 = vector.shape_cast %39 : vector<1x128x128xf32> to vector<128x128xf32>
    %cst_34 = arith.constant dense<0.000000e+00> : vector<288x128xf32>
    %41 = tpu.matmul %38, %40, %cst_34 {dimension_numbers = #tpu.dot_dimension_numbers<[1], [0], [0], [1], [0, 0, 1, 1], [], []>} : vector<288x128xf32>, vector<128x128xf32>, vector<288x128xf32> -> vector<288x128xf32>
    %42 = arith.addf %36, %41 : vector<288x128xf32>
    %c0_35 = arith.constant 0 : index
    %c54 = arith.constant 54 : index
    %c0_36 = arith.constant 0 : index
    %43 = vector.load %arg2[%c0_35, %c54, %c0_36] : memref<1x360x128xf32, #tpu.memory_space<vmem>>, vector<1x288x128xf32>
    %44 = vector.shape_cast %43 : vector<1x288x128xf32> to vector<288x128xf32>
    %c7 = arith.constant 7 : index
    %c0_37 = arith.constant 0 : index
    %c0_38 = arith.constant 0 : index
    %45 = vector.load %arg3[%c7, %c0_37, %c0_38] : memref<9x128x128xf32, #tpu.memory_space<vmem>>, vector<1x128x128xf32>
    %46 = vector.shape_cast %45 : vector<1x128x128xf32> to vector<128x128xf32>
    %cst_39 = arith.constant dense<0.000000e+00> : vector<288x128xf32>
    %47 = tpu.matmul %44, %46, %cst_39 {dimension_numbers = #tpu.dot_dimension_numbers<[1], [0], [0], [1], [0, 0, 1, 1], [], []>} : vector<288x128xf32>, vector<128x128xf32>, vector<288x128xf32> -> vector<288x128xf32>
    %48 = arith.addf %42, %47 : vector<288x128xf32>
    %c0_40 = arith.constant 0 : index
    %c55 = arith.constant 55 : index
    %c0_41 = arith.constant 0 : index
    %49 = vector.load %arg2[%c0_40, %c55, %c0_41] : memref<1x360x128xf32, #tpu.memory_space<vmem>>, vector<1x288x128xf32>
    %50 = vector.shape_cast %49 : vector<1x288x128xf32> to vector<288x128xf32>
    %c8 = arith.constant 8 : index
    %c0_42 = arith.constant 0 : index
    %c0_43 = arith.constant 0 : index
    %51 = vector.load %arg3[%c8, %c0_42, %c0_43] : memref<9x128x128xf32, #tpu.memory_space<vmem>>, vector<1x128x128xf32>
    %52 = vector.shape_cast %51 : vector<1x128x128xf32> to vector<128x128xf32>
    %cst_44 = arith.constant dense<0.000000e+00> : vector<288x128xf32>
    %53 = tpu.matmul %50, %52, %cst_44 {dimension_numbers = #tpu.dot_dimension_numbers<[1], [0], [0], [1], [0, 0, 1, 1], [], []>} : vector<288x128xf32>, vector<128x128xf32>, vector<288x128xf32> -> vector<288x128xf32>
    %54 = arith.addf %48, %53 : vector<288x128xf32>
    %c0_45 = arith.constant 0 : index
    %c0_46 = arith.constant 0 : index
    %55 = vector.load %arg4[%c0_45, %c0_46] : memref<1x128xf32, #tpu.memory_space<vmem>>, vector<1x128xf32>
    %56 = vector.broadcast %55 : vector<1x128xf32> to vector<288x128xf32>
    %57 = arith.mulf %54, %56 : vector<288x128xf32>
    %c0_47 = arith.constant 0 : index
    %c0_48 = arith.constant 0 : index
    %58 = vector.load %arg5[%c0_47, %c0_48] : memref<1x128xf32, #tpu.memory_space<vmem>>, vector<1x128xf32>
    %59 = vector.broadcast %58 : vector<1x128xf32> to vector<288x128xf32>
    %60 = arith.addf %57, %59 : vector<288x128xf32>
    %c0_49 = arith.constant 0 : index
    %c0_50 = arith.constant 0 : index
    %c0_51 = arith.constant 0 : index
    %61 = vector.load %arg6[%c0_49, %c0_50, %c0_51] : memref<1x288x128xf32, #tpu.memory_space<vmem>>, vector<1x288x128xf32>
    %62 = vector.shape_cast %61 : vector<1x288x128xf32> to vector<288x128xf32>
    %63 = arith.addf %60, %62 : vector<288x128xf32>
    %cst_52 = arith.constant 0.000000e+00 : f32
    %64 = vector.broadcast %cst_52 : f32 to vector<288x128xf32>
    %65 = arith.cmpf ogt, %63, %64 : vector<288x128xf32>
    %cst_53 = arith.constant 2.000000e-02 : f32
    %66 = vector.broadcast %cst_53 : f32 to vector<288x128xf32>
    %67 = arith.mulf %66, %63 : vector<288x128xf32>
    %68 = arith.select %65, %63, %67 : vector<288x128xi1>, vector<288x128xf32>
    %69 = tpu.iota {dimensions = array<i32: 0>} : vector<288x128xi32>
    %c18_i32 = arith.constant 18 : i32
    %c0_i32 = arith.constant 0 : i32
    %70 = arith.cmpi eq, %c18_i32, %c0_i32 : i32
    %c1_i32 = arith.constant 1 : i32
    %71 = arith.select %70, %c1_i32, %c18_i32 : i32
    %72 = vector.broadcast %71 : i32 to vector<288x128xi32>
    %73 = arith.remsi %69, %72 : vector<288x128xi32>
    %c0_i32_54 = arith.constant 0 : i32
    %74 = vector.broadcast %c0_i32_54 : i32 to vector<288x128xi32>
    %75 = arith.cmpi ne, %73, %74 : vector<288x128xi32>
    %c0_i32_55 = arith.constant 0 : i32
    %76 = vector.broadcast %c0_i32_55 : i32 to vector<288x128xi32>
    %77 = arith.cmpi slt, %73, %76 : vector<288x128xi32>
    %c0_i32_56 = arith.constant 0 : i32
    %78 = arith.cmpi slt, %71, %c0_i32_56 : i32
    %79 = vector.broadcast %78 : i1 to vector<288x128xi1>
    %80 = vector.broadcast %79 : vector<288x128xi1> to vector<288x128xi1>
    %81 = arith.xori %77, %80 : vector<288x128xi1>
    %82 = arith.andi %81, %75 : vector<288x128xi1>
    %83 = vector.broadcast %71 : i32 to vector<288x128xi32>
    %84 = arith.addi %73, %83 : vector<288x128xi32>
    %85 = arith.select %82, %84, %73 : vector<288x128xi1>, vector<288x128xi32>
    %c1_i32_57 = arith.constant 1 : i32
    %86 = vector.broadcast %c1_i32_57 : i32 to vector<288x128xi32>
    %87 = arith.cmpi sge, %85, %86 : vector<288x128xi32>
    %c16_i32 = arith.constant 16 : i32
    %88 = vector.broadcast %c16_i32 : i32 to vector<288x128xi32>
    %89 = arith.cmpi sle, %85, %88 : vector<288x128xi32>
    %90 = arith.andi %87, %89 : vector<288x128xi1>
    %cst_58 = arith.constant 0.000000e+00 : f32
    %91 = vector.broadcast %cst_58 : f32 to vector<288x128xf32>
    %92 = arith.select %90, %68, %91 : vector<288x128xi1>, vector<288x128xf32>
    %c0_59 = arith.constant 0 : index
    %c0_60 = arith.constant 0 : index
    %c0_61 = arith.constant 0 : index
    %93 = vector.load %arg7[%c0_59, %c0_60, %c0_61] : memref<1x288x128xf32, #tpu.memory_space<vmem>>, vector<1x288x128xf32>
    %94 = vector.shape_cast %93 : vector<1x288x128xf32> to vector<288x128xf32>
    %95 = vector.shape_cast %92 : vector<288x128xf32> to vector<1x288x128xf32>
    tpu.vector_store %arg7[%c0_59, %c0_60, %c0_61], %95 {strides = array<i32>} : memref<1x288x128xf32, #tpu.memory_space<vmem>>, vector<1x288x128xf32>,
    return
  }
  func.func @transform_0(%arg0: i32, %arg1: i32) -> (i32, i32, i32) {
    %c0_i32 = arith.constant 0 : i32
    %c0_i32_0 = arith.constant 0 : i32
    %c0_i32_1 = arith.constant 0 : i32
    return %arg0, %c0_i32, %c0_i32_0 : i32, i32, i32
  }
  func.func @transform_1(%arg0: i32, %arg1: i32) -> (i32, i32, i32) {
    %c0_i32 = arith.constant 0 : i32
    %c0_i32_0 = arith.constant 0 : i32
    %c0_i32_1 = arith.constant 0 : i32
    return %c0_i32, %c0_i32_0, %arg1 : i32, i32, i32
  }
  func.func @transform_2(%arg0: i32, %arg1: i32) -> (i32, i32) {
    %c0_i32 = arith.constant 0 : i32
    %c0_i32_0 = arith.constant 0 : i32
    return %c0_i32, %arg1 : i32, i32
  }
  func.func @transform_3(%arg0: i32, %arg1: i32) -> (i32, i32) {
    %c0_i32 = arith.constant 0 : i32
    %c0_i32_0 = arith.constant 0 : i32
    return %c0_i32, %arg1 : i32, i32
  }
  func.func @transform_4(%arg0: i32, %arg1: i32) -> (i32, i32, i32) {
    %c0_i32 = arith.constant 0 : i32
    %c0_i32_0 = arith.constant 0 : i32
    return %arg0, %c0_i32, %arg1 : i32, i32, i32
  }
  func.func @transform_5(%arg0: i32, %arg1: i32) -> (i32, i32, i32) {
    %c0_i32 = arith.constant 0 : i32
    %c0_i32_0 = arith.constant 0 : i32
    return %arg0, %c0_i32, %arg1 : i32, i32, i32
  }
}

</mosaic_0001>

<bundles_post_ra>
// kernel: a_call__.2
= control target key start
LH: loop header
LB: loop body
LE: loop exit
PB: predicated region body
PF: predicated region fallthrough
CT: control target
= control target key end

     0   :  { %s5865_s15 = smov 0   ;;  %s5867_s16 = smov 0   ;;  %s8494_s0 = inlined_call_operand.vmem [shape: f32[2,360,128], index: 0, kind: input, shape index: {}]   ;;  %s8495_s1 = inlined_call_operand.vmem [shape: f32[9,128,128], index: 1, kind: input, shape index: {}]   ;;  %s8496_s2 = inlined_call_operand.vmem [shape: f32[1,128], index: 2, kind: input, shape index: {}]   ;;  %s8497_s3 = inlined_call_operand.vmem [shape: f32[1,128], index: 3, kind: input, shape index: {}]   ;;  %s8498_s4 = inlined_call_operand.vmem [shape: f32[2,288,128], index: 4, kind: output, shape index: {}]  }
   0x1   :  { %s5869_s17 = smov 0  }
   0x2 LB: > { %s26_s18 = sadd.s32 1, %s5834_s16  ;;  %p4307_p0 = scmp.ge.s32.totalorder %s5838_s17, 1  ;;  %s5838_s17 = sphi %s5869_s17, %s14_s17   ;;  %s5834_s16 = sphi %s5867_s16, %s8714_s16   ;;  %s5830_s15 = sphi %s5865_s15, %s8713_s15  }
   0x3   : > { %p28_p1 = scmp.ge.s32.totalorder %s26_s18, 2  ;;  %p201_p2 = scmp.lt.s32.totalorder %s5838_s17, 3 }
   0x5   : > { %s8716_s18 = smov (%p28_p1, %s26_s18), 0  ;;  %p202_p3 = pnand %p4307_p0, %p201_p2 }
   0x7   : > { %205 = sbr.rel (%p202_p3) target bundleno = 614 (0x266), region = 36 }
   0xc   : > { %v4325_v0 = vld [vmem:[%s8495_s1 + $0xf8] sm:$0xff]  ;;  %v4324_v1 = vld [vmem:[%s8495_s1 + $0xf0] sm:$0xff]  ;;  %v4323_v2 = vld [vmem:[%s8495_s1 + $0xe8] sm:$0xff]  ;;  %p240_p4 = scmp.lt.s32.totalorder %s5830_s15, 1 }
   0xd   : > { %5684 = vmatprep.subr.mxu1 %v4325_v0  ;;  %4910 = vmatprep.subr.mxu0 %v4325_v0  ;;  %v4322_v3 = vld [vmem:[%s8495_s1 + $0xe0] sm:$0xff]  ;;  %v4321_v4 = vld [vmem:[%s8495_s1 + $0xd8] sm:$0xff]  ;;  %v4320_v5 = vld [vmem:[%s8495_s1 + $0xd0] sm:$0xff] }
   0xe   : > { %5700 = vmatpush3.msra.mxu1 %v4325_v0  ;;  %4911 = vmatpush3.msra.mxu0 %v4325_v0  ;;  %v4319_v6 = vld [vmem:[%s8495_s1 + $0xc8] sm:$0xff]  ;;  %v4318_v7 = vld [vmem:[%s8495_s1 + $0xc0] sm:$0xff]  ;;  %v4317_v8 = vld [vmem:[%s8495_s1 + $0xb8] sm:$0xff]  ;;  %s8718_s15 = smov (!%p240_p4, %s5830_s15), 1 }
   0xf   : > { %5685 = vmatprep.subr.mxu1 %v4324_v1  ;;  %4912 = vmatprep.subr.mxu0 %v4324_v1  ;;  %v4316_v9 = vld [vmem:[%s8495_s1 + $0xb0] sm:$0xff]  ;;  %v4315_v10 = vld [vmem:[%s8495_s1 + $0xa8] sm:$0xff]  ;;  %v4314_v11 = vld [vmem:[%s8495_s1 + $0xa0] sm:$0xff]  ;;  %s5716_s23 = smul.u32 360, %s8718_s15 }
  0x10   : > { %5701 = vmatpush3.msra.mxu1 %v4324_v1  ;;  %4913 = vmatpush3.msra.mxu0 %v4324_v1  ;;  %v4313_v12 = vld [vmem:[%s8495_s1 + $0x98] sm:$0xff]  ;;  %v4312_v13 = vld [vmem:[%s8495_s1 + $0x90] sm:$0xff]  ;;  %v4311_v14 = vld [vmem:[%s8495_s1 + $0x88] sm:$0xff]  ;;  %s5717_s14 = smul.u32 288, %s8718_s15 }
  0x11   : > { %5686 = vmatprep.subr.mxu1 %v4323_v2  ;;  %4914 = vmatprep.subr.mxu0 %v4323_v2  ;;  %s5938_s30 = scalar_lea.vmem %s8494_s0, %s5716_s23  ;;  %v4310_v15 = vld [vmem:[%s8495_s1 + $0x80] sm:$0xff]  ;;  %v314_v19 = vld [vmem:[%s8495_s1 + $0x78] sm:$0xff]  ;;  %v313_v23 = vld [vmem:[%s8495_s1 + $0x70] sm:$0xff] }
  0x12   : > { %5702 = vmatpush3.msra.mxu1 %v4323_v2  ;;  %4915 = vmatpush3.msra.mxu0 %v4323_v2  ;;  %v333_v16 = vld [vmem:[%s5938_s30 + $0xa2] sm:$0xff]  ;;  %v315_v17 = vld [vmem:[%s5938_s30 + $0x12] sm:$0xff]  ;;  %v334_v18 = vld [vmem:[%s5938_s30 + $0xaa] sm:$0xff]  ;;  %s7893_s20 = scalar_lea.vmem %s8498_s4, %s5717_s14 }
  0x13   : > { %5687 = vmatprep.subr.mxu1 %v4322_v3  ;;  %4916 = vmatprep.subr.mxu0 %v4322_v3  ;;  %v316_v20 = vld [vmem:[%s5938_s30 + $0x1a] sm:$0xff]  ;;  %v335_v22 = vld [vmem:[%s5938_s30 + $0xb2] sm:$0xff]  ;;  %v317_v24 = vld [vmem:[%s5938_s30 + $0x22] sm:$0xff] }
  0x14   : > { %5703 = vmatpush3.msra.mxu1 %v4322_v3  ;;  %4917 = vmatpush3.msra.mxu0 %v4322_v3  ;;  %v4341_v21 = vld [vmem:[%s8495_s1 + $0x178] sm:$0xff]  ;;  %v318_v26 = vld [vmem:[%s5938_s30 + $0x2a] sm:$0xff]  ;;  %v337_v29 = vld [vmem:[%s5938_s30 + $0xc2] sm:$0xff] }
  0x15   : > { %5688 = vmatprep.subr.mxu1 %v4321_v4  ;;  %4918 = vmatprep.subr.mxu0 %v4321_v4  ;;  %v336_v25 = vld [vmem:[%s5938_s30 + $0xba] sm:$0xff]  ;;  %v312_v27 = vld [vmem:[%s8495_s1 + $0x68] sm:$0xff]  ;;  %v4340_v28 = vld [vmem:[%s8495_s1 + $0x170] sm:$0xff] }
  0x16   : > { %5704 = vmatpush3.msra.mxu1 %v4321_v4  ;;  %4919 = vmatpush3.msra.mxu0 %v4321_v4  ;;  %v311_v30 = vld [vmem:[%s8495_s1 + $0x60] sm:$0xff]  ;;  %v4339_v31 = vld [vmem:[%s8495_s1 + $0x168] sm:$0xff]  ;;  %v319_v32 = vld [vmem:[%s5938_s30 + $0x32] sm:$0xff] }
  0x17   : > { %5689 = vmatprep.subr.mxu1 %v4320_v5  ;;  %4920 = vmatprep.subr.mxu0 %v4320_v5  ;;  %v338_v33 = vld [vmem:[%s5938_s30 + $0xca] sm:$0xff]  ;;  %v320_v34 = vld [vmem:[%s5938_s30 + $0x3a] sm:$0xff]  ;;  %v339_v37 = vld [vmem:[%s5938_s30 + $0xd2] sm:$0xff] }
  0x18   : > { %5705 = vmatpush3.msra.mxu1 %v4320_v5  ;;  %4921 = vmatpush3.msra.mxu0 %v4320_v5  ;;  %v310_v35 = vld [vmem:[%s8495_s1 + $0x58] sm:$0xff]  ;;  %v4338_v36 = vld [vmem:[%s8495_s1 + $0x160] sm:$0xff]  ;;  %v309_v41 = vld [vmem:[%s8495_s1 + $0x50] sm:$0xff] }
  0x19   : > { %5690 = vmatprep.subr.mxu1 %v4319_v6  ;;  %4922 = vmatprep.subr.mxu0 %v4319_v6  ;;  %v4337_v38 = vld [vmem:[%s8495_s1 + $0x158] sm:$0xff]  ;;  %v321_v39 = vld [vmem:[%s5938_s30 + $0x42] sm:$0xff]  ;;  %v322_v42 = vld [vmem:[%s5938_s30 + $0x4a] sm:$0xff] }
  0x1a   : > { %5706 = vmatpush3.msra.mxu1 %v4319_v6  ;;  %4923 = vmatpush3.msra.mxu0 %v4319_v6  ;;  %v340_v40 = vld [vmem:[%s5938_s30 + $0xda] sm:$0xff]  ;;  %v308_v43 = vld [vmem:[%s8495_s1 + $0x48] sm:$0xff]  ;;  %v4336_v44 = vld [vmem:[%s8495_s1 + $0x150] sm:$0xff] }
  0x1b   : > { %5691 = vmatprep.subr.mxu1 %v4318_v7  ;;  %4924 = vmatprep.subr.mxu0 %v4318_v7  ;;  %v341_v45 = vld [vmem:[%s5938_s30 + $0xe2] sm:$0xff]  ;;  %v323_v46 = vld [vmem:[%s5938_s30 + $0x52] sm:$0xff]  ;;  %v342_v47 = vld [vmem:[%s5938_s30 + $0xea] sm:$0xff] }
  0x1c   : > { %5707 = vmatpush3.msra.mxu1 %v4318_v7  ;;  %4925 = vmatpush3.msra.mxu0 %v4318_v7  ;;  %v307_v48 = vld [vmem:[%s8495_s1 + $0x40] sm:$0xff]  ;;  %v4335_v49 = vld [vmem:[%s8495_s1 + $0x148] sm:$0xff]  ;;  %v306_v51 = vld [vmem:[%s8495_s1 + $0x38] sm:$0xff] }
  0x1d   : > { %5692 = vmatprep.subr.mxu1 %v4317_v8  ;;  %4926 = vmatprep.subr.mxu0 %v4317_v8  ;;  %v324_v50 = vld [vmem:[%s5938_s30 + $0x5a] sm:$0xff]  ;;  %v343_v53 = vld [vmem:[%s5938_s30 + $0xf2] sm:$0xff]  ;;  %v325_v54 = vld [vmem:[%s5938_s30 + $0x62] sm:$0xff] }
  0x1e   : > { %5708 = vmatpush3.msra.mxu1 %v4317_v8  ;;  %4927 = vmatpush3.msra.mxu0 %v4317_v8  ;;  %v4334_v52 = vld [vmem:[%s8495_s1 + $0x140] sm:$0xff]  ;;  %v4333_v56 = vld [vmem:[%s8495_s1 + $0x138] sm:$0xff]  ;;  %v326_v57 = vld [vmem:[%s5938_s30 + $0x6a] sm:$0xff] }
  0x1f   : > { %5693 = vmatprep.subr.mxu1 %v4316_v9  ;;  %4928 = vmatprep.subr.mxu0 %v4316_v9  ;;  %v344_v55 = vld [vmem:[%s5938_s30 + $0xfa] sm:$0xff]  ;;  %v305_v58 = vld [vmem:[%s8495_s1 + $0x30] sm:$0xff]  ;;  %v345_v59 = vld [vmem:[%s5938_s30 + $0x102] sm:$0xff] }
  0x20   : > { %5709 = vmatpush3.msra.mxu1 %v4316_v9  ;;  %4929 = vmatpush3.msra.mxu0 %v4316_v9  ;;  %v304_v60 = vld [vmem:[%s8495_s1 + $0x28] sm:$0xff]  ;;  %v4332_v61 = vld [vmem:[%s8495_s1 + $0x130] sm:$0xff]  ;;  %v328_v0 = vld [vmem:[%s5938_s30 + $0x7a] sm:$0xff] }
  0x21   : > { %5694 = vmatprep.subr.mxu1 %v4315_v10  ;;  %4930 = vmatprep.subr.mxu0 %v4315_v10  ;;  %v327_v62 = vld [vmem:[%s5938_s30 + $0x72] sm:$0xff]  ;;  %v346_v63 = vld [vmem:[%s5938_s30 + $0x10a] sm:$0xff]  ;;  %v303_v1 = vld [vmem:[%s8495_s1 + $0x20] sm:$0xff] }
  0x22   : > { %5710 = vmatpush3.msra.mxu1 %v4315_v10  ;;  %4931 = vmatpush3.msra.mxu0 %v4315_v10  ;;  %v4331_v2 = vld [vmem:[%s8495_s1 + $0x128] sm:$0xff]  ;;  %v347_v3 = vld [vmem:[%s5938_s30 + $0x112] sm:$0xff]  ;;  %v4330_v5 = vld [vmem:[%s8495_s1 + $0x120] sm:$0xff] }
  0x23   : > { %5695 = vmatprep.subr.mxu1 %v4314_v11  ;;  %4932 = vmatprep.subr.mxu0 %v4314_v11  ;;  %v302_v4 = vld [vmem:[%s8495_s1 + $0x18] sm:$0xff]  ;;  %v329_v6 = vld [vmem:[%s5938_s30 + $0x82] sm:$0xff]  ;;  %v330_v8 = vld [vmem:[%s5938_s30 + $0x8a] sm:$0xff] }
  0x24   : > { %5711 = vmatpush3.msra.mxu1 %v4314_v11  ;;  %4933 = vmatpush3.msra.mxu0 %v4314_v11  ;;  %v348_v7 = vld [vmem:[%s5938_s30 + $0x11a] sm:$0xff]  ;;  %v301_v10 = vld [vmem:[%s8495_s1 + $0x10] sm:$0xff]  ;;  %v349_v11 = vld [vmem:[%s5938_s30 + $0x122] sm:$0xff] }
  0x25   : > { %5696 = vmatprep.subr.mxu1 %v4313_v12  ;;  %4934 = vmatprep.subr.mxu0 %v4313_v12  ;;  %v4329_v9 = vld [vmem:[%s8495_s1 + $0x118] sm:$0xff] }
  0x26   : > { %5712 = vmatpush3.msra.mxu1 %v4313_v12  ;;  %4935 = vmatpush3.msra.mxu0 %v4313_v12  ;;  %v4328_v12 = vld [vmem:[%s8495_s1 + $0x110] sm:$0xff] }
  0x27   : > { %5697 = vmatprep.subr.mxu1 %v4312_v13  ;;  %4936 = vmatprep.subr.mxu0 %v4312_v13 }
  0x28   : > { %5713 = vmatpush3.msra.mxu1 %v4312_v13  ;;  %4937 = vmatpush3.msra.mxu0 %v4312_v13  ;;  %v331_v13 = vld [vmem:[%s5938_s30 + $0x92] sm:$0xff] }
  0x29   : > { %5698 = vmatprep.subr.mxu1 %v4311_v14  ;;  %4938 = vmatprep.subr.mxu0 %v4311_v14 }
  0x2a   : > { %5714 = vmatpush3.msra.mxu1 %v4311_v14  ;;  %4939 = vmatpush3.msra.mxu0 %v4311_v14  ;;  %v350_v14 = vld [vmem:[%s5938_s30 + $0x12a] sm:$0xff] }
  0x2b   : > { %5699 = vmatprep.subr.mxu1 %v4310_v15  ;;  %4940 = vmatprep.subr.mxu0 %v4310_v15 }
  0x2c   : > { %5715 = vmatpush3.msra.mxu1 %v4310_v15  ;;  %4969 = vmatprep.mubr.f32.mxu1 %v333_v16  ;;  %v332_v16 = vld [vmem:[%s5938_s30 + $0x9a] sm:$0xff] }
  0x2d   : > { %4941 = vmatpush3.msra.mxu0 %v4310_v15  ;;  %4942 = vmatprep.mubr.f32.mxu0 %v315_v17  ;;  %v300_v15 = vld [vmem:[%s8495_s1 + $0x8] sm:$0xff] }
  0x2e   : > { %4970 = vmatmul.mubr.f32.vlgmr.msra.gmra.mxu1 %v334_v18  ;;  %4996 = vmatprep.subr.mxu1 %v314_v19  ;;  %v4327_v17 = vld [vmem:[%s8495_s1 + $0x108] sm:$0xff]  ;;  %v299_v18 = vld [vmem:[%s8495_s1] sm:$0xff] }
  0x2f   : > { %4943 = vmatmul.mubr.f32.vlgmr.msra.gmra.mxu0 %v316_v20  ;;  %4997 = vmatpush3.msra.mxu1 %v314_v19  ;;  %v263_v19 = vld [vmem:[%s5938_s30 + $0x11] sm:$0xff]  ;;  %v4326_v20 = vld [vmem:[%s8495_s1 + $0x100] sm:$0xff] }
  0x30   : > { %5082 = vmatprep.subr.mxu0 %v4341_v21  ;;  %4972 = vmatprep.mubr.f32.mxu1 %v335_v22  ;;  %v858_v22 = vld [vmem:[%s5938_s30 + $0x13] sm:$0xff] }
  0x31   : > { %4998 = vmatprep.subr.mxu1 %v313_v23  ;;  %5083 = vmatpush3.msra.mxu0 %v4341_v21  ;;  %v264_v21 = vld [vmem:[%s5938_s30 + $0x19] sm:$0xff] }
  0x32   : > { %4945 = vmatprep.mubr.f32.mxu0 %v317_v24  ;;  %4973 = vmatmul.mubr.f32.gmra.mxu1 %v336_v25  ;;  %v859_v24 = vld [vmem:[%s5938_s30 + $0x1b] sm:$0xff] }
  0x33   : > { %4999 = vmatpush3.msra.mxu1 %v313_v23  ;;  %4946 = vmatmul.mubr.f32.gmra.mxu0 %v318_v26  ;;  %v4357_v23 = vld [vmem:[%s8495_s1 + $0x1f8] sm:$0xff]  ;;  %v265_v26 = vld [vmem:[%s5938_s30 + $0x21] sm:$0xff] }
  0x34   : > { %5000 = vmatprep.subr.mxu1 %v312_v27  ;;  %5084 = vmatprep.subr.mxu0 %v4340_v28  ;;  %v4373_v25 = vld [vmem:[%s8495_s1 + $0x278] sm:$0xff] }
  0x35   : > { %5001 = vmatpush3.msra.mxu1 %v312_v27  ;;  %5085 = vmatpush3.msra.mxu0 %v4340_v28  ;;  %v266_v27 = vld [vmem:[%s5938_s30 + $0x29] sm:$0xff] }
  0x36   : > { %4975 = vmatprep.mubr.f32.mxu1 %v337_v29  ;;  %5002 = vmatprep.subr.mxu1 %v311_v30  ;;  %v6088_v28 = vld [vmem:[%s5938_s30 + $0x23] sm:$0xff]  ;;  %v4356_v29 = vld [vmem:[%s8495_s1 + $0x1f0] sm:$0xff] }
  0x37   : > { %5086 = vmatprep.subr.mxu0 %v4339_v31  ;;  %4948 = vmatprep.mubr.f32.mxu0 %v319_v32  ;;  %v4372_v32 = vld [vmem:[%s8495_s1 + $0x270] sm:$0xff] }
  0x38   : > { %4976 = vmatmul.mubr.f32.gmra.mxu1 %v338_v33  ;;  %5087 = vmatpush3.msra.mxu0 %v4339_v31  ;;  %v267_v31 = vld [vmem:[%s5938_s30 + $0x31] sm:$0xff]  ;;  %v268_v33 = vld [vmem:[%s5938_s30 + $0x39] sm:$0xff] }
  0x39   : > { %5003 = vmatpush3.msra.mxu1 %v311_v30  ;;  %4949 = vmatmul.mubr.f32.gmra.mxu0 %v320_v34  ;;  %v6094_v30 = vld [vmem:[%s5938_s30 + $0x2b] sm:$0xff]  ;;  %v6103_v34 = vld [vmem:[%s5938_s30 + $0x33] sm:$0xff] }
  0x3a   : > { %5004 = vmatprep.subr.mxu1 %v310_v35  ;;  %5088 = vmatprep.subr.mxu0 %v4338_v36 }
  0x3b   : > { %5005 = vmatpush3.msra.mxu1 %v310_v35  ;;  %5089 = vmatpush3.msra.mxu0 %v4338_v36  ;;  %v4355_v35 = vld [vmem:[%s8495_s1 + $0x1e8] sm:$0xff]  ;;  %v6110_v36 = vld [vmem:[%s5938_s30 + $0x3b] sm:$0xff] }
  0x3c   : > { %4978 = vmatprep.mubr.f32.mxu1 %v339_v37  ;;  %5090 = vmatprep.subr.mxu0 %v4337_v38  ;;  %v269_v37 = vld [vmem:[%s5938_s30 + $0x41] sm:$0xff] }
  0x3d   : > { %4951 = vmatprep.mubr.f32.mxu0 %v321_v39  ;;  %4979 = vmatmul.mubr.f32.gmra.mxu1 %v340_v40  ;;  %v270_v39 = vld [vmem:[%s5938_s30 + $0x49] sm:$0xff] }
  0x3e   : > { %5006 = vmatprep.subr.mxu1 %v309_v41  ;;  %5091 = vmatpush3.msra.mxu0 %v4337_v38  ;;  %v4371_v38 = vld [vmem:[%s8495_s1 + $0x268] sm:$0xff] }
  0x3f   : > { %4952 = vmatmul.mubr.f32.gmra.mxu0 %v322_v42  ;;  %5007 = vmatpush3.msra.mxu1 %v309_v41  ;;  %v6119_v40 = vld [vmem:[%s5938_s30 + $0x43] sm:$0xff]  ;;  %v6126_v42 = vld [vmem:[%s5938_s30 + $0x4b] sm:$0xff] }
  0x40   : > { %5008 = vmatprep.subr.mxu1 %v308_v43  ;;  %5092 = vmatprep.subr.mxu0 %v4336_v44  ;;  %v4354_v41 = vld [vmem:[%s8495_s1 + $0x1e0] sm:$0xff] }
  0x41   : > { %4981 = vmatprep.mubr.f32.mxu1 %v341_v45  ;;  %5009 = vmatpush3.msra.mxu1 %v308_v43  ;;  %v271_v43 = vld [vmem:[%s5938_s30 + $0x51] sm:$0xff]  ;;  %v272_v45 = vld [vmem:[%s5938_s30 + $0x59] sm:$0xff] }
  0x42   : > { %5093 = vmatpush3.msra.mxu0 %v4336_v44  ;;  %4954 = vmatprep.mubr.f32.mxu0 %v323_v46  ;;  %v6131_v44 = vld [vmem:[%s5938_s30 + $0x53] sm:$0xff]  ;;  %v4370_v46 = vld [vmem:[%s8495_s1 + $0x260] sm:$0xff] }
  0x43   : > { %4982 = vmatmul.mubr.f32.gmra.mxu1 %v342_v47  ;;  %5010 = vmatprep.subr.mxu1 %v307_v48  ;;  %v4353_v47 = vld [vmem:[%s8495_s1 + $0x1d8] sm:$0xff] }
  0x44   : > { %5094 = vmatprep.subr.mxu0 %v4335_v49  ;;  %4955 = vmatmul.mubr.f32.gmra.mxu0 %v324_v50  ;;  %v6147_v50 = vld [vmem:[%s5938_s30 + $0x63] sm:$0xff] }
  0x45   : > { %5011 = vmatpush3.msra.mxu1 %v307_v48  ;;  %5095 = vmatpush3.msra.mxu0 %v4335_v49  ;;  %v6143_v48 = vld [vmem:[%s5938_s30 + $0x5b] sm:$0xff] }
  0x46   : > { %5012 = vmatprep.subr.mxu1 %v306_v51  ;;  %5096 = vmatprep.subr.mxu0 %v4334_v52  ;;  %v273_v49 = vld [vmem:[%s5938_s30 + $0x61] sm:$0xff] }
  0x47   : > { %4984 = vmatprep.mubr.f32.mxu1 %v343_v53  ;;  %5013 = vmatpush3.msra.mxu1 %v306_v51  ;;  %v274_v51 = vld [vmem:[%s5938_s30 + $0x69] sm:$0xff]  ;;  %v275_v53 = vld [vmem:[%s5938_s30 + $0x71] sm:$0xff] }
  0x48   : > { %5097 = vmatpush3.msra.mxu0 %v4334_v52  ;;  %4957 = vmatprep.mubr.f32.mxu0 %v325_v54  ;;  %v4369_v52 = vld [vmem:[%s8495_s1 + $0x258] sm:$0xff]  ;;  %v6157_v54 = vld [vmem:[%s5938_s30 + $0x6b] sm:$0xff] }
  0x49   : > { %4985 = vmatmul.mubr.f32.gmra.mxu1 %v344_v55  ;;  %5098 = vmatprep.subr.mxu0 %v4333_v56  ;;  %v4352_v55 = vld [vmem:[%s8495_s1 + $0x1d0] sm:$0xff] }
  0x4a   : > { %4958 = vmatmul.mubr.f32.gmra.mxu0 %v326_v57  ;;  %5014 = vmatprep.subr.mxu1 %v305_v58  ;;  %v276_v57 = vld [vmem:[%s5938_s30 + $0x79] sm:$0xff] }
  0x4b   : > { %5099 = vmatpush3.msra.mxu0 %v4333_v56  ;;  %5015 = vmatpush3.msra.mxu1 %v305_v58  ;;  %v6163_v56 = vld [vmem:[%s5938_s30 + $0x73] sm:$0xff] }
  0x4c   : > { %4987 = vmatprep.mubr.f32.mxu1 %v345_v59  ;;  %5016 = vmatprep.subr.mxu1 %v304_v60  ;;  %v4368_v58 = vld [vmem:[%s8495_s1 + $0x250] sm:$0xff]  ;;  %v277_v59 = vld [vmem:[%s5938_s30 + $0x81] sm:$0xff] }
  0x4d   : > { %5100 = vmatprep.subr.mxu0 %v4332_v61  ;;  %4960 = vmatprep.mubr.f32.mxu0 %v327_v62  ;;  %v6179_v62 = vld [vmem:[%s5938_s30 + $0x83] sm:$0xff] }
  0x4e   : > { %4988 = vmatmul.mubr.f32.gmra.mxu1 %v346_v63  ;;  %5101 = vmatpush3.msra.mxu0 %v4332_v61  ;;  %v4351_v61 = vld [vmem:[%s8495_s1 + $0x1c8] sm:$0xff] }
  0x4f   : > { %5017 = vmatpush3.msra.mxu1 %v304_v60  ;;  %4961 = vmatmul.mubr.f32.gmra.mxu0 %v328_v0  ;;  %v6173_v60 = vld [vmem:[%s5938_s30 + $0x7b] sm:$0xff]  ;;  %v278_v63 = vld [vmem:[%s5938_s30 + $0x89] sm:$0xff] }
  0x50   : > { %5018 = vmatprep.subr.mxu1 %v303_v1  ;;  %5102 = vmatprep.subr.mxu0 %v4331_v2  ;;  %v4367_v0 = vld [vmem:[%s8495_s1 + $0x248] sm:$0xff] }
  0x51   : > { %5019 = vmatpush3.msra.mxu1 %v303_v1  ;;  %5103 = vmatpush3.msra.mxu0 %v4331_v2  ;;  %v279_v1 = vld [vmem:[%s5938_s30 + $0x91] sm:$0xff] }
  0x52   : > { %4990 = vmatprep.mubr.f32.mxu1 %v347_v3  ;;  %5020 = vmatprep.subr.mxu1 %v302_v4  ;;  %v6189_v2 = vld [vmem:[%s5938_s30 + $0x8b] sm:$0xff]  ;;  %v4350_v3 = vld [vmem:[%s8495_s1 + $0x1c0] sm:$0xff] }
  0x53   : > { %5104 = vmatprep.subr.mxu0 %v4330_v5  ;;  %4963 = vmatprep.mubr.f32.mxu0 %v329_v6  ;;  %v4366_v6 = vld [vmem:[%s8495_s1 + $0x240] sm:$0xff] }
  0x54   : > { %4991 = vmatmul.mubr.f32.gmra.mxu1 %v348_v7  ;;  %5105 = vmatpush3.msra.mxu0 %v4330_v5  ;;  %v280_v5 = vld [vmem:[%s5938_s30 + $0x99] sm:$0xff]  ;;  %v281_v7 = vld [vmem:[%s5938_s30 + $0xa1] sm:$0xff] }
  0x55   : > { %5021 = vmatpush3.msra.mxu1 %v302_v4  ;;  %4964 = vmatmul.mubr.f32.gmra.mxu0 %v330_v8  ;;  %v6195_v4 = vld [vmem:[%s5938_s30 + $0x93] sm:$0xff]  ;;  %v6205_v8 = vld [vmem:[%s5938_s30 + $0x9b] sm:$0xff] }
  0x56   : > { %5106 = vmatprep.subr.mxu0 %v4329_v9  ;;  %5022 = vmatprep.subr.mxu1 %v301_v10 }
  0x57   : > { %5107 = vmatpush3.msra.mxu0 %v4329_v9  ;;  %4993 = vmatprep.mubr.f32.mxu1 %v349_v11  ;;  %v4349_v9 = vld [vmem:[%s8495_s1 + $0x1b8] sm:$0xff]  ;;  %v282_v11 = vld [vmem:[%s5938_s30 + $0xa9] sm:$0xff] }
  0x58   : > { %5023 = vmatpush3.msra.mxu1 %v301_v10  ;;  %5108 = vmatprep.subr.mxu0 %v4328_v12  ;;  %v6211_v10 = vld [vmem:[%s5938_s30 + $0xa3] sm:$0xff] }
  0x59   : > { %4966 = vmatprep.mubr.f32.mxu0 %v331_v13  ;;  %4994 = vmatmul.mubr.f32.gmra.mxu1 %v350_v14  ;;  %v283_v13 = vld [vmem:[%s5938_s30 + $0xb1] sm:$0xff] }
  0x5a   : > { %5024 = vmatprep.subr.mxu1 %v300_v15  ;;  %5109 = vmatpush3.msra.mxu0 %v4328_v12  ;;  %v4365_v12 = vld [vmem:[%s8495_s1 + $0x238] sm:$0xff]  ;;  %v6221_v14 = vld [vmem:[%s5938_s30 + $0xab] sm:$0xff] }
  0x5b   : > { %4967 = vmatmul.mubr.f32.gmra.mxu0 %v332_v16  ;;  %5025 = vmatpush3.msra.mxu1 %v300_v15  ;;  %v4348_v15 = vld [vmem:[%s8495_s1 + $0x1b0] sm:$0xff] }
  0x5c   : > { %5110 = vmatprep.subr.mxu0 %v4327_v17  ;;  %5026 = vmatprep.subr.mxu1 %v299_v18  ;;  %v6227_v16 = vld [vmem:[%s5938_s30 + $0xb3] sm:$0xff] }
  0x5d   : > { %5111 = vmatpush3.msra.mxu0 %v4327_v17  ;;  %5027 = vmatpush3.msra.mxu1 %v299_v18  ;;  %v284_v17 = vld [vmem:[%s5938_s30 + $0xb9] sm:$0xff]  ;;  %v4364_v18 = vld [vmem:[%s8495_s1 + $0x230] sm:$0xff] }
  0x5e   : > { %5028 = vmatprep.mubr.f32.mxu1 %v263_v19  ;;  %5112 = vmatprep.subr.mxu0 %v4326_v20  ;;  %v285_v19 = vld [vmem:[%s5938_s30 + $0xc1] sm:$0xff] }
  0x5f   : > { %5029 = vmatmul.mubr.f32.vlgmr.msra.gmra.mxu1 %v264_v21  ;;  %5113 = vmatpush3.msra.mxu0 %v4326_v20  ;;  %v6237_v20 = vld [vmem:[%s5938_s30 + $0xbb] sm:$0xff]  ;;  %v4347_v21 = vld [vmem:[%s8495_s1 + $0x1a8] sm:$0xff] }
  0x60   : > { %5114 = vmatprep.mubr.f32.mxu0 %v858_v22  ;;  %5168 = vmatprep.subr.mxu1 %v4357_v23  ;;  %v6243_v22 = vld [vmem:[%s5938_s30 + $0xc3] sm:$0xff] }
  0x61   : > { %5115 = vmatmul.mubr.f32.vlgmr.msra.gmra.mxu0 %v859_v24  ;;  %5169 = vmatpush3.msra.mxu1 %v4357_v23  ;;  %v286_v23 = vld [vmem:[%s5938_s30 + $0xc9] sm:$0xff] }
  0x62   : > { %5254 = vmatprep.subr.mxu0 %v4373_v25  ;;  %5031 = vmatprep.mubr.f32.mxu1 %v265_v26  ;;  %v4363_v24 = vld [vmem:[%s8495_s1 + $0x228] sm:$0xff] }
  0x63   : > { %5255 = vmatpush3.msra.mxu0 %v4373_v25  ;;  %5032 = vmatmul.mubr.f32.gmra.mxu1 %v266_v27  ;;  %v287_v25 = vld [vmem:[%s5938_s30 + $0xd1] sm:$0xff]  ;;  %v4346_v27 = vld [vmem:[%s8495_s1 + $0x1a0] sm:$0xff] }
  0x64   : > { %5117 = vmatprep.mubr.f32.mxu0 %v6088_v28  ;;  %5170 = vmatprep.subr.mxu1 %v4356_v29  ;;  %v6253_v26 = vld [vmem:[%s5938_s30 + $0xcb] sm:$0xff] }
  0x65   : > { %5118 = vmatmul.mubr.f32.gmra.mxu0 %v6094_v30  ;;  %5171 = vmatpush3.msra.mxu1 %v4356_v29  ;;  %v6259_v29 = vld [vmem:[%s5938_s30 + $0xd3] sm:$0xff] }
  0x66   : > { %5034 = vmatprep.mubr.f32.mxu1 %v267_v31  ;;  %5256 = vmatprep.subr.mxu0 %v4372_v32  ;;  %v288_v31 = vld [vmem:[%s5938_s30 + $0xd9] sm:$0xff] }
  0x67   : > { %5035 = vmatmul.mubr.f32.gmra.mxu1 %v268_v33  ;;  %5120 = vmatprep.mubr.f32.mxu0 %v6103_v34  ;;  %v289_v33 = vld [vmem:[%s5938_s30 + $0xe1] sm:$0xff] }
  0x68   : > { %5257 = vmatpush3.msra.mxu0 %v4372_v32  ;;  %5172 = vmatprep.subr.mxu1 %v4355_v35  ;;  %v4362_v32 = vld [vmem:[%s8495_s1 + $0x220] sm:$0xff] }
  0x69   : > { %5121 = vmatmul.mubr.f32.gmra.mxu0 %v6110_v36  ;;  %5173 = vmatpush3.msra.mxu1 %v4355_v35  ;;  %v6269_v35 = vld [vmem:[%s5938_s30 + $0xdb] sm:$0xff] }
  0x6a   : > { %5037 = vmatprep.mubr.f32.mxu1 %v269_v37  ;;  %5258 = vmatprep.subr.mxu0 %v4371_v38  ;;  %v4345_v37 = vld [vmem:[%s8495_s1 + $0x198] sm:$0xff] }
  0x6b   : > { %5038 = vmatmul.mubr.f32.gmra.mxu1 %v270_v39  ;;  %5123 = vmatprep.mubr.f32.mxu0 %v6119_v40  ;;  %v290_v39 = vld [vmem:[%s5938_s30 + $0xe9] sm:$0xff] }
  0x6c   : > { %5259 = vmatpush3.msra.mxu0 %v4371_v38  ;;  %5174 = vmatprep.subr.mxu1 %v4354_v41  ;;  %v6275_v38 = vld [vmem:[%s5938_s30 + $0xe3] sm:$0xff] }
  0x6d   : > { %5124 = vmatmul.mubr.f32.gmra.mxu0 %v6126_v42  ;;  %5040 = vmatprep.mubr.f32.mxu1 %v271_v43  ;;  %v291_v43 = vld [vmem:[%s5938_s30 + $0xf1] sm:$0xff] }
  0x6e   : > { %5175 = vmatpush3.msra.mxu1 %v4354_v41  ;;  %5126 = vmatprep.mubr.f32.mxu0 %v6131_v44  ;;  %v4361_v41 = vld [vmem:[%s8495_s1 + $0x218] sm:$0xff] }
  0x6f   : > { %5041 = vmatmul.mubr.f32.gmra.mxu1 %v272_v45  ;;  %5260 = vmatprep.subr.mxu0 %v4370_v46  ;;  %v6285_v45 = vld [vmem:[%s5938_s30 + $0xeb] sm:$0xff] }
  0x70   : > { %5261 = vmatpush3.msra.mxu0 %v4370_v46  ;;  %5176 = vmatprep.subr.mxu1 %v4353_v47  ;;  %v4344_v46 = vld [vmem:[%s8495_s1 + $0x190] sm:$0xff] }
  0x71   : > { %5127 = vmatmul.mubr.f32.gmra.mxu0 %v6143_v48  ;;  %5043 = vmatprep.mubr.f32.mxu1 %v273_v49  ;;  %v292_v49 = vld [vmem:[%s5938_s30 + $0xf9] sm:$0xff] }
  0x72   : > { %5177 = vmatpush3.msra.mxu1 %v4353_v47  ;;  %5129 = vmatprep.mubr.f32.mxu0 %v6147_v50  ;;  %v6291_v47 = vld [vmem:[%s5938_s30 + $0xf3] sm:$0xff] }
  0x73   : > { %5044 = vmatmul.mubr.f32.gmra.mxu1 %v274_v51  ;;  %5262 = vmatprep.subr.mxu0 %v4369_v52  ;;  %v4360_v51 = vld [vmem:[%s8495_s1 + $0x210] sm:$0xff] }
  0x74   : > { %5263 = vmatpush3.msra.mxu0 %v4369_v52  ;;  %5046 = vmatprep.mubr.f32.mxu1 %v275_v53  ;;  %v293_v52 = vld [vmem:[%s5938_s30 + $0x101] sm:$0xff] }
  0x75   : > { %5130 = vmatmul.mubr.f32.gmra.mxu0 %v6157_v54  ;;  %5178 = vmatprep.subr.mxu1 %v4352_v55  ;;  %v6301_v53 = vld [vmem:[%s5938_s30 + $0xfb] sm:$0xff] }
  0x76   : > { %5132 = vmatprep.mubr.f32.mxu0 %v6163_v56  ;;  %5179 = vmatpush3.msra.mxu1 %v4352_v55  ;;  %v4343_v55 = vld [vmem:[%s8495_s1 + $0x188] sm:$0xff] }
  0x77   : > { %5047 = vmatmul.mubr.f32.gmra.mxu1 %v276_v57  ;;  %5264 = vmatprep.subr.mxu0 %v4368_v58  ;;  %v6307_v57 = vld [vmem:[%s5938_s30 + $0x103] sm:$0xff] }
  0x78   : > { %5265 = vmatpush3.msra.mxu0 %v4368_v58  ;;  %5049 = vmatprep.mubr.f32.mxu1 %v277_v59  ;;  %v294_v58 = vld [vmem:[%s5938_s30 + $0x109] sm:$0xff] }
  0x79   : > { %5133 = vmatmul.mubr.f32.gmra.mxu0 %v6173_v60  ;;  %5180 = vmatprep.subr.mxu1 %v4351_v61  ;;  %v4359_v59 = vld [vmem:[%s8495_s1 + $0x208] sm:$0xff] }
  0x7a   : > { %5135 = vmatprep.mubr.f32.mxu0 %v6179_v62  ;;  %5181 = vmatpush3.msra.mxu1 %v4351_v61  ;;  %v295_v61 = vld [vmem:[%s5938_s30 + $0x111] sm:$0xff] }
  0x7b   : > { %5050 = vmatmul.mubr.f32.gmra.mxu1 %v278_v63  ;;  %5266 = vmatprep.subr.mxu0 %v4367_v0  ;;  %v6317_v63 = vld [vmem:[%s5938_s30 + $0x10b] sm:$0xff] }
  0x7c   : > { %5267 = vmatpush3.msra.mxu0 %v4367_v0  ;;  %5052 = vmatprep.mubr.f32.mxu1 %v279_v1  ;;  %v4342_v0 = vld [vmem:[%s8495_s1 + $0x180] sm:$0xff]  ;;  %v6323_v1 = vld [vmem:[%s5938_s30 + $0x113] sm:$0xff] }
  0x7d   : > { %5136 = vmatmul.mubr.f32.gmra.mxu0 %v6189_v2  ;;  %5182 = vmatprep.subr.mxu1 %v4350_v3 }
  0x7e   : > { %5138 = vmatprep.mubr.f32.mxu0 %v6195_v4  ;;  %5183 = vmatpush3.msra.mxu1 %v4350_v3  ;;  %v296_v3 = vld [vmem:[%s5938_s30 + $0x119] sm:$0xff] }
  0x7f   : > { %5053 = vmatmul.mubr.f32.gmra.mxu1 %v280_v5  ;;  %5268 = vmatprep.subr.mxu0 %v4366_v6  ;;  %v4358_v5 = vld [vmem:[%s8495_s1 + $0x200] sm:$0xff] }
  0x80   : > { %5055 = vmatprep.mubr.f32.mxu1 %v281_v7  ;;  %5269 = vmatpush3.msra.mxu0 %v4366_v6  ;;  %v297_v6 = vld [vmem:[%s5938_s30 + $0x121] sm:$0xff] }
  0x81   : > { %5139 = vmatmul.mubr.f32.gmra.mxu0 %v6205_v8  ;;  %5184 = vmatprep.subr.mxu1 %v4349_v9  ;;  %v6333_v7 = vld [vmem:[%s5938_s30 + $0x11b] sm:$0xff] }
  0x82   : > { %5141 = vmatprep.mubr.f32.mxu0 %v6211_v10  ;;  %5185 = vmatpush3.msra.mxu1 %v4349_v9  ;;  %v4389_v9 = vld [vmem:[%s8495_s1 + $0x2f8] sm:$0xff] }
  0x83   : > { %5056 = vmatmul.mubr.f32.gmra.mxu1 %v282_v11  ;;  %5270 = vmatprep.subr.mxu0 %v4365_v12  ;;  %v6339_v11 = vld [vmem:[%s5938_s30 + $0x123] sm:$0xff] }
  0x84   : > { %5058 = vmatprep.mubr.f32.mxu1 %v283_v13  ;;  %5271 = vmatpush3.msra.mxu0 %v4365_v12  ;;  %v4405_v12 = vld [vmem:[%s8495_s1 + $0x378] sm:$0xff]  ;;  %v298_v13 = vld [vmem:[%s5938_s30 + $0x129] sm:$0xff] }
  0x85   : > { %5142 = vmatmul.mubr.f32.gmra.mxu0 %v6221_v14  ;;  %5186 = vmatprep.subr.mxu1 %v4348_v15 }
  0x86   : > { %5144 = vmatprep.mubr.f32.mxu0 %v6227_v16  ;;  %5187 = vmatpush3.msra.mxu1 %v4348_v15  ;;  %v6348_v15 = vld [vmem:[%s5938_s30 + $0x12b] sm:$0xff] }
  0x87   : > { %5059 = vmatmul.mubr.f32.gmra.mxu1 %v284_v17  ;;  %5272 = vmatprep.subr.mxu0 %v4364_v18  ;;  %v1526_v17 = vld [vmem:[%s5938_s30 + $0x24] sm:$0xff] }
  0x88   : > { %5061 = vmatprep.mubr.f32.mxu1 %v285_v19  ;;  %5273 = vmatpush3.msra.mxu0 %v4364_v18  ;;  %v1527_v18 = vld [vmem:[%s5938_s30 + $0x2c] sm:$0xff] }
  0x89   : > { %5145 = vmatmul.mubr.f32.gmra.mxu0 %v6237_v20  ;;  %5188 = vmatprep.subr.mxu1 %v4347_v21  ;;  %v4388_v19 = vld [vmem:[%s8495_s1 + $0x2f0] sm:$0xff] }
  0x8a   : > { %5147 = vmatprep.mubr.f32.mxu0 %v6243_v22  ;;  %5189 = vmatpush3.msra.mxu1 %v4347_v21  ;;  %v1528_v21 = vld [vmem:[%s5938_s30 + $0x34] sm:$0xff] }
  0x8b   : > { %5062 = vmatmul.mubr.f32.gmra.mxu1 %v286_v23  ;;  %5274 = vmatprep.subr.mxu0 %v4363_v24  ;;  %v4404_v23 = vld [vmem:[%s8495_s1 + $0x370] sm:$0xff] }
  0x8c   : > { %5064 = vmatprep.mubr.f32.mxu1 %v287_v25  ;;  %5275 = vmatpush3.msra.mxu0 %v4363_v24  ;;  %v4387_v24 = vld [vmem:[%s8495_s1 + $0x2e8] sm:$0xff] }
  0x8d   : > { %5148 = vmatmul.mubr.f32.gmra.mxu0 %v6253_v26  ;;  %5190 = vmatprep.subr.mxu1 %v4346_v27  ;;  %v1531_v25 = vld [vmem:[%s5938_s30 + $0x4c] sm:$0xff] }
  0x8e   : > { %5150 = vmatprep.mubr.f32.mxu0 %v6259_v29  ;;  %5191 = vmatpush3.msra.mxu1 %v4346_v27  ;;  %v1532_v27 = vld [vmem:[%s5938_s30 + $0x54] sm:$0xff] }
  0x8f   : > { %5065 = vmatmul.mubr.f32.gmra.mxu1 %v288_v31  ;;  %5276 = vmatprep.subr.mxu0 %v4362_v32  ;;  %v1533_v31 = vld [vmem:[%s5938_s30 + $0x5c] sm:$0xff] }
  0x90   : > { %5067 = vmatprep.mubr.f32.mxu1 %v289_v33  ;;  %5277 = vmatpush3.msra.mxu0 %v4362_v32  ;;  %v1534_v32 = vld [vmem:[%s5938_s30 + $0x64] sm:$0xff]  ;;  %v1535_v33 = vld [vmem:[%s5938_s30 + $0x6c] sm:$0xff] }
  0x91   : > { %5151 = vmatmul.mubr.f32.gmra.mxu0 %v6269_v35  ;;  %5192 = vmatprep.subr.mxu1 %v4345_v37 }
  0x92   : > { %5153 = vmatprep.mubr.f32.mxu0 %v6275_v38  ;;  %5193 = vmatpush3.msra.mxu1 %v4345_v37  ;;  %v1536_v37 = vld [vmem:[%s5938_s30 + $0x74] sm:$0xff] }
  0x93   : > { %5068 = vmatmul.mubr.f32.gmra.mxu1 %v290_v39  ;;  %5278 = vmatprep.subr.mxu0 %v4361_v41  ;;  %v1537_v39 = vld [vmem:[%s5938_s30 + $0x7c] sm:$0xff] }
  0x94   : > { %5070 = vmatprep.mubr.f32.mxu1 %v291_v43  ;;  %5279 = vmatpush3.msra.mxu0 %v4361_v41  ;;  %v1538_v41 = vld [vmem:[%s5938_s30 + $0x84] sm:$0xff]  ;;  %v1539_v43 = vld [vmem:[%s5938_s30 + $0x8c] sm:$0xff] }
  0x95   : > { %5154 = vmatmul.mubr.f32.gmra.mxu0 %v6285_v45  ;;  %5194 = vmatprep.subr.mxu1 %v4344_v46 }
  0x96   : > { %5156 = vmatprep.mubr.f32.mxu0 %v6291_v47  ;;  %5195 = vmatpush3.msra.mxu1 %v4344_v46  ;;  %v1540_v46 = vld [vmem:[%s5938_s30 + $0x94] sm:$0xff] }
  0x97   : > { %5071 = vmatmul.mubr.f32.gmra.mxu1 %v292_v49  ;;  %5280 = vmatprep.subr.mxu0 %v4360_v51  ;;  %v1541_v49 = vld [vmem:[%s5938_s30 + $0x9c] sm:$0xff] }
  0x98   : > { %5073 = vmatprep.mubr.f32.mxu1 %v293_v52  ;;  %5281 = vmatpush3.msra.mxu0 %v4360_v51  ;;  %v1542_v51 = vld [vmem:[%s5938_s30 + $0xa4] sm:$0xff]  ;;  %v1543_v52 = vld [vmem:[%s5938_s30 + $0xac] sm:$0xff] }
  0x99   : > { %5157 = vmatmul.mubr.f32.gmra.mxu0 %v6301_v53  ;;  %5196 = vmatprep.subr.mxu1 %v4343_v55 }
  0x9a   : > { %5159 = vmatprep.mubr.f32.mxu0 %v6307_v57  ;;  %5197 = vmatpush3.msra.mxu1 %v4343_v55  ;;  %v1544_v55 = vld [vmem:[%s5938_s30 + $0xb4] sm:$0xff] }
  0x9b   : > { %5074 = vmatmul.mubr.f32.gmra.mxu1 %v294_v58  ;;  %5282 = vmatprep.subr.mxu0 %v4359_v59  ;;  %v1545_v58 = vld [vmem:[%s5938_s30 + $0xbc] sm:$0xff] }
  0x9c   : > { %5076 = vmatprep.mubr.f32.mxu1 %v295_v61  ;;  %5283 = vmatpush3.msra.mxu0 %v4359_v59  ;;  %v1546_v59 = vld [vmem:[%s5938_s30 + $0xc4] sm:$0xff]  ;;  %v1547_v61 = vld [vmem:[%s5938_s30 + $0xcc] sm:$0xff] }
  0x9d   : > { %5160 = vmatmul.mubr.f32.gmra.mxu0 %v6317_v63  ;;  %5198 = vmatprep.subr.mxu1 %v4342_v0 }
  0x9e   : > { %5162 = vmatprep.mubr.f32.mxu0 %v6323_v1  ;;  %5199 = vmatpush3.msra.mxu1 %v4342_v0  ;;  %v1548_v0 = vld [vmem:[%s5938_s30 + $0xd4] sm:$0xff] }
  0x9f   : > { %5077 = vmatmul.mubr.f32.gmra.mxu1 %v296_v3  ;;  %5284 = vmatprep.subr.mxu0 %v4358_v5  ;;  %v1549_v3 = vld [vmem:[%s5938_s30 + $0xdc] sm:$0xff] }
  0xa0   : > { %5079 = vmatprep.mubr.f32.mxu1 %v297_v6  ;;  %5285 = vmatpush3.msra.mxu0 %v4358_v5  ;;  %v1550_v5 = vld [vmem:[%s5938_s30 + $0xe4] sm:$0xff]  ;;  %v1551_v6 = vld [vmem:[%s5938_s30 + $0xec] sm:$0xff] }
  0xa1   : > { %5163 = vmatmul.mubr.f32.gmra.mxu0 %v6333_v7  ;;  %5340 = vmatprep.subr.mxu1 %v4389_v9 }
  0xa2   : > { %5165 = vmatprep.mubr.f32.mxu0 %v6339_v11  ;;  %5426 = vmatprep.subr.mxu0 %v4405_v12 }
  0xa3   : > { %5080 = vmatmul.mubr.f32.gmra.mxu1 %v298_v13  ;;  %v1554_v13 = vld [vmem:[%s5938_s30 + $0x104] sm:$0xff] }
  0xa4   : > { %5200 = vmatprep.mubr.f32.mxu1 %v6088_v28  ;;  %v1529_v28 = vld [vmem:[%s5938_s30 + $0x3c] sm:$0xff] }
  0xa5   : > { %5166 = vmatmul.mubr.f32.gmra.mxu0 %v6348_v15 }
  0xa6   : > { %5286 = vmatprep.mubr.f32.mxu0 %v1526_v17  ;;  %v1555_v17 = vld [vmem:[%s5938_s30 + $0x10c] sm:$0xff] }
  0xa7   : > { %5201 = vmatmul.mubr.f32.vlgmr.msra.gmra.mxu1 %v6094_v30  ;;  %v1530_v30 = vld [vmem:[%s5938_s30 + $0x44] sm:$0xff] }
  0xa8   : > { %5341 = vmatpush3.msra.mxu1 %v4389_v9  ;;  %5203 = vmatprep.mubr.f32.mxu1 %v6103_v34  ;;  %v4403_v34 = vld [vmem:[%s8495_s1 + $0x368] sm:$0xff]  ;;  %v1552_v9 = vld [vmem:[%s5938_s30 + $0xf4] sm:$0xff] }
  0xa9   : > { %5287 = vmatmul.mubr.f32.vlgmr.msra.gmra.mxu0 %v1527_v18  ;;  %5342 = vmatprep.subr.mxu1 %v4388_v19  ;;  %v1556_v18 = vld [vmem:[%s5938_s30 + $0x114] sm:$0xff] }
  0xaa   : > { %5427 = vmatpush3.msra.mxu0 %v4405_v12  ;;  %5289 = vmatprep.mubr.f32.mxu0 %v1528_v21  ;;  %v1553_v12 = vld [vmem:[%s5938_s30 + $0xfc] sm:$0xff] }
  0xab   : > { %5204 = vmatmul.mubr.f32.gmra.mxu1 %v6110_v36  ;;  %5428 = vmatprep.subr.mxu0 %v4404_v23  ;;  %v4386_v36 = vld [vmem:[%s8495_s1 + $0x2e0] sm:$0xff]  ;;  %v4437_v21 = vld [vmem:[%s8495_s1 + $0x478] sm:$0xff] }
  0xac   : > { %5343 = vmatpush3.msra.mxu1 %v4388_v19  ;;  %5206 = vmatprep.mubr.f32.mxu1 %v6119_v40  ;;  %v4402_v40 = vld [vmem:[%s8495_s1 + $0x360] sm:$0xff] }
  0xad   : > { %5290 = vmatmul.mubr.f32.gmra.mxu0 %v1529_v28  ;;  %5344 = vmatprep.subr.mxu1 %v4387_v24  ;;  %v1557_v19 = vld [vmem:[%s5938_s30 + $0x11c] sm:$0xff]  ;;  %v1559_v28 = vld [vmem:[%s5938_s30 + $0x12c] sm:$0xff] }
  0xae   : > { %5292 = vmatprep.mubr.f32.mxu0 %v1530_v30  ;;  %5429 = vmatpush3.msra.mxu0 %v4404_v23  ;;  %v1226_v23 = vld [vmem:[%s5938_s30 + $0x133] sm:$0xff]  ;;  %v1561_v30 = vld [vmem:[%s5938_s30 + $0x13c] sm:$0xff] }
  0xaf   : > { %5207 = vmatmul.mubr.f32.gmra.mxu1 %v6126_v42  ;;  %5430 = vmatprep.subr.mxu0 %v4403_v34  ;;  %v4385_v42 = vld [vmem:[%s8495_s1 + $0x2d8] sm:$0xff] }
  0xb0   : > { %5345 = vmatpush3.msra.mxu1 %v4387_v24  ;;  %5209 = vmatprep.mubr.f32.mxu1 %v6131_v44  ;;  %v4401_v44 = vld [vmem:[%s8495_s1 + $0x358] sm:$0xff]  ;;  %v1860_v24 = vld [vmem:[%s5938_s30 + $0x25] sm:$0xff] }
  0xb1   : > { %5293 = vmatmul.mubr.f32.gmra.mxu0 %v1531_v25  ;;  %5346 = vmatprep.subr.mxu1 %v4386_v36  ;;  %v1861_v25 = vld [vmem:[%s5938_s30 + $0x2d] sm:$0xff] }
  0xb2   : > { %5295 = vmatprep.mubr.f32.mxu0 %v1532_v27  ;;  %5431 = vmatpush3.msra.mxu0 %v4403_v34  ;;  %v2194_v34 = vld [vmem:[%s5938_s30 + $0x35] sm:$0xff] }
  0xb3   : > { %5210 = vmatmul.mubr.f32.gmra.mxu1 %v6143_v48  ;;  %5432 = vmatprep.subr.mxu0 %v4402_v40  ;;  %v4384_v48 = vld [vmem:[%s8495_s1 + $0x2d0] sm:$0xff] }
  0xb4   : > { %5212 = vmatprep.mubr.f32.mxu1 %v6147_v50  ;;  %5347 = vmatpush3.msra.mxu1 %v4386_v36  ;;  %v4400_v50 = vld [vmem:[%s8495_s1 + $0x350] sm:$0xff]  ;;  %v2195_v36 = vld [vmem:[%s5938_s30 + $0x3d] sm:$0xff] }
  0xb5   : > { %5296 = vmatmul.mubr.f32.gmra.mxu0 %v1533_v31  ;;  %5348 = vmatprep.subr.mxu1 %v4385_v42 }
  0xb6   : > { %5298 = vmatprep.mubr.f32.mxu0 %v1534_v32  ;;  %5433 = vmatpush3.msra.mxu0 %v4402_v40  ;;  %v2196_v40 = vld [vmem:[%s5938_s30 + $0x45] sm:$0xff] }
  0xb7   : > { %5213 = vmatmul.mubr.f32.gmra.mxu1 %v6157_v54  ;;  %5434 = vmatprep.subr.mxu0 %v4401_v44  ;;  %v4383_v54 = vld [vmem:[%s8495_s1 + $0x2c8] sm:$0xff] }
  0xb8   : > { %5215 = vmatprep.mubr.f32.mxu1 %v6163_v56  ;;  %5349 = vmatpush3.msra.mxu1 %v4385_v42  ;;  %v4399_v56 = vld [vmem:[%s8495_s1 + $0x348] sm:$0xff]  ;;  %v4436_v42 = vld [vmem:[%s8495_s1 + $0x470] sm:$0xff] }
  0xb9   : > { %5299 = vmatmul.mubr.f32.gmra.mxu0 %v1535_v33  ;;  %5350 = vmatprep.subr.mxu1 %v4384_v48  ;;  %v2197_v33 = vld [vmem:[%s5938_s30 + $0x4d] sm:$0xff] }
  0xba   : > { %5301 = vmatprep.mubr.f32.mxu0 %v1536_v37  ;;  %5435 = vmatpush3.msra.mxu0 %v4401_v44 }
  0xbb   : > { %5216 = vmatmul.mubr.f32.gmra.mxu1 %v6173_v60  ;;  %5436 = vmatprep.subr.mxu0 %v4400_v50  ;;  %v4382_v60 = vld [vmem:[%s8495_s1 + $0x2c0] sm:$0xff] }
  0xbc   : > { %5218 = vmatprep.mubr.f32.mxu1 %v6179_v62  ;;  %5351 = vmatpush3.msra.mxu1 %v4384_v48  ;;  %v4398_v62 = vld [vmem:[%s8495_s1 + $0x340] sm:$0xff]  ;;  %v4419_v48 = vld [vmem:[%s8495_s1 + $0x3e8] sm:$0xff] }
  0xbd   : > { %5302 = vmatmul.mubr.f32.gmra.mxu0 %v1537_v39  ;;  %5352 = vmatprep.subr.mxu1 %v4383_v54 }
  0xbe   : > { %5304 = vmatprep.mubr.f32.mxu0 %v1538_v41  ;;  %5437 = vmatpush3.msra.mxu0 %v4400_v50  ;;  %v2198_v50 = vld [vmem:[%s5938_s30 + $0x55] sm:$0xff] }
  0xbf   : > { %5219 = vmatmul.mubr.f32.gmra.mxu1 %v6189_v2  ;;  %5438 = vmatprep.subr.mxu0 %v4399_v56  ;;  %v4381_v2 = vld [vmem:[%s8495_s1 + $0x2b8] sm:$0xff] }
  0xc0   : > { %5221 = vmatprep.mubr.f32.mxu1 %v6195_v4  ;;  %5353 = vmatpush3.msra.mxu1 %v4383_v54  ;;  %v4397_v4 = vld [vmem:[%s8495_s1 + $0x338] sm:$0xff]  ;;  %v4435_v54 = vld [vmem:[%s8495_s1 + $0x468] sm:$0xff] }
  0xc1   : > { %5305 = vmatmul.mubr.f32.gmra.mxu0 %v1539_v43  ;;  %5354 = vmatprep.subr.mxu1 %v4382_v60  ;;  %v2199_v43 = vld [vmem:[%s5938_s30 + $0x5d] sm:$0xff] }
  0xc2   : > { %5307 = vmatprep.mubr.f32.mxu0 %v1540_v46  ;;  %5439 = vmatpush3.msra.mxu0 %v4399_v56  ;;  %v2200_v46 = vld [vmem:[%s5938_s30 + $0x65] sm:$0xff] }
  0xc3   : > { %5222 = vmatmul.mubr.f32.gmra.mxu1 %v6205_v8  ;;  %5440 = vmatprep.subr.mxu0 %v4398_v62  ;;  %v4380_v8 = vld [vmem:[%s8495_s1 + $0x2b0] sm:$0xff] }
  0xc4   : > { %5224 = vmatprep.mubr.f32.mxu1 %v6211_v10  ;;  %5355 = vmatpush3.msra.mxu1 %v4382_v60  ;;  %v4396_v10 = vld [vmem:[%s8495_s1 + $0x330] sm:$0xff]  ;;  %v4418_v60 = vld [vmem:[%s8495_s1 + $0x3e0] sm:$0xff] }
  0xc5   : > { %5308 = vmatmul.mubr.f32.gmra.mxu0 %v1541_v49  ;;  %5356 = vmatprep.subr.mxu1 %v4381_v2 }
  0xc6   : > { %5310 = vmatprep.mubr.f32.mxu0 %v1542_v51  ;;  %5441 = vmatpush3.msra.mxu0 %v4398_v62  ;;  %v4434_v62 = vld [vmem:[%s8495_s1 + $0x460] sm:$0xff]  ;;  %v2201_v51 = vld [vmem:[%s5938_s30 + $0x6d] sm:$0xff] }
  0xc7   : > { %5225 = vmatmul.mubr.f32.gmra.mxu1 %v6221_v14  ;;  %5442 = vmatprep.subr.mxu0 %v4397_v4  ;;  %v4379_v14 = vld [vmem:[%s8495_s1 + $0x2a8] sm:$0xff] }
  0xc8   : > { %5227 = vmatprep.mubr.f32.mxu1 %v6227_v16  ;;  %5357 = vmatpush3.msra.mxu1 %v4381_v2  ;;  %v4395_v16 = vld [vmem:[%s8495_s1 + $0x328] sm:$0xff] }
  0xc9   : > { %5311 = vmatmul.mubr.f32.gmra.mxu0 %v1543_v52  ;;  %5358 = vmatprep.subr.mxu1 %v4380_v8 }
  0xca   : > { %5313 = vmatprep.mubr.f32.mxu0 %v1544_v55  ;;  %5443 = vmatpush3.msra.mxu0 %v4397_v4  ;;  %v4417_v4 = vld [vmem:[%s8495_s1 + $0x3d8] sm:$0xff] }
  0xcb   : > { %5228 = vmatmul.mubr.f32.gmra.mxu1 %v6237_v20  ;;  %5444 = vmatprep.subr.mxu0 %v4396_v10  ;;  %v4378_v20 = vld [vmem:[%s8495_s1 + $0x2a0] sm:$0xff] }
  0xcc   : > { %5230 = vmatprep.mubr.f32.mxu1 %v6243_v22  ;;  %5359 = vmatpush3.msra.mxu1 %v4380_v8  ;;  %v4394_v22 = vld [vmem:[%s8495_s1 + $0x320] sm:$0xff]  ;;  %v2202_v8 = vld [vmem:[%s5938_s30 + $0x75] sm:$0xff] }
  0xcd   : > { %5314 = vmatmul.mubr.f32.gmra.mxu0 %v1545_v58  ;;  %5360 = vmatprep.subr.mxu1 %v4379_v14 }
  0xce   : > { %5316 = vmatprep.mubr.f32.mxu0 %v1546_v59  ;;  %5445 = vmatpush3.msra.mxu0 %v4396_v10  ;;  %v4433_v10 = vld [vmem:[%s8495_s1 + $0x458] sm:$0xff]  ;;  %v4416_v59 = vld [vmem:[%s8495_s1 + $0x3d0] sm:$0xff] }
  0xcf   : > { %5231 = vmatmul.mubr.f32.gmra.mxu1 %v6253_v26  ;;  %5446 = vmatprep.subr.mxu0 %v4395_v16  ;;  %v4377_v26 = vld [vmem:[%s8495_s1 + $0x298] sm:$0xff] }
  0xd0   : > { %5233 = vmatprep.mubr.f32.mxu1 %v6259_v29  ;;  %5361 = vmatpush3.msra.mxu1 %v4379_v14  ;;  %v4393_v29 = vld [vmem:[%s8495_s1 + $0x318] sm:$0xff] }
  0xd1   : > { %5317 = vmatmul.mubr.f32.gmra.mxu0 %v1547_v61  ;;  %5362 = vmatprep.subr.mxu1 %v4378_v20  ;;  %v2203_v14 = vld [vmem:[%s5938_s30 + $0x7d] sm:$0xff] }
  0xd2   : > { %5319 = vmatprep.mubr.f32.mxu0 %v1548_v0  ;;  %5447 = vmatpush3.msra.mxu0 %v4395_v16  ;;  %v2204_v16 = vld [vmem:[%s5938_s30 + $0x85] sm:$0xff]  ;;  %v4432_v0 = vld [vmem:[%s8495_s1 + $0x450] sm:$0xff] }
  0xd3   : > { %5234 = vmatmul.mubr.f32.gmra.mxu1 %v6269_v35  ;;  %5448 = vmatprep.subr.mxu0 %v4394_v22  ;;  %v4376_v35 = vld [vmem:[%s8495_s1 + $0x290] sm:$0xff] }
  0xd4   : > { %5236 = vmatprep.mubr.f32.mxu1 %v6275_v38  ;;  %5363 = vmatpush3.msra.mxu1 %v4378_v20  ;;  %v4392_v38 = vld [vmem:[%s8495_s1 + $0x310] sm:$0xff] }
  0xd5   : > { %5320 = vmatmul.mubr.f32.gmra.mxu0 %v1549_v3  ;;  %5364 = vmatprep.subr.mxu1 %v4377_v26  ;;  %v2205_v3 = vld [vmem:[%s5938_s30 + $0x8d] sm:$0xff] }
  0xd6   : > { %5322 = vmatprep.mubr.f32.mxu0 %v1550_v5  ;;  %5449 = vmatpush3.msra.mxu0 %v4394_v22  ;;  %v2206_v5 = vld [vmem:[%s5938_s30 + $0x95] sm:$0xff] }
  0xd7   : > { %5237 = vmatmul.mubr.f32.gmra.mxu1 %v6285_v45  ;;  %5450 = vmatprep.subr.mxu0 %v4393_v29  ;;  %v4375_v45 = vld [vmem:[%s8495_s1 + $0x288] sm:$0xff] }
  0xd8   : > { %5239 = vmatprep.mubr.f32.mxu1 %v6291_v47  ;;  %5365 = vmatpush3.msra.mxu1 %v4377_v26  ;;  %v4391_v47 = vld [vmem:[%s8495_s1 + $0x308] sm:$0xff] }
  0xd9   : > { %5323 = vmatmul.mubr.f32.gmra.mxu0 %v1551_v6  ;;  %5366 = vmatprep.subr.mxu1 %v4376_v35  ;;  %v4415_v26 = vld [vmem:[%s8495_s1 + $0x3c8] sm:$0xff] }
  0xda   : > { %5325 = vmatprep.mubr.f32.mxu0 %v1552_v9  ;;  %5451 = vmatpush3.msra.mxu0 %v4393_v29 }
  0xdb   : > { %5240 = vmatmul.mubr.f32.gmra.mxu1 %v6301_v53  ;;  %5452 = vmatprep.subr.mxu0 %v4392_v38  ;;  %v4374_v53 = vld [vmem:[%s8495_s1 + $0x280] sm:$0xff] }
  0xdc   : > { %5242 = vmatprep.mubr.f32.mxu1 %v6307_v57  ;;  %5367 = vmatpush3.msra.mxu1 %v4376_v35  ;;  %v4390_v57 = vld [vmem:[%s8495_s1 + $0x300] sm:$0xff]  ;;  %v4431_v35 = vld [vmem:[%s8495_s1 + $0x448] sm:$0xff] }
  0xdd   : > { %5326 = vmatmul.mubr.f32.gmra.mxu0 %v1553_v12  ;;  %5368 = vmatprep.subr.mxu1 %v4375_v45 }
  0xde   : > { %5328 = vmatprep.mubr.f32.mxu0 %v1554_v13  ;;  %5453 = vmatpush3.msra.mxu0 %v4392_v38  ;;  %v2207_v38 = vld [vmem:[%s5938_s30 + $0x9d] sm:$0xff]  ;;  %v2208_v13 = vld [vmem:[%s5938_s30 + $0xa5] sm:$0xff] }
  0xdf   : > { %5243 = vmatmul.mubr.f32.gmra.mxu1 %v6317_v63  ;;  %5454 = vmatprep.subr.mxu0 %v4391_v47  ;;  %v4421_v63 = vld [vmem:[%s8495_s1 + $0x3f8] sm:$0xff] }
  0xe0   : > { %5245 = vmatprep.mubr.f32.mxu1 %v6323_v1  ;;  %5369 = vmatpush3.msra.mxu1 %v4375_v45  ;;  %v1558_v1 = vld [vmem:[%s5938_s30 + $0x124] sm:$0xff] }
  0xe1   : > { %5329 = vmatmul.mubr.f32.gmra.mxu0 %v1555_v17  ;;  %5370 = vmatprep.subr.mxu1 %v4374_v53  ;;  %v4414_v45 = vld [vmem:[%s8495_s1 + $0x3c0] sm:$0xff] }
  0xe2   : > { %5331 = vmatprep.mubr.f32.mxu0 %v1556_v18  ;;  %5455 = vmatpush3.msra.mxu0 %v4391_v47  ;;  %v4430_v47 = vld [vmem:[%s8495_s1 + $0x440] sm:$0xff] }
  0xe3   : > { %5246 = vmatmul.mubr.f32.gmra.mxu1 %v6333_v7  ;;  %5456 = vmatprep.subr.mxu0 %v4390_v57  ;;  %v1560_v7 = vld [vmem:[%s5938_s30 + $0x134] sm:$0xff] }
  0xe4   : > { %5248 = vmatprep.mubr.f32.mxu1 %v6339_v11  ;;  %5371 = vmatpush3.msra.mxu1 %v4374_v53  ;;  %v1227_v11 = vld [vmem:[%s5938_s30 + $0x13b] sm:$0xff]  ;;  %v2209_v53 = vld [vmem:[%s5938_s30 + $0xad] sm:$0xff] }
  0xe5   : > { %5332 = vmatmul.mubr.f32.gmra.mxu0 %v1557_v19  ;;  %5512 = vmatprep.subr.mxu1 %v4421_v63  ;;  %v2210_v19 = vld [vmem:[%s5938_s30 + $0xb5] sm:$0xff] }
  0xe6   : > { %5334 = vmatprep.mubr.f32.mxu0 %v1558_v1  ;;  %5457 = vmatpush3.msra.mxu0 %v4390_v57  ;;  %v4413_v57 = vld [vmem:[%s8495_s1 + $0x3b8] sm:$0xff] }
  0xe7   : > { %5249 = vmatmul.mubr.f32.gmra.mxu1 %v6348_v15  ;;  %5598 = vmatprep.subr.mxu0 %v4437_v21  ;;  %v4420_v15 = vld [vmem:[%s8495_s1 + $0x3f0] sm:$0xff] }
  0xe8   : > { %5251 = vmatprep.mubr.f32.mxu1 %v1226_v23  ;;  %v2211_v23 = vld [vmem:[%s5938_s30 + $0xbd] sm:$0xff] }
  0xe9   : > { %5335 = vmatmul.mubr.f32.gmra.mxu0 %v1559_v28 }
  0xea   : > { %5337 = vmatprep.mubr.f32.mxu0 %v1560_v7  ;;  %v4412_v7 = vld [vmem:[%s8495_s1 + $0x3b0] sm:$0xff] }
  0xeb   : > { %5252 = vmatmul.mubr.f32.gmra.mxu1 %v1227_v11  ;;  %v2212_v11 = vld [vmem:[%s5938_s30 + $0xc5] sm:$0xff] }
  0xec   : > { %5372 = vmatprep.mubr.f32.mxu1 %v1860_v24 }
  0xed   : > { %5338 = vmatmul.mubr.f32.gmra.mxu0 %v1561_v30 }
  0xee   : > { %5458 = vmatprep.mubr.f32.mxu0 %v2194_v34  ;;  %v6526_v27 = vpop.f32.mrf.mxu1 }
  0xef   : > { %5373 = vmatmul.mubr.f32.vlgmr.msra.gmra.mxu1 %v1861_v25  ;;  %v6529_v31 = vpop.f32.mrf.mxu0 }
  0xf0   : > { %5513 = vmatpush3.msra.mxu1 %v4421_v63  ;;  %5375 = vmatprep.mubr.f32.mxu1 %v2194_v34  ;;  %v6534_v32 = vpop.f32.mrf.mxu1  ;;  %v4428_v34 = vld [vmem:[%s8495_s1 + $0x430] sm:$0xff] }
  0xf1   : > { %5459 = vmatmul.mubr.f32.vlgmr.msra.gmra.mxu0 %v2195_v36  ;;  %5514 = vmatprep.subr.mxu1 %v4420_v15  ;;  %v6536_v44 = vpop.f32.mrf.mxu0 }
  0xf2   : > { %5599 = vmatpush3.msra.mxu0 %v4437_v21  ;;  %5461 = vmatprep.mubr.f32.mxu0 %v2196_v40  ;;  %v6542_v37 = vpop.f32.mrf.mxu1  ;;  %v4429_v21 = vld [vmem:[%s8495_s1 + $0x438] sm:$0xff] }
  0xf3   : > { %5376 = vmatmul.mubr.f32.gmra.mxu1 %v2195_v36  ;;  %5600 = vmatprep.subr.mxu0 %v4436_v42  ;;  %v6545_v39 = vpop.f32.mrf.mxu0  ;;  %v2213_v36 = vld [vmem:[%s5938_s30 + $0xcd] sm:$0xff] }
  0xf4   : > { %5515 = vmatpush3.msra.mxu1 %v4420_v15  ;;  %5378 = vmatprep.mubr.f32.mxu1 %v2196_v40  ;;  %v6550_v41 = vpop.f32.mrf.mxu1  ;;  %v4411_v15 = vld [vmem:[%s8495_s1 + $0x3a8] sm:$0xff]  ;;  %v2214_v40 = vld [vmem:[%s5938_s30 + $0xd5] sm:$0xff] }
  0xf5   : > { %5462 = vmatmul.mubr.f32.gmra.mxu0 %v2197_v33  ;;  %5516 = vmatprep.subr.mxu1 %v4419_v48  ;;  %v6552_v56 = vpop.f32.mrf.mxu0 }
  0xf6   : > { %5464 = vmatprep.mubr.f32.mxu0 %v2198_v50  ;;  %5601 = vmatpush3.msra.mxu0 %v4436_v42 }
  0xf7   : > { %5379 = vmatmul.mubr.f32.gmra.mxu1 %v2197_v33  ;;  %5602 = vmatprep.subr.mxu0 %v4435_v54  ;;  %v4427_v33 = vld [vmem:[%s8495_s1 + $0x428] sm:$0xff] }
  0xf8   : > { %5517 = vmatpush3.msra.mxu1 %v4419_v48  ;;  %5381 = vmatprep.mubr.f32.mxu1 %v2198_v50  ;;  %v6562_v49 = vpop.f32.mrf.mxu1  ;;  %v2215_v50 = vld [vmem:[%s5938_s30 + $0xdd] sm:$0xff] }
  0xf9   : > { %5465 = vmatmul.mubr.f32.gmra.mxu0 %v2199_v43  ;;  %5518 = vmatprep.subr.mxu1 %v4418_v60  ;;  %v6564_v2 = vpop.f32.mrf.mxu0 }
  0xfa   : > { %5467 = vmatprep.mubr.f32.mxu0 %v2200_v46  ;;  %5603 = vmatpush3.msra.mxu0 %v4435_v54  ;;  %v6570_v52 = vpop.f32.mrf.mxu1 }
  0xfb   : > { %5382 = vmatmul.mubr.f32.gmra.mxu1 %v2199_v43  ;;  %5604 = vmatprep.subr.mxu0 %v4434_v62  ;;  %v6573_v55 = vpop.f32.mrf.mxu0  ;;  %v4410_v43 = vld [vmem:[%s8495_s1 + $0x3a0] sm:$0xff] }
  0xfc   : > { %5384 = vmatprep.mubr.f32.mxu1 %v2200_v46  ;;  %5519 = vmatpush3.msra.mxu1 %v4418_v60  ;;  %v2216_v46 = vld [vmem:[%s5938_s30 + $0xe5] sm:$0xff] }
  0xfd   : > { %5468 = vmatmul.mubr.f32.gmra.mxu0 %v2201_v51  ;;  %5520 = vmatprep.subr.mxu1 %v4417_v4  ;;  %v6578_v58 = vpop.f32.mrf.mxu1 }
  0xfe   : > { %5470 = vmatprep.mubr.f32.mxu0 %v2202_v8  ;;  %5605 = vmatpush3.msra.mxu0 %v4434_v62  ;;  %v4426_v62 = vld [vmem:[%s8495_s1 + $0x420] sm:$0xff] }
  0xff   : > { %5385 = vmatmul.mubr.f32.gmra.mxu1 %v2201_v51  ;;  %5606 = vmatprep.subr.mxu0 %v4433_v10  ;;  %v6585_v61 = vpop.f32.mrf.mxu0  ;;  %v6587_v20 = vpop.f32.mrf.mxu1 }
 0x100   : > { %5387 = vmatprep.mubr.f32.mxu1 %v2202_v8  ;;  %5521 = vmatpush3.msra.mxu1 %v4417_v4  ;;  %v2217_v4 = vld [vmem:[%s5938_s30 + $0xed] sm:$0xff]  ;;  %v4409_v8 = vld [vmem:[%s8495_s1 + $0x398] sm:$0xff] }
 0x101   : > { %5471 = vmatmul.mubr.f32.gmra.mxu0 %v2203_v14  ;;  %5522 = vmatprep.subr.mxu1 %v4416_v59  ;;  %v6592_v22 = vpop.f32.mrf.mxu0 }
 0x102   : > { %5473 = vmatprep.mubr.f32.mxu0 %v2204_v16  ;;  %5607 = vmatpush3.msra.mxu0 %v4433_v10 }
 0x103   : > { %5388 = vmatmul.mubr.f32.gmra.mxu1 %v2203_v14  ;;  %5608 = vmatprep.subr.mxu0 %v4432_v0  ;;  %v6599_v29 = vpop.f32.mrf.mxu1 }
 0x104   : > { %5390 = vmatprep.mubr.f32.mxu1 %v2204_v16  ;;  %5523 = vmatpush3.msra.mxu1 %v4416_v59  ;;  %v6601_v6 = vpop.f32.mrf.mxu0  ;;  %v2218_v59 = vld [vmem:[%s5938_s30 + $0xf5] sm:$0xff] }
 0x105   : > { %5474 = vmatmul.mubr.f32.gmra.mxu0 %v2205_v3  ;;  %5524 = vmatprep.subr.mxu1 %v4415_v26  ;;  %v6606_v9 = vpop.f32.mrf.mxu1  ;;  %v4425_v16 = vld [vmem:[%s8495_s1 + $0x418] sm:$0xff] }
 0x106   : > { %5476 = vmatprep.mubr.f32.mxu0 %v2206_v5  ;;  %5609 = vmatpush3.msra.mxu0 %v4432_v0  ;;  %v6609_v12 = vpop.f32.mrf.mxu0 }
 0x107   : > { %5391 = vmatmul.mubr.f32.gmra.mxu1 %v2205_v3  ;;  %5610 = vmatprep.subr.mxu0 %v4431_v35  ;;  %v2219_v3 = vld [vmem:[%s5938_s30 + $0xfd] sm:$0xff] }
 0x108   : > { %5393 = vmatprep.mubr.f32.mxu1 %v2206_v5  ;;  %5525 = vmatpush3.msra.mxu1 %v4415_v26  ;;  %v4408_v26 = vld [vmem:[%s8495_s1 + $0x390] sm:$0xff] }
 0x109   : > { %5477 = vmatmul.mubr.f32.gmra.mxu0 %v2207_v38  ;;  %v6618_v17 = vpop.f32.mrf.mxu1  ;;  %5526 = vmatprep.subr.mxu1 %v4414_v45 }
 0x10a   : > { %5479 = vmatprep.mubr.f32.mxu0 %v2208_v13  ;;  %5611 = vmatpush3.msra.mxu0 %v4431_v35  ;;  %v6621_v18 = vpop.f32.mrf.mxu0  ;;  %v2220_v35 = vld [vmem:[%s5938_s30 + $0x105] sm:$0xff] }
 0x10b   : > { %5394 = vmatmul.mubr.f32.gmra.mxu1 %v2207_v38  ;;  %v6627_v63 = vpop.f32.mrf.mxu1  ;;  %5612 = vmatprep.subr.mxu0 %v4430_v47 }
 0x10c   : > { %5396 = vmatprep.mubr.f32.mxu1 %v2208_v13  ;;  %5527 = vmatpush3.msra.mxu1 %v4414_v45  ;;  %v6629_v1 = vpop.f32.mrf.mxu0  ;;  %v4424_v45 = vld [vmem:[%s8495_s1 + $0x410] sm:$0xff] }
 0x10d   : > { %5480 = vmatmul.mubr.f32.gmra.mxu0 %v2209_v53  ;;  %5528 = vmatprep.subr.mxu1 %v4413_v57 }
 0x10e   : > { %5482 = vmatprep.mubr.f32.mxu0 %v2210_v19  ;;  %5613 = vmatpush3.msra.mxu0 %v4430_v47  ;;  %v6635_v28 = vpop.f32.mrf.mxu1 }
 0x10f   : > { %5397 = vmatmul.mubr.f32.gmra.mxu1 %v2209_v53  ;;  %v6641_v24 = vpop.f32.mrf.mxu0  ;;  %5614 = vmatprep.subr.mxu0 %v4429_v21 }
 0x110   : > { %5399 = vmatprep.mubr.f32.mxu1 %v2210_v19  ;;  %5529 = vmatpush3.msra.mxu1 %v4413_v57  ;;  %v6643_v30 = vpop.f32.mrf.mxu1  ;;  %v2221_v19 = vld [vmem:[%s5938_s30 + $0x10d] sm:$0xff] }
 0x111   : > { %5483 = vmatmul.mubr.f32.gmra.mxu0 %v2211_v23  ;;  %v6648_v25 = vpop.f32.mrf.mxu0  ;;  %5530 = vmatprep.subr.mxu1 %v4412_v7 }
 0x112   : > { %5485 = vmatprep.mubr.f32.mxu0 %v2212_v11  ;;  %5615 = vmatpush3.msra.mxu0 %v4429_v21 }
 0x113   : > { %5400 = vmatmul.mubr.f32.gmra.mxu1 %v2211_v23  ;;  %5616 = vmatprep.subr.mxu0 %v4428_v34 }
 0x114   : > { %5402 = vmatprep.mubr.f32.mxu1 %v2212_v11  ;;  %v6655_v42 = vpop.f32.mrf.mxu1  ;;  %5531 = vmatpush3.msra.mxu1 %v4412_v7  ;;  %v2222_v7 = vld [vmem:[%s5938_s30 + $0x115] sm:$0xff] }
 0x115   : > { %5486 = vmatmul.mubr.f32.gmra.mxu0 %v2213_v36  ;;  %v6660_v48 = vpop.f32.mrf.mxu0  ;;  %5532 = vmatprep.subr.mxu1 %v4411_v15 }
 0x116   : > { %5488 = vmatprep.mubr.f32.mxu0 %v2214_v40  ;;  %v6663_v54 = vpop.f32.mrf.mxu1  ;;  %5617 = vmatpush3.msra.mxu0 %v4428_v34 }
 0x117   : > { %5403 = vmatmul.mubr.f32.gmra.mxu1 %v2213_v36  ;;  %v6668_v60 = vpop.f32.mrf.mxu0  ;;  %5618 = vmatprep.subr.mxu0 %v4427_v33 }
 0x118   : > { %5405 = vmatprep.mubr.f32.mxu1 %v2214_v40  ;;  %5533 = vmatpush3.msra.mxu1 %v4411_v15 }
 0x119   : > { %5489 = vmatmul.mubr.f32.gmra.mxu0 %v2215_v50  ;;  %v6674_v51 = vpop.f32.mrf.mxu1  ;;  %5534 = vmatprep.subr.mxu1 %v4410_v43 }
 0x11a   : > { %5491 = vmatprep.mubr.f32.mxu0 %v2216_v46  ;;  %5619 = vmatpush3.msra.mxu0 %v4427_v33 }
 0x11b   : > { %5406 = vmatmul.mubr.f32.gmra.mxu1 %v2215_v50  ;;  %v6680_v10 = vpop.f32.mrf.mxu0  ;;  %v6682_v14 = vpop.f32.mrf.mxu1  ;;  %5620 = vmatprep.subr.mxu0 %v4426_v62  ;;  %v2223_v50 = vld [vmem:[%s5938_s30 + $0x11d] sm:$0xff] }
 0x11c   : > { %5408 = vmatprep.mubr.f32.mxu1 %v2216_v46  ;;  %5535 = vmatpush3.msra.mxu1 %v4410_v43 }
 0x11d   : > { %5492 = vmatmul.mubr.f32.gmra.mxu0 %v2217_v4  ;;  %v6688_v0 = vpop.f32.mrf.mxu0  ;;  %5536 = vmatprep.subr.mxu1 %v4409_v8 }
 0x11e   : > { %5494 = vmatprep.mubr.f32.mxu0 %v2218_v59  ;;  %5621 = vmatpush3.msra.mxu0 %v4426_v62  ;;  %v2224_v62 = vld [vmem:[%s5938_s30 + $0x125] sm:$0xff] }
 0x11f   : > { %v5030_v5 = vpop.f32.mrf.mxu1  ;;  %5409 = vmatmul.mubr.f32.gmra.mxu1 %v2217_v4  ;;  %5622 = vmatprep.subr.mxu0 %v4425_v16 }
 0x120   : > { %v685_v38 = vadd.f32 %v5030_v5, %v6529_v31  ;;  %5411 = vmatprep.mubr.f32.mxu1 %v2218_v59  ;;  %5537 = vmatpush3.msra.mxu1 %v4409_v8  ;;  %v4407_v31 = vld [vmem:[%s8495_s1 + $0x388] sm:$0xff] }
 0x121   : > { %v5116_v13 = vpop.f32.mrf.mxu0  ;;  %5495 = vmatmul.mubr.f32.gmra.mxu0 %v2219_v3  ;;  %v679_v47 = vpop.f32.mrf.mxu1  ;;  %5538 = vmatprep.subr.mxu1 %v4408_v26  ;;  %v2225_v5 = vld [vmem:[%s5938_s30 + $0x12d] sm:$0xff] }
 0x122   : > { %v6699_v53 = vadd.f32 %v5116_v13, %v685_v38  ;;  %v680_v57 = vadd.f32 %v679_v47, %v6536_v44  ;;  %5497 = vmatprep.mubr.f32.mxu0 %v2220_v35  ;;  %5623 = vmatpush3.msra.mxu0 %v4425_v16  ;;  %v4423_v44 = vld [vmem:[%s8495_s1 + $0x408] sm:$0xff]  ;;  %v2226_v38 = vld [vmem:[%s5938_s30 + $0x135] sm:$0xff] }
 0x123   : > { %v977_v21 = vpop.f32.mrf.mxu0  ;;  %v5033_v23 = vpop.f32.mrf.mxu1  ;;  %5412 = vmatmul.mubr.f32.gmra.mxu1 %v2219_v3  ;;  %5624 = vmatprep.subr.mxu0 %v4424_v45 }
 0x124   : > { %v6707_v11 = vadd.f32 %v977_v21, %v680_v57  ;;  %v695_v34 = vadd.f32 %v5033_v23, %v6545_v39  ;;  %5414 = vmatprep.mubr.f32.mxu1 %v2220_v35  ;;  %5539 = vmatpush3.msra.mxu1 %v4408_v26  ;;  %v4406_v39 = vld [vmem:[%s8495_s1 + $0x380] sm:$0xff] }
 0x125   : > { %v5119_v36 = vpop.f32.mrf.mxu0  ;;  %5498 = vmatmul.mubr.f32.gmra.mxu0 %v2221_v19  ;;  %v689_v15 = vpop.f32.mrf.mxu1  ;;  %5540 = vmatprep.subr.mxu1 %v4407_v31 }
 0x126   : > { %v6713_v40 = vadd.f32 %v5119_v36, %v695_v34  ;;  %v690_v33 = vadd.f32 %v689_v15, %v6552_v56  ;;  %5500 = vmatprep.mubr.f32.mxu0 %v2222_v7  ;;  %5625 = vmatpush3.msra.mxu0 %v4424_v45  ;;  %v4422_v56 = vld [vmem:[%s8495_s1 + $0x400] sm:$0xff]  ;;  %v2528_v15 = vld [vmem:[%s5938_s30 + $0x36] sm:$0xff] }
 0x127   : > { %v987_v43 = vpop.f32.mrf.mxu0  ;;  %v5036_v46 = vpop.f32.mrf.mxu1  ;;  %5415 = vmatmul.mubr.f32.gmra.mxu1 %v2221_v19  ;;  %5626 = vmatprep.subr.mxu0 %v4423_v44 }
 0x128   : > { %v6721_v4 = vadd.f32 %v987_v43, %v690_v33  ;;  %v705_v8 = vadd.f32 %v5036_v46, %v6564_v2  ;;  %5417 = vmatprep.mubr.f32.mxu1 %v2222_v7  ;;  %5541 = vmatpush3.msra.mxu1 %v4407_v31  ;;  %v2227_v31 = vld [vmem:[%s5938_s30 + $0x13d] sm:$0xff]  ;;  %v2228_v7 = vld [vmem:[%s5938_s30 + $0x145] sm:$0xff] }
 0x129   : > { %v5122_v59 = vpop.f32.mrf.mxu0  ;;  %5501 = vmatmul.mubr.f32.gmra.mxu0 %v2223_v50  ;;  %v699_v16 = vpop.f32.mrf.mxu1  ;;  %5542 = vmatprep.subr.mxu1 %v4406_v39  ;;  %v2862_v46 = vld [vmem:[%s5938_s30 + $0x37] sm:$0xff] }
 0x12a   : > { %v6727_v3 = vadd.f32 %v5122_v59, %v705_v8  ;;  %v700_v26 = vadd.f32 %v699_v16, %v6573_v55  ;;  %5503 = vmatprep.mubr.f32.mxu0 %v2224_v62  ;;  %5627 = vmatpush3.msra.mxu0 %v4423_v44  ;;  %v2529_v8 = vld [vmem:[%s5938_s30 + $0x3e] sm:$0xff]  ;;  %v2530_v16 = vld [vmem:[%s5938_s30 + $0x46] sm:$0xff] }
 0x12b   : > { %v997_v2 = vpop.f32.mrf.mxu0  ;;  %v5039_v35 = vpop.f32.mrf.mxu1  ;;  %5418 = vmatmul.mubr.f32.gmra.mxu1 %v2223_v50  ;;  %5628 = vmatprep.subr.mxu0 %v4422_v56  ;;  %v2229_v50 = vld [vmem:[%s5938_s30 + $0x14d] sm:$0xff] }
 0x12c   : > { %v6732_v45 = vadd.f32 %v997_v2, %v700_v26  ;;  %v715_v13 = vadd.f32 %v5039_v35, %v6585_v61  ;;  %5420 = vmatprep.mubr.f32.mxu1 %v2224_v62  ;;  %5543 = vmatpush3.msra.mxu1 %v4406_v39 }
 0x12d   : > { %v5125_v47 = vpop.f32.mrf.mxu0  ;;  %5504 = vmatmul.mubr.f32.gmra.mxu0 %v2225_v5  ;;  %v709_v57 = vpop.f32.mrf.mxu1 }
 0x12e   : > { %v6735_v55 = vadd.f32 %v5125_v47, %v715_v13  ;;  %v710_v19 = vadd.f32 %v709_v57, %v6592_v22  ;;  %5506 = vmatprep.mubr.f32.mxu0 %v2226_v38  ;;  %5629 = vmatpush3.msra.mxu0 %v4422_v56  ;;  %v2531_v47 = vld [vmem:[%s5938_s30 + $0x4e] sm:$0xff] }
 0x12f   : > { %v1007_v21 = vpop.f32.mrf.mxu0  ;;  %v5042_v23 = vpop.f32.mrf.mxu1  ;;  %5421 = vmatmul.mubr.f32.gmra.mxu1 %v2225_v5  ;;  %v2863_v5 = vld [vmem:[%s5938_s30 + $0x3f] sm:$0xff] }
 0x130   : > { %v6740_v61 = vadd.f32 %v1007_v21, %v710_v19  ;;  %v725_v34 = vadd.f32 %v5042_v23, %v6601_v6  ;;  %5423 = vmatprep.mubr.f32.mxu1 %v2226_v38  ;;  %v2864_v38 = vld [vmem:[%s5938_s30 + $0x47] sm:$0xff]  ;;  %v2865_v23 = vld [vmem:[%s5938_s30 + $0x4f] sm:$0xff] }
 0x131   : > { %v5128_v44 = vpop.f32.mrf.mxu0  ;;  %5507 = vmatmul.mubr.f32.gmra.mxu0 %v2227_v31  ;;  %v719_v36 = vpop.f32.mrf.mxu1 }
 0x132   : > { %v6744_v22 = vadd.f32 %v5128_v44, %v725_v34  ;;  %v720_v33 = vadd.f32 %v719_v36, %v6609_v12  ;;  %5509 = vmatprep.mubr.f32.mxu0 %v2228_v7  ;;  %v2866_v44 = vld [vmem:[%s5938_s30 + $0x57] sm:$0xff] }
 0x133   : > { %v1017_v39 = vpop.f32.mrf.mxu0  ;;  %v5045_v43 = vpop.f32.mrf.mxu1  ;;  %5424 = vmatmul.mubr.f32.gmra.mxu1 %v2227_v31  ;;  %v2532_v31 = vld [vmem:[%s5938_s30 + $0x56] sm:$0xff] }
 0x134   : > { %v6749_v6 = vadd.f32 %v1017_v39, %v720_v33  ;;  %v735_v62 = vadd.f32 %v5045_v43, %v6621_v18  ;;  %5544 = vmatprep.mubr.f32.mxu1 %v2528_v15  ;;  %v2533_v15 = vld [vmem:[%s5938_s30 + $0x5e] sm:$0xff]  ;;  %v2534_v39 = vld [vmem:[%s5938_s30 + $0x66] sm:$0xff] }
 0x135   : > { %v5131_v56 = vpop.f32.mrf.mxu0  ;;  %5510 = vmatmul.mubr.f32.gmra.mxu0 %v2229_v50  ;;  %v729_v59 = vpop.f32.mrf.mxu1 }
 0x136   : > { %v6754_v12 = vadd.f32 %v5131_v56, %v735_v62  ;;  %v730_v26 = vadd.f32 %v729_v59, %v6629_v1  ;;  %5630 = vmatprep.mubr.f32.mxu0 %v2862_v46  ;;  %v2867_v46 = vld [vmem:[%s5938_s30 + $0x5f] sm:$0xff]  ;;  %v2868_v56 = vld [vmem:[%s5938_s30 + $0x67] sm:$0xff] }
 0x137   : > { %v1027_v2 = vpop.f32.mrf.mxu0  ;;  %v5048_v35 = vpop.f32.mrf.mxu1  ;;  %5545 = vmatmul.mubr.f32.vlgmr.msra.gmra.mxu1 %v2529_v8 }
 0x138   : > { %v6759_v18 = vadd.f32 %v1027_v2, %v730_v26  ;;  %v745_v13 = vadd.f32 %v5048_v35, %v6641_v24  ;;  %5547 = vmatprep.mubr.f32.mxu1 %v2530_v16  ;;  %v2535_v16 = vld [vmem:[%s5938_s30 + $0x6e] sm:$0xff]  ;;  %v2536_v2 = vld [vmem:[%s5938_s30 + $0x76] sm:$0xff] }
 0x139   : > { %v5134_v57 = vpop.f32.mrf.mxu0  ;;  %5631 = vmatmul.mubr.f32.vlgmr.msra.gmra.mxu0 %v2863_v5  ;;  %v739_v19 = vpop.f32.mrf.mxu1 }
 0x13a   : > { %v6764_v1 = vadd.f32 %v5134_v57, %v745_v13  ;;  %v740_v21 = vadd.f32 %v739_v19, %v6648_v25  ;;  %5633 = vmatprep.mubr.f32.mxu0 %v2864_v38  ;;  %v2869_v38 = vld [vmem:[%s5938_s30 + $0x6f] sm:$0xff]  ;;  %v2870_v57 = vld [vmem:[%s5938_s30 + $0x77] sm:$0xff] }
 0x13b   : > { %v1037_v7 = vpop.f32.mrf.mxu0  ;;  %v5051_v34 = vpop.f32.mrf.mxu1  ;;  %5548 = vmatmul.mubr.f32.gmra.mxu1 %v2531_v47 }
 0x13c   : > { %v6769_v24 = vadd.f32 %v1037_v7, %v740_v21  ;;  %v755_v36 = vadd.f32 %v5051_v34, %v6660_v48  ;;  %5550 = vmatprep.mubr.f32.mxu1 %v2532_v31  ;;  %v2537_v31 = vld [vmem:[%s5938_s30 + $0x7e] sm:$0xff]  ;;  %v2538_v7 = vld [vmem:[%s5938_s30 + $0x86] sm:$0xff] }
 0x13d   : > { %v5137_v33 = vpop.f32.mrf.mxu0  ;;  %5634 = vmatmul.mubr.f32.gmra.mxu0 %v2865_v23  ;;  %v749_v50 = vpop.f32.mrf.mxu1 }
 0x13e   : > { %v6774_v25 = vadd.f32 %v5137_v33, %v755_v36  ;;  %v750_v43 = vadd.f32 %v749_v50, %v6668_v60  ;;  %5636 = vmatprep.mubr.f32.mxu0 %v2866_v44  ;;  %v2871_v44 = vld [vmem:[%s5938_s30 + $0x7f] sm:$0xff]  ;;  %v2872_v33 = vld [vmem:[%s5938_s30 + $0x87] sm:$0xff] }
 0x13f   : > { %v1047_v62 = vpop.f32.mrf.mxu0  ;;  %v5054_v8 = vpop.f32.mrf.mxu1  ;;  %5551 = vmatmul.mubr.f32.gmra.mxu1 %v2533_v15 }
 0x140   : > { %v6779_v48 = vadd.f32 %v1047_v62, %v750_v43  ;;  %v765_v59 = vadd.f32 %v5054_v8, %v6680_v10  ;;  %5553 = vmatprep.mubr.f32.mxu1 %v2534_v39  ;;  %v2539_v39 = vld [vmem:[%s5938_s30 + $0x8e] sm:$0xff]  ;;  %v2540_v62 = vld [vmem:[%s5938_s30 + $0x96] sm:$0xff] }
 0x141   : > { %v5140_v26 = vpop.f32.mrf.mxu0  ;;  %5637 = vmatmul.mubr.f32.gmra.mxu0 %v2867_v46  ;;  %v759_v5 = vpop.f32.mrf.mxu1 }
 0x142   : > { %v6784_v60 = vadd.f32 %v5140_v26, %v765_v59  ;;  %v760_v35 = vadd.f32 %v759_v5, %v6688_v0  ;;  %5639 = vmatprep.mubr.f32.mxu0 %v2868_v56  ;;  %v2873_v56 = vld [vmem:[%s5938_s30 + $0x8f] sm:$0xff]  ;;  %v2874_v26 = vld [vmem:[%s5938_s30 + $0x97] sm:$0xff] }
 0x143   : > { %v1057_v13 = vpop.f32.mrf.mxu0  ;;  %v5057_v47 = vpop.f32.mrf.mxu1  ;;  %5554 = vmatmul.mubr.f32.gmra.mxu1 %v2535_v16 }
 0x144   : > { %v6789_v10 = vadd.f32 %v1057_v13, %v760_v35  ;;  %v775_v19 = vadd.f32 %v5057_v47, %v6526_v27  ;;  %5556 = vmatprep.mubr.f32.mxu1 %v2536_v2  ;;  %v2541_v2 = vld [vmem:[%s5938_s30 + $0x9e] sm:$0xff]  ;;  %v2542_v13 = vld [vmem:[%s5938_s30 + $0xa6] sm:$0xff] }
 0x145   : > { %v5143_v21 = vpop.f32.mrf.mxu0  ;;  %5640 = vmatmul.mubr.f32.gmra.mxu0 %v2869_v38  ;;  %v769_v23 = vpop.f32.mrf.mxu1 }
 0x146   : > { %v6794_v0 = vadd.f32 %v5143_v21, %v775_v19  ;;  %v770_v34 = vadd.f32 %v769_v23, %v6534_v32  ;;  %5642 = vmatprep.mubr.f32.mxu0 %v2870_v57  ;;  %v2875_v57 = vld [vmem:[%s5938_s30 + $0x9f] sm:$0xff]  ;;  %v2876_v21 = vld [vmem:[%s5938_s30 + $0xa7] sm:$0xff] }
 0x147   : > { %v1067_v36 = vpop.f32.mrf.mxu0  ;;  %v5060_v15 = vpop.f32.mrf.mxu1  ;;  %5557 = vmatmul.mubr.f32.gmra.mxu1 %v2537_v31 }
 0x148   : > { %v6799_v27 = vadd.f32 %v1067_v36, %v770_v34  ;;  %v785_v50 = vadd.f32 %v5060_v15, %v6542_v37  ;;  %5559 = vmatprep.mubr.f32.mxu1 %v2538_v7  ;;  %v2543_v7 = vld [vmem:[%s5938_s30 + $0xae] sm:$0xff]  ;;  %v2544_v36 = vld [vmem:[%s5938_s30 + $0xb6] sm:$0xff] }
 0x149   : > { %v5146_v43 = vpop.f32.mrf.mxu0  ;;  %5643 = vmatmul.mubr.f32.gmra.mxu0 %v2871_v44  ;;  %v779_v46 = vpop.f32.mrf.mxu1 }
 0x14a   : > { %v6804_v32 = vadd.f32 %v5146_v43, %v785_v50  ;;  %v780_v8 = vadd.f32 %v779_v46, %v6550_v41  ;;  %5645 = vmatprep.mubr.f32.mxu0 %v2872_v33  ;;  %v2877_v33 = vld [vmem:[%s5938_s30 + $0xaf] sm:$0xff]  ;;  %v2878_v43 = vld [vmem:[%s5938_s30 + $0xb7] sm:$0xff] }
 0x14b   : > { %v1077_v59 = vpop.f32.mrf.mxu0  ;;  %v5063_v16 = vpop.f32.mrf.mxu1  ;;  %5560 = vmatmul.mubr.f32.gmra.mxu1 %v2539_v39 }
 0x14c   : > { %v6809_v37 = vadd.f32 %v1077_v59, %v780_v8  ;;  %v795_v5 = vadd.f32 %v5063_v16, %v6562_v49  ;;  %5562 = vmatprep.mubr.f32.mxu1 %v2540_v62  ;;  %v2545_v62 = vld [vmem:[%s5938_s30 + $0xbe] sm:$0xff]  ;;  %v2546_v59 = vld [vmem:[%s5938_s30 + $0xc6] sm:$0xff] }
 0x14d   : > { %v5149_v35 = vpop.f32.mrf.mxu0  ;;  %5646 = vmatmul.mubr.f32.gmra.mxu0 %v2873_v56  ;;  %v789_v38 = vpop.f32.mrf.mxu1 }
 0x14e   : > { %v6814_v41 = vadd.f32 %v5149_v35, %v795_v5  ;;  %v790_v47 = vadd.f32 %v789_v38, %v6570_v52  ;;  %5648 = vmatprep.mubr.f32.mxu0 %v2874_v26  ;;  %v2879_v26 = vld [vmem:[%s5938_s30 + $0xbf] sm:$0xff]  ;;  %v2880_v35 = vld [vmem:[%s5938_s30 + $0xc7] sm:$0xff] }
 0x14f   : > { %v1087_v19 = vpop.f32.mrf.mxu0  ;;  %v5066_v31 = vpop.f32.mrf.mxu1  ;;  %5563 = vmatmul.mubr.f32.gmra.mxu1 %v2541_v2 }
 0x150   : > { %v6819_v49 = vadd.f32 %v1087_v19, %v790_v47  ;;  %v805_v23 = vadd.f32 %v5066_v31, %v6578_v58  ;;  %5565 = vmatprep.mubr.f32.mxu1 %v2542_v13  ;;  %v2547_v13 = vld [vmem:[%s5938_s30 + $0xce] sm:$0xff]  ;;  %v2548_v19 = vld [vmem:[%s5938_s30 + $0xd6] sm:$0xff] }
 0x151   : > { %v5152_v34 = vpop.f32.mrf.mxu0  ;;  %5649 = vmatmul.mubr.f32.gmra.mxu0 %v2875_v57  ;;  %v799_v44 = vpop.f32.mrf.mxu1 }
 0x152   : > { %v6824_v52 = vadd.f32 %v5152_v34, %v805_v23  ;;  %v800_v15 = vadd.f32 %v799_v44, %v6587_v20  ;;  %5651 = vmatprep.mubr.f32.mxu0 %v2876_v21  ;;  %v2881_v21 = vld [vmem:[%s5938_s30 + $0xcf] sm:$0xff]  ;;  %v2882_v34 = vld [vmem:[%s5938_s30 + $0xd7] sm:$0xff] }
 0x153   : > { %v1097_v50 = vpop.f32.mrf.mxu0  ;;  %v5069_v39 = vpop.f32.mrf.mxu1  ;;  %5566 = vmatmul.mubr.f32.gmra.mxu1 %v2543_v7 }
 0x154   : > { %v6829_v58 = vadd.f32 %v1097_v50, %v800_v15  ;;  %v815_v46 = vadd.f32 %v5069_v39, %v6599_v29  ;;  %5568 = vmatprep.mubr.f32.mxu1 %v2544_v36  ;;  %v2549_v36 = vld [vmem:[%s5938_s30 + $0xde] sm:$0xff]  ;;  %v2550_v50 = vld [vmem:[%s5938_s30 + $0xe6] sm:$0xff] }
 0x155   : > { %v5155_v8 = vpop.f32.mrf.mxu0  ;;  %5652 = vmatmul.mubr.f32.gmra.mxu0 %v2877_v33  ;;  %v809_v56 = vpop.f32.mrf.mxu1 }
 0x156   : > { %v6834_v20 = vadd.f32 %v5155_v8, %v815_v46  ;;  %v810_v16 = vadd.f32 %v809_v56, %v6606_v9  ;;  %5654 = vmatprep.mubr.f32.mxu0 %v2878_v43  ;;  %v2883_v43 = vld [vmem:[%s5938_s30 + $0xdf] sm:$0xff]  ;;  %v2884_v8 = vld [vmem:[%s5938_s30 + $0xe7] sm:$0xff] }
 0x157   : > { %v1107_v5 = vpop.f32.mrf.mxu0  ;;  %v5072_v2 = vpop.f32.mrf.mxu1  ;;  %5569 = vmatmul.mubr.f32.gmra.mxu1 %v2545_v62 }
 0x158   : > { %v6839_v29 = vadd.f32 %v1107_v5, %v810_v16  ;;  %v825_v38 = vadd.f32 %v5072_v2, %v6618_v17  ;;  %5571 = vmatprep.mubr.f32.mxu1 %v2546_v59  ;;  %v2551_v59 = vld [vmem:[%s5938_s30 + $0xee] sm:$0xff]  ;;  %v2552_v5 = vld [vmem:[%s5938_s30 + $0xf6] sm:$0xff] }
 0x159   : > { %v5158_v47 = vpop.f32.mrf.mxu0  ;;  %5655 = vmatmul.mubr.f32.gmra.mxu0 %v2879_v26  ;;  %v819_v57 = vpop.f32.mrf.mxu1 }
 0x15a   : > { %v6844_v9 = vadd.f32 %v5158_v47, %v825_v38  ;;  %v820_v31 = vadd.f32 %v819_v57, %v6627_v63  ;;  %5657 = vmatprep.mubr.f32.mxu0 %v2880_v35  ;;  %v2885_v35 = vld [vmem:[%s5938_s30 + $0xef] sm:$0xff]  ;;  %v2886_v47 = vld [vmem:[%s5938_s30 + $0xf7] sm:$0xff] }
 0x15b   : > { %v1117_v23 = vpop.f32.mrf.mxu0  ;;  %v5075_v7 = vpop.f32.mrf.mxu1  ;;  %5572 = vmatmul.mubr.f32.gmra.mxu1 %v2547_v13 }
 0x15c   : > { %v6849_v17 = vadd.f32 %v1117_v23, %v820_v31  ;;  %v835_v44 = vadd.f32 %v5075_v7, %v6635_v28  ;;  %5574 = vmatprep.mubr.f32.mxu1 %v2548_v19  ;;  %v2553_v19 = vld [vmem:[%s5938_s30 + $0xfe] sm:$0xff]  ;;  %v2554_v23 = vld [vmem:[%s5938_s30 + $0x106] sm:$0xff] }
 0x15d   : > { %v5161_v15 = vpop.f32.mrf.mxu0  ;;  %5658 = vmatmul.mubr.f32.gmra.mxu0 %v2881_v21  ;;  %v829_v33 = vpop.f32.mrf.mxu1 }
 0x15e   : > { %v6854_v63 = vadd.f32 %v5161_v15, %v835_v44  ;;  %v830_v39 = vadd.f32 %v829_v33, %v6643_v30  ;;  %5660 = vmatprep.mubr.f32.mxu0 %v2882_v34  ;;  %v2887_v34 = vld [vmem:[%s5938_s30 + $0xff] sm:$0xff]  ;;  %v2888_v15 = vld [vmem:[%s5938_s30 + $0x107] sm:$0xff] }
 0x15f   : > { %v1127_v46 = vpop.f32.mrf.mxu0  ;;  %v5078_v62 = vpop.f32.mrf.mxu1  ;;  %5575 = vmatmul.mubr.f32.gmra.mxu1 %v2549_v36 }
 0x160   : > { %v6859_v28 = vadd.f32 %v1127_v46, %v830_v39  ;;  %v845_v56 = vadd.f32 %v5078_v62, %v6655_v42  ;;  %5577 = vmatprep.mubr.f32.mxu1 %v2550_v50  ;;  %v2555_v50 = vld [vmem:[%s5938_s30 + $0x10e] sm:$0xff]  ;;  %v2556_v46 = vld [vmem:[%s5938_s30 + $0x116] sm:$0xff] }
 0x161   : > { %v5164_v16 = vpop.f32.mrf.mxu0  ;;  %5661 = vmatmul.mubr.f32.gmra.mxu0 %v2883_v43  ;;  %v839_v26 = vpop.f32.mrf.mxu1 }
 0x162   : > { %v6864_v30 = vadd.f32 %v5164_v16, %v845_v56  ;;  %v840_v2 = vadd.f32 %v839_v26, %v6663_v54  ;;  %5663 = vmatprep.mubr.f32.mxu0 %v2884_v8  ;;  %v2889_v8 = vld [vmem:[%s5938_s30 + $0x10f] sm:$0xff]  ;;  %v2890_v16 = vld [vmem:[%s5938_s30 + $0x117] sm:$0xff] }
 0x163   : > { %v1137_v38 = vpop.f32.mrf.mxu0  ;;  %v5081_v13 = vpop.f32.mrf.mxu1  ;;  %5578 = vmatmul.mubr.f32.gmra.mxu1 %v2551_v59 }
 0x164   : > { %v6869_v42 = vadd.f32 %v1137_v38, %v840_v2  ;;  %v855_v57 = vadd.f32 %v5081_v13, %v6674_v51  ;;  %5580 = vmatprep.mubr.f32.mxu1 %v2552_v5  ;;  %v2557_v5 = vld [vmem:[%s5938_s30 + $0x11e] sm:$0xff]  ;;  %v2558_v38 = vld [vmem:[%s5938_s30 + $0x126] sm:$0xff] }
 0x165   : > { %v5167_v31 = vpop.f32.mrf.mxu0  ;;  %5664 = vmatmul.mubr.f32.gmra.mxu0 %v2885_v35  ;;  %v849_v21 = vpop.f32.mrf.mxu1 }
 0x166   : > { %v6874_v54 = vadd.f32 %v5167_v31, %v855_v57  ;;  %v850_v7 = vadd.f32 %v849_v21, %v6682_v14  ;;  %5666 = vmatprep.mubr.f32.mxu0 %v2886_v47  ;;  %v2891_v47 = vld [vmem:[%s5938_s30 + $0x11f] sm:$0xff]  ;;  %v2892_v31 = vld [vmem:[%s5938_s30 + $0x127] sm:$0xff] }
 0x167   : > { %v1147_v44 = vpop.f32.mrf.mxu0  ;;  %v5202_v36 = vpop.f32.mrf.mxu1  ;;  %5581 = vmatmul.mubr.f32.gmra.mxu1 %v2553_v19 }
 0x168   : > { %v6879_v51 = vadd.f32 %v1147_v44, %v850_v7  ;;  %v1491_v33 = vadd.f32 %v5202_v36, %v6699_v53  ;;  %5583 = vmatprep.mubr.f32.mxu1 %v2554_v23  ;;  %v2559_v23 = vld [vmem:[%s5938_s30 + $0x12e] sm:$0xff]  ;;  %v2560_v44 = vld [vmem:[%s5938_s30 + $0x136] sm:$0xff] }
 0x169   : > { %v5288_v39 = vpop.f32.mrf.mxu0  ;;  %5667 = vmatmul.mubr.f32.gmra.mxu0 %v2887_v34  ;;  %v1311_v43 = vpop.f32.mrf.mxu1 }
 0x16a   : > { %v6884_v14 = vadd.f32 %v5288_v39, %v1491_v33  ;;  %v1490_v62 = vadd.f32 %v1311_v43, %v6707_v11  ;;  %5669 = vmatprep.mubr.f32.mxu0 %v2888_v15  ;;  %v2893_v15 = vld [vmem:[%s5938_s30 + $0x12f] sm:$0xff]  ;;  %v2894_v39 = vld [vmem:[%s5938_s30 + $0x137] sm:$0xff] }
 0x16b   : > { %v1645_v56 = vpop.f32.mrf.mxu0  ;;  %v5205_v59 = vpop.f32.mrf.mxu1  ;;  %5584 = vmatmul.mubr.f32.gmra.mxu1 %v2555_v50 }
 0x16c   : > { %v6889_v53 = vadd.f32 %v1645_v56, %v1490_v62  ;;  %v1493_v26 = vadd.f32 %v5205_v59, %v6713_v40  ;;  %5586 = vmatprep.mubr.f32.mxu1 %v2556_v46  ;;  %v2561_v46 = vld [vmem:[%s5938_s30 + $0x13e] sm:$0xff]  ;;  %v2562_v56 = vld [vmem:[%s5938_s30 + $0x146] sm:$0xff] }
 0x16d   : > { %v5291_v2 = vpop.f32.mrf.mxu0  ;;  %5670 = vmatmul.mubr.f32.gmra.mxu0 %v2889_v8  ;;  %v1321_v35 = vpop.f32.mrf.mxu1 }
 0x16e   : > { %v6894_v11 = vadd.f32 %v5291_v2, %v1493_v26  ;;  %v1492_v13 = vadd.f32 %v1321_v35, %v6721_v4  ;;  %5672 = vmatprep.mubr.f32.mxu0 %v2890_v16  ;;  %v2895_v16 = vld [vmem:[%s5938_s30 + $0x13f] sm:$0xff]  ;;  %v2896_v2 = vld [vmem:[%s5938_s30 + $0x147] sm:$0xff] }
 0x16f   : > { %v1655_v57 = vpop.f32.mrf.mxu0  ;;  %v5208_v19 = vpop.f32.mrf.mxu1  ;;  %5587 = vmatmul.mubr.f32.gmra.mxu1 %v2557_v5 }
 0x170   : > { %v6899_v40 = vadd.f32 %v1655_v57, %v1492_v13  ;;  %v1495_v21 = vadd.f32 %v5208_v19, %v6727_v3  ;;  %5589 = vmatprep.mubr.f32.mxu1 %v2558_v38  ;;  %v2563_v38 = vld [vmem:[%s5938_s30 + $0x14e] sm:$0xff] }
 0x171   : > { %v5294_v7 = vpop.f32.mrf.mxu0  ;;  %5673 = vmatmul.mubr.f32.gmra.mxu0 %v2891_v47  ;;  %v1331_v34 = vpop.f32.mrf.mxu1  ;;  %v2897_v19 = vld [vmem:[%s5938_s30 + $0x14f] sm:$0xff] }
 0x172   : > { %v6904_v4 = vadd.f32 %v5294_v7, %v1495_v21  ;;  %v1494_v36 = vadd.f32 %v1331_v34, %v6732_v45  ;;  %5675 = vmatprep.mubr.f32.mxu0 %v2892_v31 }
 0x173   : > { %v1665_v33 = vpop.f32.mrf.mxu0  ;;  %v5211_v50 = vpop.f32.mrf.mxu1  ;;  %5590 = vmatmul.mubr.f32.gmra.mxu1 %v2559_v23 }
 0x174   : > { %v6909_v3 = vadd.f32 %v1665_v33, %v1494_v36  ;;  %v1497_v43 = vadd.f32 %v5211_v50, %v6735_v55  ;;  %5592 = vmatprep.mubr.f32.mxu1 %v2560_v44 }
 0x175   : > { %v5297_v62 = vpop.f32.mrf.mxu0  ;;  %5676 = vmatmul.mubr.f32.gmra.mxu0 %v2893_v15  ;;  %v1341_v8 = vpop.f32.mrf.mxu1 }
 0x176   : > { %v6914_v45 = vadd.f32 %v5297_v62, %v1497_v43  ;;  %v1496_v59 = vadd.f32 %v1341_v8, %v6740_v61  ;;  %5678 = vmatprep.mubr.f32.mxu0 %v2894_v39  ;;  %v3390_v39 = vlaneseq }
 0x177   : > { %v1675_v26 = vpop.f32.mrf.mxu0  ;;  %v5214_v5 = vpop.f32.mrf.mxu1  ;;  %5593 = vmatmul.mubr.f32.gmra.mxu1 %v2561_v46 }
 0x178   : > { %v6919_v35 = vadd.f32 %v1675_v26, %v1496_v59  ;;  %v1499_v55 = vadd.f32 %v5214_v5, %v6744_v22  ;;  %5595 = vmatprep.mubr.f32.mxu1 %v2562_v56 }
 0x179   : > { %v5300_v13 = vpop.f32.mrf.mxu0  ;;  %5679 = vmatmul.mubr.f32.gmra.mxu0 %v2895_v16  ;;  %v1351_v47 = vpop.f32.mrf.mxu1 }
 0x17a   : > { %v6923_v57 = vadd.f32 %v5300_v13, %v1499_v55  ;;  %v1498_v61 = vadd.f32 %v1351_v47, %v6749_v6  ;;  %5681 = vmatprep.mubr.f32.mxu0 %v2896_v2 }
 0x17b   : > { %v1685_v31 = vpop.f32.mrf.mxu0  ;;  %v5217_v21 = vpop.f32.mrf.mxu1  ;;  %5596 = vmatmul.mubr.f32.gmra.mxu1 %v2563_v38 }
 0x17c   : > { %v6927_v23 = vadd.f32 %v1685_v31, %v1498_v61  ;;  %v1501_v7 = vadd.f32 %v5217_v21, %v6754_v12 }
 0x17d   : > { %v5303_v34 = vpop.f32.mrf.mxu0  ;;  %5682 = vmatmul.mubr.f32.gmra.mxu0 %v2897_v19  ;;  %v1361_v22 = vpop.f32.mrf.mxu1 }
 0x17e   : > { %v6930_v44 = vadd.f32 %v5303_v34, %v1501_v7  ;;  %v1500_v36 = vadd.f32 %v1361_v22, %v6759_v18  ;;  %v6942_v18 = vshrl.u32 %v3390_v39, 7 }
 0x17f   : > { %v1695_v15 = vpop.f32.mrf.mxu0  ;;  %v5220_v33 = vpop.f32.mrf.mxu1 }
 0x180   : > { %v6933_v50 = vadd.f32 %v1695_v15, %v1500_v36  ;;  %v1503_v6 = vadd.f32 %v5220_v33, %v6764_v1  ;;  %v6951_v47 = vadd.s32 8, %v6942_v18  ;;  %v6957_v34 = vadd.s32 24, %v6942_v18 }
 0x181   : > { %v5306_v43 = vpop.f32.mrf.mxu0  ;;  %v1371_v46 = vpop.f32.mrf.mxu1 }
 0x182   : > { %v6936_v62 = vadd.f32 %v5306_v43, %v1503_v6  ;;  %v1502_v12 = vadd.f32 %v1371_v46, %v6769_v24  ;;  %v6967_v6 = vmul.u32.u64.low 3817748708, %v6942_v18  ;;  %v6968_v39 = vmul.u32.u64.high 3817748708, %v6942_v18, %v6967_v6 }
 0x183   : > { %v1705_v8 = vpop.f32.mrf.mxu0  ;;  %v5223_v56 = vpop.f32.mrf.mxu1 }
 0x184   : > { %v6939_v59 = vadd.f32 %v1705_v8, %v1502_v12  ;;  %v1505_v16 = vadd.f32 %v5223_v56, %v6774_v25 }
 0x185   : > { %v5309_v26 = vpop.f32.mrf.mxu0  ;;  %v1381_v5 = vpop.f32.mrf.mxu1 }
 0x186   : > { %v6944_v2 = vadd.f32 %v5309_v26, %v1505_v16  ;;  %v1504_v1 = vadd.f32 %v1381_v5, %v6779_v48 }
 0x187   : > { %v1715_v55 = vpop.f32.mrf.mxu0  ;;  %v5226_v38 = vpop.f32.mrf.mxu1 }
 0x188   : > { %v6947_v13 = vadd.f32 %v1715_v55, %v1504_v1  ;;  %v1507_v24 = vadd.f32 %v5226_v38, %v6784_v60  ;;  %v6963_v60 = vmul.u32.u64.low 3817748708, %v6951_v47  ;;  %v6964_v36 = vmul.u32.u64.high 3817748708, %v6951_v47, %v6963_v60 }
 0x189   : > { %v5312_v61 = vpop.f32.mrf.mxu0  ;;  %v1391_v19 = vpop.f32.mrf.mxu1 }
 0x18a   : > { %v6953_v25 = vadd.f32 %v5312_v61, %v1507_v24  ;;  %v1506_v31 = vadd.f32 %v1391_v19, %v6789_v10  ;;  %v6971_v10 = vadd.s32 16, %v6942_v18 }
 0x18b   : > { %v1725_v21 = vpop.f32.mrf.mxu0  ;;  %v5229_v7 = vpop.f32.mrf.mxu1 }
 0x18c   : > { %v6959_v48 = vadd.f32 %v1725_v21, %v1506_v31  ;;  %v1509_v22 = vadd.f32 %v5229_v7, %v6794_v0  ;;  %v6977_v0 = vmul.u32.u64.low 3817748708, %v6957_v34  ;;  %v6978_v56 = vmul.u32.u64.high 3817748708, %v6957_v34, %v6977_v0 }
 0x18d   : > { %v5315_v15 = vpop.f32.mrf.mxu0  ;;  %v1401_v33 = vpop.f32.mrf.mxu1  ;;  %v6984_v55 = vmul.u32.u64.low 3817748708, %v6971_v10  ;;  %v6985_v38 = vmul.u32.u64.high 3817748708, %v6971_v10, %v6984_v55  ;;  %v6991_v31 = vadd.s32 40, %v6942_v18 }
 0x18e   : > { %v6973_v43 = vadd.f32 %v5315_v15, %v1509_v22  ;;  %v1508_v46 = vadd.f32 %v1401_v33, %v6799_v27  ;;  %v3433_v15 = vshrl.u32 %v6968_v39, 4 }
 0x18f   : > { %v1735_v12 = vpop.f32.mrf.mxu0  ;;  %v5232_v8 = vpop.f32.mrf.mxu1 }
 0x190   : > { %v6980_v16 = vadd.f32 %v1735_v12, %v1508_v46  ;;  %v1511_v26 = vadd.f32 %v5232_v8, %v6804_v32  ;;  %v3444_v32 = vshrl.u32 %v6964_v36, 4  ;;  %v3466_v12 = vshrl.u32 %v6978_v56, 4 }
 0x191   : > { %v5318_v5 = vpop.f32.mrf.mxu0  ;;  %v1411_v1 = vpop.f32.mrf.mxu1  ;;  %v7003_v8 = vmul.u32.u64.low 3817748708, %v6991_v31  ;;  %v7004_v0 = vmul.u32.u64.high 3817748708, %v6991_v31, %v7003_v8  ;;  %v3434_v55 = vmul.u32 18, %v3433_v15 }
 0x192   : > { %v6987_v24 = vadd.f32 %v5318_v5, %v1511_v26  ;;  %v1510_v27 = vadd.f32 %v1411_v1, %v6809_v37  ;;  %v3445_v39 = vmul.u32 18, %v3444_v32 }
 0x193   : > { %v1745_v61 = vpop.f32.mrf.mxu0  ;;  %v5235_v19 = vpop.f32.mrf.mxu1 }
 0x194   : > { %v6993_v21 = vadd.f32 %v1745_v61, %v1510_v27  ;;  %v1513_v7 = vadd.f32 %v5235_v19, %v6814_v41  ;;  %v7007_v41 = vadd.s32 32, %v6942_v18  ;;  %v7014_v27 = vadd.s32 56, %v6942_v18 }
 0x195   : > { %v5321_v22 = vpop.f32.mrf.mxu0  ;;  %v1421_v60 = vpop.f32.mrf.mxu1  ;;  %v7020_v19 = vadd.s32 48, %v6942_v18 }
 0x196   : > { %v6998_v33 = vadd.f32 %v5321_v22, %v1513_v7  ;;  %v1512_v6 = vadd.f32 %v1421_v60, %v6819_v49  ;;  %v3455_v49 = vshrl.u32 %v6985_v38, 4  ;;  %v3467_v60 = vmul.u32 18, %v3466_v12 }
 0x197   : > { %v1755_v37 = vpop.f32.mrf.mxu0  ;;  %v5238_v46 = vpop.f32.mrf.mxu1 }
 0x198   : > { %v7009_v36 = vadd.f32 %v1755_v37, %v1512_v6  ;;  %v1515_v26 = vadd.f32 %v5238_v46, %v6824_v52  ;;  %v7023_v52 = vmul.u32.u64.low 3817748708, %v7007_v41  ;;  %v7024_v32 = vmul.u32.u64.high 3817748708, %v7007_v41, %v7023_v52 }
 0x199   : > { %v5324_v5 = vpop.f32.mrf.mxu0  ;;  %v1431_v1 = vpop.f32.mrf.mxu1  ;;  %v7030_v6 = vsub.s32 %v6951_v47, %v3445_v39  ;;  %v3456_v8 = vmul.u32 18, %v3455_v49  ;;  %v7055_v52 = vadd.s32 72, %v6942_v18 }
 0x19a   : > { %v7016_v56 = vadd.f32 %v5324_v5, %v1515_v26  ;;  %v1514_v61 = vadd.f32 %v1431_v1, %v6829_v58  ;;  %v7033_v58 = vsub.s32 %v6942_v18, %v3434_v55  ;;  %v3488_v55 = vshrl.u32 %v7004_v0, 4 }
 0x19b   : > { %v1765_v7 = vpop.f32.mrf.mxu0  ;;  %v5241_v22 = vpop.f32.mrf.mxu1  ;;  %v7036_v26 = vmul.u32.u64.low 3817748708, %v7014_v27  ;;  %v7037_v12 = vmul.u32.u64.high 3817748708, %v7014_v27, %v7036_v26  ;;  %vm3824_vm0 = vcmp.ne.s32.totalorder %v7030_v6, 0  ;;  %vm3860_vm1 = vcmp.lt.s32.totalorder %v7030_v6, 0 }
 0x19c   : > { %8504 = vst [vmem:[#allocation2_spill] sm:$0xff] %v7016_v56  ;;  %v7026_v15 = vadd.f32 %v1765_v7, %v1514_v61  ;;  %v1517_v38 = vadd.f32 %v5241_v22, %v6834_v20  ;;  %v7043_v61 = vmul.u32.u64.low 3817748708, %v7020_v19  ;;  %v7044_v20 = vmul.u32.u64.high 3817748708, %v7020_v19, %v7043_v61  ;;  %vm7090_vm7 = vmand %vm3860_vm1, %vm3824_vm0 }
 0x19d   : > { %v5327_v37 = vpop.f32.mrf.mxu0  ;;  %v1441_v46 = vpop.f32.mrf.mxu1  ;;  %v7047_v7 = vsub.s32 %v6957_v34, %v3467_v60  ;;  %vm3823_vm2 = vcmp.ne.s32.totalorder %v7033_v58, 0  ;;  %v3457_v34 = vsub.s32 %v6971_v10, %v3456_v8  ;;  %vm3859_vm3 = vcmp.lt.s32.totalorder %v7033_v58, 0 }
 0x19e   : > { %8505 = vst [vmem:[#allocation3_spill] sm:$0xff] %v7026_v15  ;;  %v7039_v5 = vadd.f32 %v5327_v37, %v1517_v38  ;;  %v1516_v1 = vadd.f32 %v1441_v46, %v6839_v29  ;;  %v3932_v37 = vadd.s32 18, %v7030_v6  ;;  %v3477_v61 = vshrl.u32 %v7024_v32, 4  ;;  %vm7099_vm9 = vmand %vm3859_vm3, %vm3823_vm2 }
 0x19f   : > { %v1775_v47 = vpop.f32.mrf.mxu0  ;;  %v5244_v39 = vpop.f32.mrf.mxu1  ;;  %vm3826_vm4 = vcmp.ne.s32.totalorder %v7047_v7, 0  ;;  %vm3862_vm5 = vcmp.lt.s32.totalorder %v7047_v7, 0  ;;  %vm3825_vm6 = vcmp.ne.s32.totalorder %v3457_v34, 0  ;;  %v7081_v32 = vadd.s32 88, %v6942_v18 }
 0x1a0   : > { %8506 = vst [vmem:[#allocation4_spill] sm:$0xff] %v7039_v5  ;;  %v7050_v49 = vadd.f32 %v1775_v47, %v1516_v1  ;;  %v1519_v22 = vadd.f32 %v5244_v39, %v6844_v9  ;;  %v3931_v9 = vadd.s32 18, %v7033_v58  ;;  %v3489_v1 = vmul.u32 18, %v3488_v55  ;;  %vm7114_vm10 = vmand %vm3862_vm5, %vm3826_vm4 }
 0x1a1   : > { %v5330_v29 = vpop.f32.mrf.mxu0  ;;  %v1451_v38 = vpop.f32.mrf.mxu1  ;;  %v7069_v47 = vadd.s32 64, %v6942_v18  ;;  %v3510_v55 = vshrl.u32 %v7037_v12, 4  ;;  %vm3861_vm8 = vcmp.lt.s32.totalorder %v3457_v34, 0  ;;  %v7137_v56 = vsel %vm7090_vm7, %v3932_v37, %v7030_v6 }
 0x1a2   : > { %8507 = vst [vmem:[#allocation5_spill] sm:$0xff] %v7050_v49  ;;  %v7061_v0 = vadd.f32 %v5330_v29, %v1519_v22  ;;  %v1518_v60 = vadd.f32 %v1451_v38, %v6849_v17  ;;  %v7075_v17 = vmul.u32.u64.low 3817748708, %v7055_v52  ;;  %v7076_v8 = vmul.u32.u64.high 3817748708, %v7055_v52, %v7075_v17  ;;  %vm3897_vm11 = vmand %vm3861_vm8, %vm3825_vm6 }
 0x1a3   : > { %v1785_v46 = vpop.f32.mrf.mxu0  ;;  %v5247_v26 = vpop.f32.mrf.mxu1  ;;  %v3933_v17 = vadd.s32 18, %v3457_v34 }
 0x1a4   : > { %8508 = vst [vmem:[#allocation6_spill] sm:$0xff] %v7061_v0  ;;  %v7071_v39 = vadd.f32 %v1785_v46, %v1518_v60  ;;  %v1521_v10 = vadd.f32 %v5247_v26, %v6854_v63  ;;  %v3499_v46 = vshrl.u32 %v7044_v20, 4  ;;  %v3532_v6 = vshrl.u32 %v7076_v8, 4 }
 0x1a5   : > { %v5333_v22 = vpop.f32.mrf.mxu0  ;;  %v1461_v29 = vpop.f32.mrf.mxu1  ;;  %v7119_v0 = vmul.u32.u64.low 3817748708, %v7069_v47  ;;  %v7120_v49 = vmul.u32.u64.high 3817748708, %v7069_v47, %v7119_v0 }
 0x1a6   : > { %8509 = vst [vmem:[#allocation7_spill] sm:$0xff] %v7071_v39  ;;  %v7083_v38 = vadd.f32 %v5333_v22, %v1521_v10  ;;  %v1520_v60 = vadd.f32 %v1461_v29, %v6859_v28  ;;  %v3934_v28 = vadd.s32 18, %v7047_v7  ;;  %v7105_v22 = vsub.s32 %v6991_v31, %v3489_v1 }
 0x1a7   : > { %v1795_v26 = vpop.f32.mrf.mxu0  ;;  %v5250_v12 = vpop.f32.mrf.mxu1  ;;  %v3478_v29 = vmul.u32 18, %v3477_v61  ;;  %v3511_v1 = vmul.u32 18, %v3510_v55  ;;  %v7142_v55 = vsel %vm7099_vm9, %v3931_v9, %v7033_v58 }
 0x1a8   : > { %8510 = vst [vmem:[#allocation8_spill] sm:$0xff] %v7083_v38  ;;  %v7107_v38 = vadd.f32 %v1795_v26, %v1520_v60  ;;  %v1523_v20 = vadd.f32 %v5250_v12, %v6864_v30  ;;  %v7125_v30 = vmul.u32.u64.low 3817748708, %v7081_v32  ;;  %v7126_v61 = vmul.u32.u64.high 3817748708, %v7081_v32, %v7125_v30 }
 0x1a9   : > { %v5336_v5 = vpop.f32.mrf.mxu0  ;;  %v1471_v31 = vpop.f32.mrf.mxu1  ;;  %v7129_v60 = vadd.s32 80, %v6942_v18  ;;  %vm3828_vm12 = vcmp.ne.s32.totalorder %v7105_v22, 0  ;;  %v3512_v58 = vsub.s32 %v7014_v27, %v3511_v1  ;;  %vm3864_vm13 = vcmp.lt.s32.totalorder %v7105_v22, 0 }
 0x1aa   : > { %8515 = vst [vmem:[#allocation9_spill] sm:$0xff] %v7107_v38  ;;  %v7131_v26 = vadd.f32 %v5336_v5, %v1523_v20  ;;  %v1522_v12 = vadd.f32 %v1471_v31, %v6869_v42  ;;  %v3500_v38 = vmul.u32 18, %v3499_v46  ;;  %v7147_v5 = vsel %vm7114_vm10, %v3934_v28, %v7047_v7  ;;  %vm7183_vm2 = vmand %vm3864_vm13, %vm3828_vm12 }
 0x1ab   : > { %v1805_v15 = vpop.f32.mrf.mxu0  ;;  %v5253_v0 = vpop.f32.mrf.mxu1  ;;  %v3479_v42 = vsub.s32 %v7007_v41, %v3478_v29  ;;  %v7153_v31 = vsel %vm3897_vm11, %v3933_v17, %v3457_v34  ;;  %v7159_v9 = vmul.u32.u64.low 3817748708, %v7129_v60  ;;  %v7160_v7 = vmul.u32.u64.high 3817748708, %v7129_v60, %v7159_v9 }
 0x1ac   : > { %v7150_v46 = vadd.f32 %v1805_v15, %v1522_v12  ;;  %v1525_v20 = vadd.f32 %v5253_v0, %v6874_v54  ;;  %v3501_v54 = vsub.s32 %v7020_v19, %v3500_v38  ;;  %v3936_v8 = vadd.s32 18, %v7105_v22 }
 0x1ad   : > { %v5339_v37 = vpop.f32.mrf.mxu0  ;;  %v1481_v63 = vpop.f32.mrf.mxu1  ;;  %vm3827_vm14 = vcmp.ne.s32.totalorder %v3479_v42, 0  ;;  %vm3863_vm15 = vcmp.lt.s32.totalorder %v3479_v42, 0  ;;  %v7169_v27 = vadd.s32 104, %v6942_v18  ;;  %v3935_v17 = vadd.s32 18, %v3479_v42 }
 0x1ae   : > { %v7162_v39 = vadd.f32 %v5339_v37, %v1525_v20  ;;  %v1524_v41 = vadd.f32 %v1481_v63, %v6879_v51  ;;  %v3533_v29 = vmul.u32 18, %v3532_v6  ;;  %vm3830_vm0 = vcmp.ne.s32.totalorder %v3512_v58, 0  ;;  %vm7189_vm5 = vmand %vm3863_vm15, %vm3827_vm14 }
 0x1af   : > { %v1815_v15 = vpop.f32.mrf.mxu0  ;;  %v5374_v34 = vpop.f32.mrf.mxu1  ;;  %vm3866_vm1 = vcmp.lt.s32.totalorder %v3512_v58, 0  ;;  %v3521_v19 = vshrl.u32 %v7120_v49, 4  ;;  %v3554_v38 = vshrl.u32 %v7126_v61, 4  ;;  %vm3829_vm3 = vcmp.ne.s32.totalorder %v3501_v54, 0 }
 0x1b0   : > { %v7171_v10 = vadd.f32 %v1815_v15, %v1524_v41  ;;  %v2159_v28 = vadd.f32 %v5374_v34, %v6884_v14  ;;  %vm3865_vm4 = vcmp.lt.s32.totalorder %v3501_v54, 0  ;;  %v3938_v61 = vadd.s32 18, %v3512_v58  ;;  %vm7205_vm6 = vmand %vm3866_vm1, %vm3830_vm0 }
 0x1b1   : > { %v5460_v51 = vpop.f32.mrf.mxu0  ;;  %v1979_v1 = vpop.f32.mrf.mxu1  ;;  %v7198_v37 = vadd.s32 96, %v6942_v18  ;;  %v3937_v15 = vadd.s32 18, %v3501_v54  ;;  %v7210_v34 = vsub.s32 %v7055_v52, %v3533_v29  ;;  %vm7219_vm7 = vmand %vm3865_vm4, %vm3829_vm3  ;;  %v7229_v29 = vsel %vm7189_vm5, %v3935_v17, %v3479_v42 }
 0x1b2   : > { %v7176_v30 = vadd.f32 %v5460_v51, %v2159_v28  ;;  %v2158_v12 = vadd.f32 %v1979_v1, %v6889_v53  ;;  %v7194_v53 = vmul.u32.u64.low 3817748708, %v7169_v27  ;;  %v7195_v6 = vmul.u32.u64.high 3817748708, %v7169_v27, %v7194_v53 }
 0x1b3   : > { %v2313_v0 = vpop.f32.mrf.mxu0  ;;  %v5377_v20 = vpop.f32.mrf.mxu1  ;;  %v7215_v1 = vsel %vm7183_vm2, %v3936_v8, %v7105_v22  ;;  %v7232_v22 = vadd.s32 120, %v6942_v18  ;;  %v7250_v17 = vsel %vm7219_vm7, %v3937_v15, %v3501_v54  ;;  %vm3832_vm8 = vcmp.ne.s32.totalorder %v7210_v34, 0 }
 0x1b4   : > { %v7200_v63 = vadd.f32 %v2313_v0, %v2158_v12  ;;  %v2161_v9 = vadd.f32 %v5377_v20, %v6894_v11  ;;  %8524 = vst [vmem:[#allocation10_spill] sm:$0xff] %v7215_v1  ;;  %v3522_v12 = vmul.u32 18, %v3521_v19  ;;  %v3555_v0 = vmul.u32 18, %v3554_v38  ;;  %8527 = vst [vmem:[#allocation11_spill] sm:$0xff] %v7250_v17 }
 0x1b5   : > { %v5463_v28 = vpop.f32.mrf.mxu0  ;;  %v1989_v51 = vpop.f32.mrf.mxu1  ;;  %v3543_v20 = vshrl.u32 %v7160_v7, 4  ;;  %v7236_v1 = vsel %vm7205_vm6, %v3938_v61, %v3512_v58  ;;  %v7239_v19 = vmul.u32.u64.low 3817748708, %v7198_v37  ;;  %v7240_v7 = vmul.u32.u64.high 3817748708, %v7198_v37, %v7239_v19 }
 0x1b6   : > { %v7224_v53 = vadd.f32 %v5463_v28, %v2161_v9  ;;  %v2160_v52 = vadd.f32 %v1989_v51, %v6899_v40  ;;  %v7243_v38 = vadd.s32 112, %v6942_v18  ;;  %vm3868_vm9 = vcmp.lt.s32.totalorder %v7210_v34, 0 }
 0x1b7   : > { %v2323_v8 = vpop.f32.mrf.mxu0  ;;  %v5380_v14 = vpop.f32.mrf.mxu1  ;;  %v3523_v61 = vsub.s32 %v7069_v47, %v3522_v12  ;;  %v7256_v9 = vsub.s32 %v7081_v32, %v3555_v0  ;;  %v3544_v41 = vmul.u32 18, %v3543_v20  ;;  %v7271_v47 = vadd.s32 136, %v6942_v18  ;;  %vm7288_vm12 = vmand %vm3868_vm9, %vm3832_vm8 }
 0x1b8   : > { %v7245_v40 = vadd.f32 %v2323_v8, %v2160_v52  ;;  %v2163_v42 = vadd.f32 %v5380_v14, %v6904_v4  ;;  %v7262_v51 = vmul.u32.u64.low 3817748708, %v7232_v22  ;;  %v7263_v54 = vmul.u32.u64.high 3817748708, %v7232_v22, %v7262_v51 }
 0x1b9   : > { %v5466_v49 = vpop.f32.mrf.mxu0  ;;  %v1999_v58 = vpop.f32.mrf.mxu1  ;;  %v3576_v52 = vshrl.u32 %v7195_v6, 4  ;;  %v7267_v8 = vmul.u32.u64.low 3817748708, %v7243_v38  ;;  %v7268_v14 = vmul.u32.u64.high 3817748708, %v7243_v38, %v7267_v8  ;;  %v7278_v0 = vadd.s32 128, %v6942_v18 }
 0x1ba   : > { %v7258_v28 = vadd.f32 %v5466_v49, %v2163_v42  ;;  %v2162_v4 = vadd.f32 %v1999_v58, %v6909_v3  ;;  %v3940_v3 = vadd.s32 18, %v7210_v34  ;;  %vm3831_vm10 = vcmp.ne.s32.totalorder %v3523_v61, 0 }
 0x1bb   : > { %v2333_v15 = vpop.f32.mrf.mxu0  ;;  %v5383_v11 = vpop.f32.mrf.mxu1  ;;  %vm3867_vm11 = vcmp.lt.s32.totalorder %v3523_v61, 0  ;;  %v3939_v6 = vadd.s32 18, %v3523_v61  ;;  %v3545_v42 = vsub.s32 %v7129_v60, %v3544_v41  ;;  %vm3834_vm13 = vcmp.ne.s32.totalorder %v7256_v9, 0 }
 0x1bc   : > { %v7273_v32 = vadd.f32 %v2333_v15, %v2162_v4  ;;  %v2165_v12 = vadd.f32 %v5383_v11, %v6914_v45  ;;  %vm3870_vm14 = vcmp.lt.s32.totalorder %v7256_v9, 0  ;;  %v3577_v15 = vmul.u32 18, %v3576_v52  ;;  %vm3903_vm15 = vmand %vm3867_vm11, %vm3831_vm10 }
 0x1bd   : > { %v5469_v20 = vpop.f32.mrf.mxu0  ;;  %v2009_v19 = vpop.f32.mrf.mxu1  ;;  %v3565_v60 = vshrl.u32 %v7240_v7, 4  ;;  %v7311_v7 = vsel %vm7288_vm12, %v3940_v3, %v7210_v34  ;;  %vm3833_vm0 = vcmp.ne.s32.totalorder %v3545_v42, 0  ;;  %vm3869_vm1 = vcmp.lt.s32.totalorder %v3545_v42, 0  ;;  %vm7329_vm2 = vmand %vm3870_vm14, %vm3834_vm13 }
 0x1be   : > { %v7281_v49 = vadd.f32 %v5469_v20, %v2165_v12  ;;  %v2164_v58 = vadd.f32 %v2009_v19, %v6919_v35  ;;  %v7296_v41 = vmul.u32.u64.low 3817748708, %v7271_v47  ;;  %v7297_v35 = vmul.u32.u64.high 3817748708, %v7271_v47, %v7296_v41  ;;  %8532 = vst [vmem:[#allocation14_spill] sm:$0xff] %v7311_v7  ;;  %vm3905_vm3 = vmand %vm3869_vm1, %vm3833_vm0 }
 0x1bf   : > { %v2343_v4 = vpop.f32.mrf.mxu0  ;;  %v5386_v51 = vpop.f32.mrf.mxu1  ;;  %v7305_v12 = vmul.u32.u64.low 3817748708, %v7278_v0  ;;  %v7306_v20 = vmul.u32.u64.high 3817748708, %v7278_v0, %v7305_v12  ;;  %v7314_v52 = vadd.s32 152, %v6942_v18  ;;  %v3941_v3 = vadd.s32 18, %v3545_v42 }
 0x1c0   : > { %8528 = vst [vmem:[#allocation12_spill] sm:$0xff] %v7281_v49  ;;  %v7299_v11 = vadd.f32 %v2343_v4, %v2164_v58  ;;  %v2167_v8 = vadd.f32 %v5386_v51, %v6923_v57  ;;  %v3942_v4 = vadd.s32 18, %v7256_v9  ;;  %v7321_v51 = vadd.s32 144, %v6942_v18 }
 0x1c1   : > { %v5472_v19 = vpop.f32.mrf.mxu0  ;;  %v2019_v17 = vpop.f32.mrf.mxu1  ;;  %v3620_v49 = vshrl.u32 %v7297_v35, 4 }
 0x1c2   : > { %8531 = vst [vmem:[#allocation13_spill] sm:$0xff] %v7299_v11  ;;  %v7316_v57 = vadd.f32 %v5472_v19, %v2167_v8  ;;  %v2166_v58 = vadd.f32 %v2019_v17, %v6927_v23  ;;  %v7323_v11 = vsel %vm3903_vm15, %v3939_v6, %v3523_v61  ;;  %v7334_v23 = vsub.s32 %v7169_v27, %v3577_v15 }
 0x1c3   : > { %v2353_v41 = vpop.f32.mrf.mxu0  ;;  %v5389_v12 = vpop.f32.mrf.mxu1  ;;  %8534 = vst [vmem:[#allocation16_spill] sm:$0xff] %v7323_v11  ;;  %v3598_v17 = vshrl.u32 %v7263_v54, 4  ;;  %v3566_v61 = vmul.u32 18, %v3565_v60  ;;  %v3587_v6 = vshrl.u32 %v7268_v14, 4  ;;  %v7348_v27 = vadd.s32 168, %v6942_v18 }
 0x1c4   : > { %8533 = vst [vmem:[#allocation15_spill] sm:$0xff] %v7316_v57  ;;  %v7337_v45 = vadd.f32 %v2353_v41, %v2166_v58  ;;  %v2169_v8 = vadd.f32 %v5389_v12, %v6930_v44  ;;  %v7344_v57 = vmul.u32.u64.low 3817748708, %v7314_v52  ;;  %v7345_v7 = vmul.u32.u64.high 3817748708, %v7314_v52, %v7344_v57 }
 0x1c5   : > { %v5475_v19 = vpop.f32.mrf.mxu0  ;;  %v2029_v11 = vpop.f32.mrf.mxu1  ;;  %v7351_v54 = vadd.s32 160, %v6942_v18  ;;  %v7357_v60 = vmul.u32.u64.low 3817748708, %v7321_v51  ;;  %v7358_v58 = vmul.u32.u64.high 3817748708, %v7321_v51, %v7357_v60  ;;  %v7363_v57 = vsel %vm7329_vm2, %v3942_v4, %v7256_v9 }
 0x1c6   : > { %8537 = vst [vmem:[#allocation17_spill] sm:$0xff] %v7337_v45  ;;  %v7353_v15 = vadd.f32 %v5475_v19, %v2169_v8  ;;  %v2168_v44 = vadd.f32 %v2029_v11, %v6933_v50  ;;  %v7365_v12 = vsel %vm3905_vm3, %v3941_v3, %v3545_v42  ;;  %v3599_v45 = vmul.u32 18, %v3598_v17 }
 0x1c7   : > { %v2363_v14 = vpop.f32.mrf.mxu0  ;;  %v5392_v41 = vpop.f32.mrf.mxu1  ;;  %v3588_v11 = vmul.u32 18, %v3587_v6  ;;  %v3609_v19 = vshrl.u32 %v7306_v20, 4  ;;  %vm3836_vm4 = vcmp.ne.s32.totalorder %v7334_v23, 0  ;;  %v7374_v34 = vsub.s32 %v7198_v37, %v3566_v61 }
 0x1c8   : > { %8538 = vst [vmem:[#allocation18_spill] sm:$0xff] %v7353_v15  ;;  %v7368_v8 = vadd.f32 %v2363_v14, %v2168_v44  ;;  %v2171_v50 = vadd.f32 %v5392_v41, %v6936_v62  ;;  %v7377_v9 = vmul.u32.u64.low 3817748708, %v7348_v27  ;;  %v7378_v42 = vmul.u32.u64.high 3817748708, %v7348_v27, %v7377_v9 }
 0x1c9   : > { %v5478_v60 = vpop.f32.mrf.mxu0  ;;  %v2039_v15 = vpop.f32.mrf.mxu1  ;;  %v7384_v62 = vmul.u32.u64.low 3817748708, %v7351_v54  ;;  %v7385_v3 = vmul.u32.u64.high 3817748708, %v7351_v54, %v7384_v62  ;;  %vm3872_vm5 = vcmp.lt.s32.totalorder %v7334_v23, 0  ;;  %v7389_v6 = vadd.s32 18, %v7334_v23 }
 0x1ca   : > { %v7380_v4 = vadd.f32 %v5478_v60, %v2171_v50  ;;  %v2170_v35 = vadd.f32 %v2039_v15, %v6939_v59  ;;  %v7392_v37 = vsub.s32 %v7232_v22, %v3599_v45  ;;  %v3621_v61 = vmul.u32 18, %v3620_v49  ;;  %vm7433_vm12 = vmand %vm3872_vm5, %vm3836_vm4 }
 0x1cb   : > { %v2373_v20 = vpop.f32.mrf.mxu0  ;;  %v5395_v17 = vpop.f32.mrf.mxu1  ;;  %v7398_v59 = vsub.s32 %v7243_v38, %v3588_v11  ;;  %v3610_v15 = vmul.u32 18, %v3609_v19  ;;  %vm3835_vm6 = vcmp.ne.s32.totalorder %v7374_v34, 0  ;;  %vm3871_vm7 = vcmp.lt.s32.totalorder %v7374_v34, 0 }
 0x1cc   : > { %v7394_v44 = vadd.f32 %v2373_v20, %v2170_v35  ;;  %v2173_v14 = vadd.f32 %v5395_v17, %v6944_v2  ;;  %v7403_v60 = vadd.s32 18, %v7374_v34  ;;  %v3642_v22 = vshrl.u32 %v7345_v7, 4  ;;  %vm7447_vm15 = vmand %vm3871_vm7, %vm3835_vm6 }
 0x1cd   : > { %v5481_v41 = vpop.f32.mrf.mxu0  ;;  %v2049_v50 = vpop.f32.mrf.mxu1  ;;  %v3631_v2 = vshrl.u32 %v7358_v58, 4  ;;  %v7411_v38 = vadd.s32 184, %v6942_v18  ;;  %vm3838_vm8 = vcmp.ne.s32.totalorder %v7392_v37, 0  ;;  %vm3874_vm9 = vcmp.lt.s32.totalorder %v7392_v37, 0 }
 0x1ce   : > { %8539 = vst [vmem:[#allocation19_spill] sm:$0xff] %v7394_v44  ;;  %v7406_v49 = vadd.f32 %v5481_v41, %v2173_v14  ;;  %v2172_v45 = vadd.f32 %v2049_v50, %v6947_v13  ;;  %v3946_v9 = vadd.s32 18, %v7392_v37  ;;  %v3622_v35 = vsub.s32 %v7271_v47, %v3621_v61  ;;  %vm7458_vm1 = vmand %vm3874_vm9, %vm3838_vm8 }
 0x1cf   : > { %v2383_v11 = vpop.f32.mrf.mxu0  ;;  %v5398_v19 = vpop.f32.mrf.mxu1  ;;  %vm3837_vm10 = vcmp.ne.s32.totalorder %v7398_v59, 0  ;;  %v3611_v13 = vsub.s32 %v7278_v0, %v3610_v15  ;;  %vm3873_vm11 = vcmp.lt.s32.totalorder %v7398_v59, 0  ;;  %v3945_v17 = vadd.s32 18, %v7398_v59 }
 0x1d0   : > { %8540 = vst [vmem:[#allocation20_spill] sm:$0xff] %v7406_v49  ;;  %v7417_v7 = vadd.f32 %v2383_v11, %v2172_v45  ;;  %v2175_v62 = vadd.f32 %v5398_v19, %v6953_v25  ;;  %v3643_v14 = vmul.u32 18, %v3642_v22  ;;  %v3664_v41 = vshrl.u32 %v7378_v42, 4  ;;  %vm7472_vm3 = vmand %vm3873_vm11, %vm3837_vm10 }
 0x1d1   : > { %v5484_v58 = vpop.f32.mrf.mxu0  ;;  %v2059_v20 = vpop.f32.mrf.mxu1  ;;  %v3632_v61 = vmul.u32 18, %v3631_v2  ;;  %v3653_v25 = vshrl.u32 %v7385_v3, 4  ;;  %vm3840_vm13 = vcmp.ne.s32.totalorder %v3622_v35, 0  ;;  %vm3876_vm14 = vcmp.lt.s32.totalorder %v3622_v35, 0 }
 0x1d2   : > { %8541 = vst [vmem:[#allocation21_spill] sm:$0xff] %v7417_v7  ;;  %v7425_v50 = vadd.f32 %v5484_v58, %v2175_v62  ;;  %v2174_v47 = vadd.f32 %v2059_v20, %v6959_v48  ;;  %v3948_v42 = vadd.s32 18, %v3622_v35  ;;  %v7438_v15 = vadd.s32 176, %v6942_v18  ;;  %vm7481_vm4 = vmand %vm3876_vm14, %vm3840_vm13 }
 0x1d3   : > { %v2393_v45 = vpop.f32.mrf.mxu0  ;;  %v5401_v11 = vpop.f32.mrf.mxu1  ;;  %vm3839_vm0 = vcmp.ne.s32.totalorder %v3611_v13, 0  ;;  %v7452_v2 = vadd.s32 200, %v6942_v18  ;;  %vm3875_vm2 = vcmp.lt.s32.totalorder %v3611_v13, 0  ;;  %v3947_v58 = vadd.s32 18, %v3611_v13 }
 0x1d4   : > { %8542 = vst [vmem:[#allocation22_spill] sm:$0xff] %v7425_v50  ;;  %v7440_v48 = vadd.f32 %v2393_v45, %v2174_v47  ;;  %v2177_v3 = vadd.f32 %v5401_v11, %v6973_v43  ;;  %v7463_v20 = vsub.s32 %v7314_v52, %v3643_v14  ;;  %v3665_v47 = vmul.u32 18, %v3664_v41  ;;  %vm3911_vm5 = vmand %vm3875_vm2, %vm3839_vm0 }
 0x1d5   : > { %v5487_v19 = vpop.f32.mrf.mxu0  ;;  %v2069_v62 = vpop.f32.mrf.mxu1  ;;  %v7477_v50 = vsub.s32 %v7321_v51, %v3632_v61  ;;  %v3654_v7 = vmul.u32 18, %v3653_v25  ;;  %v7499_v61 = vmul.u32.u64.low 3817748708, %v7452_v2  ;;  %v7500_v25 = vmul.u32.u64.high 3817748708, %v7452_v2, %v7499_v61 }
 0x1d6   : > { %8545 = vst [vmem:[#allocation23_spill] sm:$0xff] %v7440_v48  ;;  %v7465_v45 = vadd.f32 %v5487_v19, %v2177_v3  ;;  %v2176_v11 = vadd.f32 %v2069_v62, %v6980_v16  ;;  %v7486_v16 = vmul.u32.u64.low 3817748708, %v7411_v38  ;;  %v7487_v41 = vmul.u32.u64.high 3817748708, %v7411_v38, %v7486_v16 }
 0x1d7   : > { %v2403_v49 = vpop.f32.mrf.mxu0  ;;  %v5404_v52 = vpop.f32.mrf.mxu1  ;;  %v7490_v3 = vmul.u32.u64.low 3817748708, %v7438_v15  ;;  %v7491_v19 = vmul.u32.u64.high 3817748708, %v7438_v15, %v7490_v3  ;;  %v7506_v16 = vsel %vm7433_vm12, %v7389_v6, %v7334_v23  ;;  %v7528_v23 = vsel %vm7472_vm3, %v3945_v17, %v7398_v59 }
 0x1d8   : > { %8550 = vst [vmem:[#allocation24_spill] sm:$0xff] %v7465_v45  ;;  %v7493_v62 = vadd.f32 %v2403_v49, %v2176_v11  ;;  %v2179_v51 = vadd.f32 %v5404_v52, %v6987_v24  ;;  %v7512_v24 = vsel %vm7447_vm15, %v7403_v60, %v7374_v34  ;;  %v7517_v49 = vsel %vm7458_vm1, %v3946_v9, %v7392_v37 }
 0x1d9   : > { %v5490_v45 = vpop.f32.mrf.mxu0  ;;  %v2079_v44 = vpop.f32.mrf.mxu1  ;;  %v7520_v11 = vadd.s32 192, %v6942_v18  ;;  %v7532_v34 = vsel %vm7481_vm4, %v3948_v42, %v3622_v35  ;;  %v7534_v37 = vsel %vm3911_vm5, %v3947_v58, %v3611_v13  ;;  %vm3842_vm6 = vcmp.ne.s32.totalorder %v7463_v20, 0 }
 0x1da   : > { %v7522_v52 = vadd.f32 %v5490_v45, %v2179_v51  ;;  %v2178_v0 = vadd.f32 %v2079_v44, %v6993_v21  ;;  %v3666_v9 = vsub.s32 %v7348_v27, %v3665_v47  ;;  %v7539_v22 = vsub.s32 %v7351_v54, %v3654_v7  ;;  %v8559_v45 = vld [vmem:[#allocation2_spill] sm:$0xff] }
 0x1db   : > { %v2413_v6 = vpop.f32.mrf.mxu0  ;;  %v5407_v60 = vpop.f32.mrf.mxu1  ;;  %vm3878_vm7 = vcmp.lt.s32.totalorder %v7463_v20, 0  ;;  %vm3841_vm8 = vcmp.ne.s32.totalorder %v7477_v50, 0  ;;  %vm3877_vm9 = vcmp.lt.s32.totalorder %v7477_v50, 0  ;;  %v7552_v27 = vadd.s32 216, %v6942_v18 }
 0x1dc   : > { %v7541_v21 = vadd.f32 %v2413_v6, %v2178_v0  ;;  %v2181_v44 = vadd.f32 %v5407_v60, %v6998_v33  ;;  %v7548_v13 = vmul.u32.u64.low 3817748708, %v7520_v11  ;;  %v7549_v17 = vmul.u32.u64.high 3817748708, %v7520_v11, %v7548_v13  ;;  %vm7563_vm10 = vmand %vm3878_vm7, %vm3842_vm6 }
 0x1dd   : > { %v5493_v59 = vpop.f32.mrf.mxu0  ;;  %v2089_v35 = vpop.f32.mrf.mxu1  ;;  %v3950_v33 = vadd.s32 18, %v7463_v20  ;;  %v3949_v42 = vadd.s32 18, %v7477_v50  ;;  %vm3844_vm11 = vcmp.ne.s32.totalorder %v3666_v9, 0  ;;  %vm3880_vm12 = vcmp.lt.s32.totalorder %v3666_v9, 0  ;;  %vm3913_vm14 = vmand %vm3877_vm9, %vm3841_vm8 }
 0x1de   : > { %v7554_v54 = vadd.f32 %v5493_v59, %v2181_v44  ;;  %v2180_v7 = vadd.f32 %v2089_v35, %v7009_v36  ;;  %vm3843_vm13 = vcmp.ne.s32.totalorder %v7539_v22, 0  ;;  %v3686_v36 = vshrl.u32 %v7487_v41, 4  ;;  %v8561_v59 = vld [vmem:[#allocation3_spill] sm:$0xff]  ;;  %vm7599_vm0 = vmand %vm3880_vm12, %vm3844_vm11 }
 0x1df   : > { %v2423_v48 = vpop.f32.mrf.mxu0  ;;  %v5410_v43 = vpop.f32.mrf.mxu1  ;;  %v3675_v3 = vshrl.u32 %v7491_v19, 4  ;;  %v3708_v51 = vshrl.u32 %v7500_v25, 4  ;;  %vm3879_vm15 = vcmp.lt.s32.totalorder %v7539_v22, 0  ;;  %v7584_v60 = vadd.s32 208, %v6942_v18 }
 0x1e0   : > { %8555 = vst [vmem:[#allocation25_spill] sm:$0xff] %v7554_v54  ;;  %v7569_v47 = vadd.f32 %v2423_v48, %v2180_v7  ;;  %v2183_v14 = vadd.f32 %v5410_v43, %v8559_v45  ;;  %v7580_v6 = vmul.u32.u64.low 3817748708, %v7552_v27  ;;  %v7581_v41 = vmul.u32.u64.high 3817748708, %v7552_v27, %v7580_v6  ;;  %vm3915_vm1 = vmand %vm3879_vm15, %vm3843_vm13 }
 0x1e1   : > { %v5496_v61 = vpop.f32.mrf.mxu0  ;;  %v2099_v0 = vpop.f32.mrf.mxu1  ;;  %v7592_v19 = vsel %vm7563_vm10, %v3950_v33, %v7463_v20  ;;  %v3952_v25 = vadd.s32 18, %v3666_v9  ;;  %v7595_v48 = vsel %vm3913_vm14, %v3949_v42, %v7477_v50  ;;  %v3951_v45 = vadd.s32 18, %v7539_v22  ;;  %v8565_v33 = vld [vmem:[#allocation4_spill] sm:$0xff] }
 0x1e2   : > { %8558 = vst [vmem:[#allocation26_spill] sm:$0xff] %v7569_v47  ;;  %v7586_v44 = vadd.f32 %v5496_v61, %v2183_v14  ;;  %v2182_v35 = vadd.f32 %v2099_v0, %v8561_v59  ;;  %v3687_v14 = vmul.u32 18, %v3686_v36  ;;  %v7605_v61 = vadd.s32 232, %v6942_v18 }
 0x1e3   : > { %v2433_v13 = vpop.f32.mrf.mxu0  ;;  %v5413_v7 = vpop.f32.mrf.mxu1  ;;  %v3676_v50 = vmul.u32 18, %v3675_v3  ;;  %v3709_v42 = vmul.u32 18, %v3708_v51  ;;  %v3697_v59 = vshrl.u32 %v7549_v17, 4  ;;  %v7630_v3 = vadd.s32 248, %v6942_v18 }
 0x1e4   : > { %8560 = vst [vmem:[#allocation2_spill] sm:$0xff] %v7586_v44  ;;  %v7607_v20 = vadd.f32 %v2433_v13, %v2182_v35  ;;  %v2185_v58 = vadd.f32 %v5413_v7, %v8565_v33  ;;  %v7616_v36 = vmul.u32.u64.low 3817748708, %v7584_v60  ;;  %v7617_v44 = vmul.u32.u64.high 3817748708, %v7584_v60, %v7616_v36  ;;  %v8567_v7 = vld [vmem:[#allocation5_spill] sm:$0xff] }
 0x1e5   : > { %v5499_v0 = vpop.f32.mrf.mxu0  ;;  %v2109_v6 = vpop.f32.mrf.mxu1  ;;  %v7620_v35 = vadd.s32 224, %v6942_v18  ;;  %v7633_v47 = vsel %vm3915_vm1, %v3951_v45, %v7539_v22  ;;  %v3688_v36 = vsub.s32 %v7411_v38, %v3687_v14  ;;  %v3698_v22 = vmul.u32 18, %v3697_v59 }
 0x1e6   : > { %8564 = vst [vmem:[#allocation3_spill] sm:$0xff] %v7607_v20  ;;  %v7622_v13 = vadd.f32 %v5499_v0, %v2185_v58  ;;  %v2184_v33 = vadd.f32 %v2109_v6, %v8567_v7  ;;  %v7627_v20 = vsel %vm7599_vm0, %v3952_v25, %v3666_v9  ;;  %v8569_v6 = vld [vmem:[#allocation6_spill] sm:$0xff]  ;;  %v7644_v9 = vsub.s32 %v7438_v15, %v3676_v50 }
 0x1e7   : > { %v2443_v51 = vpop.f32.mrf.mxu0  ;;  %v5416_v17 = vpop.f32.mrf.mxu1  ;;  %v7637_v54 = vmul.u32.u64.low 3817748708, %v7605_v61  ;;  %v7638_v58 = vmul.u32.u64.high 3817748708, %v7605_v61, %v7637_v54  ;;  %v7647_v25 = vsub.s32 %v7452_v2, %v3709_v42  ;;  %v3730_v45 = vshrl.u32 %v7581_v41, 4 }
 0x1e8   : > { %8566 = vst [vmem:[#allocation4_spill] sm:$0xff] %v7622_v13  ;;  %v7640_v0 = vadd.f32 %v2443_v51, %v2184_v33  ;;  %v2187_v43 = vadd.f32 %v5416_v17, %v8569_v6  ;;  %v7651_v38 = vmul.u32.u64.low 3817748708, %v7620_v35  ;;  %v7652_v14 = vmul.u32.u64.high 3817748708, %v7620_v35, %v7651_v38  ;;  %v8571_v33 = vld [vmem:[#allocation7_spill] sm:$0xff]  ;;  %v8573_v6 = vld [vmem:[#allocation8_spill] sm:$0xff] }
 0x1e9   : > { %v5502_v7 = vpop.f32.mrf.mxu0  ;;  %v2119_v13 = vpop.f32.mrf.mxu1  ;;  %v7658_v17 = vmul.u32.u64.low 3817748708, %v7630_v3  ;;  %v7659_v15 = vmul.u32.u64.high 3817748708, %v7630_v3, %v7658_v17  ;;  %vm3846_vm2 = vcmp.ne.s32.totalorder %v3688_v36, 0  ;;  %vm3882_vm3 = vcmp.lt.s32.totalorder %v3688_v36, 0 }
 0x1ea   : > { %8568 = vst [vmem:[#allocation5_spill] sm:$0xff] %v7640_v0  ;;  %v7654_v54 = vadd.f32 %v5502_v7, %v2187_v43  ;;  %v2186_v51 = vadd.f32 %v2119_v13, %v8571_v33  ;;  %v3954_v42 = vadd.s32 18, %v3688_v36  ;;  %v3719_v59 = vshrl.u32 %v7617_v44, 4  ;;  %v8575_v44 = vld [vmem:[#allocation9_spill] sm:$0xff]  ;;  %vm7677_vm7 = vmand %vm3882_vm3, %vm3846_vm2 }
 0x1eb   : > { %v2453_v50 = vpop.f32.mrf.mxu0  ;;  %v5419_v2 = vpop.f32.mrf.mxu1  ;;  %vm3845_vm4 = vcmp.ne.s32.totalorder %v7644_v9, 0  ;;  %v3752_v43 = vshrl.u32 %v7638_v58, 4  ;;  %vm3881_vm5 = vcmp.lt.s32.totalorder %v7644_v9, 0  ;;  %v3699_v38 = vsub.s32 %v7520_v11, %v3698_v22 }
 0x1ec   : > { %8570 = vst [vmem:[#allocation6_spill] sm:$0xff] %v7654_v54  ;;  %v7662_v41 = vadd.f32 %v2453_v50, %v2186_v51  ;;  %v2189_v0 = vadd.f32 %v5419_v2, %v8573_v6  ;;  %v3731_v33 = vmul.u32 18, %v3730_v45  ;;  %v3741_v17 = vshrl.u32 %v7652_v14, 4  ;;  %vm7694_vm9 = vmand %vm3881_vm5, %vm3845_vm4 }
 0x1ed   : > { %v5505_v13 = vpop.f32.mrf.mxu0  ;;  %v2129_v7 = vpop.f32.mrf.mxu1  ;;  %v3953_v50 = vadd.s32 18, %v7644_v9  ;;  %vm3848_vm6 = vcmp.ne.s32.totalorder %v7647_v25, 0  ;;  %vm3884_vm8 = vcmp.lt.s32.totalorder %v7647_v25, 0  ;;  %v3720_v11 = vmul.u32 18, %v3719_v59 }
 0x1ee   : > { %8572 = vst [vmem:[#allocation7_spill] sm:$0xff] %v7662_v41  ;;  %v7670_v54 = vadd.f32 %v5505_v13, %v2189_v0  ;;  %v2188_v51 = vadd.f32 %v2129_v7, %v8575_v44  ;;  %v3774_v0 = vshrl.u32 %v7659_v15, 4  ;;  %v7684_v22 = vadd.s32 240, %v6942_v18  ;;  %vm7712_vm12 = vmand %vm3884_vm8, %vm3848_vm6  ;;  %v8598_v41 = vld [vmem:[#allocation10_spill] sm:$0xff] }
 0x1ef   : > { %v2463_v2 = vpop.f32.mrf.mxu0  ;;  %v5422_v6 = vpop.f32.mrf.mxu1  ;;  %v3956_v13 = vadd.s32 18, %v7647_v25  ;;  %v3753_v7 = vmul.u32 18, %v3752_v43  ;;  %vm3847_vm10 = vcmp.ne.s32.totalorder %v3699_v38, 0  ;;  %vm3883_vm11 = vcmp.lt.s32.totalorder %v3699_v38, 0 }
 0x1f0   : > { %8574 = vst [vmem:[#allocation8_spill] sm:$0xff] %v7670_v54  ;;  %v7686_v45 = vadd.f32 %v2463_v2, %v2188_v51  ;;  %v2191_v14 = vadd.f32 %v5422_v6, %v7131_v26  ;;  %v7699_v15 = vsub.s32 %v7552_v27, %v3731_v33  ;;  %v3742_v51 = vmul.u32 18, %v3741_v17  ;;  %vm7733_vm13 = vmand %vm3883_vm11, %vm3847_vm10 }
 0x1f1   : > { %v5508_v44 = vpop.f32.mrf.mxu0  ;;  %v2139_v54 = vpop.f32.mrf.mxu1  ;;  %v7706_v2 = vsel %vm7677_vm7, %v3954_v42, %v3688_v36  ;;  %v7717_v17 = vsub.s32 %v7584_v60, %v3720_v11  ;;  %v7729_v58 = vsel %vm7694_vm9, %v3953_v50, %v7644_v9  ;;  %v7738_v60 = vsub.s32 %v7605_v61, %v3753_v7 }
 0x1f2   : > { %8578 = vst [vmem:[#allocation9_spill] sm:$0xff] %v7686_v45  ;;  %v7701_v26 = vadd.f32 %v5508_v44, %v2191_v14  ;;  %v2190_v43 = vadd.f32 %v2139_v54, %v7150_v46  ;;  %v3955_v45 = vadd.s32 18, %v3699_v38  ;;  %v3775_v14 = vmul.u32 18, %v3774_v0 }
 0x1f3   : > { %v2473_v27 = vpop.f32.mrf.mxu0  ;;  %v5425_v33 = vpop.f32.mrf.mxu1  ;;  %v7720_v46 = vmul.u32.u64.low 3817748708, %v7684_v22  ;;  %v7721_v54 = vmul.u32.u64.high 3817748708, %v7684_v22, %v7720_v46  ;;  %vm4004_vm14 = vcmp.ge.s32.totalorder %v7137_v56, 1  ;;  %vm4040_vm15 = vcmp.le.s32.totalorder %v7137_v56, 16 }
 0x1f4   : > { %8581 = vst [vmem:[#allocation27_spill] sm:$0xff] %v7701_v26  ;;  %v7723_v36 = vadd.f32 %v2473_v27, %v2190_v43  ;;  %v2193_v42 = vadd.f32 %v5425_v33, %v7162_v39  ;;  %v7745_v39 = vsel %vm7712_vm12, %v3956_v13, %v7647_v25  ;;  %vm3850_vm0 = vcmp.ne.s32.totalorder %v7699_v15, 0 }
 0x1f5   : > { %v5511_v11 = vpop.f32.mrf.mxu0  ;;  %v2149_v0 = vpop.f32.mrf.mxu1  ;;  %v7749_v9 = vsub.s32 %v7620_v35, %v3742_v51  ;;  %v7752_v50 = vadd.s32 264, %v6942_v18  ;;  %vm3886_vm1 = vcmp.lt.s32.totalorder %v7699_v15, 0  ;;  %v3958_v59 = vadd.s32 18, %v7699_v15 }
 0x1f6   : > { %8584 = vst [vmem:[#allocation28_spill] sm:$0xff] %v7723_v36  ;;  %v7754_v61 = vadd.f32 %v5511_v11, %v2193_v42  ;;  %v2192_v7 = vadd.f32 %v2149_v0, %v7171_v10  ;;  %vm4003_vm2 = vcmp.ge.s32.totalorder %v7142_v55, 1  ;;  %vm4039_vm3 = vcmp.le.s32.totalorder %v7142_v55, 16  ;;  %vm7786_vm10 = vmand %vm3886_vm1, %vm3850_vm0  ;;  %v7810_v11 = vld [vmem:[%s8497_s3] ss:$0 sm:$0xff] }
 0x1f7   : > { %v2483_v43 = vpop.f32.mrf.mxu0  ;;  %v5546_v6 = vpop.f32.mrf.mxu1  ;;  %v7763_v35 = vsel %vm7733_vm13, %v3955_v45, %v3699_v38  ;;  %vm3849_vm4 = vcmp.ne.s32.totalorder %v7717_v17, 0  ;;  %vm3885_vm5 = vcmp.lt.s32.totalorder %v7717_v17, 0  ;;  %v7768_v10 = vsub.s32 %v7630_v3, %v3775_v14  ;;  %v7778_v38 = vld [vmem:[%s8496_s2] ss:$0 sm:$0xff] }
 0x1f8   : > { %8587 = vst [vmem:[#allocation29_spill] sm:$0xff] %v7754_v61  ;;  %v7770_v25 = vadd.f32 %v2483_v43, %v2192_v7  ;;  %v2827_v13 = vadd.f32 %v5546_v6, %v7176_v30  ;;  %vm3852_vm6 = vcmp.ne.s32.totalorder %v7738_v60, 0  ;;  %vm3888_vm7 = vcmp.lt.s32.totalorder %v7738_v60, 0  ;;  %vm7801_vm13 = vmand %vm3885_vm5, %vm3849_vm4 }
 0x1f9   : > { %v5632_v51 = vpop.f32.mrf.mxu0  ;;  %v2647_v45 = vpop.f32.mrf.mxu1  ;;  %vm4006_vm8 = vcmp.ge.s32.totalorder %v7147_v5, 1  ;;  %vm4042_vm9 = vcmp.le.s32.totalorder %v7147_v5, 16  ;;  %vm3851_vm11 = vcmp.ne.s32.totalorder %v7749_v9, 0  ;;  %vm3887_vm12 = vcmp.lt.s32.totalorder %v7749_v9, 0  ;;  %vm7816_vm0 = vmand %vm3888_vm7, %vm3852_vm6 }
 0x1fa   : > { %8588 = vst [vmem:[#allocation30_spill] sm:$0xff] %v7770_v25  ;;  %v7793_v3 = vmul.u32.u64.low 3817748708, %v7752_v50  ;;  %v7794_v27 = vmul.u32.u64.high 3817748708, %v7752_v50, %v7793_v3  ;;  %v3161_v33 = vadd.f32 %v5632_v51, %v2827_v13  ;;  %v2826_v14 = vadd.f32 %v2647_v45, %v7200_v63  ;;  %vm7832_vm7 = vmand %vm3887_vm12, %vm3851_vm11 }
 0x1fb   : > { %v3957_v42 = vadd.s32 18, %v7717_v17  ;;  %v3960_v44 = vadd.s32 18, %v7738_v60  ;;  %v2981_v0 = vpop.f32.mrf.mxu0  ;;  %v5549_v63 = vpop.f32.mrf.mxu1  ;;  %v3959_v43 = vadd.s32 18, %v7749_v9  ;;  %vm3854_vm1 = vcmp.ne.s32.totalorder %v7768_v10, 0 }
 0x1fc   : > { %vm3890_vm4 = vcmp.lt.s32.totalorder %v7768_v10, 0  ;;  %v3763_v6 = vshrl.u32 %v7721_v54, 4  ;;  %v3204_v13 = vmul.f32 %v7778_v38, %v3161_v33  ;;  %v3160_v51 = vadd.f32 %v2981_v0, %v2826_v14 }
 0x1fd   : > { %v2829_v45 = vadd.f32 %v5549_v63, %v7224_v53  ;;  %vm4005_vm5 = vcmp.ge.s32.totalorder %v7153_v31, 1  ;;  %vm4041_vm6 = vcmp.le.s32.totalorder %v7153_v31, 16  ;;  %v7837_v25 = vadd.s32 256, %v6942_v18  ;;  %v5635_v54 = vpop.f32.mrf.mxu0  ;;  %v2657_v33 = vpop.f32.mrf.mxu1  ;;  %vm7861_vm12 = vmand %vm3890_vm4, %vm3854_vm1  ;;  %v8613_v31 = vld [vmem:[#allocation15_spill] sm:$0xff] }
 0x1fe   : > { %v7843_v53 = vsel %vm7786_vm10, %v3958_v59, %v7699_v15  ;;  %v3962_v14 = vadd.s32 18, %v7768_v10  ;;  %v7847_v0 = vadd.s32 280, %v6942_v18  ;;  %v7850_v63 = vadd.s32 272, %v6942_v18  ;;  %vm7884_vm4 = vmand %vm4004_vm14, %vm4040_vm15  ;;  %v8607_v15 = vld [vmem:[#allocation12_spill] sm:$0xff] }
 0x1ff   : > { %8597 = vst [vmem:[#allocation31_spill] sm:$0xff] %v7837_v25  ;;  %v3247_v61 = vadd.f32 %v7810_v11, %v3204_v13  ;;  %v3203_v25 = vmul.f32 %v7778_v38, %v3160_v51  ;;  %v3163_v36 = vadd.f32 %v5635_v54, %v2829_v45  ;;  %v2828_v26 = vadd.f32 %v2657_v33, %v7245_v40  ;;  %v2991_v18 = vpop.f32.mrf.mxu0  ;;  %v5552_v59 = vpop.f32.mrf.mxu1 }
 0x200   : > { %vm4008_vm11 = vcmp.ge.s32.totalorder %v8598_v41, 1  ;;  %vm4044_vm10 = vcmp.le.s32.totalorder %v8598_v41, 16  ;;  %v7868_v30 = vsel %vm7801_vm13, %v3957_v42, %v7717_v17  ;;  %v7873_v40 = vsel %vm7816_vm0, %v3960_v44, %v7738_v60  ;;  %vm7908_vm0 = vmand %vm4003_vm2, %vm4039_vm3 }
 0x201   : > { %v7878_v13 = vsel %vm7832_vm7, %v3959_v43, %v7749_v9  ;;  %v3764_v51 = vmul.u32 18, %v3763_v6  ;;  %vm3283_vm1 = vcmp.gt.f32.partialorder %v3247_v61, 0.0  ;;  %v3319_v45 = vmul.f32 0.02, %v3247_v61  ;;  %v5638_v44 = vpop.f32.mrf.mxu0  ;;  %v2667_v7 = vpop.f32.mrf.mxu1  ;;  %vm7924_vm3 = vmand %vm4006_vm8, %vm4042_vm9 }
 0x202   : > { %v3246_v46 = vadd.f32 %v7810_v11, %v3203_v25  ;;  %v3206_v60 = vmul.f32 %v7778_v38, %v3163_v36  ;;  %v3162_v9 = vadd.f32 %v2991_v18, %v2828_v26  ;;  %v2831_v42 = vadd.f32 %v5552_v59, %v7258_v28  ;;  %v8608_v59 = vld [vmem:[#allocation11_spill] sm:$0xff]  ;;  %vm7946_vm9 = vmand %vm4005_vm5, %vm4041_vm6 }
 0x203   : > { %vm4007_vm13 = vcmp.ge.s32.totalorder %v7229_v29, 1  ;;  %vm4043_vm14 = vcmp.le.s32.totalorder %v7229_v29, 16  ;;  %v7901_v56 = vsel %vm7861_vm12, %v3962_v14, %v7768_v10  ;;  %v3796_v36 = vshrl.u32 %v7794_v27, 4  ;;  %v3001_v3 = vpop.f32.mrf.mxu0  ;;  %v5555_v55 = vpop.f32.mrf.mxu1  ;;  %vm7961_vm6 = vmand %vm4008_vm11, %vm4044_vm10 }
 0x204   : > { %v3355_v25 = vsel %vm3283_vm1, %v3247_v61, %v3319_v45  ;;  %vm3282_vm15 = vcmp.gt.f32.partialorder %v3246_v46, 0.0  ;;  %v3318_v43 = vmul.f32 0.02, %v3246_v46  ;;  %v3249_v26 = vadd.f32 %v7810_v11, %v3206_v60 }
 0x205   : > { %vm4010_vm7 = vcmp.ge.s32.totalorder %v7236_v1, 1  ;;  %vm4046_vm12 = vcmp.le.s32.totalorder %v7236_v1, 16  ;;  %v4112_v10 = vsel %vm7884_vm4, %v3355_v25, 0.0  ;;  %v3205_v61 = vmul.f32 %v7778_v38, %v3162_v9  ;;  %v5641_v60 = vpop.f32.mrf.mxu0  ;;  %v2677_v5 = vpop.f32.mrf.mxu1 }
 0x206   : > { %v3165_v27 = vadd.f32 %v5638_v44, %v2831_v42  ;;  %v2830_v6 = vadd.f32 %v2667_v7, %v7273_v32  ;;  %4148 = vst [vmem:[%s7893_s20 + $0x8] sm:$0xff] %v4112_v10  ;;  %v3354_v54 = vsel %vm3282_vm15, %v3246_v46, %v3318_v43  ;;  %vm3285_vm2 = vcmp.gt.f32.partialorder %v3249_v26, 0.0  ;;  %v8609_v44 = vld [vmem:[#allocation13_spill] sm:$0xff] }
 0x207   : > { %v3321_v33 = vmul.f32 0.02, %v3249_v26  ;;  %v2833_v18 = vadd.f32 %v5555_v55, %v8607_v15  ;;  %vm4009_vm1 = vcmp.ge.s32.totalorder %v8608_v59, 1  ;;  %vm4045_vm4 = vcmp.le.s32.totalorder %v8608_v59, 16 }
 0x208   : > { %v4111_v32 = vsel %vm7908_vm0, %v3354_v54, 0.0  ;;  %v3248_v45 = vadd.f32 %v7810_v11, %v3205_v61  ;;  %v3208_v17 = vmul.f32 %v7778_v38, %v3165_v27  ;;  %v3164_v46 = vadd.f32 %v3001_v3, %v2830_v6  ;;  %v3011_v61 = vpop.f32.mrf.mxu0  ;;  %v5558_v27 = vpop.f32.mrf.mxu1  ;;  %v8612_v6 = vld [vmem:[#allocation14_spill] sm:$0xff] }
 0x209   : > { %4147 = vst [vmem:[%s7893_s20] sm:$0xff] %v4111_v32  ;;  %v3357_v9 = vsel %vm3285_vm2, %v3249_v26, %v3321_v33  ;;  %v3167_v42 = vadd.f32 %v5641_v60, %v2833_v18  ;;  %v2832_v7 = vadd.f32 %v2677_v5, %v8609_v44  ;;  %v7938_v25 = vsub.s32 %v7684_v22, %v3764_v51  ;;  %v8616_v32 = vld [vmem:[#allocation16_spill] sm:$0xff] }
 0x20a   : > { %v4114_v43 = vsel %vm7924_vm3, %v3357_v9, 0.0  ;;  %vm3284_vm8 = vcmp.gt.f32.partialorder %v3248_v45, 0.0  ;;  %v3320_v28 = vmul.f32 0.02, %v3248_v45  ;;  %v3251_v26 = vadd.f32 %v7810_v11, %v3208_v17  ;;  %v5644_v15 = vpop.f32.mrf.mxu0  ;;  %v2687_v18 = vpop.f32.mrf.mxu1 }
 0x20b   : > { %vm4012_vm15 = vcmp.ge.s32.totalorder %v8612_v6, 1  ;;  %vm4048_vm0 = vcmp.le.s32.totalorder %v8612_v6, 16  ;;  %4150 = vst [vmem:[%s7893_s20 + $0x18] sm:$0xff] %v4114_v43  ;;  %v3207_v22 = vmul.f32 %v7778_v38, %v3164_v46  ;;  %v3210_v51 = vmul.f32 %v7778_v38, %v3167_v42  ;;  %v8617_v42 = vld [vmem:[#allocation17_spill] sm:$0xff] }
 0x20c   : > { %v3166_v3 = vadd.f32 %v3011_v61, %v2832_v7  ;;  %v2835_v55 = vadd.f32 %v5558_v27, %v8613_v31  ;;  %v3356_v54 = vsel %vm3284_vm8, %v3248_v45, %v3320_v28  ;;  %vm3287_vm5 = vcmp.gt.f32.partialorder %v3251_v26, 0.0  ;;  %v3021_v7 = vpop.f32.mrf.mxu0  ;;  %v5561_v43 = vpop.f32.mrf.mxu1 }
 0x20d   : > { %v3323_v33 = vmul.f32 0.02, %v3251_v26  ;;  %vm4047_vm3 = vcmp.le.s32.totalorder %v8616_v32, 16  ;;  %v3797_v17 = vmul.u32 18, %v3796_v36  ;;  %v4113_v45 = vsel %vm7946_vm9, %v3356_v54, 0.0  ;;  %vm7982_vm9 = vmand %vm4007_vm13, %vm4043_vm14 }
 0x20e   : > { %v3250_v46 = vadd.f32 %v7810_v11, %v3207_v22  ;;  %v3253_v60 = vadd.f32 %v7810_v11, %v3210_v51  ;;  %v3209_v41 = vmul.f32 %v7778_v38, %v3166_v3  ;;  %4149 = vst [vmem:[%s7893_s20 + $0x10] sm:$0xff] %v4113_v45  ;;  %v3169_v9 = vadd.f32 %v5644_v15, %v2835_v55  ;;  %v5647_v51 = vpop.f32.mrf.mxu0  ;;  %v2697_v3 = vpop.f32.mrf.mxu1  ;;  %v8622_v55 = vld [vmem:[#allocation18_spill] sm:$0xff] }
 0x20f   : > { %v3359_v5 = vsel %vm3287_vm5, %v3251_v26, %v3323_v33  ;;  %v2834_v44 = vadd.f32 %v2687_v18, %v8617_v42  ;;  %vm3889_vm10 = vcmp.lt.s32.totalorder %v7938_v25, 0  ;;  %vm4014_vm2 = vcmp.ge.s32.totalorder %v7363_v57, 1 }
 0x210   : > { %v4116_v36 = vsel %vm7961_vm6, %v3359_v5, 0.0  ;;  %vm3286_vm8 = vcmp.gt.f32.partialorder %v3250_v46, 0.0  ;;  %v3322_v28 = vmul.f32 0.02, %v3250_v46  ;;  %vm3289_vm5 = vcmp.gt.f32.partialorder %v3253_v60, 0.0  ;;  %vm7993_vm6 = vmand %vm4010_vm7, %vm4046_vm12 }
 0x211   : > { %vm4050_vm11 = vcmp.le.s32.totalorder %v7363_v57, 16  ;;  %4152 = vst [vmem:[%s7893_s20 + $0x28] sm:$0xff] %v4116_v36  ;;  %v3325_v26 = vmul.f32 0.02, %v3253_v60  ;;  %v3252_v29 = vadd.f32 %v7810_v11, %v3209_v41  ;;  %v3212_v27 = vmul.f32 %v7778_v38, %v3169_v9  ;;  %vm8014_vm12 = vmand %vm4009_vm1, %vm4045_vm4 }
 0x212   : > { %v3168_v22 = vadd.f32 %v3021_v7, %v2834_v44  ;;  %vm4049_vm14 = vcmp.le.s32.totalorder %v7365_v12, 16  ;;  %v3358_v31 = vsel %vm3286_vm8, %v3250_v46, %v3322_v28  ;;  %v2837_v1 = vadd.f32 %v5561_v43, %v8622_v55  ;;  %v5564_v46 = vpop.f32.mrf.mxu1  ;;  %vm8036_vm4 = vmand %vm4012_vm15, %vm4048_vm0  ;;  %v8631_v55 = vld [vmem:[#allocation20_spill] sm:$0xff] }
 0x213   : > { %v2836_v54 = vadd.f32 %v2697_v3, %v7368_v8  ;;  %v8005_v33 = vadd.s32 18, %v7938_v25  ;;  %v4115_v14 = vsel %vm7982_vm9, %v3358_v31, 0.0  ;;  %v3361_v15 = vsel %vm3289_vm5, %v3253_v60, %v3325_v26  ;;  %v3031_v8 = vpop.f32.mrf.mxu0 }
 0x214   : > { %vm3288_vm7 = vcmp.gt.f32.partialorder %v3252_v29, 0.0  ;;  %v3324_v18 = vmul.f32 0.02, %v3252_v29  ;;  %vm4016_vm8 = vcmp.ge.s32.totalorder %v7506_v16, 1  ;;  %vm4052_vm13 = vcmp.le.s32.totalorder %v7506_v16, 16  ;;  %4151 = vst [vmem:[%s7893_s20 + $0x20] sm:$0xff] %v4115_v14  ;;  %v2707_v43 = vpop.f32.mrf.mxu1 }
 0x215   : > { %v4118_v60 = vsel %vm7993_vm6, %v3361_v15, 0.0  ;;  %v3255_v41 = vadd.f32 %v7810_v11, %v3212_v27  ;;  %v3211_v5 = vmul.f32 %v7778_v38, %v3168_v22  ;;  %v3171_v59 = vadd.f32 %v5647_v51, %v2837_v1  ;;  %v5650_v7 = vpop.f32.mrf.mxu0 }
 0x216   : > { %4154 = vst [vmem:[%s7893_s20 + $0x38] sm:$0xff] %v4118_v60  ;;  %v3360_v9 = vsel %vm3288_vm7, %v3252_v29, %v3324_v18  ;;  %v3170_v42 = vadd.f32 %v3031_v8, %v2836_v54  ;;  %v2839_v44 = vadd.f32 %v5564_v46, %v7380_v4  ;;  %v8028_v36 = vsub.s32 %v7752_v50, %v3797_v17  ;;  %v8627_v29 = vld [vmem:[#allocation19_spill] sm:$0xff]  ;;  %v5567_v6 = vpop.f32.mrf.mxu1 }
 0x217   : > { %v4117_v28 = vsel %vm8014_vm12, %v3360_v9, 0.0  ;;  %vm3291_vm1 = vcmp.gt.f32.partialorder %v3255_v41, 0.0  ;;  %v3327_v10 = vmul.f32 0.02, %v3255_v41  ;;  %v3254_v4 = vadd.f32 %v7810_v11, %v3211_v5  ;;  %v3041_v22 = vpop.f32.mrf.mxu0 }
 0x218   : > { %vm4015_vm9 = vcmp.ge.s32.totalorder %v7512_v24, 1  ;;  %vm4051_vm5 = vcmp.le.s32.totalorder %v7512_v24, 16  ;;  %4153 = vst [vmem:[%s7893_s20 + $0x30] sm:$0xff] %v4117_v28  ;;  %v3214_v50 = vmul.f32 %v7778_v38, %v3171_v59  ;;  %v3213_v17 = vmul.f32 %v7778_v38, %v3170_v42  ;;  %v2717_v8 = vpop.f32.mrf.mxu1 }
 0x219   : > { %v3173_v61 = vadd.f32 %v5650_v7, %v2839_v44  ;;  %v2838_v27 = vadd.f32 %v2707_v43, %v8627_v29  ;;  %vm4018_vm15 = vcmp.ge.s32.totalorder %v7517_v49, 1  ;;  %vm4054_vm0 = vcmp.le.s32.totalorder %v7517_v49, 16  ;;  %v5653_v45 = vpop.f32.mrf.mxu0 }
 0x21a   : > { %v3363_v51 = vsel %vm3291_vm1, %v3255_v41, %v3327_v10  ;;  %vm3290_vm6 = vcmp.gt.f32.partialorder %v3254_v4, 0.0  ;;  %v3326_v3 = vmul.f32 0.02, %v3254_v4  ;;  %vm8628_vm7 = vcmp.ge.s32.totalorder %v8616_v32, 1  ;;  %v8632_v41 = vld [vmem:[#allocation21_spill] sm:$0xff]  ;;  %v5570_v43 = vpop.f32.mrf.mxu1 }
 0x21b   : > { %vm8053_vm12 = vmand %vm8628_vm7, %vm4047_vm3  ;;  %v2841_v1 = vadd.f32 %v5567_v6, %v8631_v55  ;;  %v4120_v54 = vsel %vm8036_vm4, %v3363_v51, 0.0  ;;  %v3257_v14 = vadd.f32 %v7810_v11, %v3214_v50  ;;  %v3256_v15 = vadd.f32 %v7810_v11, %v3213_v17  ;;  %v3051_v7 = vpop.f32.mrf.mxu0 }
 0x21c   : > { %v3216_v18 = vmul.f32 %v7778_v38, %v3173_v61  ;;  %4156 = vst [vmem:[%s7893_s20 + $0x48] sm:$0xff] %v4120_v54  ;;  %v3362_v32 = vsel %vm3290_vm6, %v3254_v4, %v3326_v3  ;;  %v3172_v46 = vadd.f32 %v3041_v22, %v2838_v27  ;;  %v2840_v5 = vadd.f32 %v2717_v8, %v8632_v41  ;;  %vm8081_vm6 = vmand %vm4014_vm2, %vm4050_vm11  ;;  %v8641_v61 = vld [vmem:[#allocation22_spill] sm:$0xff]  ;;  %v2727_v27 = vpop.f32.mrf.mxu1  ;;  %v8645_v8 = vld [vmem:[#allocation24_spill] sm:$0xff] }
 0x21d   : > { %v3175_v60 = vadd.f32 %v5653_v45, %v2841_v1  ;;  %vm8633_vm4 = vcmp.ne.s32.totalorder %v7938_v25, 0  ;;  %v4119_v9 = vsel %vm8053_vm12, %v3362_v32, 0.0  ;;  %vm3293_vm1 = vcmp.gt.f32.partialorder %v3257_v14, 0.0 }
 0x21e   : > { %vm8071_vm7 = vmand %vm3889_vm10, %vm8633_vm4  ;;  %v3329_v42 = vmul.f32 0.02, %v3257_v14  ;;  %vm3292_vm3 = vcmp.gt.f32.partialorder %v3256_v15, 0.0  ;;  %4155 = vst [vmem:[%s7893_s20 + $0x40] sm:$0xff] %v4119_v9  ;;  %v3328_v28 = vmul.f32 0.02, %v3256_v15  ;;  %v3259_v26 = vadd.f32 %v7810_v11, %v3216_v18  ;;  %v5573_v16 = vpop.f32.mrf.mxu1 }
 0x21f   : > { %vm8638_vm10 = vcmp.ge.s32.totalorder %v7365_v12, 1  ;;  %v3215_v57 = vmul.f32 %v7778_v38, %v3172_v46  ;;  %v3218_v4 = vmul.f32 %v7778_v38, %v3175_v60  ;;  %vm4020_vm2 = vcmp.ge.s32.totalorder %v7532_v34, 1  ;;  %v5656_v12 = vpop.f32.mrf.mxu0  ;;  %v8644_v18 = vld [vmem:[#allocation23_spill] sm:$0xff] }
 0x220   : > { %vm8090_vm12 = vmand %vm8638_vm10, %vm4049_vm14  ;;  %vm4056_vm11 = vcmp.le.s32.totalorder %v7532_v34, 16  ;;  %v3365_v50 = vsel %vm3293_vm1, %v3257_v14, %v3329_v42  ;;  %v3174_v17 = vadd.f32 %v3051_v7, %v2840_v5  ;;  %v2843_v29 = vadd.f32 %v5570_v43, %v8641_v61  ;;  %v2737_v59 = vpop.f32.mrf.mxu1 }
 0x221   : > { %v8104_v22 = vsel %vm8071_vm7, %v8005_v33, %v7938_v25  ;;  %v4122_v6 = vsel %vm8081_vm6, %v3365_v50, 0.0  ;;  %v3364_v51 = vsel %vm3292_vm3, %v3256_v15, %v3328_v28  ;;  %vm3295_vm14 = vcmp.gt.f32.partialorder %v3259_v26, 0.0  ;;  %vm8113_vm1 = vmand %vm4016_vm8, %vm4052_vm13  ;;  %v3061_v54 = vpop.f32.mrf.mxu0 }
 0x222   : > { %v3331_v3 = vmul.f32 0.02, %v3259_v26  ;;  %vm4019_vm4 = vcmp.ge.s32.totalorder %v7534_v37, 1  ;;  %vm4055_vm7 = vcmp.le.s32.totalorder %v7534_v37, 16  ;;  %4158 = vst [vmem:[%s7893_s20 + $0x58] sm:$0xff] %v4122_v6  ;;  %v4121_v25 = vsel %vm8090_vm12, %v3364_v51, 0.0  ;;  %vm8136_vm6 = vmand %vm4015_vm9, %vm4051_vm5 }
 0x223   : > { %v3258_v33 = vadd.f32 %v7810_v11, %v3215_v57  ;;  %v3261_v55 = vadd.f32 %v7810_v11, %v3218_v4  ;;  %v3217_v1 = vmul.f32 %v7778_v38, %v3174_v17  ;;  %vm4022_vm13 = vcmp.ge.s32.totalorder %v7592_v19, 1  ;;  %4157 = vst [vmem:[%s7893_s20 + $0x50] sm:$0xff] %v4121_v25  ;;  %v5659_v5 = vpop.f32.mrf.mxu0  ;;  %v5576_v57 = vpop.f32.mrf.mxu1 }
 0x224   : > { %vm4058_vm8 = vcmp.le.s32.totalorder %v7592_v19, 16  ;;  %v3367_v14 = vsel %vm3295_vm14, %v3259_v26, %v3331_v3  ;;  %v3177_v15 = vadd.f32 %v5656_v12, %v2843_v29  ;;  %v2842_v45 = vadd.f32 %v2727_v27, %v8644_v18 }
 0x225   : > { %v2845_v32 = vadd.f32 %v5573_v16, %v8645_v8  ;;  %v4124_v46 = vsel %vm8113_vm1, %v3367_v14, 0.0  ;;  %vm3294_vm3 = vcmp.gt.f32.partialorder %v3258_v33, 0.0  ;;  %v3330_v60 = vmul.f32 0.02, %v3258_v33  ;;  %vm8147_vm1 = vmand %vm4018_vm15, %vm4054_vm0  ;;  %v3071_v26 = vpop.f32.mrf.mxu0 }
 0x226   : > { %vm3297_vm10 = vcmp.gt.f32.partialorder %v3261_v55, 0.0  ;;  %vm4057_vm14 = vcmp.le.s32.totalorder %v7595_v48, 16  ;;  %4160 = vst [vmem:[%s7893_s20 + $0x68] sm:$0xff] %v4124_v46  ;;  %v3333_v9 = vmul.f32 0.02, %v3261_v55  ;;  %v3260_v24 = vadd.f32 %v7810_v11, %v3217_v1 }
 0x227   : > { %v3220_v44 = vmul.f32 %v7778_v38, %v3177_v15  ;;  %v3176_v7 = vadd.f32 %v3061_v54, %v2842_v45  ;;  %v3366_v43 = vsel %vm3294_vm3, %v3258_v33, %v3330_v60  ;;  %v3179_v28 = vadd.f32 %v5659_v5, %v2845_v32  ;;  %v5662_v6 = vpop.f32.mrf.mxu0  ;;  %v8658_v32 = vld [vmem:[#allocation25_spill] sm:$0xff] }
 0x228   : > { %v2844_v10 = vadd.f32 %v2737_v59, %v7493_v62  ;;  %v8157_v49 = vadd.s32 18, %v8028_v36  ;;  %v4123_v4 = vsel %vm8136_vm6, %v3366_v43, 0.0  ;;  %v3369_v50 = vsel %vm3297_vm10, %v3261_v55, %v3333_v9 }
 0x229   : > { %vm3296_vm15 = vcmp.gt.f32.partialorder %v3260_v24, 0.0  ;;  %v3332_v17 = vmul.f32 0.02, %v3260_v24  ;;  %vm8650_vm0 = vcmp.le.s32.totalorder %v7528_v23, 16  ;;  %vm8651_vm3 = vcmp.ge.s32.totalorder %v7528_v23, 1  ;;  %4159 = vst [vmem:[%s7893_s20 + $0x60] sm:$0xff] %v4123_v4  ;;  %v2747_v23 = vpop.f32.mrf.mxu1  ;;  %v3081_v16 = vpop.f32.mrf.mxu0 }
 0x22a   : > { %vm8166_vm12 = vmand %vm8651_vm3, %vm8650_vm0  ;;  %vm4024_vm5 = vcmp.ge.s32.totalorder %v7627_v20, 1  ;;  %vm4060_vm9 = vcmp.le.s32.totalorder %v7627_v20, 16  ;;  %v4126_v61 = vsel %vm8147_vm1, %v3369_v50, 0.0  ;;  %v3263_v29 = vadd.f32 %v7810_v11, %v3220_v44 }
 0x22b   : > { %v3219_v12 = vmul.f32 %v7778_v38, %v3176_v7  ;;  %v3222_v27 = vmul.f32 %v7778_v38, %v3179_v28  ;;  %vm4023_vm6 = vcmp.ge.s32.totalorder %v7633_v47, 1  ;;  %vm4059_vm10 = vcmp.le.s32.totalorder %v7633_v47, 16  ;;  %4162 = vst [vmem:[%s7893_s20 + $0x78] sm:$0xff] %v4126_v61  ;;  %vm8189_vm0 = vmand %vm4020_vm2, %vm4056_vm11  ;;  %v5579_v14 = vpop.f32.mrf.mxu1  ;;  %v5665_v60 = vpop.f32.mrf.mxu0 }
 0x22c   : > { %v3368_v51 = vsel %vm3296_vm15, %v3260_v24, %v3332_v17  ;;  %v3178_v3 = vadd.f32 %v3071_v26, %v2844_v10  ;;  %v2847_v31 = vadd.f32 %v5576_v57, %v7522_v52  ;;  %v2846_v25 = vadd.f32 %v2747_v23, %v7541_v21  ;;  %vm8203_vm11 = vmand %vm4019_vm4, %vm4055_vm7 }
 0x22d   : > { %v4125_v33 = vsel %vm8166_vm12, %v3368_v51, 0.0  ;;  %vm3299_vm1 = vcmp.gt.f32.partialorder %v3263_v29, 0.0  ;;  %v3335_v55 = vmul.f32 0.02, %v3263_v29  ;;  %v3262_v54 = vadd.f32 %v7810_v11, %v3219_v12  ;;  %v2757_v41 = vpop.f32.mrf.mxu1  ;;  %v3091_v43 = vpop.f32.mrf.mxu0  ;;  %v8664_v12 = vld [vmem:[#allocation26_spill] sm:$0xff]  ;;  %v8666_v51 = vld [vmem:[#allocation3_spill] sm:$0xff] }
 0x22e   : > { %vm4026_vm15 = vcmp.ge.s32.totalorder %v7706_v2, 1  ;;  %vm4062_vm3 = vcmp.le.s32.totalorder %v7706_v2, 16  ;;  %4161 = vst [vmem:[%s7893_s20 + $0x70] sm:$0xff] %v4125_v33  ;;  %v3265_v52 = vadd.f32 %v7810_v11, %v3222_v27  ;;  %v3221_v21 = vmul.f32 %v7778_v38, %v3178_v3 }
 0x22f   : > { %v3181_v15 = vadd.f32 %v5662_v6, %v2847_v31  ;;  %v3180_v34 = vadd.f32 %v3081_v16, %v2846_v25  ;;  %v3371_v18 = vsel %vm3299_vm1, %v3263_v29, %v3335_v55  ;;  %vm3298_vm2 = vcmp.gt.f32.partialorder %v3262_v54, 0.0  ;;  %vm8214_vm1 = vmand %vm4022_vm13, %vm4058_vm8  ;;  %v5582_v19 = vpop.f32.mrf.mxu1  ;;  %v5668_v61 = vpop.f32.mrf.mxu0  ;;  %v8665_v6 = vld [vmem:[#allocation2_spill] sm:$0xff] }
 0x230   : > { %v3334_v45 = vmul.f32 0.02, %v3262_v54  ;;  %v2849_v46 = vadd.f32 %v5579_v14, %v8658_v32  ;;  %v4128_v5 = vsel %vm8189_vm0, %v3371_v18, 0.0  ;;  %vm3301_vm12 = vcmp.gt.f32.partialorder %v3265_v52, 0.0  ;;  %v8675_v18 = vld [vmem:[#allocation4_spill] sm:$0xff] }
 0x231   : > { %v3337_v59 = vmul.f32 0.02, %v3265_v52  ;;  %v3264_v37 = vadd.f32 %v7810_v11, %v3221_v21  ;;  %4164 = vst [vmem:[%s7893_s20 + $0x88] sm:$0xff] %v4128_v5  ;;  %v3224_v24 = vmul.f32 %v7778_v38, %v3181_v15  ;;  %v3223_v44 = vmul.f32 %v7778_v38, %v3180_v34  ;;  %v3101_v1 = vpop.f32.mrf.mxu0 }
 0x232   : > { %v3370_v42 = vsel %vm3298_vm2, %v3262_v54, %v3334_v45  ;;  %v3183_v7 = vadd.f32 %v5665_v60, %v2849_v46  ;;  %vm4061_vm7 = vcmp.le.s32.totalorder %v7729_v58, 16  ;;  %vm8661_vm8 = vcmp.ge.s32.totalorder %v7595_v48, 1  ;;  %v2767_v48 = vpop.f32.mrf.mxu1 }
 0x233   : > { %v4127_v28 = vsel %vm8203_vm11, %v3370_v42, 0.0  ;;  %v3373_v10 = vsel %vm3301_vm12, %v3265_v52, %v3337_v59  ;;  %vm3300_vm13 = vcmp.gt.f32.partialorder %v3264_v37, 0.0  ;;  %v3336_v26 = vmul.f32 0.02, %v3264_v37  ;;  %vm8230_vm0 = vmand %vm8661_vm8, %vm4057_vm14  ;;  %v5671_v8 = vpop.f32.mrf.mxu0 }
 0x234   : > { %vm4028_vm2 = vcmp.ge.s32.totalorder %v7745_v39, 1  ;;  %vm4064_vm4 = vcmp.le.s32.totalorder %v7745_v39, 16  ;;  %4163 = vst [vmem:[%s7893_s20 + $0x80] sm:$0xff] %v4127_v28  ;;  %v4130_v4 = vsel %vm8214_vm1, %v3373_v10, 0.0  ;;  %v3267_v50 = vadd.f32 %v7810_v11, %v3224_v24  ;;  %v5585_v54 = vpop.f32.mrf.mxu1 }
 0x235   : > { %v3266_v17 = vadd.f32 %v7810_v11, %v3223_v44  ;;  %v3226_v62 = vmul.f32 %v7778_v38, %v3183_v7  ;;  %4166 = vst [vmem:[%s7893_s20 + $0x98] sm:$0xff] %v4130_v4  ;;  %v3372_v29 = vsel %vm3300_vm13, %v3264_v37, %v3336_v26  ;;  %v2848_v27 = vadd.f32 %v2757_v41, %v8664_v12  ;;  %vm8262_vm13 = vmand %vm4024_vm5, %vm4060_vm9  ;;  %v3111_v37 = vpop.f32.mrf.mxu0  ;;  %v8678_v44 = vld [vmem:[#allocation5_spill] sm:$0xff] }
 0x236   : > { %v2851_v23 = vadd.f32 %v5582_v19, %v8665_v6  ;;  %v2850_v3 = vadd.f32 %v2767_v48, %v8666_v51  ;;  %vm8667_vm12 = vcmp.ne.s32.totalorder %v8028_v36, 0  ;;  %vm8668_vm1 = vcmp.lt.s32.totalorder %v8028_v36, 0  ;;  %v2777_v32 = vpop.f32.mrf.mxu1 }
 0x237   : > { %vm8252_vm8 = vmand %vm8668_vm1, %vm8667_vm12  ;;  %v4129_v25 = vsel %vm8230_vm0, %v3372_v29, 0.0  ;;  %vm3303_vm14 = vcmp.gt.f32.partialorder %v3267_v50, 0.0  ;;  %v3339_v33 = vmul.f32 0.02, %v3267_v50  ;;  %vm3302_vm11 = vcmp.gt.f32.partialorder %v3266_v17, 0.0  ;;  %v5674_v4 = vpop.f32.mrf.mxu0  ;;  %v8683_v29 = vld [vmem:[#allocation7_spill] sm:$0xff] }
 0x238   : > { %4165 = vst [vmem:[%s7893_s20 + $0x90] sm:$0xff] %v4129_v25  ;;  %v3338_v16 = vmul.f32 0.02, %v3266_v17  ;;  %vm8271_vm0 = vmand %vm4023_vm6, %vm4059_vm10  ;;  %v3269_v52 = vadd.f32 %v7810_v11, %v3226_v62  ;;  %v3182_v20 = vadd.f32 %v3091_v43, %v2848_v27  ;;  %v3185_v21 = vadd.f32 %v5668_v61, %v2851_v23  ;;  %v5588_v2 = vpop.f32.mrf.mxu1  ;;  %v8679_v43 = vld [vmem:[#allocation6_spill] sm:$0xff] }
 0x239   : > { %vm4030_vm9 = vcmp.ge.s32.totalorder %v7843_v53, 1  ;;  %vm4066_vm5 = vcmp.le.s32.totalorder %v7843_v53, 16  ;;  %v3375_v15 = vsel %vm3303_vm14, %v3267_v50, %v3339_v33  ;;  %v3184_v34 = vadd.f32 %v3101_v1, %v2850_v3  ;;  %vm8292_vm10 = vmand %vm4026_vm15, %vm4062_vm3  ;;  %v3121_v23 = vpop.f32.mrf.mxu0 }
 0x23a   : > { %v2853_v45 = vadd.f32 %v5585_v54, %v8675_v18  ;;  %v8283_v47 = vsel %vm8252_vm8, %v8157_v49, %v8028_v36  ;;  %v4132_v46 = vsel %vm8262_vm13, %v3375_v15, 0.0  ;;  %v3374_v60 = vsel %vm3302_vm11, %v3266_v17, %v3338_v16  ;;  %v2787_v50 = vpop.f32.mrf.mxu1 }
 0x23b   : > { %vm3305_vm6 = vcmp.gt.f32.partialorder %v3269_v52, 0.0  ;;  %v3341_v41 = vmul.f32 0.02, %v3269_v52  ;;  %vm4029_vm14 = vcmp.ge.s32.totalorder %v7868_v30, 1  ;;  %vm4065_vm12 = vcmp.le.s32.totalorder %v7868_v30, 16  ;;  %4168 = vst [vmem:[%s7893_s20 + $0xa8] sm:$0xff] %v4132_v46  ;;  %v5677_v16 = vpop.f32.mrf.mxu0 }
 0x23c   : > { %v4131_v36 = vsel %vm8271_vm0, %v3374_v60, 0.0  ;;  %v3225_v49 = vmul.f32 %v7778_v38, %v3182_v20  ;;  %v3228_v59 = vmul.f32 %v7778_v38, %v3185_v21  ;;  %v3227_v9 = vmul.f32 %v7778_v38, %v3184_v34  ;;  %v5591_v51 = vpop.f32.mrf.mxu1  ;;  %v8692_v60 = vld [vmem:[#allocation8_spill] sm:$0xff] }
 0x23d   : > { %vm4032_vm15 = vcmp.ge.s32.totalorder %v7873_v40, 1  ;;  %vm4068_vm3 = vcmp.le.s32.totalorder %v7873_v40, 16  ;;  %4167 = vst [vmem:[%s7893_s20 + $0xa0] sm:$0xff] %v4131_v36  ;;  %v3377_v42 = vsel %vm3305_vm6, %v3269_v52, %v3341_v41  ;;  %v3187_v24 = vadd.f32 %v5671_v8, %v2853_v45  ;;  %v3131_v8 = vpop.f32.mrf.mxu0  ;;  %v8693_v41 = vld [vmem:[#allocation9_spill] sm:$0xff]  ;;  %v8694_v36 = vld [vmem:[#allocation27_spill] sm:$0xff] }
 0x23e   : > { %v2852_v7 = vadd.f32 %v2777_v32, %v8678_v44  ;;  %v2855_v19 = vadd.f32 %v5588_v2, %v8679_v43  ;;  %v4134_v28 = vsel %vm8292_vm10, %v3377_v42, 0.0  ;;  %v3268_v10 = vadd.f32 %v7810_v11, %v3225_v49  ;;  %vm8331_vm10 = vmand %vm4028_vm2, %vm4064_vm4 }
 0x23f   : > { %v3271_v26 = vadd.f32 %v7810_v11, %v3228_v59  ;;  %v3270_v57 = vadd.f32 %v7810_v11, %v3227_v9  ;;  %4170 = vst [vmem:[%s7893_s20 + $0xb8] sm:$0xff] %v4134_v28  ;;  %vm8680_vm8 = vcmp.ge.s32.totalorder %v7729_v58, 1  ;;  %v3230_v62 = vmul.f32 %v7778_v38, %v3187_v24  ;;  %v5680_v2 = vpop.f32.mrf.mxu0  ;;  %v8704_v58 = vld [vmem:[#allocation31_spill] sm:$0xff] }
 0x240   : > { %vm8321_vm13 = vmand %vm8680_vm8, %vm4061_vm7  ;;  %v3186_v61 = vadd.f32 %v3111_v37, %v2852_v7  ;;  %v3189_v48 = vadd.f32 %v5674_v4, %v2855_v19  ;;  %v2854_v12 = vadd.f32 %v2787_v50, %v8683_v29  ;;  %vm3304_vm0 = vcmp.gt.f32.partialorder %v3268_v10, 0.0 }
 0x241   : > { %v3340_v27 = vmul.f32 0.02, %v3268_v10  ;;  %vm3307_vm6 = vcmp.gt.f32.partialorder %v3271_v26, 0.0  ;;  %v3343_v6 = vmul.f32 0.02, %v3271_v26  ;;  %vm3306_vm7 = vcmp.gt.f32.partialorder %v3270_v57, 0.0 }
 0x242   : > { %v3342_v3 = vmul.f32 0.02, %v3270_v57  ;;  %vm8686_vm8 = vcmp.le.s32.totalorder %v7763_v35, 16  ;;  %vm8687_vm11 = vcmp.ge.s32.totalorder %v7763_v35, 1  ;;  %v3273_v25 = vadd.f32 %v7810_v11, %v3230_v62  ;;  %v2797_v35 = vpop.f32.mrf.mxu1 }
 0x243   : > { %vm8339_vm1 = vmand %vm8687_vm11, %vm8686_vm8  ;;  %v3229_v39 = vmul.f32 %v7778_v38, %v3186_v61  ;;  %v3376_v33 = vsel %vm3304_vm0, %v3268_v10, %v3340_v27  ;;  %v3379_v55 = vsel %vm3307_vm6, %v3271_v26, %v3343_v6  ;;  %v3232_v1 = vmul.f32 %v7778_v38, %v3189_v48  ;;  %v8699_v26 = vld [vmem:[#allocation28_spill] sm:$0xff]  ;;  %v3141_v27 = vpop.f32.mrf.mxu0 }
 0x244   : > { %v3188_v54 = vadd.f32 %v3121_v23, %v2854_v12  ;;  %vm4034_vm4 = vcmp.ge.s32.totalorder %v7901_v56, 1  ;;  %vm4070_vm2 = vcmp.le.s32.totalorder %v7901_v56, 16  ;;  %v4133_v14 = vsel %vm8321_vm13, %v3376_v33, 0.0  ;;  %vm8362_vm13 = vmand %vm4030_vm9, %vm4066_vm5  ;;  %v5594_v32 = vpop.f32.mrf.mxu1 }
 0x245   : > { %v4136_v52 = vsel %vm8331_vm10, %v3379_v55, 0.0  ;;  %v3378_v20 = vsel %vm3306_vm7, %v3270_v57, %v3342_v3  ;;  %vm3309_vm11 = vcmp.gt.f32.partialorder %v3273_v25, 0.0  ;;  %vm4033_vm0 = vcmp.ge.s32.totalorder %v8104_v22, 1  ;;  %4169 = vst [vmem:[%s7893_s20 + $0xb0] sm:$0xff] %v4133_v14  ;;  %vm8380_vm5 = vmand %vm4029_vm14, %vm4065_vm12 }
 0x246   : > { %vm4069_vm6 = vcmp.le.s32.totalorder %v8104_v22, 16  ;;  %4172 = vst [vmem:[%s7893_s20 + $0xc8] sm:$0xff] %v4136_v52  ;;  %v4135_v21 = vsel %vm8339_vm1, %v3378_v20, 0.0  ;;  %v3345_v15 = vmul.f32 0.02, %v3273_v25  ;;  %v3272_v18 = vadd.f32 %v7810_v11, %v3229_v39  ;;  %v2807_v42 = vpop.f32.mrf.mxu1  ;;  %vm8390_vm8 = vmand %vm4032_vm15, %vm4068_vm3 }
 0x247   : > { %v3275_v45 = vadd.f32 %v7810_v11, %v3232_v1  ;;  %vm4036_vm10 = vcmp.ge.s32.totalorder %v8283_v47, 1  ;;  %vm4072_vm7 = vcmp.le.s32.totalorder %v8283_v47, 16  ;;  %4171 = vst [vmem:[%s7893_s20 + $0xc0] sm:$0xff] %v4135_v21  ;;  %v3231_v46 = vmul.f32 %v7778_v38, %v3188_v54  ;;  %v8707_v1 = vld [vmem:[#allocation29_spill] sm:$0xff] }
 0x248   : > { %v2857_v53 = vadd.f32 %v5591_v51, %v8692_v60  ;;  %v2856_v5 = vadd.f32 %v2797_v35, %v8693_v41  ;;  %v2859_v49 = vadd.f32 %v5594_v32, %v8694_v36  ;;  %v3381_v59 = vsel %vm3309_vm11, %v3273_v25, %v3345_v15  ;;  %v5597_v62 = vpop.f32.mrf.mxu1  ;;  %vm8428_vm11 = vmand %vm4034_vm4, %vm4070_vm2  ;;  %v8712_v32 = vld [vmem:[#allocation30_spill] sm:$0xff] }
 0x249   : > { %vm3308_vm9 = vcmp.gt.f32.partialorder %v3272_v18, 0.0  ;;  %v3344_v9 = vmul.f32 0.02, %v3272_v18  ;;  %vm3311_vm1 = vcmp.gt.f32.partialorder %v3275_v45, 0.0  ;;  %v4138_v24 = vsel %vm8362_vm13, %v3381_v59, 0.0  ;;  %vm8442_vm4 = vmand %vm4033_vm0, %vm4069_vm6 }
 0x24a   : > { %v3347_v44 = vmul.f32 0.02, %v3275_v45  ;;  %v3274_v30 = vadd.f32 %v7810_v11, %v3231_v46  ;;  %v3191_v43 = vadd.f32 %v5677_v16, %v2857_v53  ;;  %4174 = vst [vmem:[%s7893_s20 + $0xd8] sm:$0xff] %v4138_v24  ;;  %v3190_v28 = vadd.f32 %v3131_v8, %v2856_v5  ;;  %v2817_v14 = vpop.f32.mrf.mxu1  ;;  %v5814_v36 = vld [vmem:[%s8496_s2] ss:$0 sm:$0xff] }
 0x24b   : > { %v3380_v19 = vsel %vm3308_vm9, %v3272_v18, %v3344_v9  ;;  %v3193_v10 = vadd.f32 %v5680_v2, %v2859_v49  ;;  %v2858_v57 = vadd.f32 %v2807_v42, %v8699_v26  ;;  %vm8700_vm12 = vcmp.le.s32.totalorder %v7878_v13, 16 }
 0x24c   : > { %v4137_v4 = vsel %vm8380_vm5, %v3380_v19, 0.0  ;;  %v3383_v50 = vsel %vm3311_vm1, %v3275_v45, %v3347_v44  ;;  %vm3310_vm14 = vcmp.gt.f32.partialorder %v3274_v30, 0.0  ;;  %v3346_v40 = vmul.f32 0.02, %v3274_v30  ;;  %vm8450_vm5 = vmand %vm4036_vm10, %vm4072_vm7 }
 0x24d   : > { %vm8701_vm15 = vcmp.ge.s32.totalorder %v7878_v13, 1  ;;  %4173 = vst [vmem:[%s7893_s20 + $0xd0] sm:$0xff] %v4137_v4  ;;  %v4140_v61 = vsel %vm8390_vm8, %v3383_v50, 0.0  ;;  %v3234_v48 = vmul.f32 %v7778_v38, %v3191_v43  ;;  %v3233_v29 = vmul.f32 %v7778_v38, %v3190_v28 }
 0x24e   : > { %vm8403_vm3 = vmand %vm8701_vm15, %vm8700_vm12  ;;  %v3236_v12 = vmul.f32 %v7778_v38, %v3193_v10  ;;  %4176 = vst [vmem:[%s7893_s20 + $0xe8] sm:$0xff] %v4140_v61  ;;  %v3382_v6 = vsel %vm3310_vm14, %v3274_v30, %v3346_v40  ;;  %v3192_v13 = vadd.f32 %v3141_v27, %v2858_v57  ;;  %v2861_v54 = vadd.f32 %v5597_v62, %v8707_v1 }
 0x24f   : > { %v8415_v23 = vmul.u32.u64.low 3817748708, %v8704_v58  ;;  %v8416_v51 = vmul.u32.u64.high 3817748708, %v8704_v58, %v8415_v23  ;;  %v4139_v3 = vsel %vm8403_vm3, %v3382_v6, 0.0  ;;  %v3277_v31 = vadd.f32 %v7810_v11, %v3234_v48 }
 0x250   : > { %v3276_v25 = vadd.f32 %v7810_v11, %v3233_v29  ;;  %v3279_v39 = vadd.f32 %v7810_v11, %v3236_v12  ;;  %4175 = vst [vmem:[%s7893_s20 + $0xe0] sm:$0xff] %v4139_v3  ;;  %v3235_v55 = vmul.f32 %v7778_v38, %v3192_v13  ;;  %v5683_v38 = vpop.f32.mrf.mxu0  ;;  %v2860_v46 = vadd.f32 %v2817_v14, %v8712_v32 }
 0x251   : > { %v8435_v16 = vmul.u32.u64.low 3817748708, %v7847_v0  ;;  %v8436_v35 = vmul.u32.u64.high 3817748708, %v7847_v0, %v8435_v16  ;;  %vm3313_vm13 = vcmp.gt.f32.partialorder %v3277_v31, 0.0  ;;  %v3349_v52 = vmul.f32 0.02, %v3277_v31 }
 0x252   : > { %vm3312_vm9 = vcmp.gt.f32.partialorder %v3276_v25, 0.0  ;;  %v3348_v20 = vmul.f32 0.02, %v3276_v25  ;;  %vm3315_vm2 = vcmp.gt.f32.partialorder %v3279_v39, 0.0  ;;  %v3351_v21 = vmul.f32 0.02, %v3279_v39  ;;  %v3151_v59 = vpop.f32.mrf.mxu0 }
 0x253   : > { %v3278_v34 = vadd.f32 %v7810_v11, %v3235_v55  ;;  %v3785_v22 = vshrl.u32 %v8416_v51, 4  ;;  %v3385_v18 = vsel %vm3313_vm13, %v3277_v31, %v3349_v52  ;;  %v3195_v8 = vadd.f32 %v5683_v38, %v2861_v54 }
 0x254   : > { %v3384_v45 = vsel %vm3312_vm9, %v3276_v25, %v3348_v20  ;;  %v4142_v60 = vsel %vm8428_vm11, %v3385_v18, 0.0  ;;  %v3387_v53 = vsel %vm3315_vm2, %v3279_v39, %v3351_v21  ;;  %v3818_v9 = vshrl.u32 %v8436_v35, 4 }
 0x255   : > { %v4141_v47 = vsel %vm8442_vm4, %v3384_v45, 0.0  ;;  %4178 = vst [vmem:[%s7893_s20 + $0xf8] sm:$0xff] %v4142_v60  ;;  %v4144_v41 = vsel %vm8450_vm5, %v3387_v53, 0.0  ;;  %v3786_v5 = vmul.u32 18, %v3785_v22  ;;  %v3238_v49 = vmul.f32 %v5814_v36, %v3195_v8 }
 0x256   : > { %4177 = vst [vmem:[%s7893_s20 + $0xf0] sm:$0xff] %v4141_v47  ;;  %4180 = vst [vmem:[%s7893_s20 + $0x108] sm:$0xff] %v4144_v41  ;;  %v3194_v37 = vadd.f32 %v3151_v59, %v2860_v46  ;;  %v8471_v2 = vmul.u32.u64.low 3817748708, %v7850_v63  ;;  %v8472_v42 = vmul.u32.u64.high 3817748708, %v7850_v63, %v8471_v2  ;;  %v3350_v24 = vmul.f32 0.02, %v3278_v34 }
 0x257   : > { %v3787_v44 = vsub.s32 %v8704_v58, %v3786_v5  ;;  %v3281_v7 = vadd.f32 %v7810_v11, %v3238_v49  ;;  %vm3314_vm0 = vcmp.gt.f32.partialorder %v3278_v34, 0.0  ;;  %v3819_v30 = vmul.u32 18, %v3818_v9  ;;  %v5815_v11 = vld [vmem:[%s8497_s3] ss:$0 sm:$0xff] }
 0x258   : > { %v3237_v43 = vmul.f32 %v5814_v36, %v3194_v37  ;;  %v3807_v10 = vshrl.u32 %v8472_v42, 4  ;;  %v3386_v26 = vsel %vm3314_vm0, %v3278_v34, %v3350_v24 }
 0x259   : > { %vm3855_vm6 = vcmp.ne.s32.totalorder %v3787_v44, 0  ;;  %vm3891_vm10 = vcmp.lt.s32.totalorder %v3787_v44, 0  ;;  %v3963_v19 = vadd.s32 18, %v3787_v44  ;;  %v3820_v28 = vsub.s32 %v7847_v0, %v3819_v30 }
 0x25a   : > { %vm3927_vm7 = vmand %vm3891_vm10, %vm3855_vm6  ;;  %vm3317_vm1 = vcmp.gt.f32.partialorder %v3281_v7, 0.0  ;;  %v3353_v4 = vmul.f32 0.02, %v3281_v7  ;;  %v3280_v50 = vadd.f32 %v5815_v11, %v3237_v43  ;;  %v3808_v0 = vmul.u32 18, %v3807_v10 }
 0x25b   : > { %v3999_v57 = vsel %vm3927_vm7, %v3963_v19, %v3787_v44  ;;  %vm3858_vm12 = vcmp.ne.s32.totalorder %v3820_v28, 0  ;;  %vm3894_vm3 = vcmp.lt.s32.totalorder %v3820_v28, 0  ;;  %v3966_v40 = vadd.s32 18, %v3820_v28 }
 0x25c   : > { %vm4035_vm8 = vcmp.ge.s32.totalorder %v3999_v57, 1  ;;  %vm4071_vm14 = vcmp.le.s32.totalorder %v3999_v57, 16  ;;  %vm3930_vm11 = vmand %vm3894_vm3, %vm3858_vm12  ;;  %v3389_v62 = vsel %vm3317_vm1, %v3281_v7, %v3353_v4  ;;  %v3352_v48 = vmul.f32 0.02, %v3280_v50 }
 0x25d   : > { %vm4107_vm15 = vmand %vm4035_vm8, %vm4071_vm14  ;;  %v4002_v61 = vsel %vm3930_vm11, %v3966_v40, %v3820_v28  ;;  %v3809_v29 = vsub.s32 %v7850_v63, %v3808_v0  ;;  %vm3316_vm2 = vcmp.gt.f32.partialorder %v3280_v50, 0.0 }
 0x25e   : > { %v4143_v17 = vsel %vm4107_vm15, %v3386_v26, 0.0  ;;  %vm4038_vm13 = vcmp.ge.s32.totalorder %v4002_v61, 1  ;;  %vm4074_vm9 = vcmp.le.s32.totalorder %v4002_v61, 16  ;;  %v3388_v6 = vsel %vm3316_vm2, %v3280_v50, %v3352_v48 }
 0x25f   : > { %4179 = vst [vmem:[%s7893_s20 + $0x100] sm:$0xff] %v4143_v17  ;;  %vm4110_vm4 = vmand %vm4038_vm13, %vm4074_vm9  ;;  %vm3857_vm5 = vcmp.ne.s32.totalorder %v3809_v29, 0  ;;  %vm3893_vm0 = vcmp.lt.s32.totalorder %v3809_v29, 0  ;;  %v3965_v27 = vadd.s32 18, %v3809_v29 }
 0x260   : > { %v4146_v12 = vsel %vm4110_vm4, %v3389_v62, 0.0  ;;  %vm3929_vm6 = vmand %vm3893_vm0, %vm3857_vm5 }
 0x261   : > { %4182 = vst [vmem:[%s7893_s20 + $0x118] sm:$0xff] %v4146_v12  ;;  %v4001_v13 = vsel %vm3929_vm6, %v3965_v27, %v3809_v29 }
 0x262   : > { %vm4037_vm10 = vcmp.ge.s32.totalorder %v4001_v13, 1  ;;  %vm4073_vm7 = vcmp.le.s32.totalorder %v4001_v13, 16 }
 0x263   : > { %vm4109_vm1 = vmand %vm4037_vm10, %vm4073_vm7 }
 0x264   : > { %v4145_v58 = vsel %vm4109_vm1, %v3388_v6, 0.0 }
 0x265   : > { %4181 = vst [vmem:[%s7893_s20 + $0x110] sm:$0xff] %v4145_v58 }
 0x266 PF: > { %s14_s17 = sadd.s32 1, %s5838_s17   ;;  %s8713_s15 = smov %s5834_s16 }
 0x267   : > { %p11_p5 = scmp.ge.s32.totalorder %s14_s17, 4   ;;  %s8714_s16 = smov %s8716_s18 }
 0x269   :  { %13 = sbr.rel (!%p11_p5) target bundleno = 2 (0x2), region = 83 }

// kernel: a_call__.3
= control target key start
LH: loop header
LB: loop body
LE: loop exit
PB: predicated region body
PF: predicated region fallthrough
CT: control target
= control target key end

     0   :  { %s6019_s18 = smov 0   ;;  %s6021_s19 = smov 0   ;;  %s8812_s0 = inlined_call_operand.vmem [shape: f32[2,360,128], index: 0, kind: input, shape index: {}]   ;;  %s8813_s1 = inlined_call_operand.vmem [shape: f32[9,128,128], index: 1, kind: input, shape index: {}]   ;;  %s8814_s2 = inlined_call_operand.vmem [shape: f32[1,128], index: 2, kind: input, shape index: {}]   ;;  %s8815_s3 = inlined_call_operand.vmem [shape: f32[1,128], index: 3, kind: input, shape index: {}]   ;;  %s8816_s4 = inlined_call_operand.vmem [shape: f32[2,288,128], index: 4, kind: input, shape index: {}]   ;;  %s8817_s5 = inlined_call_operand.vmem [shape: f32[2,288,128], index: 5, kind: output, shape index: {}]  }
   0x1   :  { %s6023_s20 = smov 0  }
   0x2 LB: > { %s27_s21 = sadd.s32 1, %s5983_s19  ;;  %p4455_p0 = scmp.ge.s32.totalorder %s5987_s20, 1  ;;  %s5987_s20 = sphi %s6023_s20, %s15_s20   ;;  %s5983_s19 = sphi %s6021_s19, %s9054_s19   ;;  %s5979_s18 = sphi %s6019_s18, %s9053_s18  }
   0x3   : > { %p29_p1 = scmp.ge.s32.totalorder %s27_s21, 2  ;;  %p241_p2 = scmp.lt.s32.totalorder %s5987_s20, 3 }
   0x5   : > { %s9056_s21 = smov (%p29_p1, %s27_s21), 0  ;;  %p242_p3 = pnand %p4455_p0, %p241_p2 }
   0x7   : > { %245 = sbr.rel (%p242_p3) target bundleno = 626 (0x272), region = 40 }
   0xc   : > { %v4474_v0 = vld [vmem:[%s8813_s1 + $0xf8] sm:$0xff]  ;;  %v4473_v1 = vld [vmem:[%s8813_s1 + $0xf0] sm:$0xff]  ;;  %v4472_v2 = vld [vmem:[%s8813_s1 + $0xe8] sm:$0xff]  ;;  %p290_p4 = scmp.lt.s32.totalorder %s5979_s18, 1 }
   0xd   : > { %5833 = vmatprep.subr.mxu1 %v4474_v0  ;;  %5059 = vmatprep.subr.mxu0 %v4474_v0  ;;  %v4471_v3 = vld [vmem:[%s8813_s1 + $0xe0] sm:$0xff]  ;;  %v4470_v4 = vld [vmem:[%s8813_s1 + $0xd8] sm:$0xff]  ;;  %v4469_v5 = vld [vmem:[%s8813_s1 + $0xd0] sm:$0xff] }
   0xe   : > { %5849 = vmatpush3.msra.mxu1 %v4474_v0  ;;  %5060 = vmatpush3.msra.mxu0 %v4474_v0  ;;  %v4468_v6 = vld [vmem:[%s8813_s1 + $0xc8] sm:$0xff]  ;;  %v4467_v7 = vld [vmem:[%s8813_s1 + $0xc0] sm:$0xff]  ;;  %v4466_v8 = vld [vmem:[%s8813_s1 + $0xb8] sm:$0xff]  ;;  %s9058_s18 = smov (!%p290_p4, %s5979_s18), 1 }
   0xf   : > { %5834 = vmatprep.subr.mxu1 %v4473_v1  ;;  %5061 = vmatprep.subr.mxu0 %v4473_v1  ;;  %v4465_v9 = vld [vmem:[%s8813_s1 + $0xb0] sm:$0xff]  ;;  %v4464_v10 = vld [vmem:[%s8813_s1 + $0xa8] sm:$0xff]  ;;  %v4463_v11 = vld [vmem:[%s8813_s1 + $0xa0] sm:$0xff]  ;;  %s5865_s27 = smul.u32 360, %s9058_s18 }
  0x10   : > { %5850 = vmatpush3.msra.mxu1 %v4473_v1  ;;  %5062 = vmatpush3.msra.mxu0 %v4473_v1  ;;  %v4462_v12 = vld [vmem:[%s8813_s1 + $0x98] sm:$0xff]  ;;  %v4461_v13 = vld [vmem:[%s8813_s1 + $0x90] sm:$0xff]  ;;  %v4460_v14 = vld [vmem:[%s8813_s1 + $0x88] sm:$0xff] }
  0x11   : > { %5835 = vmatprep.subr.mxu1 %v4472_v2  ;;  %5063 = vmatprep.subr.mxu0 %v4472_v2  ;;  %s6092_s9 = scalar_lea.vmem %s8812_s0, %s5865_s27  ;;  %v4459_v15 = vld [vmem:[%s8813_s1 + $0x80] sm:$0xff]  ;;  %v372_v19 = vld [vmem:[%s8813_s1 + $0x78] sm:$0xff]  ;;  %v371_v23 = vld [vmem:[%s8813_s1 + $0x70] sm:$0xff] }
  0x12   : > { %5851 = vmatpush3.msra.mxu1 %v4472_v2  ;;  %5064 = vmatpush3.msra.mxu0 %v4472_v2  ;;  %v391_v16 = vld [vmem:[%s6092_s9 + $0xa2] sm:$0xff]  ;;  %v373_v17 = vld [vmem:[%s6092_s9 + $0x12] sm:$0xff]  ;;  %v392_v18 = vld [vmem:[%s6092_s9 + $0xaa] sm:$0xff] }
  0x13   : > { %5836 = vmatprep.subr.mxu1 %v4471_v3  ;;  %5065 = vmatprep.subr.mxu0 %v4471_v3  ;;  %v374_v20 = vld [vmem:[%s6092_s9 + $0x1a] sm:$0xff]  ;;  %v393_v22 = vld [vmem:[%s6092_s9 + $0xb2] sm:$0xff]  ;;  %v375_v24 = vld [vmem:[%s6092_s9 + $0x22] sm:$0xff] }
  0x14   : > { %5852 = vmatpush3.msra.mxu1 %v4471_v3  ;;  %5066 = vmatpush3.msra.mxu0 %v4471_v3  ;;  %v4490_v21 = vld [vmem:[%s8813_s1 + $0x178] sm:$0xff]  ;;  %v376_v26 = vld [vmem:[%s6092_s9 + $0x2a] sm:$0xff]  ;;  %v395_v29 = vld [vmem:[%s6092_s9 + $0xc2] sm:$0xff] }
  0x15   : > { %5837 = vmatprep.subr.mxu1 %v4470_v4  ;;  %5067 = vmatprep.subr.mxu0 %v4470_v4  ;;  %v394_v25 = vld [vmem:[%s6092_s9 + $0xba] sm:$0xff]  ;;  %v370_v27 = vld [vmem:[%s8813_s1 + $0x68] sm:$0xff]  ;;  %v4489_v28 = vld [vmem:[%s8813_s1 + $0x170] sm:$0xff] }
  0x16   : > { %5853 = vmatpush3.msra.mxu1 %v4470_v4  ;;  %5068 = vmatpush3.msra.mxu0 %v4470_v4  ;;  %v369_v30 = vld [vmem:[%s8813_s1 + $0x60] sm:$0xff]  ;;  %v4488_v31 = vld [vmem:[%s8813_s1 + $0x168] sm:$0xff]  ;;  %v377_v32 = vld [vmem:[%s6092_s9 + $0x32] sm:$0xff] }
  0x17   : > { %5838 = vmatprep.subr.mxu1 %v4469_v5  ;;  %5069 = vmatprep.subr.mxu0 %v4469_v5  ;;  %v396_v33 = vld [vmem:[%s6092_s9 + $0xca] sm:$0xff]  ;;  %v378_v34 = vld [vmem:[%s6092_s9 + $0x3a] sm:$0xff]  ;;  %v397_v37 = vld [vmem:[%s6092_s9 + $0xd2] sm:$0xff] }
  0x18   : > { %5854 = vmatpush3.msra.mxu1 %v4469_v5  ;;  %5070 = vmatpush3.msra.mxu0 %v4469_v5  ;;  %v368_v35 = vld [vmem:[%s8813_s1 + $0x58] sm:$0xff]  ;;  %v4487_v36 = vld [vmem:[%s8813_s1 + $0x160] sm:$0xff]  ;;  %v367_v41 = vld [vmem:[%s8813_s1 + $0x50] sm:$0xff] }
  0x19   : > { %5839 = vmatprep.subr.mxu1 %v4468_v6  ;;  %5071 = vmatprep.subr.mxu0 %v4468_v6  ;;  %v4486_v38 = vld [vmem:[%s8813_s1 + $0x158] sm:$0xff]  ;;  %v379_v39 = vld [vmem:[%s6092_s9 + $0x42] sm:$0xff]  ;;  %v380_v42 = vld [vmem:[%s6092_s9 + $0x4a] sm:$0xff] }
  0x1a   : > { %5855 = vmatpush3.msra.mxu1 %v4468_v6  ;;  %5072 = vmatpush3.msra.mxu0 %v4468_v6  ;;  %v398_v40 = vld [vmem:[%s6092_s9 + $0xda] sm:$0xff]  ;;  %v366_v43 = vld [vmem:[%s8813_s1 + $0x48] sm:$0xff]  ;;  %v4485_v44 = vld [vmem:[%s8813_s1 + $0x150] sm:$0xff] }
  0x1b   : > { %5840 = vmatprep.subr.mxu1 %v4467_v7  ;;  %5073 = vmatprep.subr.mxu0 %v4467_v7  ;;  %v399_v45 = vld [vmem:[%s6092_s9 + $0xe2] sm:$0xff]  ;;  %v381_v46 = vld [vmem:[%s6092_s9 + $0x52] sm:$0xff]  ;;  %v400_v47 = vld [vmem:[%s6092_s9 + $0xea] sm:$0xff] }
  0x1c   : > { %5856 = vmatpush3.msra.mxu1 %v4467_v7  ;;  %5074 = vmatpush3.msra.mxu0 %v4467_v7  ;;  %v365_v48 = vld [vmem:[%s8813_s1 + $0x40] sm:$0xff]  ;;  %v4484_v49 = vld [vmem:[%s8813_s1 + $0x148] sm:$0xff]  ;;  %v364_v51 = vld [vmem:[%s8813_s1 + $0x38] sm:$0xff] }
  0x1d   : > { %5841 = vmatprep.subr.mxu1 %v4466_v8  ;;  %5075 = vmatprep.subr.mxu0 %v4466_v8  ;;  %v382_v50 = vld [vmem:[%s6092_s9 + $0x5a] sm:$0xff]  ;;  %v401_v53 = vld [vmem:[%s6092_s9 + $0xf2] sm:$0xff]  ;;  %v383_v54 = vld [vmem:[%s6092_s9 + $0x62] sm:$0xff] }
  0x1e   : > { %5857 = vmatpush3.msra.mxu1 %v4466_v8  ;;  %5076 = vmatpush3.msra.mxu0 %v4466_v8  ;;  %v4483_v52 = vld [vmem:[%s8813_s1 + $0x140] sm:$0xff]  ;;  %v4482_v56 = vld [vmem:[%s8813_s1 + $0x138] sm:$0xff]  ;;  %v384_v57 = vld [vmem:[%s6092_s9 + $0x6a] sm:$0xff] }
  0x1f   : > { %5842 = vmatprep.subr.mxu1 %v4465_v9  ;;  %5077 = vmatprep.subr.mxu0 %v4465_v9  ;;  %v402_v55 = vld [vmem:[%s6092_s9 + $0xfa] sm:$0xff]  ;;  %v363_v58 = vld [vmem:[%s8813_s1 + $0x30] sm:$0xff]  ;;  %v403_v59 = vld [vmem:[%s6092_s9 + $0x102] sm:$0xff] }
  0x20   : > { %5858 = vmatpush3.msra.mxu1 %v4465_v9  ;;  %5078 = vmatpush3.msra.mxu0 %v4465_v9  ;;  %v362_v60 = vld [vmem:[%s8813_s1 + $0x28] sm:$0xff]  ;;  %v4481_v61 = vld [vmem:[%s8813_s1 + $0x130] sm:$0xff]  ;;  %v386_v0 = vld [vmem:[%s6092_s9 + $0x7a] sm:$0xff] }
  0x21   : > { %5843 = vmatprep.subr.mxu1 %v4464_v10  ;;  %5079 = vmatprep.subr.mxu0 %v4464_v10  ;;  %v385_v62 = vld [vmem:[%s6092_s9 + $0x72] sm:$0xff]  ;;  %v404_v63 = vld [vmem:[%s6092_s9 + $0x10a] sm:$0xff]  ;;  %v361_v1 = vld [vmem:[%s8813_s1 + $0x20] sm:$0xff] }
  0x22   : > { %5859 = vmatpush3.msra.mxu1 %v4464_v10  ;;  %5080 = vmatpush3.msra.mxu0 %v4464_v10  ;;  %v4480_v2 = vld [vmem:[%s8813_s1 + $0x128] sm:$0xff]  ;;  %v405_v3 = vld [vmem:[%s6092_s9 + $0x112] sm:$0xff]  ;;  %v4479_v5 = vld [vmem:[%s8813_s1 + $0x120] sm:$0xff] }
  0x23   : > { %5844 = vmatprep.subr.mxu1 %v4463_v11  ;;  %5081 = vmatprep.subr.mxu0 %v4463_v11  ;;  %v360_v4 = vld [vmem:[%s8813_s1 + $0x18] sm:$0xff]  ;;  %v387_v6 = vld [vmem:[%s6092_s9 + $0x82] sm:$0xff]  ;;  %v388_v8 = vld [vmem:[%s6092_s9 + $0x8a] sm:$0xff] }
  0x24   : > { %5860 = vmatpush3.msra.mxu1 %v4463_v11  ;;  %5082 = vmatpush3.msra.mxu0 %v4463_v11  ;;  %v406_v7 = vld [vmem:[%s6092_s9 + $0x11a] sm:$0xff]  ;;  %v359_v10 = vld [vmem:[%s8813_s1 + $0x10] sm:$0xff]  ;;  %v407_v11 = vld [vmem:[%s6092_s9 + $0x122] sm:$0xff] }
  0x25   : > { %5845 = vmatprep.subr.mxu1 %v4462_v12  ;;  %5083 = vmatprep.subr.mxu0 %v4462_v12  ;;  %v4478_v9 = vld [vmem:[%s8813_s1 + $0x118] sm:$0xff] }
  0x26   : > { %5861 = vmatpush3.msra.mxu1 %v4462_v12  ;;  %5084 = vmatpush3.msra.mxu0 %v4462_v12  ;;  %v4477_v12 = vld [vmem:[%s8813_s1 + $0x110] sm:$0xff] }
  0x27   : > { %5846 = vmatprep.subr.mxu1 %v4461_v13  ;;  %5085 = vmatprep.subr.mxu0 %v4461_v13 }
  0x28   : > { %5862 = vmatpush3.msra.mxu1 %v4461_v13  ;;  %5086 = vmatpush3.msra.mxu0 %v4461_v13  ;;  %v389_v13 = vld [vmem:[%s6092_s9 + $0x92] sm:$0xff] }
  0x29   : > { %5847 = vmatprep.subr.mxu1 %v4460_v14  ;;  %5087 = vmatprep.subr.mxu0 %v4460_v14 }
  0x2a   : > { %5863 = vmatpush3.msra.mxu1 %v4460_v14  ;;  %5088 = vmatpush3.msra.mxu0 %v4460_v14  ;;  %v408_v14 = vld [vmem:[%s6092_s9 + $0x12a] sm:$0xff] }
  0x2b   : > { %5848 = vmatprep.subr.mxu1 %v4459_v15  ;;  %5089 = vmatprep.subr.mxu0 %v4459_v15 }
  0x2c   : > { %5864 = vmatpush3.msra.mxu1 %v4459_v15  ;;  %5118 = vmatprep.mubr.f32.mxu1 %v391_v16  ;;  %v390_v16 = vld [vmem:[%s6092_s9 + $0x9a] sm:$0xff] }
  0x2d   : > { %5090 = vmatpush3.msra.mxu0 %v4459_v15  ;;  %5091 = vmatprep.mubr.f32.mxu0 %v373_v17  ;;  %v358_v15 = vld [vmem:[%s8813_s1 + $0x8] sm:$0xff] }
  0x2e   : > { %5119 = vmatmul.mubr.f32.vlgmr.msra.gmra.mxu1 %v392_v18  ;;  %5145 = vmatprep.subr.mxu1 %v372_v19  ;;  %v4476_v17 = vld [vmem:[%s8813_s1 + $0x108] sm:$0xff]  ;;  %v357_v18 = vld [vmem:[%s8813_s1] sm:$0xff] }
  0x2f   : > { %5092 = vmatmul.mubr.f32.vlgmr.msra.gmra.mxu0 %v374_v20  ;;  %5146 = vmatpush3.msra.mxu1 %v372_v19  ;;  %v321_v19 = vld [vmem:[%s6092_s9 + $0x11] sm:$0xff]  ;;  %v4475_v20 = vld [vmem:[%s8813_s1 + $0x100] sm:$0xff] }
  0x30   : > { %5231 = vmatprep.subr.mxu0 %v4490_v21  ;;  %5121 = vmatprep.mubr.f32.mxu1 %v393_v22  ;;  %v916_v22 = vld [vmem:[%s6092_s9 + $0x13] sm:$0xff] }
  0x31   : > { %5147 = vmatprep.subr.mxu1 %v371_v23  ;;  %5232 = vmatpush3.msra.mxu0 %v4490_v21  ;;  %v322_v21 = vld [vmem:[%s6092_s9 + $0x19] sm:$0xff] }
  0x32   : > { %5094 = vmatprep.mubr.f32.mxu0 %v375_v24  ;;  %5122 = vmatmul.mubr.f32.gmra.mxu1 %v394_v25  ;;  %v917_v24 = vld [vmem:[%s6092_s9 + $0x1b] sm:$0xff] }
  0x33   : > { %5148 = vmatpush3.msra.mxu1 %v371_v23  ;;  %5095 = vmatmul.mubr.f32.gmra.mxu0 %v376_v26  ;;  %v4506_v23 = vld [vmem:[%s8813_s1 + $0x1f8] sm:$0xff]  ;;  %v323_v26 = vld [vmem:[%s6092_s9 + $0x21] sm:$0xff] }
  0x34   : > { %5149 = vmatprep.subr.mxu1 %v370_v27  ;;  %5233 = vmatprep.subr.mxu0 %v4489_v28  ;;  %v4522_v25 = vld [vmem:[%s8813_s1 + $0x278] sm:$0xff] }
  0x35   : > { %5150 = vmatpush3.msra.mxu1 %v370_v27  ;;  %5234 = vmatpush3.msra.mxu0 %v4489_v28  ;;  %v324_v27 = vld [vmem:[%s6092_s9 + $0x29] sm:$0xff] }
  0x36   : > { %5124 = vmatprep.mubr.f32.mxu1 %v395_v29  ;;  %5151 = vmatprep.subr.mxu1 %v369_v30  ;;  %v6242_v28 = vld [vmem:[%s6092_s9 + $0x23] sm:$0xff]  ;;  %v4505_v29 = vld [vmem:[%s8813_s1 + $0x1f0] sm:$0xff] }
  0x37   : > { %5235 = vmatprep.subr.mxu0 %v4488_v31  ;;  %5097 = vmatprep.mubr.f32.mxu0 %v377_v32  ;;  %v4521_v32 = vld [vmem:[%s8813_s1 + $0x270] sm:$0xff] }
  0x38   : > { %5125 = vmatmul.mubr.f32.gmra.mxu1 %v396_v33  ;;  %5236 = vmatpush3.msra.mxu0 %v4488_v31  ;;  %v325_v31 = vld [vmem:[%s6092_s9 + $0x31] sm:$0xff]  ;;  %v326_v33 = vld [vmem:[%s6092_s9 + $0x39] sm:$0xff] }
  0x39   : > { %5152 = vmatpush3.msra.mxu1 %v369_v30  ;;  %5098 = vmatmul.mubr.f32.gmra.mxu0 %v378_v34  ;;  %v6248_v30 = vld [vmem:[%s6092_s9 + $0x2b] sm:$0xff]  ;;  %v6257_v34 = vld [vmem:[%s6092_s9 + $0x33] sm:$0xff] }
  0x3a   : > { %5153 = vmatprep.subr.mxu1 %v368_v35  ;;  %5237 = vmatprep.subr.mxu0 %v4487_v36 }
  0x3b   : > { %5154 = vmatpush3.msra.mxu1 %v368_v35  ;;  %5238 = vmatpush3.msra.mxu0 %v4487_v36  ;;  %v4504_v35 = vld [vmem:[%s8813_s1 + $0x1e8] sm:$0xff]  ;;  %v6264_v36 = vld [vmem:[%s6092_s9 + $0x3b] sm:$0xff] }
  0x3c   : > { %5127 = vmatprep.mubr.f32.mxu1 %v397_v37  ;;  %5239 = vmatprep.subr.mxu0 %v4486_v38  ;;  %v327_v37 = vld [vmem:[%s6092_s9 + $0x41] sm:$0xff] }
  0x3d   : > { %5100 = vmatprep.mubr.f32.mxu0 %v379_v39  ;;  %5128 = vmatmul.mubr.f32.gmra.mxu1 %v398_v40  ;;  %v328_v39 = vld [vmem:[%s6092_s9 + $0x49] sm:$0xff] }
  0x3e   : > { %5155 = vmatprep.subr.mxu1 %v367_v41  ;;  %5240 = vmatpush3.msra.mxu0 %v4486_v38  ;;  %v4520_v38 = vld [vmem:[%s8813_s1 + $0x268] sm:$0xff] }
  0x3f   : > { %5101 = vmatmul.mubr.f32.gmra.mxu0 %v380_v42  ;;  %5156 = vmatpush3.msra.mxu1 %v367_v41  ;;  %v6273_v40 = vld [vmem:[%s6092_s9 + $0x43] sm:$0xff]  ;;  %v6280_v42 = vld [vmem:[%s6092_s9 + $0x4b] sm:$0xff] }
  0x40   : > { %5157 = vmatprep.subr.mxu1 %v366_v43  ;;  %5241 = vmatprep.subr.mxu0 %v4485_v44  ;;  %v4503_v41 = vld [vmem:[%s8813_s1 + $0x1e0] sm:$0xff] }
  0x41   : > { %5130 = vmatprep.mubr.f32.mxu1 %v399_v45  ;;  %5158 = vmatpush3.msra.mxu1 %v366_v43  ;;  %v329_v43 = vld [vmem:[%s6092_s9 + $0x51] sm:$0xff]  ;;  %v330_v45 = vld [vmem:[%s6092_s9 + $0x59] sm:$0xff] }
  0x42   : > { %5242 = vmatpush3.msra.mxu0 %v4485_v44  ;;  %5103 = vmatprep.mubr.f32.mxu0 %v381_v46  ;;  %v6285_v44 = vld [vmem:[%s6092_s9 + $0x53] sm:$0xff]  ;;  %v4519_v46 = vld [vmem:[%s8813_s1 + $0x260] sm:$0xff] }
  0x43   : > { %5131 = vmatmul.mubr.f32.gmra.mxu1 %v400_v47  ;;  %5159 = vmatprep.subr.mxu1 %v365_v48  ;;  %v4502_v47 = vld [vmem:[%s8813_s1 + $0x1d8] sm:$0xff] }
  0x44   : > { %5243 = vmatprep.subr.mxu0 %v4484_v49  ;;  %5104 = vmatmul.mubr.f32.gmra.mxu0 %v382_v50  ;;  %v6301_v50 = vld [vmem:[%s6092_s9 + $0x63] sm:$0xff] }
  0x45   : > { %5160 = vmatpush3.msra.mxu1 %v365_v48  ;;  %5244 = vmatpush3.msra.mxu0 %v4484_v49  ;;  %v6297_v48 = vld [vmem:[%s6092_s9 + $0x5b] sm:$0xff] }
  0x46   : > { %5161 = vmatprep.subr.mxu1 %v364_v51  ;;  %5245 = vmatprep.subr.mxu0 %v4483_v52  ;;  %v331_v49 = vld [vmem:[%s6092_s9 + $0x61] sm:$0xff] }
  0x47   : > { %5133 = vmatprep.mubr.f32.mxu1 %v401_v53  ;;  %5162 = vmatpush3.msra.mxu1 %v364_v51  ;;  %v332_v51 = vld [vmem:[%s6092_s9 + $0x69] sm:$0xff]  ;;  %v333_v53 = vld [vmem:[%s6092_s9 + $0x71] sm:$0xff] }
  0x48   : > { %5246 = vmatpush3.msra.mxu0 %v4483_v52  ;;  %5106 = vmatprep.mubr.f32.mxu0 %v383_v54  ;;  %v4518_v52 = vld [vmem:[%s8813_s1 + $0x258] sm:$0xff]  ;;  %v6311_v54 = vld [vmem:[%s6092_s9 + $0x6b] sm:$0xff] }
  0x49   : > { %5134 = vmatmul.mubr.f32.gmra.mxu1 %v402_v55  ;;  %5247 = vmatprep.subr.mxu0 %v4482_v56  ;;  %v4501_v55 = vld [vmem:[%s8813_s1 + $0x1d0] sm:$0xff] }
  0x4a   : > { %5107 = vmatmul.mubr.f32.gmra.mxu0 %v384_v57  ;;  %5163 = vmatprep.subr.mxu1 %v363_v58  ;;  %v334_v57 = vld [vmem:[%s6092_s9 + $0x79] sm:$0xff] }
  0x4b   : > { %5248 = vmatpush3.msra.mxu0 %v4482_v56  ;;  %5164 = vmatpush3.msra.mxu1 %v363_v58  ;;  %v6317_v56 = vld [vmem:[%s6092_s9 + $0x73] sm:$0xff] }
  0x4c   : > { %5136 = vmatprep.mubr.f32.mxu1 %v403_v59  ;;  %5165 = vmatprep.subr.mxu1 %v362_v60  ;;  %v4517_v58 = vld [vmem:[%s8813_s1 + $0x250] sm:$0xff]  ;;  %v335_v59 = vld [vmem:[%s6092_s9 + $0x81] sm:$0xff] }
  0x4d   : > { %5249 = vmatprep.subr.mxu0 %v4481_v61  ;;  %5109 = vmatprep.mubr.f32.mxu0 %v385_v62  ;;  %v6333_v62 = vld [vmem:[%s6092_s9 + $0x83] sm:$0xff] }
  0x4e   : > { %5137 = vmatmul.mubr.f32.gmra.mxu1 %v404_v63  ;;  %5250 = vmatpush3.msra.mxu0 %v4481_v61  ;;  %v4500_v61 = vld [vmem:[%s8813_s1 + $0x1c8] sm:$0xff] }
  0x4f   : > { %5166 = vmatpush3.msra.mxu1 %v362_v60  ;;  %5110 = vmatmul.mubr.f32.gmra.mxu0 %v386_v0  ;;  %v6327_v60 = vld [vmem:[%s6092_s9 + $0x7b] sm:$0xff]  ;;  %v336_v63 = vld [vmem:[%s6092_s9 + $0x89] sm:$0xff] }
  0x50   : > { %5167 = vmatprep.subr.mxu1 %v361_v1  ;;  %5251 = vmatprep.subr.mxu0 %v4480_v2  ;;  %v4516_v0 = vld [vmem:[%s8813_s1 + $0x248] sm:$0xff] }
  0x51   : > { %5168 = vmatpush3.msra.mxu1 %v361_v1  ;;  %5252 = vmatpush3.msra.mxu0 %v4480_v2  ;;  %v337_v1 = vld [vmem:[%s6092_s9 + $0x91] sm:$0xff] }
  0x52   : > { %5139 = vmatprep.mubr.f32.mxu1 %v405_v3  ;;  %5169 = vmatprep.subr.mxu1 %v360_v4  ;;  %v6343_v2 = vld [vmem:[%s6092_s9 + $0x8b] sm:$0xff]  ;;  %v4499_v3 = vld [vmem:[%s8813_s1 + $0x1c0] sm:$0xff] }
  0x53   : > { %5253 = vmatprep.subr.mxu0 %v4479_v5  ;;  %5112 = vmatprep.mubr.f32.mxu0 %v387_v6  ;;  %v4515_v6 = vld [vmem:[%s8813_s1 + $0x240] sm:$0xff] }
  0x54   : > { %5140 = vmatmul.mubr.f32.gmra.mxu1 %v406_v7  ;;  %5254 = vmatpush3.msra.mxu0 %v4479_v5  ;;  %v338_v5 = vld [vmem:[%s6092_s9 + $0x99] sm:$0xff]  ;;  %v339_v7 = vld [vmem:[%s6092_s9 + $0xa1] sm:$0xff] }
  0x55   : > { %5170 = vmatpush3.msra.mxu1 %v360_v4  ;;  %5113 = vmatmul.mubr.f32.gmra.mxu0 %v388_v8  ;;  %v6349_v4 = vld [vmem:[%s6092_s9 + $0x93] sm:$0xff]  ;;  %v6359_v8 = vld [vmem:[%s6092_s9 + $0x9b] sm:$0xff] }
  0x56   : > { %5255 = vmatprep.subr.mxu0 %v4478_v9  ;;  %5171 = vmatprep.subr.mxu1 %v359_v10 }
  0x57   : > { %5256 = vmatpush3.msra.mxu0 %v4478_v9  ;;  %5142 = vmatprep.mubr.f32.mxu1 %v407_v11  ;;  %v4498_v9 = vld [vmem:[%s8813_s1 + $0x1b8] sm:$0xff]  ;;  %v340_v11 = vld [vmem:[%s6092_s9 + $0xa9] sm:$0xff] }
  0x58   : > { %5172 = vmatpush3.msra.mxu1 %v359_v10  ;;  %5257 = vmatprep.subr.mxu0 %v4477_v12  ;;  %v6365_v10 = vld [vmem:[%s6092_s9 + $0xa3] sm:$0xff] }
  0x59   : > { %5115 = vmatprep.mubr.f32.mxu0 %v389_v13  ;;  %5143 = vmatmul.mubr.f32.gmra.mxu1 %v408_v14  ;;  %v341_v13 = vld [vmem:[%s6092_s9 + $0xb1] sm:$0xff] }
  0x5a   : > { %5173 = vmatprep.subr.mxu1 %v358_v15  ;;  %5258 = vmatpush3.msra.mxu0 %v4477_v12  ;;  %v4514_v12 = vld [vmem:[%s8813_s1 + $0x238] sm:$0xff]  ;;  %v6375_v14 = vld [vmem:[%s6092_s9 + $0xab] sm:$0xff] }
  0x5b   : > { %5116 = vmatmul.mubr.f32.gmra.mxu0 %v390_v16  ;;  %5174 = vmatpush3.msra.mxu1 %v358_v15  ;;  %v4497_v15 = vld [vmem:[%s8813_s1 + $0x1b0] sm:$0xff] }
  0x5c   : > { %5259 = vmatprep.subr.mxu0 %v4476_v17  ;;  %5175 = vmatprep.subr.mxu1 %v357_v18  ;;  %v6381_v16 = vld [vmem:[%s6092_s9 + $0xb3] sm:$0xff] }
  0x5d   : > { %5260 = vmatpush3.msra.mxu0 %v4476_v17  ;;  %5176 = vmatpush3.msra.mxu1 %v357_v18  ;;  %v342_v17 = vld [vmem:[%s6092_s9 + $0xb9] sm:$0xff]  ;;  %v4513_v18 = vld [vmem:[%s8813_s1 + $0x230] sm:$0xff] }
  0x5e   : > { %5177 = vmatprep.mubr.f32.mxu1 %v321_v19  ;;  %5261 = vmatprep.subr.mxu0 %v4475_v20  ;;  %v343_v19 = vld [vmem:[%s6092_s9 + $0xc1] sm:$0xff] }
  0x5f   : > { %5178 = vmatmul.mubr.f32.vlgmr.msra.gmra.mxu1 %v322_v21  ;;  %5262 = vmatpush3.msra.mxu0 %v4475_v20  ;;  %v6391_v20 = vld [vmem:[%s6092_s9 + $0xbb] sm:$0xff]  ;;  %v4496_v21 = vld [vmem:[%s8813_s1 + $0x1a8] sm:$0xff] }
  0x60   : > { %5263 = vmatprep.mubr.f32.mxu0 %v916_v22  ;;  %5317 = vmatprep.subr.mxu1 %v4506_v23  ;;  %v6397_v22 = vld [vmem:[%s6092_s9 + $0xc3] sm:$0xff] }
  0x61   : > { %5264 = vmatmul.mubr.f32.vlgmr.msra.gmra.mxu0 %v917_v24  ;;  %5318 = vmatpush3.msra.mxu1 %v4506_v23  ;;  %v344_v23 = vld [vmem:[%s6092_s9 + $0xc9] sm:$0xff] }
  0x62   : > { %5403 = vmatprep.subr.mxu0 %v4522_v25  ;;  %5180 = vmatprep.mubr.f32.mxu1 %v323_v26  ;;  %v4512_v24 = vld [vmem:[%s8813_s1 + $0x228] sm:$0xff] }
  0x63   : > { %5404 = vmatpush3.msra.mxu0 %v4522_v25  ;;  %5181 = vmatmul.mubr.f32.gmra.mxu1 %v324_v27  ;;  %v345_v25 = vld [vmem:[%s6092_s9 + $0xd1] sm:$0xff]  ;;  %v4495_v27 = vld [vmem:[%s8813_s1 + $0x1a0] sm:$0xff] }
  0x64   : > { %5266 = vmatprep.mubr.f32.mxu0 %v6242_v28  ;;  %5319 = vmatprep.subr.mxu1 %v4505_v29  ;;  %v6407_v26 = vld [vmem:[%s6092_s9 + $0xcb] sm:$0xff] }
  0x65   : > { %5267 = vmatmul.mubr.f32.gmra.mxu0 %v6248_v30  ;;  %5320 = vmatpush3.msra.mxu1 %v4505_v29  ;;  %v6413_v29 = vld [vmem:[%s6092_s9 + $0xd3] sm:$0xff] }
  0x66   : > { %5183 = vmatprep.mubr.f32.mxu1 %v325_v31  ;;  %5405 = vmatprep.subr.mxu0 %v4521_v32  ;;  %v346_v31 = vld [vmem:[%s6092_s9 + $0xd9] sm:$0xff] }
  0x67   : > { %5184 = vmatmul.mubr.f32.gmra.mxu1 %v326_v33  ;;  %5269 = vmatprep.mubr.f32.mxu0 %v6257_v34  ;;  %v347_v33 = vld [vmem:[%s6092_s9 + $0xe1] sm:$0xff] }
  0x68   : > { %5406 = vmatpush3.msra.mxu0 %v4521_v32  ;;  %5321 = vmatprep.subr.mxu1 %v4504_v35  ;;  %v4511_v32 = vld [vmem:[%s8813_s1 + $0x220] sm:$0xff] }
  0x69   : > { %5270 = vmatmul.mubr.f32.gmra.mxu0 %v6264_v36  ;;  %5322 = vmatpush3.msra.mxu1 %v4504_v35  ;;  %v6423_v35 = vld [vmem:[%s6092_s9 + $0xdb] sm:$0xff] }
  0x6a   : > { %5186 = vmatprep.mubr.f32.mxu1 %v327_v37  ;;  %5407 = vmatprep.subr.mxu0 %v4520_v38  ;;  %v4494_v37 = vld [vmem:[%s8813_s1 + $0x198] sm:$0xff] }
  0x6b   : > { %5187 = vmatmul.mubr.f32.gmra.mxu1 %v328_v39  ;;  %5272 = vmatprep.mubr.f32.mxu0 %v6273_v40  ;;  %v348_v39 = vld [vmem:[%s6092_s9 + $0xe9] sm:$0xff] }
  0x6c   : > { %5408 = vmatpush3.msra.mxu0 %v4520_v38  ;;  %5323 = vmatprep.subr.mxu1 %v4503_v41  ;;  %v6429_v38 = vld [vmem:[%s6092_s9 + $0xe3] sm:$0xff] }
  0x6d   : > { %5273 = vmatmul.mubr.f32.gmra.mxu0 %v6280_v42  ;;  %5189 = vmatprep.mubr.f32.mxu1 %v329_v43  ;;  %v349_v43 = vld [vmem:[%s6092_s9 + $0xf1] sm:$0xff] }
  0x6e   : > { %5324 = vmatpush3.msra.mxu1 %v4503_v41  ;;  %5275 = vmatprep.mubr.f32.mxu0 %v6285_v44  ;;  %v4510_v41 = vld [vmem:[%s8813_s1 + $0x218] sm:$0xff] }
  0x6f   : > { %5190 = vmatmul.mubr.f32.gmra.mxu1 %v330_v45  ;;  %5409 = vmatprep.subr.mxu0 %v4519_v46  ;;  %v6439_v45 = vld [vmem:[%s6092_s9 + $0xeb] sm:$0xff] }
  0x70   : > { %5410 = vmatpush3.msra.mxu0 %v4519_v46  ;;  %5325 = vmatprep.subr.mxu1 %v4502_v47  ;;  %v4493_v46 = vld [vmem:[%s8813_s1 + $0x190] sm:$0xff] }
  0x71   : > { %5276 = vmatmul.mubr.f32.gmra.mxu0 %v6297_v48  ;;  %5192 = vmatprep.mubr.f32.mxu1 %v331_v49  ;;  %v350_v49 = vld [vmem:[%s6092_s9 + $0xf9] sm:$0xff] }
  0x72   : > { %5326 = vmatpush3.msra.mxu1 %v4502_v47  ;;  %5278 = vmatprep.mubr.f32.mxu0 %v6301_v50  ;;  %v6445_v47 = vld [vmem:[%s6092_s9 + $0xf3] sm:$0xff] }
  0x73   : > { %5193 = vmatmul.mubr.f32.gmra.mxu1 %v332_v51  ;;  %5411 = vmatprep.subr.mxu0 %v4518_v52  ;;  %v4509_v51 = vld [vmem:[%s8813_s1 + $0x210] sm:$0xff] }
  0x74   : > { %5412 = vmatpush3.msra.mxu0 %v4518_v52  ;;  %5195 = vmatprep.mubr.f32.mxu1 %v333_v53  ;;  %v351_v52 = vld [vmem:[%s6092_s9 + $0x101] sm:$0xff] }
  0x75   : > { %5279 = vmatmul.mubr.f32.gmra.mxu0 %v6311_v54  ;;  %5327 = vmatprep.subr.mxu1 %v4501_v55  ;;  %v6455_v53 = vld [vmem:[%s6092_s9 + $0xfb] sm:$0xff] }
  0x76   : > { %5281 = vmatprep.mubr.f32.mxu0 %v6317_v56  ;;  %5328 = vmatpush3.msra.mxu1 %v4501_v55  ;;  %v4492_v55 = vld [vmem:[%s8813_s1 + $0x188] sm:$0xff] }
  0x77   : > { %5196 = vmatmul.mubr.f32.gmra.mxu1 %v334_v57  ;;  %5413 = vmatprep.subr.mxu0 %v4517_v58  ;;  %v6461_v57 = vld [vmem:[%s6092_s9 + $0x103] sm:$0xff] }
  0x78   : > { %5414 = vmatpush3.msra.mxu0 %v4517_v58  ;;  %5198 = vmatprep.mubr.f32.mxu1 %v335_v59  ;;  %v352_v58 = vld [vmem:[%s6092_s9 + $0x109] sm:$0xff] }
  0x79   : > { %5282 = vmatmul.mubr.f32.gmra.mxu0 %v6327_v60  ;;  %5329 = vmatprep.subr.mxu1 %v4500_v61  ;;  %v4508_v59 = vld [vmem:[%s8813_s1 + $0x208] sm:$0xff] }
  0x7a   : > { %5284 = vmatprep.mubr.f32.mxu0 %v6333_v62  ;;  %5330 = vmatpush3.msra.mxu1 %v4500_v61  ;;  %v353_v61 = vld [vmem:[%s6092_s9 + $0x111] sm:$0xff] }
  0x7b   : > { %5199 = vmatmul.mubr.f32.gmra.mxu1 %v336_v63  ;;  %5415 = vmatprep.subr.mxu0 %v4516_v0  ;;  %v6471_v63 = vld [vmem:[%s6092_s9 + $0x10b] sm:$0xff] }
  0x7c   : > { %5416 = vmatpush3.msra.mxu0 %v4516_v0  ;;  %5201 = vmatprep.mubr.f32.mxu1 %v337_v1  ;;  %v4491_v0 = vld [vmem:[%s8813_s1 + $0x180] sm:$0xff]  ;;  %v6477_v1 = vld [vmem:[%s6092_s9 + $0x113] sm:$0xff] }
  0x7d   : > { %5285 = vmatmul.mubr.f32.gmra.mxu0 %v6343_v2  ;;  %5331 = vmatprep.subr.mxu1 %v4499_v3 }
  0x7e   : > { %5287 = vmatprep.mubr.f32.mxu0 %v6349_v4  ;;  %5332 = vmatpush3.msra.mxu1 %v4499_v3  ;;  %v354_v3 = vld [vmem:[%s6092_s9 + $0x119] sm:$0xff] }
  0x7f   : > { %5202 = vmatmul.mubr.f32.gmra.mxu1 %v338_v5  ;;  %5417 = vmatprep.subr.mxu0 %v4515_v6  ;;  %v4507_v5 = vld [vmem:[%s8813_s1 + $0x200] sm:$0xff] }
  0x80   : > { %5204 = vmatprep.mubr.f32.mxu1 %v339_v7  ;;  %5418 = vmatpush3.msra.mxu0 %v4515_v6  ;;  %v355_v6 = vld [vmem:[%s6092_s9 + $0x121] sm:$0xff] }
  0x81   : > { %5288 = vmatmul.mubr.f32.gmra.mxu0 %v6359_v8  ;;  %5333 = vmatprep.subr.mxu1 %v4498_v9  ;;  %v6487_v7 = vld [vmem:[%s6092_s9 + $0x11b] sm:$0xff] }
  0x82   : > { %5290 = vmatprep.mubr.f32.mxu0 %v6365_v10  ;;  %5334 = vmatpush3.msra.mxu1 %v4498_v9  ;;  %v4538_v9 = vld [vmem:[%s8813_s1 + $0x2f8] sm:$0xff] }
  0x83   : > { %5205 = vmatmul.mubr.f32.gmra.mxu1 %v340_v11  ;;  %5419 = vmatprep.subr.mxu0 %v4514_v12  ;;  %v6493_v11 = vld [vmem:[%s6092_s9 + $0x123] sm:$0xff] }
  0x84   : > { %5207 = vmatprep.mubr.f32.mxu1 %v341_v13  ;;  %5420 = vmatpush3.msra.mxu0 %v4514_v12  ;;  %v4554_v12 = vld [vmem:[%s8813_s1 + $0x378] sm:$0xff]  ;;  %v356_v13 = vld [vmem:[%s6092_s9 + $0x129] sm:$0xff] }
  0x85   : > { %5291 = vmatmul.mubr.f32.gmra.mxu0 %v6375_v14  ;;  %5335 = vmatprep.subr.mxu1 %v4497_v15 }
  0x86   : > { %5293 = vmatprep.mubr.f32.mxu0 %v6381_v16  ;;  %5336 = vmatpush3.msra.mxu1 %v4497_v15  ;;  %v6502_v15 = vld [vmem:[%s6092_s9 + $0x12b] sm:$0xff] }
  0x87   : > { %5208 = vmatmul.mubr.f32.gmra.mxu1 %v342_v17  ;;  %5421 = vmatprep.subr.mxu0 %v4513_v18  ;;  %v1584_v17 = vld [vmem:[%s6092_s9 + $0x24] sm:$0xff] }
  0x88   : > { %5210 = vmatprep.mubr.f32.mxu1 %v343_v19  ;;  %5422 = vmatpush3.msra.mxu0 %v4513_v18  ;;  %v1585_v18 = vld [vmem:[%s6092_s9 + $0x2c] sm:$0xff] }
  0x89   : > { %5294 = vmatmul.mubr.f32.gmra.mxu0 %v6391_v20  ;;  %5337 = vmatprep.subr.mxu1 %v4496_v21  ;;  %v4537_v19 = vld [vmem:[%s8813_s1 + $0x2f0] sm:$0xff] }
  0x8a   : > { %5296 = vmatprep.mubr.f32.mxu0 %v6397_v22  ;;  %5338 = vmatpush3.msra.mxu1 %v4496_v21  ;;  %v1586_v21 = vld [vmem:[%s6092_s9 + $0x34] sm:$0xff] }
  0x8b   : > { %5211 = vmatmul.mubr.f32.gmra.mxu1 %v344_v23  ;;  %5423 = vmatprep.subr.mxu0 %v4512_v24  ;;  %v4553_v23 = vld [vmem:[%s8813_s1 + $0x370] sm:$0xff] }
  0x8c   : > { %5213 = vmatprep.mubr.f32.mxu1 %v345_v25  ;;  %5424 = vmatpush3.msra.mxu0 %v4512_v24  ;;  %v4536_v24 = vld [vmem:[%s8813_s1 + $0x2e8] sm:$0xff] }
  0x8d   : > { %5297 = vmatmul.mubr.f32.gmra.mxu0 %v6407_v26  ;;  %5339 = vmatprep.subr.mxu1 %v4495_v27  ;;  %v1589_v25 = vld [vmem:[%s6092_s9 + $0x4c] sm:$0xff] }
  0x8e   : > { %5299 = vmatprep.mubr.f32.mxu0 %v6413_v29  ;;  %5340 = vmatpush3.msra.mxu1 %v4495_v27  ;;  %v1590_v27 = vld [vmem:[%s6092_s9 + $0x54] sm:$0xff] }
  0x8f   : > { %5214 = vmatmul.mubr.f32.gmra.mxu1 %v346_v31  ;;  %5425 = vmatprep.subr.mxu0 %v4511_v32  ;;  %v1591_v31 = vld [vmem:[%s6092_s9 + $0x5c] sm:$0xff] }
  0x90   : > { %5216 = vmatprep.mubr.f32.mxu1 %v347_v33  ;;  %5426 = vmatpush3.msra.mxu0 %v4511_v32  ;;  %v1592_v32 = vld [vmem:[%s6092_s9 + $0x64] sm:$0xff]  ;;  %v1593_v33 = vld [vmem:[%s6092_s9 + $0x6c] sm:$0xff] }
  0x91   : > { %5300 = vmatmul.mubr.f32.gmra.mxu0 %v6423_v35  ;;  %5341 = vmatprep.subr.mxu1 %v4494_v37 }
  0x92   : > { %5302 = vmatprep.mubr.f32.mxu0 %v6429_v38  ;;  %5342 = vmatpush3.msra.mxu1 %v4494_v37  ;;  %v1594_v37 = vld [vmem:[%s6092_s9 + $0x74] sm:$0xff] }
  0x93   : > { %5217 = vmatmul.mubr.f32.gmra.mxu1 %v348_v39  ;;  %5427 = vmatprep.subr.mxu0 %v4510_v41  ;;  %v1595_v39 = vld [vmem:[%s6092_s9 + $0x7c] sm:$0xff] }
  0x94   : > { %5219 = vmatprep.mubr.f32.mxu1 %v349_v43  ;;  %5428 = vmatpush3.msra.mxu0 %v4510_v41  ;;  %v1596_v41 = vld [vmem:[%s6092_s9 + $0x84] sm:$0xff]  ;;  %v1597_v43 = vld [vmem:[%s6092_s9 + $0x8c] sm:$0xff] }
  0x95   : > { %5303 = vmatmul.mubr.f32.gmra.mxu0 %v6439_v45  ;;  %5343 = vmatprep.subr.mxu1 %v4493_v46 }
  0x96   : > { %5305 = vmatprep.mubr.f32.mxu0 %v6445_v47  ;;  %5344 = vmatpush3.msra.mxu1 %v4493_v46  ;;  %v1598_v46 = vld [vmem:[%s6092_s9 + $0x94] sm:$0xff] }
  0x97   : > { %5220 = vmatmul.mubr.f32.gmra.mxu1 %v350_v49  ;;  %5429 = vmatprep.subr.mxu0 %v4509_v51  ;;  %v1599_v49 = vld [vmem:[%s6092_s9 + $0x9c] sm:$0xff] }
  0x98   : > { %5222 = vmatprep.mubr.f32.mxu1 %v351_v52  ;;  %5430 = vmatpush3.msra.mxu0 %v4509_v51  ;;  %v1600_v51 = vld [vmem:[%s6092_s9 + $0xa4] sm:$0xff]  ;;  %v1601_v52 = vld [vmem:[%s6092_s9 + $0xac] sm:$0xff] }
  0x99   : > { %5306 = vmatmul.mubr.f32.gmra.mxu0 %v6455_v53  ;;  %5345 = vmatprep.subr.mxu1 %v4492_v55 }
  0x9a   : > { %5308 = vmatprep.mubr.f32.mxu0 %v6461_v57  ;;  %5346 = vmatpush3.msra.mxu1 %v4492_v55  ;;  %v1602_v55 = vld [vmem:[%s6092_s9 + $0xb4] sm:$0xff] }
  0x9b   : > { %5223 = vmatmul.mubr.f32.gmra.mxu1 %v352_v58  ;;  %5431 = vmatprep.subr.mxu0 %v4508_v59  ;;  %v1603_v58 = vld [vmem:[%s6092_s9 + $0xbc] sm:$0xff] }
  0x9c   : > { %5225 = vmatprep.mubr.f32.mxu1 %v353_v61  ;;  %5432 = vmatpush3.msra.mxu0 %v4508_v59  ;;  %v1604_v59 = vld [vmem:[%s6092_s9 + $0xc4] sm:$0xff]  ;;  %v1605_v61 = vld [vmem:[%s6092_s9 + $0xcc] sm:$0xff] }
  0x9d   : > { %5309 = vmatmul.mubr.f32.gmra.mxu0 %v6471_v63  ;;  %5347 = vmatprep.subr.mxu1 %v4491_v0 }
  0x9e   : > { %5311 = vmatprep.mubr.f32.mxu0 %v6477_v1  ;;  %5348 = vmatpush3.msra.mxu1 %v4491_v0  ;;  %v1606_v0 = vld [vmem:[%s6092_s9 + $0xd4] sm:$0xff] }
  0x9f   : > { %5226 = vmatmul.mubr.f32.gmra.mxu1 %v354_v3  ;;  %5433 = vmatprep.subr.mxu0 %v4507_v5  ;;  %v1607_v3 = vld [vmem:[%s6092_s9 + $0xdc] sm:$0xff] }
  0xa0   : > { %5228 = vmatprep.mubr.f32.mxu1 %v355_v6  ;;  %5434 = vmatpush3.msra.mxu0 %v4507_v5  ;;  %v1608_v5 = vld [vmem:[%s6092_s9 + $0xe4] sm:$0xff]  ;;  %v1609_v6 = vld [vmem:[%s6092_s9 + $0xec] sm:$0xff] }
  0xa1   : > { %5312 = vmatmul.mubr.f32.gmra.mxu0 %v6487_v7  ;;  %5489 = vmatprep.subr.mxu1 %v4538_v9 }
  0xa2   : > { %5314 = vmatprep.mubr.f32.mxu0 %v6493_v11  ;;  %5575 = vmatprep.subr.mxu0 %v4554_v12 }
  0xa3   : > { %5229 = vmatmul.mubr.f32.gmra.mxu1 %v356_v13  ;;  %v1612_v13 = vld [vmem:[%s6092_s9 + $0x104] sm:$0xff] }
  0xa4   : > { %5349 = vmatprep.mubr.f32.mxu1 %v6242_v28  ;;  %v1587_v28 = vld [vmem:[%s6092_s9 + $0x3c] sm:$0xff] }
  0xa5   : > { %5315 = vmatmul.mubr.f32.gmra.mxu0 %v6502_v15 }
  0xa6   : > { %5435 = vmatprep.mubr.f32.mxu0 %v1584_v17  ;;  %v1613_v17 = vld [vmem:[%s6092_s9 + $0x10c] sm:$0xff] }
  0xa7   : > { %5350 = vmatmul.mubr.f32.vlgmr.msra.gmra.mxu1 %v6248_v30  ;;  %v1588_v30 = vld [vmem:[%s6092_s9 + $0x44] sm:$0xff] }
  0xa8   : > { %5490 = vmatpush3.msra.mxu1 %v4538_v9  ;;  %5352 = vmatprep.mubr.f32.mxu1 %v6257_v34  ;;  %v4552_v34 = vld [vmem:[%s8813_s1 + $0x368] sm:$0xff]  ;;  %v1610_v9 = vld [vmem:[%s6092_s9 + $0xf4] sm:$0xff] }
  0xa9   : > { %5436 = vmatmul.mubr.f32.vlgmr.msra.gmra.mxu0 %v1585_v18  ;;  %5491 = vmatprep.subr.mxu1 %v4537_v19  ;;  %v1614_v18 = vld [vmem:[%s6092_s9 + $0x114] sm:$0xff] }
  0xaa   : > { %5576 = vmatpush3.msra.mxu0 %v4554_v12  ;;  %5438 = vmatprep.mubr.f32.mxu0 %v1586_v21  ;;  %v1611_v12 = vld [vmem:[%s6092_s9 + $0xfc] sm:$0xff] }
  0xab   : > { %5353 = vmatmul.mubr.f32.gmra.mxu1 %v6264_v36  ;;  %5577 = vmatprep.subr.mxu0 %v4553_v23  ;;  %v4535_v36 = vld [vmem:[%s8813_s1 + $0x2e0] sm:$0xff]  ;;  %v4586_v21 = vld [vmem:[%s8813_s1 + $0x478] sm:$0xff] }
  0xac   : > { %5492 = vmatpush3.msra.mxu1 %v4537_v19  ;;  %5355 = vmatprep.mubr.f32.mxu1 %v6273_v40  ;;  %v4551_v40 = vld [vmem:[%s8813_s1 + $0x360] sm:$0xff] }
  0xad   : > { %5439 = vmatmul.mubr.f32.gmra.mxu0 %v1587_v28  ;;  %5493 = vmatprep.subr.mxu1 %v4536_v24  ;;  %v1615_v19 = vld [vmem:[%s6092_s9 + $0x11c] sm:$0xff]  ;;  %v1617_v28 = vld [vmem:[%s6092_s9 + $0x12c] sm:$0xff] }
  0xae   : > { %5441 = vmatprep.mubr.f32.mxu0 %v1588_v30  ;;  %5578 = vmatpush3.msra.mxu0 %v4553_v23  ;;  %v1284_v23 = vld [vmem:[%s6092_s9 + $0x133] sm:$0xff]  ;;  %v1619_v30 = vld [vmem:[%s6092_s9 + $0x13c] sm:$0xff] }
  0xaf   : > { %5356 = vmatmul.mubr.f32.gmra.mxu1 %v6280_v42  ;;  %5579 = vmatprep.subr.mxu0 %v4552_v34  ;;  %v4534_v42 = vld [vmem:[%s8813_s1 + $0x2d8] sm:$0xff] }
  0xb0   : > { %5494 = vmatpush3.msra.mxu1 %v4536_v24  ;;  %5358 = vmatprep.mubr.f32.mxu1 %v6285_v44  ;;  %v4550_v44 = vld [vmem:[%s8813_s1 + $0x358] sm:$0xff]  ;;  %v1918_v24 = vld [vmem:[%s6092_s9 + $0x25] sm:$0xff] }
  0xb1   : > { %5442 = vmatmul.mubr.f32.gmra.mxu0 %v1589_v25  ;;  %5495 = vmatprep.subr.mxu1 %v4535_v36  ;;  %v1919_v25 = vld [vmem:[%s6092_s9 + $0x2d] sm:$0xff] }
  0xb2   : > { %5444 = vmatprep.mubr.f32.mxu0 %v1590_v27  ;;  %5580 = vmatpush3.msra.mxu0 %v4552_v34  ;;  %v2252_v34 = vld [vmem:[%s6092_s9 + $0x35] sm:$0xff] }
  0xb3   : > { %5359 = vmatmul.mubr.f32.gmra.mxu1 %v6297_v48  ;;  %5581 = vmatprep.subr.mxu0 %v4551_v40  ;;  %v4533_v48 = vld [vmem:[%s8813_s1 + $0x2d0] sm:$0xff] }
  0xb4   : > { %5361 = vmatprep.mubr.f32.mxu1 %v6301_v50  ;;  %5496 = vmatpush3.msra.mxu1 %v4535_v36  ;;  %v4549_v50 = vld [vmem:[%s8813_s1 + $0x350] sm:$0xff]  ;;  %v2253_v36 = vld [vmem:[%s6092_s9 + $0x3d] sm:$0xff] }
  0xb5   : > { %5445 = vmatmul.mubr.f32.gmra.mxu0 %v1591_v31  ;;  %5497 = vmatprep.subr.mxu1 %v4534_v42 }
  0xb6   : > { %5447 = vmatprep.mubr.f32.mxu0 %v1592_v32  ;;  %5582 = vmatpush3.msra.mxu0 %v4551_v40  ;;  %v2254_v40 = vld [vmem:[%s6092_s9 + $0x45] sm:$0xff] }
  0xb7   : > { %5362 = vmatmul.mubr.f32.gmra.mxu1 %v6311_v54  ;;  %5583 = vmatprep.subr.mxu0 %v4550_v44  ;;  %v4532_v54 = vld [vmem:[%s8813_s1 + $0x2c8] sm:$0xff] }
  0xb8   : > { %5364 = vmatprep.mubr.f32.mxu1 %v6317_v56  ;;  %5498 = vmatpush3.msra.mxu1 %v4534_v42  ;;  %v4548_v56 = vld [vmem:[%s8813_s1 + $0x348] sm:$0xff]  ;;  %v4585_v42 = vld [vmem:[%s8813_s1 + $0x470] sm:$0xff] }
  0xb9   : > { %5448 = vmatmul.mubr.f32.gmra.mxu0 %v1593_v33  ;;  %5499 = vmatprep.subr.mxu1 %v4533_v48  ;;  %v2255_v33 = vld [vmem:[%s6092_s9 + $0x4d] sm:$0xff] }
  0xba   : > { %5450 = vmatprep.mubr.f32.mxu0 %v1594_v37  ;;  %5584 = vmatpush3.msra.mxu0 %v4550_v44 }
  0xbb   : > { %5365 = vmatmul.mubr.f32.gmra.mxu1 %v6327_v60  ;;  %5585 = vmatprep.subr.mxu0 %v4549_v50  ;;  %v4531_v60 = vld [vmem:[%s8813_s1 + $0x2c0] sm:$0xff] }
  0xbc   : > { %5367 = vmatprep.mubr.f32.mxu1 %v6333_v62  ;;  %5500 = vmatpush3.msra.mxu1 %v4533_v48  ;;  %v4547_v62 = vld [vmem:[%s8813_s1 + $0x340] sm:$0xff]  ;;  %v4568_v48 = vld [vmem:[%s8813_s1 + $0x3e8] sm:$0xff] }
  0xbd   : > { %5451 = vmatmul.mubr.f32.gmra.mxu0 %v1595_v39  ;;  %5501 = vmatprep.subr.mxu1 %v4532_v54 }
  0xbe   : > { %5453 = vmatprep.mubr.f32.mxu0 %v1596_v41  ;;  %5586 = vmatpush3.msra.mxu0 %v4549_v50  ;;  %v2256_v50 = vld [vmem:[%s6092_s9 + $0x55] sm:$0xff] }
  0xbf   : > { %5368 = vmatmul.mubr.f32.gmra.mxu1 %v6343_v2  ;;  %5587 = vmatprep.subr.mxu0 %v4548_v56  ;;  %v4530_v2 = vld [vmem:[%s8813_s1 + $0x2b8] sm:$0xff] }
  0xc0   : > { %5370 = vmatprep.mubr.f32.mxu1 %v6349_v4  ;;  %5502 = vmatpush3.msra.mxu1 %v4532_v54  ;;  %v4546_v4 = vld [vmem:[%s8813_s1 + $0x338] sm:$0xff]  ;;  %v4584_v54 = vld [vmem:[%s8813_s1 + $0x468] sm:$0xff] }
  0xc1   : > { %5454 = vmatmul.mubr.f32.gmra.mxu0 %v1597_v43  ;;  %5503 = vmatprep.subr.mxu1 %v4531_v60  ;;  %v2257_v43 = vld [vmem:[%s6092_s9 + $0x5d] sm:$0xff] }
  0xc2   : > { %5456 = vmatprep.mubr.f32.mxu0 %v1598_v46  ;;  %5588 = vmatpush3.msra.mxu0 %v4548_v56  ;;  %v2258_v46 = vld [vmem:[%s6092_s9 + $0x65] sm:$0xff] }
  0xc3   : > { %5371 = vmatmul.mubr.f32.gmra.mxu1 %v6359_v8  ;;  %5589 = vmatprep.subr.mxu0 %v4547_v62  ;;  %v4529_v8 = vld [vmem:[%s8813_s1 + $0x2b0] sm:$0xff] }
  0xc4   : > { %5373 = vmatprep.mubr.f32.mxu1 %v6365_v10  ;;  %5504 = vmatpush3.msra.mxu1 %v4531_v60  ;;  %v4545_v10 = vld [vmem:[%s8813_s1 + $0x330] sm:$0xff]  ;;  %v4567_v60 = vld [vmem:[%s8813_s1 + $0x3e0] sm:$0xff] }
  0xc5   : > { %5457 = vmatmul.mubr.f32.gmra.mxu0 %v1599_v49  ;;  %5505 = vmatprep.subr.mxu1 %v4530_v2 }
  0xc6   : > { %5459 = vmatprep.mubr.f32.mxu0 %v1600_v51  ;;  %5590 = vmatpush3.msra.mxu0 %v4547_v62  ;;  %v4583_v62 = vld [vmem:[%s8813_s1 + $0x460] sm:$0xff]  ;;  %v2259_v51 = vld [vmem:[%s6092_s9 + $0x6d] sm:$0xff] }
  0xc7   : > { %5374 = vmatmul.mubr.f32.gmra.mxu1 %v6375_v14  ;;  %5591 = vmatprep.subr.mxu0 %v4546_v4  ;;  %v4528_v14 = vld [vmem:[%s8813_s1 + $0x2a8] sm:$0xff] }
  0xc8   : > { %5376 = vmatprep.mubr.f32.mxu1 %v6381_v16  ;;  %5506 = vmatpush3.msra.mxu1 %v4530_v2  ;;  %v4544_v16 = vld [vmem:[%s8813_s1 + $0x328] sm:$0xff] }
  0xc9   : > { %5460 = vmatmul.mubr.f32.gmra.mxu0 %v1601_v52  ;;  %5507 = vmatprep.subr.mxu1 %v4529_v8 }
  0xca   : > { %5462 = vmatprep.mubr.f32.mxu0 %v1602_v55  ;;  %5592 = vmatpush3.msra.mxu0 %v4546_v4  ;;  %v4566_v4 = vld [vmem:[%s8813_s1 + $0x3d8] sm:$0xff] }
  0xcb   : > { %5377 = vmatmul.mubr.f32.gmra.mxu1 %v6391_v20  ;;  %5593 = vmatprep.subr.mxu0 %v4545_v10  ;;  %v4527_v20 = vld [vmem:[%s8813_s1 + $0x2a0] sm:$0xff] }
  0xcc   : > { %5379 = vmatprep.mubr.f32.mxu1 %v6397_v22  ;;  %5508 = vmatpush3.msra.mxu1 %v4529_v8  ;;  %v4543_v22 = vld [vmem:[%s8813_s1 + $0x320] sm:$0xff]  ;;  %v2260_v8 = vld [vmem:[%s6092_s9 + $0x75] sm:$0xff] }
  0xcd   : > { %5463 = vmatmul.mubr.f32.gmra.mxu0 %v1603_v58  ;;  %5509 = vmatprep.subr.mxu1 %v4528_v14 }
  0xce   : > { %5465 = vmatprep.mubr.f32.mxu0 %v1604_v59  ;;  %5594 = vmatpush3.msra.mxu0 %v4545_v10  ;;  %v4582_v10 = vld [vmem:[%s8813_s1 + $0x458] sm:$0xff]  ;;  %v4565_v59 = vld [vmem:[%s8813_s1 + $0x3d0] sm:$0xff] }
  0xcf   : > { %5380 = vmatmul.mubr.f32.gmra.mxu1 %v6407_v26  ;;  %5595 = vmatprep.subr.mxu0 %v4544_v16  ;;  %v4526_v26 = vld [vmem:[%s8813_s1 + $0x298] sm:$0xff] }
  0xd0   : > { %5382 = vmatprep.mubr.f32.mxu1 %v6413_v29  ;;  %5510 = vmatpush3.msra.mxu1 %v4528_v14  ;;  %v4542_v29 = vld [vmem:[%s8813_s1 + $0x318] sm:$0xff] }
  0xd1   : > { %5466 = vmatmul.mubr.f32.gmra.mxu0 %v1605_v61  ;;  %5511 = vmatprep.subr.mxu1 %v4527_v20  ;;  %v2261_v14 = vld [vmem:[%s6092_s9 + $0x7d] sm:$0xff] }
  0xd2   : > { %5468 = vmatprep.mubr.f32.mxu0 %v1606_v0  ;;  %5596 = vmatpush3.msra.mxu0 %v4544_v16  ;;  %v2262_v16 = vld [vmem:[%s6092_s9 + $0x85] sm:$0xff]  ;;  %v4581_v0 = vld [vmem:[%s8813_s1 + $0x450] sm:$0xff] }
  0xd3   : > { %5383 = vmatmul.mubr.f32.gmra.mxu1 %v6423_v35  ;;  %5597 = vmatprep.subr.mxu0 %v4543_v22  ;;  %v4525_v35 = vld [vmem:[%s8813_s1 + $0x290] sm:$0xff] }
  0xd4   : > { %5385 = vmatprep.mubr.f32.mxu1 %v6429_v38  ;;  %5512 = vmatpush3.msra.mxu1 %v4527_v20  ;;  %v4541_v38 = vld [vmem:[%s8813_s1 + $0x310] sm:$0xff] }
  0xd5   : > { %5469 = vmatmul.mubr.f32.gmra.mxu0 %v1607_v3  ;;  %5513 = vmatprep.subr.mxu1 %v4526_v26  ;;  %v2263_v3 = vld [vmem:[%s6092_s9 + $0x8d] sm:$0xff] }
  0xd6   : > { %5471 = vmatprep.mubr.f32.mxu0 %v1608_v5  ;;  %5598 = vmatpush3.msra.mxu0 %v4543_v22  ;;  %v2264_v5 = vld [vmem:[%s6092_s9 + $0x95] sm:$0xff] }
  0xd7   : > { %5386 = vmatmul.mubr.f32.gmra.mxu1 %v6439_v45  ;;  %5599 = vmatprep.subr.mxu0 %v4542_v29  ;;  %v4524_v45 = vld [vmem:[%s8813_s1 + $0x288] sm:$0xff] }
  0xd8   : > { %5388 = vmatprep.mubr.f32.mxu1 %v6445_v47  ;;  %5514 = vmatpush3.msra.mxu1 %v4526_v26  ;;  %v4540_v47 = vld [vmem:[%s8813_s1 + $0x308] sm:$0xff] }
  0xd9   : > { %5472 = vmatmul.mubr.f32.gmra.mxu0 %v1609_v6  ;;  %5515 = vmatprep.subr.mxu1 %v4525_v35  ;;  %v4564_v26 = vld [vmem:[%s8813_s1 + $0x3c8] sm:$0xff] }
  0xda   : > { %5474 = vmatprep.mubr.f32.mxu0 %v1610_v9  ;;  %5600 = vmatpush3.msra.mxu0 %v4542_v29 }
  0xdb   : > { %5389 = vmatmul.mubr.f32.gmra.mxu1 %v6455_v53  ;;  %5601 = vmatprep.subr.mxu0 %v4541_v38  ;;  %v4523_v53 = vld [vmem:[%s8813_s1 + $0x280] sm:$0xff] }
  0xdc   : > { %5391 = vmatprep.mubr.f32.mxu1 %v6461_v57  ;;  %5516 = vmatpush3.msra.mxu1 %v4525_v35  ;;  %v4539_v57 = vld [vmem:[%s8813_s1 + $0x300] sm:$0xff]  ;;  %v4580_v35 = vld [vmem:[%s8813_s1 + $0x448] sm:$0xff] }
  0xdd   : > { %5475 = vmatmul.mubr.f32.gmra.mxu0 %v1611_v12  ;;  %5517 = vmatprep.subr.mxu1 %v4524_v45 }
  0xde   : > { %5477 = vmatprep.mubr.f32.mxu0 %v1612_v13  ;;  %5602 = vmatpush3.msra.mxu0 %v4541_v38  ;;  %v2265_v38 = vld [vmem:[%s6092_s9 + $0x9d] sm:$0xff]  ;;  %v2266_v13 = vld [vmem:[%s6092_s9 + $0xa5] sm:$0xff] }
  0xdf   : > { %5392 = vmatmul.mubr.f32.gmra.mxu1 %v6471_v63  ;;  %5603 = vmatprep.subr.mxu0 %v4540_v47  ;;  %v4570_v63 = vld [vmem:[%s8813_s1 + $0x3f8] sm:$0xff] }
  0xe0   : > { %5394 = vmatprep.mubr.f32.mxu1 %v6477_v1  ;;  %5518 = vmatpush3.msra.mxu1 %v4524_v45  ;;  %v1616_v1 = vld [vmem:[%s6092_s9 + $0x124] sm:$0xff] }
  0xe1   : > { %5478 = vmatmul.mubr.f32.gmra.mxu0 %v1613_v17  ;;  %5519 = vmatprep.subr.mxu1 %v4523_v53  ;;  %v4563_v45 = vld [vmem:[%s8813_s1 + $0x3c0] sm:$0xff] }
  0xe2   : > { %5480 = vmatprep.mubr.f32.mxu0 %v1614_v18  ;;  %5604 = vmatpush3.msra.mxu0 %v4540_v47  ;;  %v4579_v47 = vld [vmem:[%s8813_s1 + $0x440] sm:$0xff] }
  0xe3   : > { %5395 = vmatmul.mubr.f32.gmra.mxu1 %v6487_v7  ;;  %5605 = vmatprep.subr.mxu0 %v4539_v57  ;;  %v1618_v7 = vld [vmem:[%s6092_s9 + $0x134] sm:$0xff] }
  0xe4   : > { %5397 = vmatprep.mubr.f32.mxu1 %v6493_v11  ;;  %5520 = vmatpush3.msra.mxu1 %v4523_v53  ;;  %v1285_v11 = vld [vmem:[%s6092_s9 + $0x13b] sm:$0xff]  ;;  %v2267_v53 = vld [vmem:[%s6092_s9 + $0xad] sm:$0xff] }
  0xe5   : > { %5481 = vmatmul.mubr.f32.gmra.mxu0 %v1615_v19  ;;  %5661 = vmatprep.subr.mxu1 %v4570_v63  ;;  %v2268_v19 = vld [vmem:[%s6092_s9 + $0xb5] sm:$0xff] }
  0xe6   : > { %5483 = vmatprep.mubr.f32.mxu0 %v1616_v1  ;;  %5606 = vmatpush3.msra.mxu0 %v4539_v57  ;;  %v4562_v57 = vld [vmem:[%s8813_s1 + $0x3b8] sm:$0xff] }
  0xe7   : > { %5398 = vmatmul.mubr.f32.gmra.mxu1 %v6502_v15  ;;  %5747 = vmatprep.subr.mxu0 %v4586_v21  ;;  %v4569_v15 = vld [vmem:[%s8813_s1 + $0x3f0] sm:$0xff] }
  0xe8   : > { %5400 = vmatprep.mubr.f32.mxu1 %v1284_v23  ;;  %v2269_v23 = vld [vmem:[%s6092_s9 + $0xbd] sm:$0xff] }
  0xe9   : > { %5484 = vmatmul.mubr.f32.gmra.mxu0 %v1617_v28 }
  0xea   : > { %5486 = vmatprep.mubr.f32.mxu0 %v1618_v7  ;;  %v4561_v7 = vld [vmem:[%s8813_s1 + $0x3b0] sm:$0xff] }
  0xeb   : > { %5401 = vmatmul.mubr.f32.gmra.mxu1 %v1285_v11  ;;  %v2270_v11 = vld [vmem:[%s6092_s9 + $0xc5] sm:$0xff] }
  0xec   : > { %5521 = vmatprep.mubr.f32.mxu1 %v1918_v24 }
  0xed   : > { %5487 = vmatmul.mubr.f32.gmra.mxu0 %v1619_v30 }
  0xee   : > { %5607 = vmatprep.mubr.f32.mxu0 %v2252_v34  ;;  %v6680_v27 = vpop.f32.mrf.mxu1 }
  0xef   : > { %5522 = vmatmul.mubr.f32.vlgmr.msra.gmra.mxu1 %v1919_v25  ;;  %v6683_v31 = vpop.f32.mrf.mxu0 }
  0xf0   : > { %5662 = vmatpush3.msra.mxu1 %v4570_v63  ;;  %5524 = vmatprep.mubr.f32.mxu1 %v2252_v34  ;;  %v6688_v32 = vpop.f32.mrf.mxu1  ;;  %v4577_v34 = vld [vmem:[%s8813_s1 + $0x430] sm:$0xff] }
  0xf1   : > { %5608 = vmatmul.mubr.f32.vlgmr.msra.gmra.mxu0 %v2253_v36  ;;  %5663 = vmatprep.subr.mxu1 %v4569_v15  ;;  %v6690_v44 = vpop.f32.mrf.mxu0 }
  0xf2   : > { %5748 = vmatpush3.msra.mxu0 %v4586_v21  ;;  %5610 = vmatprep.mubr.f32.mxu0 %v2254_v40  ;;  %v6696_v37 = vpop.f32.mrf.mxu1  ;;  %v4578_v21 = vld [vmem:[%s8813_s1 + $0x438] sm:$0xff] }
  0xf3   : > { %5525 = vmatmul.mubr.f32.gmra.mxu1 %v2253_v36  ;;  %5749 = vmatprep.subr.mxu0 %v4585_v42  ;;  %v6699_v39 = vpop.f32.mrf.mxu0  ;;  %v2271_v36 = vld [vmem:[%s6092_s9 + $0xcd] sm:$0xff] }
  0xf4   : > { %5664 = vmatpush3.msra.mxu1 %v4569_v15  ;;  %5527 = vmatprep.mubr.f32.mxu1 %v2254_v40  ;;  %v6704_v41 = vpop.f32.mrf.mxu1  ;;  %v4560_v15 = vld [vmem:[%s8813_s1 + $0x3a8] sm:$0xff]  ;;  %v2272_v40 = vld [vmem:[%s6092_s9 + $0xd5] sm:$0xff] }
  0xf5   : > { %5611 = vmatmul.mubr.f32.gmra.mxu0 %v2255_v33  ;;  %5665 = vmatprep.subr.mxu1 %v4568_v48  ;;  %v6706_v56 = vpop.f32.mrf.mxu0 }
  0xf6   : > { %5613 = vmatprep.mubr.f32.mxu0 %v2256_v50  ;;  %5750 = vmatpush3.msra.mxu0 %v4585_v42 }
  0xf7   : > { %5528 = vmatmul.mubr.f32.gmra.mxu1 %v2255_v33  ;;  %5751 = vmatprep.subr.mxu0 %v4584_v54  ;;  %v4576_v33 = vld [vmem:[%s8813_s1 + $0x428] sm:$0xff] }
  0xf8   : > { %5666 = vmatpush3.msra.mxu1 %v4568_v48  ;;  %5530 = vmatprep.mubr.f32.mxu1 %v2256_v50  ;;  %v6716_v49 = vpop.f32.mrf.mxu1  ;;  %v2273_v50 = vld [vmem:[%s6092_s9 + $0xdd] sm:$0xff] }
  0xf9   : > { %5614 = vmatmul.mubr.f32.gmra.mxu0 %v2257_v43  ;;  %5667 = vmatprep.subr.mxu1 %v4567_v60  ;;  %v6718_v2 = vpop.f32.mrf.mxu0 }
  0xfa   : > { %5616 = vmatprep.mubr.f32.mxu0 %v2258_v46  ;;  %5752 = vmatpush3.msra.mxu0 %v4584_v54  ;;  %v6724_v52 = vpop.f32.mrf.mxu1 }
  0xfb   : > { %5531 = vmatmul.mubr.f32.gmra.mxu1 %v2257_v43  ;;  %5753 = vmatprep.subr.mxu0 %v4583_v62  ;;  %v6727_v55 = vpop.f32.mrf.mxu0  ;;  %v4559_v43 = vld [vmem:[%s8813_s1 + $0x3a0] sm:$0xff] }
  0xfc   : > { %5533 = vmatprep.mubr.f32.mxu1 %v2258_v46  ;;  %5668 = vmatpush3.msra.mxu1 %v4567_v60  ;;  %v2274_v46 = vld [vmem:[%s6092_s9 + $0xe5] sm:$0xff] }
  0xfd   : > { %5617 = vmatmul.mubr.f32.gmra.mxu0 %v2259_v51  ;;  %5669 = vmatprep.subr.mxu1 %v4566_v4  ;;  %v6732_v58 = vpop.f32.mrf.mxu1 }
  0xfe   : > { %5619 = vmatprep.mubr.f32.mxu0 %v2260_v8  ;;  %5754 = vmatpush3.msra.mxu0 %v4583_v62  ;;  %v4575_v62 = vld [vmem:[%s8813_s1 + $0x420] sm:$0xff] }
  0xff   : > { %5534 = vmatmul.mubr.f32.gmra.mxu1 %v2259_v51  ;;  %5755 = vmatprep.subr.mxu0 %v4582_v10  ;;  %v6739_v61 = vpop.f32.mrf.mxu0  ;;  %v6741_v20 = vpop.f32.mrf.mxu1 }
 0x100   : > { %5536 = vmatprep.mubr.f32.mxu1 %v2260_v8  ;;  %5670 = vmatpush3.msra.mxu1 %v4566_v4  ;;  %v2275_v4 = vld [vmem:[%s6092_s9 + $0xed] sm:$0xff]  ;;  %v4558_v8 = vld [vmem:[%s8813_s1 + $0x398] sm:$0xff] }
 0x101   : > { %5620 = vmatmul.mubr.f32.gmra.mxu0 %v2261_v14  ;;  %5671 = vmatprep.subr.mxu1 %v4565_v59  ;;  %v6746_v22 = vpop.f32.mrf.mxu0 }
 0x102   : > { %5622 = vmatprep.mubr.f32.mxu0 %v2262_v16  ;;  %5756 = vmatpush3.msra.mxu0 %v4582_v10 }
 0x103   : > { %5537 = vmatmul.mubr.f32.gmra.mxu1 %v2261_v14  ;;  %5757 = vmatprep.subr.mxu0 %v4581_v0  ;;  %v6753_v29 = vpop.f32.mrf.mxu1 }
 0x104   : > { %5539 = vmatprep.mubr.f32.mxu1 %v2262_v16  ;;  %5672 = vmatpush3.msra.mxu1 %v4565_v59  ;;  %v6755_v6 = vpop.f32.mrf.mxu0  ;;  %v2276_v59 = vld [vmem:[%s6092_s9 + $0xf5] sm:$0xff] }
 0x105   : > { %5623 = vmatmul.mubr.f32.gmra.mxu0 %v2263_v3  ;;  %5673 = vmatprep.subr.mxu1 %v4564_v26  ;;  %v6760_v9 = vpop.f32.mrf.mxu1  ;;  %v4574_v16 = vld [vmem:[%s8813_s1 + $0x418] sm:$0xff] }
 0x106   : > { %5625 = vmatprep.mubr.f32.mxu0 %v2264_v5  ;;  %5758 = vmatpush3.msra.mxu0 %v4581_v0  ;;  %v6763_v12 = vpop.f32.mrf.mxu0 }
 0x107   : > { %5540 = vmatmul.mubr.f32.gmra.mxu1 %v2263_v3  ;;  %5759 = vmatprep.subr.mxu0 %v4580_v35  ;;  %v2277_v3 = vld [vmem:[%s6092_s9 + $0xfd] sm:$0xff] }
 0x108   : > { %5542 = vmatprep.mubr.f32.mxu1 %v2264_v5  ;;  %5674 = vmatpush3.msra.mxu1 %v4564_v26  ;;  %v4557_v26 = vld [vmem:[%s8813_s1 + $0x390] sm:$0xff] }
 0x109   : > { %5626 = vmatmul.mubr.f32.gmra.mxu0 %v2265_v38  ;;  %v6772_v17 = vpop.f32.mrf.mxu1  ;;  %5675 = vmatprep.subr.mxu1 %v4563_v45 }
 0x10a   : > { %5628 = vmatprep.mubr.f32.mxu0 %v2266_v13  ;;  %5760 = vmatpush3.msra.mxu0 %v4580_v35  ;;  %v6775_v18 = vpop.f32.mrf.mxu0  ;;  %v2278_v35 = vld [vmem:[%s6092_s9 + $0x105] sm:$0xff] }
 0x10b   : > { %5543 = vmatmul.mubr.f32.gmra.mxu1 %v2265_v38  ;;  %v6781_v63 = vpop.f32.mrf.mxu1  ;;  %5761 = vmatprep.subr.mxu0 %v4579_v47 }
 0x10c   : > { %5545 = vmatprep.mubr.f32.mxu1 %v2266_v13  ;;  %5676 = vmatpush3.msra.mxu1 %v4563_v45  ;;  %v6783_v1 = vpop.f32.mrf.mxu0  ;;  %v4573_v45 = vld [vmem:[%s8813_s1 + $0x410] sm:$0xff] }
 0x10d   : > { %5629 = vmatmul.mubr.f32.gmra.mxu0 %v2267_v53  ;;  %5677 = vmatprep.subr.mxu1 %v4562_v57 }
 0x10e   : > { %5631 = vmatprep.mubr.f32.mxu0 %v2268_v19  ;;  %5762 = vmatpush3.msra.mxu0 %v4579_v47  ;;  %v6789_v28 = vpop.f32.mrf.mxu1 }
 0x10f   : > { %5546 = vmatmul.mubr.f32.gmra.mxu1 %v2267_v53  ;;  %v6795_v24 = vpop.f32.mrf.mxu0  ;;  %5763 = vmatprep.subr.mxu0 %v4578_v21 }
 0x110   : > { %5548 = vmatprep.mubr.f32.mxu1 %v2268_v19  ;;  %5678 = vmatpush3.msra.mxu1 %v4562_v57  ;;  %v6797_v30 = vpop.f32.mrf.mxu1  ;;  %v2279_v19 = vld [vmem:[%s6092_s9 + $0x10d] sm:$0xff] }
 0x111   : > { %5632 = vmatmul.mubr.f32.gmra.mxu0 %v2269_v23  ;;  %v6802_v25 = vpop.f32.mrf.mxu0  ;;  %5679 = vmatprep.subr.mxu1 %v4561_v7 }
 0x112   : > { %5634 = vmatprep.mubr.f32.mxu0 %v2270_v11  ;;  %5764 = vmatpush3.msra.mxu0 %v4578_v21 }
 0x113   : > { %5549 = vmatmul.mubr.f32.gmra.mxu1 %v2269_v23  ;;  %5765 = vmatprep.subr.mxu0 %v4577_v34 }
 0x114   : > { %5551 = vmatprep.mubr.f32.mxu1 %v2270_v11  ;;  %v6809_v42 = vpop.f32.mrf.mxu1  ;;  %5680 = vmatpush3.msra.mxu1 %v4561_v7  ;;  %v2280_v7 = vld [vmem:[%s6092_s9 + $0x115] sm:$0xff] }
 0x115   : > { %5635 = vmatmul.mubr.f32.gmra.mxu0 %v2271_v36  ;;  %v6814_v48 = vpop.f32.mrf.mxu0  ;;  %5681 = vmatprep.subr.mxu1 %v4560_v15 }
 0x116   : > { %5637 = vmatprep.mubr.f32.mxu0 %v2272_v40  ;;  %v6817_v54 = vpop.f32.mrf.mxu1  ;;  %5766 = vmatpush3.msra.mxu0 %v4577_v34 }
 0x117   : > { %5552 = vmatmul.mubr.f32.gmra.mxu1 %v2271_v36  ;;  %v6822_v60 = vpop.f32.mrf.mxu0  ;;  %5767 = vmatprep.subr.mxu0 %v4576_v33 }
 0x118   : > { %5554 = vmatprep.mubr.f32.mxu1 %v2272_v40  ;;  %5682 = vmatpush3.msra.mxu1 %v4560_v15 }
 0x119   : > { %5638 = vmatmul.mubr.f32.gmra.mxu0 %v2273_v50  ;;  %v6828_v51 = vpop.f32.mrf.mxu1  ;;  %5683 = vmatprep.subr.mxu1 %v4559_v43 }
 0x11a   : > { %5640 = vmatprep.mubr.f32.mxu0 %v2274_v46  ;;  %5768 = vmatpush3.msra.mxu0 %v4576_v33 }
 0x11b   : > { %5555 = vmatmul.mubr.f32.gmra.mxu1 %v2273_v50  ;;  %v6834_v10 = vpop.f32.mrf.mxu0  ;;  %v6836_v14 = vpop.f32.mrf.mxu1  ;;  %5769 = vmatprep.subr.mxu0 %v4575_v62  ;;  %v2281_v50 = vld [vmem:[%s6092_s9 + $0x11d] sm:$0xff] }
 0x11c   : > { %5557 = vmatprep.mubr.f32.mxu1 %v2274_v46  ;;  %5684 = vmatpush3.msra.mxu1 %v4559_v43 }
 0x11d   : > { %5641 = vmatmul.mubr.f32.gmra.mxu0 %v2275_v4  ;;  %v6842_v0 = vpop.f32.mrf.mxu0  ;;  %5685 = vmatprep.subr.mxu1 %v4558_v8 }
 0x11e   : > { %5643 = vmatprep.mubr.f32.mxu0 %v2276_v59  ;;  %5770 = vmatpush3.msra.mxu0 %v4575_v62  ;;  %v2282_v62 = vld [vmem:[%s6092_s9 + $0x125] sm:$0xff] }
 0x11f   : > { %v5179_v5 = vpop.f32.mrf.mxu1  ;;  %5558 = vmatmul.mubr.f32.gmra.mxu1 %v2275_v4  ;;  %5771 = vmatprep.subr.mxu0 %v4574_v16 }
 0x120   : > { %v743_v38 = vadd.f32 %v5179_v5, %v6683_v31  ;;  %5560 = vmatprep.mubr.f32.mxu1 %v2276_v59  ;;  %5686 = vmatpush3.msra.mxu1 %v4558_v8  ;;  %v4556_v31 = vld [vmem:[%s8813_s1 + $0x388] sm:$0xff] }
 0x121   : > { %v5265_v13 = vpop.f32.mrf.mxu0  ;;  %5644 = vmatmul.mubr.f32.gmra.mxu0 %v2277_v3  ;;  %v737_v47 = vpop.f32.mrf.mxu1  ;;  %5687 = vmatprep.subr.mxu1 %v4557_v26  ;;  %v2283_v5 = vld [vmem:[%s6092_s9 + $0x12d] sm:$0xff] }
 0x122   : > { %v6853_v53 = vadd.f32 %v5265_v13, %v743_v38  ;;  %v738_v57 = vadd.f32 %v737_v47, %v6690_v44  ;;  %5646 = vmatprep.mubr.f32.mxu0 %v2278_v35  ;;  %5772 = vmatpush3.msra.mxu0 %v4574_v16  ;;  %v4572_v44 = vld [vmem:[%s8813_s1 + $0x408] sm:$0xff]  ;;  %v2284_v38 = vld [vmem:[%s6092_s9 + $0x135] sm:$0xff] }
 0x123   : > { %v1035_v21 = vpop.f32.mrf.mxu0  ;;  %v5182_v23 = vpop.f32.mrf.mxu1  ;;  %5561 = vmatmul.mubr.f32.gmra.mxu1 %v2277_v3  ;;  %5773 = vmatprep.subr.mxu0 %v4573_v45 }
 0x124   : > { %v6861_v11 = vadd.f32 %v1035_v21, %v738_v57  ;;  %v753_v34 = vadd.f32 %v5182_v23, %v6699_v39  ;;  %5563 = vmatprep.mubr.f32.mxu1 %v2278_v35  ;;  %5688 = vmatpush3.msra.mxu1 %v4557_v26  ;;  %v4555_v39 = vld [vmem:[%s8813_s1 + $0x380] sm:$0xff] }
 0x125   : > { %v5268_v36 = vpop.f32.mrf.mxu0  ;;  %5647 = vmatmul.mubr.f32.gmra.mxu0 %v2279_v19  ;;  %v747_v15 = vpop.f32.mrf.mxu1  ;;  %5689 = vmatprep.subr.mxu1 %v4556_v31 }
 0x126   : > { %v6867_v40 = vadd.f32 %v5268_v36, %v753_v34  ;;  %v748_v33 = vadd.f32 %v747_v15, %v6706_v56  ;;  %5649 = vmatprep.mubr.f32.mxu0 %v2280_v7  ;;  %5774 = vmatpush3.msra.mxu0 %v4573_v45  ;;  %v4571_v56 = vld [vmem:[%s8813_s1 + $0x400] sm:$0xff]  ;;  %v2586_v15 = vld [vmem:[%s6092_s9 + $0x36] sm:$0xff] }
 0x127   : > { %v1045_v43 = vpop.f32.mrf.mxu0  ;;  %v5185_v46 = vpop.f32.mrf.mxu1  ;;  %5564 = vmatmul.mubr.f32.gmra.mxu1 %v2279_v19  ;;  %5775 = vmatprep.subr.mxu0 %v4572_v44 }
 0x128   : > { %v6875_v4 = vadd.f32 %v1045_v43, %v748_v33  ;;  %v763_v8 = vadd.f32 %v5185_v46, %v6718_v2  ;;  %5566 = vmatprep.mubr.f32.mxu1 %v2280_v7  ;;  %5690 = vmatpush3.msra.mxu1 %v4556_v31  ;;  %v2285_v31 = vld [vmem:[%s6092_s9 + $0x13d] sm:$0xff]  ;;  %v2286_v7 = vld [vmem:[%s6092_s9 + $0x145] sm:$0xff] }
 0x129   : > { %v5271_v59 = vpop.f32.mrf.mxu0  ;;  %5650 = vmatmul.mubr.f32.gmra.mxu0 %v2281_v50  ;;  %v757_v16 = vpop.f32.mrf.mxu1  ;;  %5691 = vmatprep.subr.mxu1 %v4555_v39  ;;  %v2920_v46 = vld [vmem:[%s6092_s9 + $0x37] sm:$0xff] }
 0x12a   : > { %v6881_v3 = vadd.f32 %v5271_v59, %v763_v8  ;;  %v758_v26 = vadd.f32 %v757_v16, %v6727_v55  ;;  %5652 = vmatprep.mubr.f32.mxu0 %v2282_v62  ;;  %5776 = vmatpush3.msra.mxu0 %v4572_v44  ;;  %v2587_v8 = vld [vmem:[%s6092_s9 + $0x3e] sm:$0xff]  ;;  %v2588_v16 = vld [vmem:[%s6092_s9 + $0x46] sm:$0xff] }
 0x12b   : > { %v1055_v2 = vpop.f32.mrf.mxu0  ;;  %v5188_v35 = vpop.f32.mrf.mxu1  ;;  %5567 = vmatmul.mubr.f32.gmra.mxu1 %v2281_v50  ;;  %5777 = vmatprep.subr.mxu0 %v4571_v56  ;;  %v2287_v50 = vld [vmem:[%s6092_s9 + $0x14d] sm:$0xff] }
 0x12c   : > { %v6886_v45 = vadd.f32 %v1055_v2, %v758_v26  ;;  %v773_v13 = vadd.f32 %v5188_v35, %v6739_v61  ;;  %5569 = vmatprep.mubr.f32.mxu1 %v2282_v62  ;;  %5692 = vmatpush3.msra.mxu1 %v4555_v39 }
 0x12d   : > { %v5274_v47 = vpop.f32.mrf.mxu0  ;;  %5653 = vmatmul.mubr.f32.gmra.mxu0 %v2283_v5  ;;  %v767_v57 = vpop.f32.mrf.mxu1 }
 0x12e   : > { %v6889_v55 = vadd.f32 %v5274_v47, %v773_v13  ;;  %v768_v19 = vadd.f32 %v767_v57, %v6746_v22  ;;  %5655 = vmatprep.mubr.f32.mxu0 %v2284_v38  ;;  %5778 = vmatpush3.msra.mxu0 %v4571_v56  ;;  %v2589_v47 = vld [vmem:[%s6092_s9 + $0x4e] sm:$0xff] }
 0x12f   : > { %v1065_v21 = vpop.f32.mrf.mxu0  ;;  %v5191_v23 = vpop.f32.mrf.mxu1  ;;  %5570 = vmatmul.mubr.f32.gmra.mxu1 %v2283_v5  ;;  %v2921_v5 = vld [vmem:[%s6092_s9 + $0x3f] sm:$0xff] }
 0x130   : > { %v6894_v61 = vadd.f32 %v1065_v21, %v768_v19  ;;  %v783_v34 = vadd.f32 %v5191_v23, %v6755_v6  ;;  %5572 = vmatprep.mubr.f32.mxu1 %v2284_v38  ;;  %v2922_v38 = vld [vmem:[%s6092_s9 + $0x47] sm:$0xff]  ;;  %v2923_v23 = vld [vmem:[%s6092_s9 + $0x4f] sm:$0xff] }
 0x131   : > { %v5277_v44 = vpop.f32.mrf.mxu0  ;;  %5656 = vmatmul.mubr.f32.gmra.mxu0 %v2285_v31  ;;  %v777_v36 = vpop.f32.mrf.mxu1 }
 0x132   : > { %v6898_v22 = vadd.f32 %v5277_v44, %v783_v34  ;;  %v778_v33 = vadd.f32 %v777_v36, %v6763_v12  ;;  %5658 = vmatprep.mubr.f32.mxu0 %v2286_v7  ;;  %v2924_v44 = vld [vmem:[%s6092_s9 + $0x57] sm:$0xff] }
 0x133   : > { %v1075_v39 = vpop.f32.mrf.mxu0  ;;  %v5194_v43 = vpop.f32.mrf.mxu1  ;;  %5573 = vmatmul.mubr.f32.gmra.mxu1 %v2285_v31  ;;  %v2590_v31 = vld [vmem:[%s6092_s9 + $0x56] sm:$0xff] }
 0x134   : > { %v6903_v6 = vadd.f32 %v1075_v39, %v778_v33  ;;  %v793_v62 = vadd.f32 %v5194_v43, %v6775_v18  ;;  %5693 = vmatprep.mubr.f32.mxu1 %v2586_v15  ;;  %v2591_v15 = vld [vmem:[%s6092_s9 + $0x5e] sm:$0xff]  ;;  %v2592_v39 = vld [vmem:[%s6092_s9 + $0x66] sm:$0xff] }
 0x135   : > { %v5280_v56 = vpop.f32.mrf.mxu0  ;;  %5659 = vmatmul.mubr.f32.gmra.mxu0 %v2287_v50  ;;  %v787_v59 = vpop.f32.mrf.mxu1 }
 0x136   : > { %v6908_v12 = vadd.f32 %v5280_v56, %v793_v62  ;;  %v788_v26 = vadd.f32 %v787_v59, %v6783_v1  ;;  %5779 = vmatprep.mubr.f32.mxu0 %v2920_v46  ;;  %v2925_v46 = vld [vmem:[%s6092_s9 + $0x5f] sm:$0xff]  ;;  %v2926_v56 = vld [vmem:[%s6092_s9 + $0x67] sm:$0xff] }
 0x137   : > { %v1085_v2 = vpop.f32.mrf.mxu0  ;;  %v5197_v35 = vpop.f32.mrf.mxu1  ;;  %5694 = vmatmul.mubr.f32.vlgmr.msra.gmra.mxu1 %v2587_v8 }
 0x138   : > { %v6913_v18 = vadd.f32 %v1085_v2, %v788_v26  ;;  %v803_v13 = vadd.f32 %v5197_v35, %v6795_v24  ;;  %5696 = vmatprep.mubr.f32.mxu1 %v2588_v16  ;;  %v2593_v16 = vld [vmem:[%s6092_s9 + $0x6e] sm:$0xff]  ;;  %v2594_v2 = vld [vmem:[%s6092_s9 + $0x76] sm:$0xff] }
 0x139   : > { %v5283_v57 = vpop.f32.mrf.mxu0  ;;  %5780 = vmatmul.mubr.f32.vlgmr.msra.gmra.mxu0 %v2921_v5  ;;  %v797_v19 = vpop.f32.mrf.mxu1 }
 0x13a   : > { %v6918_v1 = vadd.f32 %v5283_v57, %v803_v13  ;;  %v798_v21 = vadd.f32 %v797_v19, %v6802_v25  ;;  %5782 = vmatprep.mubr.f32.mxu0 %v2922_v38  ;;  %v2927_v38 = vld [vmem:[%s6092_s9 + $0x6f] sm:$0xff]  ;;  %v2928_v57 = vld [vmem:[%s6092_s9 + $0x77] sm:$0xff] }
 0x13b   : > { %v1095_v7 = vpop.f32.mrf.mxu0  ;;  %v5200_v34 = vpop.f32.mrf.mxu1  ;;  %5697 = vmatmul.mubr.f32.gmra.mxu1 %v2589_v47 }
 0x13c   : > { %v6923_v24 = vadd.f32 %v1095_v7, %v798_v21  ;;  %v813_v36 = vadd.f32 %v5200_v34, %v6814_v48  ;;  %5699 = vmatprep.mubr.f32.mxu1 %v2590_v31  ;;  %v2595_v31 = vld [vmem:[%s6092_s9 + $0x7e] sm:$0xff]  ;;  %v2596_v7 = vld [vmem:[%s6092_s9 + $0x86] sm:$0xff] }
 0x13d   : > { %v5286_v33 = vpop.f32.mrf.mxu0  ;;  %5783 = vmatmul.mubr.f32.gmra.mxu0 %v2923_v23  ;;  %v807_v50 = vpop.f32.mrf.mxu1 }
 0x13e   : > { %v6928_v25 = vadd.f32 %v5286_v33, %v813_v36  ;;  %v808_v43 = vadd.f32 %v807_v50, %v6822_v60  ;;  %5785 = vmatprep.mubr.f32.mxu0 %v2924_v44  ;;  %v2929_v44 = vld [vmem:[%s6092_s9 + $0x7f] sm:$0xff]  ;;  %v2930_v33 = vld [vmem:[%s6092_s9 + $0x87] sm:$0xff] }
 0x13f   : > { %v1105_v62 = vpop.f32.mrf.mxu0  ;;  %v5203_v8 = vpop.f32.mrf.mxu1  ;;  %5700 = vmatmul.mubr.f32.gmra.mxu1 %v2591_v15 }
 0x140   : > { %v6933_v48 = vadd.f32 %v1105_v62, %v808_v43  ;;  %v823_v59 = vadd.f32 %v5203_v8, %v6834_v10  ;;  %5702 = vmatprep.mubr.f32.mxu1 %v2592_v39  ;;  %v2597_v39 = vld [vmem:[%s6092_s9 + $0x8e] sm:$0xff]  ;;  %v2598_v62 = vld [vmem:[%s6092_s9 + $0x96] sm:$0xff] }
 0x141   : > { %v5289_v26 = vpop.f32.mrf.mxu0  ;;  %5786 = vmatmul.mubr.f32.gmra.mxu0 %v2925_v46  ;;  %v817_v5 = vpop.f32.mrf.mxu1 }
 0x142   : > { %v6938_v60 = vadd.f32 %v5289_v26, %v823_v59  ;;  %v818_v35 = vadd.f32 %v817_v5, %v6842_v0  ;;  %5788 = vmatprep.mubr.f32.mxu0 %v2926_v56  ;;  %v2931_v56 = vld [vmem:[%s6092_s9 + $0x8f] sm:$0xff]  ;;  %v2932_v26 = vld [vmem:[%s6092_s9 + $0x97] sm:$0xff] }
 0x143   : > { %v1115_v13 = vpop.f32.mrf.mxu0  ;;  %v5206_v47 = vpop.f32.mrf.mxu1  ;;  %5703 = vmatmul.mubr.f32.gmra.mxu1 %v2593_v16 }
 0x144   : > { %v6943_v10 = vadd.f32 %v1115_v13, %v818_v35  ;;  %v833_v19 = vadd.f32 %v5206_v47, %v6680_v27  ;;  %5705 = vmatprep.mubr.f32.mxu1 %v2594_v2  ;;  %v2599_v2 = vld [vmem:[%s6092_s9 + $0x9e] sm:$0xff]  ;;  %v2600_v13 = vld [vmem:[%s6092_s9 + $0xa6] sm:$0xff] }
 0x145   : > { %v5292_v21 = vpop.f32.mrf.mxu0  ;;  %5789 = vmatmul.mubr.f32.gmra.mxu0 %v2927_v38  ;;  %v827_v23 = vpop.f32.mrf.mxu1 }
 0x146   : > { %v6948_v0 = vadd.f32 %v5292_v21, %v833_v19  ;;  %v828_v34 = vadd.f32 %v827_v23, %v6688_v32  ;;  %5791 = vmatprep.mubr.f32.mxu0 %v2928_v57  ;;  %v2933_v57 = vld [vmem:[%s6092_s9 + $0x9f] sm:$0xff]  ;;  %v2934_v21 = vld [vmem:[%s6092_s9 + $0xa7] sm:$0xff] }
 0x147   : > { %v1125_v36 = vpop.f32.mrf.mxu0  ;;  %v5209_v15 = vpop.f32.mrf.mxu1  ;;  %5706 = vmatmul.mubr.f32.gmra.mxu1 %v2595_v31 }
 0x148   : > { %v6953_v27 = vadd.f32 %v1125_v36, %v828_v34  ;;  %v843_v50 = vadd.f32 %v5209_v15, %v6696_v37  ;;  %5708 = vmatprep.mubr.f32.mxu1 %v2596_v7  ;;  %v2601_v7 = vld [vmem:[%s6092_s9 + $0xae] sm:$0xff]  ;;  %v2602_v36 = vld [vmem:[%s6092_s9 + $0xb6] sm:$0xff] }
 0x149   : > { %v5295_v43 = vpop.f32.mrf.mxu0  ;;  %5792 = vmatmul.mubr.f32.gmra.mxu0 %v2929_v44  ;;  %v837_v46 = vpop.f32.mrf.mxu1 }
 0x14a   : > { %v6958_v32 = vadd.f32 %v5295_v43, %v843_v50  ;;  %v838_v8 = vadd.f32 %v837_v46, %v6704_v41  ;;  %5794 = vmatprep.mubr.f32.mxu0 %v2930_v33  ;;  %v2935_v33 = vld [vmem:[%s6092_s9 + $0xaf] sm:$0xff]  ;;  %v2936_v43 = vld [vmem:[%s6092_s9 + $0xb7] sm:$0xff] }
 0x14b   : > { %v1135_v59 = vpop.f32.mrf.mxu0  ;;  %v5212_v16 = vpop.f32.mrf.mxu1  ;;  %5709 = vmatmul.mubr.f32.gmra.mxu1 %v2597_v39 }
 0x14c   : > { %v6963_v37 = vadd.f32 %v1135_v59, %v838_v8  ;;  %v853_v5 = vadd.f32 %v5212_v16, %v6716_v49  ;;  %5711 = vmatprep.mubr.f32.mxu1 %v2598_v62  ;;  %v2603_v62 = vld [vmem:[%s6092_s9 + $0xbe] sm:$0xff]  ;;  %v2604_v59 = vld [vmem:[%s6092_s9 + $0xc6] sm:$0xff] }
 0x14d   : > { %v5298_v35 = vpop.f32.mrf.mxu0  ;;  %5795 = vmatmul.mubr.f32.gmra.mxu0 %v2931_v56  ;;  %v847_v38 = vpop.f32.mrf.mxu1 }
 0x14e   : > { %v6968_v41 = vadd.f32 %v5298_v35, %v853_v5  ;;  %v848_v47 = vadd.f32 %v847_v38, %v6724_v52  ;;  %5797 = vmatprep.mubr.f32.mxu0 %v2932_v26  ;;  %v2937_v26 = vld [vmem:[%s6092_s9 + $0xbf] sm:$0xff]  ;;  %v2938_v35 = vld [vmem:[%s6092_s9 + $0xc7] sm:$0xff] }
 0x14f   : > { %v1145_v19 = vpop.f32.mrf.mxu0  ;;  %v5215_v31 = vpop.f32.mrf.mxu1  ;;  %5712 = vmatmul.mubr.f32.gmra.mxu1 %v2599_v2 }
 0x150   : > { %v6973_v49 = vadd.f32 %v1145_v19, %v848_v47  ;;  %v863_v23 = vadd.f32 %v5215_v31, %v6732_v58  ;;  %5714 = vmatprep.mubr.f32.mxu1 %v2600_v13  ;;  %v2605_v13 = vld [vmem:[%s6092_s9 + $0xce] sm:$0xff]  ;;  %v2606_v19 = vld [vmem:[%s6092_s9 + $0xd6] sm:$0xff] }
 0x151   : > { %v5301_v34 = vpop.f32.mrf.mxu0  ;;  %5798 = vmatmul.mubr.f32.gmra.mxu0 %v2933_v57  ;;  %v857_v44 = vpop.f32.mrf.mxu1 }
 0x152   : > { %v6978_v52 = vadd.f32 %v5301_v34, %v863_v23  ;;  %v858_v15 = vadd.f32 %v857_v44, %v6741_v20  ;;  %5800 = vmatprep.mubr.f32.mxu0 %v2934_v21  ;;  %v2939_v21 = vld [vmem:[%s6092_s9 + $0xcf] sm:$0xff]  ;;  %v2940_v34 = vld [vmem:[%s6092_s9 + $0xd7] sm:$0xff] }
 0x153   : > { %v1155_v50 = vpop.f32.mrf.mxu0  ;;  %v5218_v39 = vpop.f32.mrf.mxu1  ;;  %5715 = vmatmul.mubr.f32.gmra.mxu1 %v2601_v7 }
 0x154   : > { %v6983_v58 = vadd.f32 %v1155_v50, %v858_v15  ;;  %v873_v46 = vadd.f32 %v5218_v39, %v6753_v29  ;;  %5717 = vmatprep.mubr.f32.mxu1 %v2602_v36  ;;  %v2607_v36 = vld [vmem:[%s6092_s9 + $0xde] sm:$0xff]  ;;  %v2608_v50 = vld [vmem:[%s6092_s9 + $0xe6] sm:$0xff] }
 0x155   : > { %v5304_v8 = vpop.f32.mrf.mxu0  ;;  %5801 = vmatmul.mubr.f32.gmra.mxu0 %v2935_v33  ;;  %v867_v56 = vpop.f32.mrf.mxu1 }
 0x156   : > { %v6988_v20 = vadd.f32 %v5304_v8, %v873_v46  ;;  %v868_v16 = vadd.f32 %v867_v56, %v6760_v9  ;;  %5803 = vmatprep.mubr.f32.mxu0 %v2936_v43  ;;  %v2941_v43 = vld [vmem:[%s6092_s9 + $0xdf] sm:$0xff]  ;;  %v2942_v8 = vld [vmem:[%s6092_s9 + $0xe7] sm:$0xff] }
 0x157   : > { %v1165_v5 = vpop.f32.mrf.mxu0  ;;  %v5221_v2 = vpop.f32.mrf.mxu1  ;;  %5718 = vmatmul.mubr.f32.gmra.mxu1 %v2603_v62 }
 0x158   : > { %v6993_v29 = vadd.f32 %v1165_v5, %v868_v16  ;;  %v883_v38 = vadd.f32 %v5221_v2, %v6772_v17  ;;  %5720 = vmatprep.mubr.f32.mxu1 %v2604_v59  ;;  %v2609_v59 = vld [vmem:[%s6092_s9 + $0xee] sm:$0xff]  ;;  %v2610_v5 = vld [vmem:[%s6092_s9 + $0xf6] sm:$0xff] }
 0x159   : > { %v5307_v47 = vpop.f32.mrf.mxu0  ;;  %5804 = vmatmul.mubr.f32.gmra.mxu0 %v2937_v26  ;;  %v877_v57 = vpop.f32.mrf.mxu1 }
 0x15a   : > { %v6998_v9 = vadd.f32 %v5307_v47, %v883_v38  ;;  %v878_v31 = vadd.f32 %v877_v57, %v6781_v63  ;;  %5806 = vmatprep.mubr.f32.mxu0 %v2938_v35  ;;  %v2943_v35 = vld [vmem:[%s6092_s9 + $0xef] sm:$0xff]  ;;  %v2944_v47 = vld [vmem:[%s6092_s9 + $0xf7] sm:$0xff] }
 0x15b   : > { %v1175_v23 = vpop.f32.mrf.mxu0  ;;  %v5224_v7 = vpop.f32.mrf.mxu1  ;;  %5721 = vmatmul.mubr.f32.gmra.mxu1 %v2605_v13 }
 0x15c   : > { %v7003_v17 = vadd.f32 %v1175_v23, %v878_v31  ;;  %v893_v44 = vadd.f32 %v5224_v7, %v6789_v28  ;;  %5723 = vmatprep.mubr.f32.mxu1 %v2606_v19  ;;  %v2611_v19 = vld [vmem:[%s6092_s9 + $0xfe] sm:$0xff]  ;;  %v2612_v23 = vld [vmem:[%s6092_s9 + $0x106] sm:$0xff] }
 0x15d   : > { %v5310_v15 = vpop.f32.mrf.mxu0  ;;  %5807 = vmatmul.mubr.f32.gmra.mxu0 %v2939_v21  ;;  %v887_v33 = vpop.f32.mrf.mxu1 }
 0x15e   : > { %v7008_v63 = vadd.f32 %v5310_v15, %v893_v44  ;;  %v888_v39 = vadd.f32 %v887_v33, %v6797_v30  ;;  %5809 = vmatprep.mubr.f32.mxu0 %v2940_v34  ;;  %v2945_v34 = vld [vmem:[%s6092_s9 + $0xff] sm:$0xff]  ;;  %v2946_v15 = vld [vmem:[%s6092_s9 + $0x107] sm:$0xff] }
 0x15f   : > { %v1185_v46 = vpop.f32.mrf.mxu0  ;;  %v5227_v62 = vpop.f32.mrf.mxu1  ;;  %5724 = vmatmul.mubr.f32.gmra.mxu1 %v2607_v36 }
 0x160   : > { %v7013_v28 = vadd.f32 %v1185_v46, %v888_v39  ;;  %v903_v56 = vadd.f32 %v5227_v62, %v6809_v42  ;;  %5726 = vmatprep.mubr.f32.mxu1 %v2608_v50  ;;  %v2613_v50 = vld [vmem:[%s6092_s9 + $0x10e] sm:$0xff]  ;;  %v2614_v46 = vld [vmem:[%s6092_s9 + $0x116] sm:$0xff] }
 0x161   : > { %v5313_v16 = vpop.f32.mrf.mxu0  ;;  %5810 = vmatmul.mubr.f32.gmra.mxu0 %v2941_v43  ;;  %v897_v26 = vpop.f32.mrf.mxu1 }
 0x162   : > { %v7018_v30 = vadd.f32 %v5313_v16, %v903_v56  ;;  %v898_v2 = vadd.f32 %v897_v26, %v6817_v54  ;;  %5812 = vmatprep.mubr.f32.mxu0 %v2942_v8  ;;  %v2947_v8 = vld [vmem:[%s6092_s9 + $0x10f] sm:$0xff]  ;;  %v2948_v16 = vld [vmem:[%s6092_s9 + $0x117] sm:$0xff] }
 0x163   : > { %v1195_v38 = vpop.f32.mrf.mxu0  ;;  %v5230_v13 = vpop.f32.mrf.mxu1  ;;  %5727 = vmatmul.mubr.f32.gmra.mxu1 %v2609_v59 }
 0x164   : > { %v7023_v42 = vadd.f32 %v1195_v38, %v898_v2  ;;  %v913_v57 = vadd.f32 %v5230_v13, %v6828_v51  ;;  %5729 = vmatprep.mubr.f32.mxu1 %v2610_v5  ;;  %v2615_v5 = vld [vmem:[%s6092_s9 + $0x11e] sm:$0xff]  ;;  %v2616_v38 = vld [vmem:[%s6092_s9 + $0x126] sm:$0xff] }
 0x165   : > { %v5316_v31 = vpop.f32.mrf.mxu0  ;;  %5813 = vmatmul.mubr.f32.gmra.mxu0 %v2943_v35  ;;  %v907_v21 = vpop.f32.mrf.mxu1 }
 0x166   : > { %v7028_v54 = vadd.f32 %v5316_v31, %v913_v57  ;;  %v908_v7 = vadd.f32 %v907_v21, %v6836_v14  ;;  %5815 = vmatprep.mubr.f32.mxu0 %v2944_v47  ;;  %v2949_v47 = vld [vmem:[%s6092_s9 + $0x11f] sm:$0xff]  ;;  %v2950_v31 = vld [vmem:[%s6092_s9 + $0x127] sm:$0xff] }
 0x167   : > { %v1205_v44 = vpop.f32.mrf.mxu0  ;;  %v5351_v36 = vpop.f32.mrf.mxu1  ;;  %5730 = vmatmul.mubr.f32.gmra.mxu1 %v2611_v19 }
 0x168   : > { %v7033_v51 = vadd.f32 %v1205_v44, %v908_v7  ;;  %v1549_v33 = vadd.f32 %v5351_v36, %v6853_v53  ;;  %5732 = vmatprep.mubr.f32.mxu1 %v2612_v23  ;;  %v2617_v23 = vld [vmem:[%s6092_s9 + $0x12e] sm:$0xff]  ;;  %v2618_v44 = vld [vmem:[%s6092_s9 + $0x136] sm:$0xff] }
 0x169   : > { %v5437_v39 = vpop.f32.mrf.mxu0  ;;  %5816 = vmatmul.mubr.f32.gmra.mxu0 %v2945_v34  ;;  %v1369_v43 = vpop.f32.mrf.mxu1 }
 0x16a   : > { %v7038_v14 = vadd.f32 %v5437_v39, %v1549_v33  ;;  %v1548_v62 = vadd.f32 %v1369_v43, %v6861_v11  ;;  %5818 = vmatprep.mubr.f32.mxu0 %v2946_v15  ;;  %v2951_v15 = vld [vmem:[%s6092_s9 + $0x12f] sm:$0xff]  ;;  %v2952_v39 = vld [vmem:[%s6092_s9 + $0x137] sm:$0xff] }
 0x16b   : > { %v1703_v56 = vpop.f32.mrf.mxu0  ;;  %v5354_v59 = vpop.f32.mrf.mxu1  ;;  %5733 = vmatmul.mubr.f32.gmra.mxu1 %v2613_v50 }
 0x16c   : > { %v7043_v53 = vadd.f32 %v1703_v56, %v1548_v62  ;;  %v1551_v26 = vadd.f32 %v5354_v59, %v6867_v40  ;;  %5735 = vmatprep.mubr.f32.mxu1 %v2614_v46  ;;  %v2619_v46 = vld [vmem:[%s6092_s9 + $0x13e] sm:$0xff]  ;;  %v2620_v56 = vld [vmem:[%s6092_s9 + $0x146] sm:$0xff] }
 0x16d   : > { %v5440_v2 = vpop.f32.mrf.mxu0  ;;  %5819 = vmatmul.mubr.f32.gmra.mxu0 %v2947_v8  ;;  %v1379_v35 = vpop.f32.mrf.mxu1 }
 0x16e   : > { %v7048_v11 = vadd.f32 %v5440_v2, %v1551_v26  ;;  %v1550_v13 = vadd.f32 %v1379_v35, %v6875_v4  ;;  %5821 = vmatprep.mubr.f32.mxu0 %v2948_v16  ;;  %v2953_v16 = vld [vmem:[%s6092_s9 + $0x13f] sm:$0xff]  ;;  %v2954_v2 = vld [vmem:[%s6092_s9 + $0x147] sm:$0xff] }
 0x16f   : > { %v1713_v57 = vpop.f32.mrf.mxu0  ;;  %v5357_v19 = vpop.f32.mrf.mxu1  ;;  %5736 = vmatmul.mubr.f32.gmra.mxu1 %v2615_v5 }
 0x170   : > { %v7053_v40 = vadd.f32 %v1713_v57, %v1550_v13  ;;  %v1553_v21 = vadd.f32 %v5357_v19, %v6881_v3  ;;  %5738 = vmatprep.mubr.f32.mxu1 %v2616_v38  ;;  %v2621_v38 = vld [vmem:[%s6092_s9 + $0x14e] sm:$0xff] }
 0x171   : > { %v5443_v7 = vpop.f32.mrf.mxu0  ;;  %5822 = vmatmul.mubr.f32.gmra.mxu0 %v2949_v47  ;;  %v1389_v34 = vpop.f32.mrf.mxu1  ;;  %v2955_v19 = vld [vmem:[%s6092_s9 + $0x14f] sm:$0xff]  ;;  %s5866_s9 = smul.u32 288, %s9058_s18 }
 0x172   : > { %v7058_v4 = vadd.f32 %v5443_v7, %v1553_v21  ;;  %v1552_v36 = vadd.f32 %v1389_v34, %v6886_v45  ;;  %5824 = vmatprep.mubr.f32.mxu0 %v2950_v31 }
 0x173   : > { %v1723_v33 = vpop.f32.mrf.mxu0  ;;  %v5360_v50 = vpop.f32.mrf.mxu1  ;;  %5739 = vmatmul.mubr.f32.gmra.mxu1 %v2617_v23  ;;  %s8098_s12 = scalar_lea.vmem %s8816_s4, %s5866_s9  ;;  %s8210_s17 = scalar_lea.vmem %s8817_s5, %s5866_s9 }
 0x174   : > { %v7063_v3 = vadd.f32 %v1723_v33, %v1552_v36  ;;  %v1555_v43 = vadd.f32 %v5360_v50, %v6889_v55  ;;  %5741 = vmatprep.mubr.f32.mxu1 %v2618_v44  ;;  %v3520_v50 = vlaneseq }
 0x175   : > { %v5446_v62 = vpop.f32.mrf.mxu0  ;;  %5825 = vmatmul.mubr.f32.gmra.mxu0 %v2951_v15  ;;  %v1399_v8 = vpop.f32.mrf.mxu1 }
 0x176   : > { %v7068_v45 = vadd.f32 %v5446_v62, %v1555_v43  ;;  %v1554_v59 = vadd.f32 %v1399_v8, %v6894_v61  ;;  %5827 = vmatprep.mubr.f32.mxu0 %v2952_v39 }
 0x177   : > { %v1733_v26 = vpop.f32.mrf.mxu0  ;;  %v5363_v5 = vpop.f32.mrf.mxu1  ;;  %5742 = vmatmul.mubr.f32.gmra.mxu1 %v2619_v46 }
 0x178   : > { %v7073_v35 = vadd.f32 %v1733_v26, %v1554_v59  ;;  %v1557_v55 = vadd.f32 %v5363_v5, %v6898_v22  ;;  %5744 = vmatprep.mubr.f32.mxu1 %v2620_v56  ;;  %v7093_v59 = vshrl.u32 %v3520_v50, 7 }
 0x179   : > { %v5449_v13 = vpop.f32.mrf.mxu0  ;;  %5828 = vmatmul.mubr.f32.gmra.mxu0 %v2953_v16  ;;  %v1409_v47 = vpop.f32.mrf.mxu1 }
 0x17a   : > { %v7077_v57 = vadd.f32 %v5449_v13, %v1557_v55  ;;  %v1556_v61 = vadd.f32 %v1409_v47, %v6903_v6  ;;  %5830 = vmatprep.mubr.f32.mxu0 %v2954_v2  ;;  %v7102_v13 = vadd.s32 8, %v7093_v59 }
 0x17b   : > { %v1743_v31 = vpop.f32.mrf.mxu0  ;;  %v5366_v21 = vpop.f32.mrf.mxu1  ;;  %5745 = vmatmul.mubr.f32.gmra.mxu1 %v2621_v38 }
 0x17c   : > { %v7081_v23 = vadd.f32 %v1743_v31, %v1556_v61  ;;  %v1559_v7 = vadd.f32 %v5366_v21, %v6908_v12 }
 0x17d   : > { %v5452_v34 = vpop.f32.mrf.mxu0  ;;  %5831 = vmatmul.mubr.f32.gmra.mxu0 %v2955_v19  ;;  %v1419_v22 = vpop.f32.mrf.mxu1 }
 0x17e   : > { %v7084_v44 = vadd.f32 %v5452_v34, %v1559_v7  ;;  %v1558_v36 = vadd.f32 %v1419_v22, %v6913_v18 }
 0x17f   : > { %v1753_v15 = vpop.f32.mrf.mxu0  ;;  %v5369_v33 = vpop.f32.mrf.mxu1 }
 0x180   : > { %v7087_v6 = vadd.f32 %v1753_v15, %v1558_v36  ;;  %v1561_v39 = vadd.f32 %v5369_v33, %v6918_v1  ;;  %v7118_v15 = vadd.s32 24, %v7093_v59 }
 0x181   : > { %v5455_v43 = vpop.f32.mrf.mxu0  ;;  %v1429_v46 = vpop.f32.mrf.mxu1 }
 0x182   : > { %v7090_v62 = vadd.f32 %v5455_v43, %v1561_v39  ;;  %v1560_v12 = vadd.f32 %v1429_v46, %v6923_v24 }
 0x183   : > { %v1763_v8 = vpop.f32.mrf.mxu0  ;;  %v5372_v56 = vpop.f32.mrf.mxu1 }
 0x184   : > { %v7095_v16 = vadd.f32 %v1763_v8, %v1560_v12  ;;  %v1563_v18 = vadd.f32 %v5372_v56, %v6928_v25 }
 0x185   : > { %v5458_v26 = vpop.f32.mrf.mxu0  ;;  %v1439_v5 = vpop.f32.mrf.mxu1 }
 0x186   : > { %v7098_v2 = vadd.f32 %v5458_v26, %v1563_v18  ;;  %v1562_v1 = vadd.f32 %v1439_v5, %v6933_v48  ;;  %v7111_v34 = vmul.u32.u64.low 3817748708, %v7102_v13  ;;  %v7112_v48 = vmul.u32.u64.high 3817748708, %v7102_v13, %v7111_v34 }
 0x187   : > { %v1773_v55 = vpop.f32.mrf.mxu0  ;;  %v5375_v38 = vpop.f32.mrf.mxu1 }
 0x188   : > { %v7104_v24 = vadd.f32 %v1773_v55, %v1562_v1  ;;  %v1565_v47 = vadd.f32 %v5375_v38, %v6938_v60  ;;  %v7135_v1 = vadd.s32 16, %v7093_v59 }
 0x189   : > { %v5461_v61 = vpop.f32.mrf.mxu0  ;;  %v1449_v19 = vpop.f32.mrf.mxu1 }
 0x18a   : > { %v7107_v31 = vadd.f32 %v5461_v61, %v1565_v47  ;;  %v1564_v25 = vadd.f32 %v1449_v19, %v6943_v10  ;;  %v7124_v10 = vmul.u32.u64.low 3817748708, %v7093_v59  ;;  %v7125_v43 = vmul.u32.u64.high 3817748708, %v7093_v59, %v7124_v10 }
 0x18b   : > { %v1783_v21 = vpop.f32.mrf.mxu0  ;;  %v5378_v7 = vpop.f32.mrf.mxu1  ;;  %v7141_v61 = vadd.s32 40, %v7093_v59 }
 0x18c   : > { %v7114_v22 = vadd.f32 %v1783_v21, %v1564_v25  ;;  %v1567_v36 = vadd.f32 %v5378_v7, %v6948_v0  ;;  %v7131_v0 = vmul.u32.u64.low 3817748708, %v7118_v15  ;;  %v7132_v18 = vmul.u32.u64.high 3817748708, %v7118_v15, %v7131_v0 }
 0x18d   : > { %v5464_v60 = vpop.f32.mrf.mxu0  ;;  %v1459_v33 = vpop.f32.mrf.mxu1  ;;  %v3574_v25 = vshrl.u32 %v7112_v48, 4 }
 0x18e   : > { %v7120_v50 = vadd.f32 %v5464_v60, %v1567_v36  ;;  %v1566_v39 = vadd.f32 %v1459_v33, %v6953_v27  ;;  %v7148_v34 = vmul.u32.u64.low 3817748708, %v7135_v1  ;;  %v7149_v36 = vmul.u32.u64.high 3817748708, %v7135_v1, %v7148_v34 }
 0x18f   : > { %v1793_v46 = vpop.f32.mrf.mxu0  ;;  %v5381_v12 = vpop.f32.mrf.mxu1  ;;  %v7152_v60 = vadd.s32 32, %v7093_v59 }
 0x190   : > { %v7127_v8 = vadd.f32 %v1793_v46, %v1566_v39  ;;  %v1569_v56 = vadd.f32 %v5381_v12, %v6958_v32  ;;  %v7162_v46 = vmul.u32.u64.low 3817748708, %v7141_v61  ;;  %v7163_v12 = vmul.u32.u64.high 3817748708, %v7141_v61, %v7162_v46 }
 0x191   : > { %v5467_v26 = vpop.f32.mrf.mxu0  ;;  %v1469_v5 = vpop.f32.mrf.mxu1 }
 0x192   : > { %v7137_v27 = vadd.f32 %v5467_v26, %v1569_v56  ;;  %v1568_v55 = vadd.f32 %v1469_v5, %v6963_v37  ;;  %v7155_v37 = vadd.s32 56, %v7093_v59  ;;  %v3575_v26 = vmul.u32 18, %v3574_v25 }
 0x193   : > { %v1803_v38 = vpop.f32.mrf.mxu0  ;;  %v5384_v47 = vpop.f32.mrf.mxu1  ;;  %v3596_v5 = vshrl.u32 %v7132_v18, 4 }
 0x194   : > { %v7143_v19 = vadd.f32 %v1803_v38, %v1568_v55  ;;  %v1571_v32 = vadd.f32 %v5384_v47, %v6968_v41  ;;  %v3563_v41 = vshrl.u32 %v7125_v43, 4 }
 0x195   : > { %v5470_v21 = vpop.f32.mrf.mxu0  ;;  %v1479_v7 = vpop.f32.mrf.mxu1 }
 0x196   : > { %v7157_v33 = vadd.f32 %v5470_v21, %v1571_v32  ;;  %v1570_v39 = vadd.f32 %v1479_v7, %v6973_v49  ;;  %v7170_v47 = vmul.u32.u64.low 3817748708, %v7152_v60  ;;  %v7171_v49 = vmul.u32.u64.high 3817748708, %v7152_v60, %v7170_v47 }
 0x197   : > { %v1813_v10 = vpop.f32.mrf.mxu0  ;;  %v5387_v48 = vpop.f32.mrf.mxu1  ;;  %v7174_v43 = vmul.u32.u64.low 3817748708, %v7155_v37  ;;  %v7175_v32 = vmul.u32.u64.high 3817748708, %v7155_v37, %v7174_v43  ;;  %v3564_v34 = vmul.u32 18, %v3563_v41  ;;  %v7194_v41 = vadd.s32 48, %v7093_v59 }
 0x198   : > { %v7165_v56 = vadd.f32 %v1813_v10, %v1570_v39  ;;  %v1573_v0 = vadd.f32 %v5387_v48, %v6978_v52  ;;  %v7184_v10 = vsub.s32 %v7102_v13, %v3575_v26  ;;  %v3597_v48 = vmul.u32 18, %v3596_v5 }
 0x199   : > { %v5473_v55 = vpop.f32.mrf.mxu0  ;;  %v1489_v38 = vpop.f32.mrf.mxu1  ;;  %v3618_v13 = vshrl.u32 %v7163_v12, 4  ;;  %v3640_v12 = vshrl.u32 %v7175_v32, 4  ;;  %v7226_v32 = vadd.s32 64, %v7093_v59 }
 0x19a   : > { %8830 = vst [vmem:[#allocation2_spill] sm:$0xff] %v7165_v56  ;;  %v7177_v21 = vadd.f32 %v5473_v55, %v1573_v0  ;;  %v1572_v7 = vadd.f32 %v1489_v38, %v6983_v58  ;;  %v3585_v56 = vshrl.u32 %v7149_v36, 4  ;;  %v7191_v58 = vsub.s32 %v7093_v59, %v3564_v34 }
 0x19b   : > { %v1823_v39 = vpop.f32.mrf.mxu0  ;;  %v5390_v52 = vpop.f32.mrf.mxu1  ;;  %v7201_v36 = vadd.s32 18, %v7184_v10  ;;  %v7204_v38 = vsub.s32 %v7118_v15, %v3597_v48  ;;  %vm3954_vm0 = vcmp.ne.s32.totalorder %v7184_v10, 0  ;;  %vm3990_vm1 = vcmp.lt.s32.totalorder %v7184_v10, 0 }
 0x19c   : > { %v7180_v25 = vadd.f32 %v1823_v39, %v1572_v7  ;;  %v1575_v18 = vadd.f32 %v5390_v52, %v6988_v20  ;;  %v3586_v34 = vmul.u32 18, %v3585_v56  ;;  %v3607_v39 = vshrl.u32 %v7171_v49, 4  ;;  %vm7289_vm10 = vmand %vm3990_vm1, %vm3954_vm0 }
 0x19d   : > { %v5476_v46 = vpop.f32.mrf.mxu0  ;;  %v1499_v47 = vpop.f32.mrf.mxu1  ;;  %v7211_v52 = vadd.s32 72, %v7093_v59  ;;  %vm3953_vm2 = vcmp.ne.s32.totalorder %v7191_v58, 0  ;;  %v7218_v15 = vmul.u32.u64.low 3817748708, %v7194_v41  ;;  %v7219_v48 = vmul.u32.u64.high 3817748708, %v7194_v41, %v7218_v15 }
 0x19e   : > { %v7187_v43 = vadd.f32 %v5476_v46, %v1575_v18  ;;  %v1574_v0 = vadd.f32 %v1499_v47, %v6993_v29  ;;  %vm3989_vm3 = vcmp.lt.s32.totalorder %v7191_v58, 0  ;;  %v7223_v56 = vadd.s32 18, %v7191_v58 }
 0x19f   : > { %v1833_v55 = vpop.f32.mrf.mxu0  ;;  %v5393_v20 = vpop.f32.mrf.mxu1  ;;  %v3619_v49 = vmul.u32 18, %v3618_v13  ;;  %vm3956_vm4 = vcmp.ne.s32.totalorder %v7204_v38, 0  ;;  %v7239_v13 = vmul.u32.u64.low 3817748708, %v7211_v52  ;;  %v7240_v15 = vmul.u32.u64.high 3817748708, %v7211_v52, %v7239_v13  ;;  %vm7301_vm11 = vmand %vm3989_vm3, %vm3953_vm2 }
 0x1a0   : > { %v7197_v26 = vadd.f32 %v1833_v55, %v1574_v0  ;;  %v1577_v5 = vadd.f32 %v5393_v20, %v6998_v9  ;;  %v7233_v55 = vadd.s32 88, %v7093_v59  ;;  %vm3992_vm5 = vcmp.lt.s32.totalorder %v7204_v38, 0 }
 0x1a1   : > { %v5479_v29 = vpop.f32.mrf.mxu0  ;;  %v1509_v7 = vpop.f32.mrf.mxu1  ;;  %vm7316_vm14 = vmand %vm3992_vm5, %vm3956_vm4 }
 0x1a2   : > { %v7213_v9 = vadd.f32 %v5479_v29, %v1577_v5  ;;  %v1576_v18 = vadd.f32 %v1509_v7, %v7003_v17  ;;  %v7236_v29 = vsub.s32 %v7135_v1, %v3586_v34  ;;  %v3608_v7 = vmul.u32 18, %v3607_v39 }
 0x1a3   : > { %v1843_v46 = vpop.f32.mrf.mxu0  ;;  %v5396_v47 = vpop.f32.mrf.mxu1  ;;  %v7250_v1 = vmul.u32.u64.low 3817748708, %v7226_v32  ;;  %v7251_v34 = vmul.u32.u64.high 3817748708, %v7226_v32, %v7250_v1  ;;  %v7254_v39 = vadd.s32 80, %v7093_v59 }
 0x1a4   : > { %8831 = vst [vmem:[#allocation3_spill] sm:$0xff] %v7213_v9  ;;  %v7228_v0 = vadd.f32 %v1843_v46, %v1576_v18  ;;  %v1579_v17 = vadd.f32 %v5396_v47, %v7008_v63  ;;  %v3641_v63 = vmul.u32 18, %v3640_v12  ;;  %vm3955_vm6 = vcmp.ne.s32.totalorder %v7236_v29, 0 }
 0x1a5   : > { %v5482_v20 = vpop.f32.mrf.mxu0  ;;  %v1519_v5 = vpop.f32.mrf.mxu1  ;;  %vm3991_vm7 = vcmp.lt.s32.totalorder %v7236_v29, 0 }
 0x1a6   : > { %8832 = vst [vmem:[#allocation4_spill] sm:$0xff] %v7228_v0  ;;  %v7242_v9 = vadd.f32 %v5482_v20, %v1579_v17  ;;  %v1578_v18 = vadd.f32 %v1519_v5, %v7013_v28  ;;  %v7247_v0 = vsub.s32 %v7141_v61, %v3619_v49  ;;  %v4064_v61 = vadd.s32 18, %v7204_v38  ;;  %vm7325_vm0 = vmand %vm3991_vm7, %vm3955_vm6 }
 0x1a7   : > { %v1853_v46 = vpop.f32.mrf.mxu0  ;;  %v5399_v47 = vpop.f32.mrf.mxu1  ;;  %v7260_v28 = vmul.u32.u64.low 3817748708, %v7233_v55  ;;  %v7261_v20 = vmul.u32.u64.high 3817748708, %v7233_v55, %v7260_v28  ;;  %v7267_v49 = vsub.s32 %v7152_v60, %v3608_v7  ;;  %v7280_v60 = vadd.s32 104, %v7093_v59 }
 0x1a8   : > { %8833 = vst [vmem:[#allocation5_spill] sm:$0xff] %v7242_v9  ;;  %v7256_v13 = vadd.f32 %v1853_v46, %v1578_v18  ;;  %v1581_v17 = vadd.f32 %v5399_v47, %v7018_v30  ;;  %v7273_v30 = vsub.s32 %v7155_v37, %v3641_v63  ;;  %v3629_v46 = vshrl.u32 %v7219_v48, 4 }
 0x1a9   : > { %v5485_v12 = vpop.f32.mrf.mxu0  ;;  %v1529_v5 = vpop.f32.mrf.mxu1  ;;  %vm3958_vm8 = vcmp.ne.s32.totalorder %v7247_v0, 0  ;;  %vm3994_vm9 = vcmp.lt.s32.totalorder %v7247_v0, 0  ;;  %v7294_v48 = vmul.u32.u64.low 3817748708, %v7254_v39  ;;  %v7295_v63 = vmul.u32.u64.high 3817748708, %v7254_v39, %v7294_v48 }
 0x1aa   : > { %8834 = vst [vmem:[#allocation6_spill] sm:$0xff] %v7256_v13  ;;  %v7269_v1 = vadd.f32 %v5485_v12, %v1581_v17  ;;  %v1580_v18 = vadd.f32 %v1529_v5, %v7023_v42  ;;  %v4063_v13 = vadd.s32 18, %v7236_v29  ;;  %v4066_v5 = vadd.s32 18, %v7247_v0  ;;  %vm7348_vm2 = vmand %vm3994_vm9, %vm3958_vm8 }
 0x1ab   : > { %v1863_v47 = vpop.f32.mrf.mxu0  ;;  %v5402_v28 = vpop.f32.mrf.mxu1  ;;  %vm3957_vm12 = vcmp.ne.s32.totalorder %v7267_v49, 0  ;;  %vm3993_vm13 = vcmp.lt.s32.totalorder %v7267_v49, 0  ;;  %vm3960_vm15 = vcmp.ne.s32.totalorder %v7273_v30, 0  ;;  %vm3996_vm1 = vcmp.lt.s32.totalorder %v7273_v30, 0 }
 0x1ac   : > { %8835 = vst [vmem:[#allocation7_spill] sm:$0xff] %v7269_v1  ;;  %v7282_v7 = vadd.f32 %v1863_v47, %v1580_v18  ;;  %v1583_v42 = vadd.f32 %v5402_v28, %v7028_v54  ;;  %v3662_v18 = vshrl.u32 %v7240_v15, 4  ;;  %vm7368_vm3 = vmand %vm3993_vm13, %vm3957_vm12 }
 0x1ad   : > { %v5488_v17 = vpop.f32.mrf.mxu0  ;;  %v1539_v12 = vpop.f32.mrf.mxu1  ;;  %vm7381_vm4 = vmand %vm3996_vm1, %vm3960_vm15 }
 0x1ae   : > { %8836 = vst [vmem:[#allocation8_spill] sm:$0xff] %v7282_v7  ;;  %v7309_v47 = vadd.f32 %v5488_v17, %v1583_v42  ;;  %v1582_v28 = vadd.f32 %v1539_v12, %v7033_v51  ;;  %v3630_v7 = vmul.u32 18, %v3629_v46  ;;  %v3651_v51 = vshrl.u32 %v7251_v34, 4 }
 0x1af   : > { %v1873_v1 = vpop.f32.mrf.mxu0  ;;  %v5523_v9 = vpop.f32.mrf.mxu1  ;;  %v7332_v42 = vmul.u32.u64.low 3817748708, %v7280_v60  ;;  %v7333_v17 = vmul.u32.u64.high 3817748708, %v7280_v60, %v7332_v42 }
 0x1b0   : > { %8841 = vst [vmem:[#allocation9_spill] sm:$0xff] %v7309_v47  ;;  %v7335_v12 = vadd.f32 %v1873_v1, %v1582_v28  ;;  %v2217_v46 = vadd.f32 %v5523_v9, %v7038_v14  ;;  %v7342_v47 = vsel %vm7289_vm10, %v7201_v36, %v7184_v10  ;;  %v3684_v42 = vshrl.u32 %v7261_v20, 4 }
 0x1b1   : > { %v5609_v1 = vpop.f32.mrf.mxu0  ;;  %v2037_v28 = vpop.f32.mrf.mxu1  ;;  %v7357_v14 = vsel %vm7301_vm11, %v7223_v56, %v7191_v58  ;;  %v7362_v10 = vsel %vm7316_vm14, %v4064_v61, %v7204_v38  ;;  %v4065_v9 = vadd.s32 18, %v7267_v49  ;;  %v4068_v20 = vadd.s32 18, %v7273_v30 }
 0x1b2   : > { %8848 = vst [vmem:[#allocation10_spill] sm:$0xff] %v7357_v14  ;;  %8849 = vst [vmem:[#allocation11_spill] sm:$0xff] %v7362_v10  ;;  %v7374_v37 = vadd.f32 %v5609_v1, %v2217_v46  ;;  %v2216_v58 = vadd.f32 %v2037_v28, %v7043_v53  ;;  %v7386_v56 = vsub.s32 %v7194_v41, %v3630_v7  ;;  %v3663_v61 = vmul.u32 18, %v3662_v18 }
 0x1b3   : > { %v2371_v54 = vpop.f32.mrf.mxu0  ;;  %v5526_v48 = vpop.f32.mrf.mxu1  ;;  %v7391_v46 = vsel %vm7325_vm0, %v4063_v13, %v7236_v29  ;;  %v7396_v53 = vsel %vm7348_vm2, %v4066_v5, %v7247_v0  ;;  %v3652_v1 = vmul.u32 18, %v3651_v51  ;;  %v7399_v28 = vadd.s32 96, %v7093_v59 }
 0x1b4   : > { %8854 = vst [vmem:[#allocation12_spill] sm:$0xff] %v7391_v46  ;;  %8855 = vst [vmem:[#allocation13_spill] sm:$0xff] %v7396_v53  ;;  %v7401_v10 = vadd.f32 %v2371_v54, %v2216_v58  ;;  %v2219_v41 = vadd.f32 %v5526_v48, %v7048_v11  ;;  %v3685_v7 = vmul.u32 18, %v3684_v42  ;;  %v3673_v18 = vshrl.u32 %v7295_v63, 4 }
 0x1b5   : > { %v5612_v14 = vpop.f32.mrf.mxu0  ;;  %v2047_v15 = vpop.f32.mrf.mxu1  ;;  %v7408_v29 = vsel %vm7368_vm3, %v4065_v9, %v7267_v49  ;;  %v7413_v0 = vsel %vm7381_vm4, %v4068_v20, %v7273_v30  ;;  %v7416_v13 = vadd.s32 120, %v7093_v59  ;;  %v7419_v11 = vadd.s32 112, %v7093_v59 }
 0x1b6   : > { %8856 = vst [vmem:[#allocation14_spill] sm:$0xff] %v7408_v29  ;;  %8857 = vst [vmem:[#allocation15_spill] sm:$0xff] %v7413_v0  ;;  %v7421_v5 = vadd.f32 %v5612_v14, %v2219_v41  ;;  %v2218_v63 = vadd.f32 %v2047_v15, %v7053_v40  ;;  %v7425_v51 = vadd.s32 18, %v7386_v56  ;;  %v7428_v49 = vsub.s32 %v7211_v52, %v3663_v61 }
 0x1b7   : > { %v2381_v34 = vpop.f32.mrf.mxu0  ;;  %v5529_v42 = vpop.f32.mrf.mxu1  ;;  %v7431_v30 = vsub.s32 %v7226_v32, %v3652_v1  ;;  %v3706_v36 = vshrl.u32 %v7333_v17, 4  ;;  %v7435_v9 = vmul.u32.u64.low 3817748708, %v7399_v28  ;;  %v7436_v20 = vmul.u32.u64.high 3817748708, %v7399_v28, %v7435_v9 }
 0x1b8   : > { %8858 = vst [vmem:[#allocation16_spill] sm:$0xff] %v7421_v5  ;;  %v7438_v14 = vadd.f32 %v2381_v34, %v2218_v63  ;;  %v2221_v40 = vadd.f32 %v5529_v42, %v7058_v4  ;;  %v7442_v58 = vsub.s32 %v7233_v55, %v3685_v7  ;;  %v3674_v52 = vmul.u32 18, %v3673_v18 }
 0x1b9   : > { %v5615_v38 = vpop.f32.mrf.mxu0  ;;  %v2057_v61 = vpop.f32.mrf.mxu1  ;;  %vm3959_vm5 = vcmp.ne.s32.totalorder %v7386_v56, 0  ;;  %vm3995_vm6 = vcmp.lt.s32.totalorder %v7386_v56, 0  ;;  %v7447_v32 = vmul.u32.u64.low 3817748708, %v7416_v13  ;;  %v7448_v17 = vmul.u32.u64.high 3817748708, %v7416_v13, %v7447_v32 }
 0x1ba   : > { %8859 = vst [vmem:[#allocation17_spill] sm:$0xff] %v7438_v14  ;;  %v7451_v54 = vmul.u32.u64.low 3817748708, %v7419_v11  ;;  %v7452_v48 = vmul.u32.u64.high 3817748708, %v7419_v11, %v7451_v54  ;;  %v7454_v1 = vadd.f32 %v5615_v38, %v2221_v40  ;;  %v2220_v4 = vadd.f32 %v2057_v61, %v7063_v3  ;;  %vm7533_vm15 = vmand %vm3995_vm6, %vm3959_vm5 }
 0x1bb   : > { %vm3962_vm7 = vcmp.ne.s32.totalorder %v7428_v49, 0  ;;  %v7459_v55 = vadd.s32 136, %v7093_v59  ;;  %v2391_v41 = vpop.f32.mrf.mxu0  ;;  %v5532_v7 = vpop.f32.mrf.mxu1  ;;  %vm3998_vm8 = vcmp.lt.s32.totalorder %v7428_v49, 0  ;;  %v7463_v18 = vadd.s32 18, %v7428_v49 }
 0x1bc   : > { %8860 = vst [vmem:[#allocation18_spill] sm:$0xff] %v7454_v1  ;;  %vm3961_vm9 = vcmp.ne.s32.totalorder %v7431_v30, 0  ;;  %v3707_v15 = vmul.u32 18, %v3706_v36  ;;  %v7466_v63 = vadd.f32 %v2391_v41, %v2220_v4  ;;  %v2223_v34 = vadd.f32 %v5532_v7, %v7068_v45  ;;  %vm7542_vm1 = vmand %vm3998_vm8, %vm3962_vm7 }
 0x1bd   : > { %vm3997_vm10 = vcmp.lt.s32.totalorder %v7431_v30, 0  ;;  %v7471_v3 = vadd.s32 128, %v7093_v59  ;;  %v5618_v42 = vpop.f32.mrf.mxu0  ;;  %v2067_v9 = vpop.f32.mrf.mxu1  ;;  %v7474_v40 = vadd.s32 18, %v7431_v30  ;;  %vm3964_vm11 = vcmp.ne.s32.totalorder %v7442_v58, 0 }
 0x1be   : > { %8861 = vst [vmem:[#allocation19_spill] sm:$0xff] %v7466_v63  ;;  %vm4000_vm12 = vcmp.lt.s32.totalorder %v7442_v58, 0  ;;  %v7479_v36 = vsub.s32 %v7254_v39, %v3674_v52  ;;  %v7481_v38 = vadd.f32 %v5618_v42, %v2223_v34  ;;  %v2222_v45 = vadd.f32 %v2067_v9, %v7073_v35  ;;  %vm7558_vm3 = vmand %vm3997_vm10, %vm3961_vm9 }
 0x1bf   : > { %v7485_v61 = vmul.u32.u64.low 3817748708, %v7459_v55  ;;  %v7486_v32 = vmul.u32.u64.high 3817748708, %v7459_v55, %v7485_v61  ;;  %v2401_v54 = vpop.f32.mrf.mxu0  ;;  %v5535_v4 = vpop.f32.mrf.mxu1  ;;  %v7489_v41 = vadd.s32 18, %v7442_v58  ;;  %v7492_v7 = vsub.s32 %v7280_v60, %v3707_v15  ;;  %vm7567_vm4 = vmand %vm4000_vm12, %vm3964_vm11 }
 0x1c0   : > { %8862 = vst [vmem:[#allocation20_spill] sm:$0xff] %v7481_v38  ;;  %v3695_v0 = vshrl.u32 %v7436_v20, 4  ;;  %v7496_v39 = vadd.s32 152, %v7093_v59  ;;  %v7498_v52 = vadd.f32 %v2401_v54, %v2222_v45  ;;  %v2225_v35 = vadd.f32 %v5535_v4, %v7077_v57 }
 0x1c1   : > { %v7502_v34 = vmul.u32.u64.low 3817748708, %v7471_v3  ;;  %v7503_v42 = vmul.u32.u64.high 3817748708, %v7471_v3, %v7502_v34  ;;  %v5621_v9 = vpop.f32.mrf.mxu0  ;;  %v2077_v61 = vpop.f32.mrf.mxu1  ;;  %vm3963_vm13 = vcmp.ne.s32.totalorder %v7479_v36, 0  ;;  %vm3999_vm14 = vcmp.lt.s32.totalorder %v7479_v36, 0 }
 0x1c2   : > { %8863 = vst [vmem:[#allocation21_spill] sm:$0xff] %v7498_v52  ;;  %v3728_v60 = vshrl.u32 %v7448_v17, 4  ;;  %v7509_v20 = vadd.s32 144, %v7093_v59  ;;  %v7511_v15 = vadd.f32 %v5621_v9, %v2225_v35  ;;  %v2224_v45 = vadd.f32 %v2077_v61, %v7081_v23  ;;  %vm7586_vm5 = vmand %vm3999_vm14, %vm3963_vm13 }
 0x1c3   : > { %v4071_v57 = vadd.s32 18, %v7479_v36  ;;  %v3717_v54 = vshrl.u32 %v7452_v48, 4  ;;  %v2411_v4 = vpop.f32.mrf.mxu0  ;;  %v5538_v34 = vpop.f32.mrf.mxu1  ;;  %v7517_v52 = vmul.u32.u64.low 3817748708, %v7496_v39  ;;  %v7518_v38 = vmul.u32.u64.high 3817748708, %v7496_v39, %v7517_v52 }
 0x1c4   : > { %8864 = vst [vmem:[#allocation22_spill] sm:$0xff] %v7511_v15  ;;  %v7521_v29 = vadd.s32 168, %v7093_v59  ;;  %v7524_v17 = vadd.s32 160, %v7093_v59  ;;  %v7526_v35 = vadd.f32 %v2411_v4, %v2224_v45  ;;  %v2227_v23 = vadd.f32 %v5538_v34, %v7084_v44 }
 0x1c5   : > { %vm3966_vm0 = vcmp.ne.s32.totalorder %v7492_v7, 0  ;;  %v3696_v52 = vmul.u32 18, %v3695_v0  ;;  %v5624_v9 = vpop.f32.mrf.mxu0  ;;  %v2087_v61 = vpop.f32.mrf.mxu1  ;;  %vm4002_vm2 = vcmp.lt.s32.totalorder %v7492_v7, 0  ;;  %v3729_v44 = vmul.u32 18, %v3728_v60 }
 0x1c6   : > { %8865 = vst [vmem:[#allocation23_spill] sm:$0xff] %v7526_v35  ;;  %v7548_v4 = vmul.u32.u64.low 3817748708, %v7509_v20  ;;  %v7549_v34 = vmul.u32.u64.high 3817748708, %v7509_v20, %v7548_v4  ;;  %v7551_v35 = vadd.f32 %v5624_v9, %v2227_v23  ;;  %v2226_v0 = vadd.f32 %v2087_v61, %v7087_v6  ;;  %vm7614_vm6 = vmand %vm4002_vm2, %vm3966_vm0 }
 0x1c7   : > { %v3718_v63 = vmul.u32 18, %v3717_v54  ;;  %v3750_v1 = vshrl.u32 %v7486_v32, 4  ;;  %v2421_v60 = vpop.f32.mrf.mxu0  ;;  %v5541_v53 = vpop.f32.mrf.mxu1  ;;  %v7572_v6 = vmul.u32.u64.low 3817748708, %v7521_v29  ;;  %v7573_v9 = vmul.u32.u64.high 3817748708, %v7521_v29, %v7572_v6 }
 0x1c8   : > { %8870 = vst [vmem:[#allocation24_spill] sm:$0xff] %v7551_v35  ;;  %v7576_v61 = vmul.u32.u64.low 3817748708, %v7524_v17  ;;  %v7577_v4 = vmul.u32.u64.high 3817748708, %v7524_v17, %v7576_v61  ;;  %v7579_v54 = vadd.f32 %v2421_v60, %v2226_v0  ;;  %v2229_v32 = vadd.f32 %v5541_v53, %v7090_v62 }
 0x1c9   : > { %v4074_v46 = vadd.s32 18, %v7492_v7  ;;  %v3739_v6 = vshrl.u32 %v7503_v42, 4  ;;  %v5627_v14 = vpop.f32.mrf.mxu0  ;;  %v2097_v5 = vpop.f32.mrf.mxu1  ;;  %v7596_v0 = vsel %vm7533_vm15, %v7425_v51, %v7386_v56  ;;  %v7602_v62 = vsel %vm7542_vm1, %v7463_v18, %v7428_v49 }
 0x1ca   : > { %v7608_v53 = vsel %vm7558_vm3, %v7474_v40, %v7431_v30  ;;  %v7619_v56 = vsub.s32 %v7399_v28, %v3696_v52  ;;  %v7621_v51 = vadd.f32 %v5627_v14, %v2229_v32  ;;  %v2228_v49 = vadd.f32 %v2097_v5, %v7095_v16 }
 0x1cb   : > { %v7625_v18 = vsub.s32 %v7416_v13, %v3729_v44  ;;  %v3751_v30 = vmul.u32 18, %v3750_v1  ;;  %v2431_v40 = vpop.f32.mrf.mxu0  ;;  %v5544_v15 = vpop.f32.mrf.mxu1  ;;  %v7631_v48 = vsel %vm7567_vm4, %v7489_v41, %v7442_v58  ;;  %v7636_v28 = vsel %vm7586_vm5, %v4071_v57, %v7479_v36 }
 0x1cc   : > { %v7639_v14 = vsub.s32 %v7419_v11, %v3718_v63  ;;  %v3772_v16 = vshrl.u32 %v7518_v38, 4  ;;  %v7642_v13 = vadd.f32 %v2431_v40, %v2228_v49  ;;  %v2231_v5 = vadd.f32 %v5544_v15, %v7098_v2 }
 0x1cd   : > { %v7648_v1 = vsel %vm7614_vm6, %v4074_v46, %v7492_v7  ;;  %v3740_v58 = vmul.u32 18, %v3739_v6  ;;  %v5630_v41 = vpop.f32.mrf.mxu0  ;;  %v2107_v52 = vpop.f32.mrf.mxu1  ;;  %vm3965_vm7 = vcmp.ne.s32.totalorder %v7619_v56, 0  ;;  %vm4001_vm8 = vcmp.lt.s32.totalorder %v7619_v56, 0 }
 0x1ce   : > { %v7653_v11 = vadd.s32 18, %v7619_v56  ;;  %v3761_v63 = vshrl.u32 %v7549_v34, 4  ;;  %v7657_v36 = vadd.s32 184, %v7093_v59  ;;  %v7659_v2 = vadd.f32 %v5630_v41, %v2231_v5  ;;  %vm7739_vm3 = vmand %vm4001_vm8, %vm3965_vm7 }
 0x1cf   : > { %v2230_v46 = vadd.f32 %v2107_v52, %v7104_v24  ;;  %vm3968_vm9 = vcmp.ne.s32.totalorder %v7625_v18, 0  ;;  %vm4004_vm10 = vcmp.lt.s32.totalorder %v7625_v18, 0  ;;  %v7665_v38 = vadd.s32 18, %v7625_v18  ;;  %v2441_v57 = vpop.f32.mrf.mxu0  ;;  %v5547_v35 = vpop.f32.mrf.mxu1 }
 0x1d0   : > { %v7668_v7 = vsub.s32 %v7459_v55, %v3751_v30  ;;  %vm3967_vm11 = vcmp.ne.s32.totalorder %v7639_v14, 0  ;;  %vm4003_vm12 = vcmp.lt.s32.totalorder %v7639_v14, 0  ;;  %v7673_v45 = vadd.s32 18, %v7639_v14  ;;  %vm7751_vm4 = vmand %vm4004_vm10, %vm3968_vm9 }
 0x1d1   : > { %v3773_v24 = vmul.u32 18, %v3772_v16  ;;  %v3794_v44 = vshrl.u32 %v7573_v9, 4  ;;  %v3783_v34 = vshrl.u32 %v7577_v4, 4  ;;  %v7677_v60 = vadd.f32 %v2441_v57, %v2230_v46  ;;  %v5633_v32 = vpop.f32.mrf.mxu0  ;;  %v2117_v6 = vpop.f32.mrf.mxu1  ;;  %vm7768_vm7 = vmand %vm4003_vm12, %vm3967_vm11 }
 0x1d2   : > { %v2233_v23 = vadd.f32 %v5547_v35, %v7107_v31  ;;  %v7681_v55 = vsub.s32 %v7471_v3, %v3740_v58  ;;  %v7684_v61 = vadd.s32 176, %v7093_v59  ;;  %v3762_v42 = vmul.u32 18, %v3761_v63 }
 0x1d3   : > { %v7687_v49 = vmul.u32.u64.low 3817748708, %v7657_v36  ;;  %v7688_v30 = vmul.u32.u64.high 3817748708, %v7657_v36, %v7687_v49  ;;  %v7691_v9 = vadd.s32 200, %v7093_v59  ;;  %v2232_v31 = vadd.f32 %v2117_v6, %v7114_v22  ;;  %v2451_v3 = vpop.f32.mrf.mxu0  ;;  %v5550_v40 = vpop.f32.mrf.mxu1 }
 0x1d4   : > { %v7693_v4 = vadd.f32 %v5633_v32, %v2233_v23  ;;  %vm3970_vm13 = vcmp.ne.s32.totalorder %v7668_v7, 0  ;;  %vm4006_vm14 = vcmp.lt.s32.totalorder %v7668_v7, 0  ;;  %v7699_v15 = vadd.s32 18, %v7668_v7 }
 0x1d5   : > { %v7702_v16 = vsub.s32 %v7496_v39, %v3773_v24  ;;  %v3795_v5 = vmul.u32 18, %v3794_v44  ;;  %v3784_v58 = vmul.u32 18, %v3783_v34  ;;  %v7704_v41 = vadd.f32 %v2451_v3, %v2232_v31  ;;  %v5636_v46 = vpop.f32.mrf.mxu0  ;;  %v2127_v57 = vpop.f32.mrf.mxu1  ;;  %vm7780_vm8 = vmand %vm4006_vm14, %vm3970_vm13 }
 0x1d6   : > { %v2235_v52 = vadd.f32 %v5550_v40, %v7120_v50  ;;  %v7708_v22 = vmul.u32.u64.low 3817748708, %v7684_v61  ;;  %v7709_v63 = vmul.u32.u64.high 3817748708, %v7684_v61, %v7708_v22  ;;  %vm3969_vm15 = vcmp.ne.s32.totalorder %v7681_v55, 0 }
 0x1d7   : > { %v7713_v35 = vsub.s32 %v7509_v20, %v3762_v42  ;;  %v7716_v39 = vmul.u32.u64.low 3817748708, %v7691_v9  ;;  %v7717_v24 = vmul.u32.u64.high 3817748708, %v7691_v9, %v7716_v39  ;;  %v2234_v34 = vadd.f32 %v2127_v57, %v7127_v8  ;;  %v2461_v23 = vpop.f32.mrf.mxu0  ;;  %v5553_v32 = vpop.f32.mrf.mxu1 }
 0x1d8   : > { %v7719_v44 = vadd.f32 %v5636_v46, %v2235_v52  ;;  %vm4005_vm0 = vcmp.lt.s32.totalorder %v7681_v55, 0  ;;  %v7724_v50 = vadd.s32 192, %v7093_v59  ;;  %v4077_v6 = vadd.s32 18, %v7681_v55 }
 0x1d9   : > { %vm3972_vm1 = vcmp.ne.s32.totalorder %v7702_v16, 0  ;;  %vm4008_vm2 = vcmp.lt.s32.totalorder %v7702_v16, 0  ;;  %v7730_v20 = vsub.s32 %v7521_v29, %v3795_v5  ;;  %v7732_v42 = vadd.f32 %v2461_v23, %v2234_v34  ;;  %v5639_v40 = vpop.f32.mrf.mxu0  ;;  %v2137_v29 = vpop.f32.mrf.mxu1  ;;  %vm7795_vm11 = vmand %vm4005_vm0, %vm3969_vm15 }
 0x1da   : > { %v2237_v8 = vadd.f32 %v5553_v32, %v7137_v27  ;;  %v4080_v31 = vadd.s32 18, %v7702_v16  ;;  %v7745_v3 = vsub.s32 %v7524_v17, %v3784_v58  ;;  %vm3971_vm5 = vcmp.ne.s32.totalorder %v7713_v35, 0  ;;  %vm7805_vm13 = vmand %vm4008_vm2, %vm3972_vm1 }
 0x1db   : > { %8879 = vst [vmem:[#allocation25_spill] sm:$0xff] %v7732_v42  ;;  %vm4007_vm6 = vcmp.lt.s32.totalorder %v7713_v35, 0  ;;  %v3816_v5 = vshrl.u32 %v7688_v30, 4  ;;  %v7759_v52 = vadd.s32 216, %v7093_v59  ;;  %v2236_v58 = vadd.f32 %v2137_v29, %v7143_v19  ;;  %v2471_v30 = vpop.f32.mrf.mxu0  ;;  %v5556_v39 = vpop.f32.mrf.mxu1 }
 0x1dc   : > { %v7761_v17 = vadd.f32 %v5639_v40, %v2237_v8  ;;  %v7773_v46 = vmul.u32.u64.low 3817748708, %v7724_v50  ;;  %v7774_v57 = vmul.u32.u64.high 3817748708, %v7724_v50, %v7773_v46  ;;  %v4079_v34 = vadd.s32 18, %v7713_v35  ;;  %vm7827_vm15 = vmand %vm4007_vm6, %vm3971_vm5 }
 0x1dd   : > { %vm3974_vm9 = vcmp.ne.s32.totalorder %v7730_v20, 0  ;;  %vm4010_vm10 = vcmp.lt.s32.totalorder %v7730_v20, 0  ;;  %v3805_v23 = vshrl.u32 %v7709_v63, 4  ;;  %v7788_v32 = vadd.f32 %v2471_v30, %v2236_v58  ;;  %v5642_v46 = vpop.f32.mrf.mxu0 }
 0x1de   : > { %8884 = vst [vmem:[#allocation26_spill] sm:$0xff] %v7761_v17  ;;  %v2239_v8 = vadd.f32 %v5556_v39, %v7157_v33  ;;  %vm3973_vm12 = vcmp.ne.s32.totalorder %v7745_v3, 0  ;;  %v3838_v29 = vshrl.u32 %v7717_v24, 4  ;;  %v2147_v17 = vpop.f32.mrf.mxu1  ;;  %vm4009_vm14 = vcmp.lt.s32.totalorder %v7745_v3, 0  ;;  %v8894_v24 = vld [vmem:[#allocation2_spill] sm:$0xff]  ;;  %vm7848_vm0 = vmand %vm4010_vm10, %vm3974_vm9 }
 0x1df   : > { %8889 = vst [vmem:[#allocation27_spill] sm:$0xff] %v7788_v32  ;;  %v3817_v63 = vmul.u32 18, %v3816_v5  ;;  %v7811_v58 = vmul.u32.u64.low 3817748708, %v7759_v52  ;;  %v7812_v30 = vmul.u32.u64.high 3817748708, %v7759_v52, %v7811_v58  ;;  %v2238_v32 = vadd.f32 %v2147_v17, %v8894_v24  ;;  %vm4045_vm1 = vmand %vm4009_vm14, %vm3973_vm12 }
 0x1e0   : > { %v7814_v39 = vadd.f32 %v5642_v46, %v2239_v8  ;;  %v7821_v42 = vsel %vm7739_vm3, %v7653_v11, %v7619_v56  ;;  %v4082_v58 = vadd.s32 18, %v7730_v20  ;;  %v2481_v8 = vpop.f32.mrf.mxu0  ;;  %v5559_v46 = vpop.f32.mrf.mxu1  ;;  %v7836_v17 = vsel %vm7751_vm4, %v7665_v38, %v7625_v18 }
 0x1e1   : > { %v7842_v56 = vsel %vm7768_vm7, %v7673_v45, %v7639_v14  ;;  %v4081_v49 = vadd.s32 18, %v7745_v3  ;;  %v3806_v24 = vmul.u32 18, %v3805_v23  ;;  %v7853_v27 = vadd.f32 %v2481_v8, %v2238_v32 }
 0x1e2   : > { %v2241_v18 = vadd.f32 %v5559_v46, %v7177_v21  ;;  %v7860_v14 = vsel %vm7780_vm8, %v7699_v15, %v7668_v7  ;;  %v3839_v38 = vmul.u32 18, %v3838_v29  ;;  %v5645_v45 = vpop.f32.mrf.mxu0  ;;  %v2157_v22 = vpop.f32.mrf.mxu1  ;;  %v7869_v23 = vsel %vm7795_vm11, %v4077_v6, %v7681_v55 }
 0x1e3   : > { %v7874_v21 = vsel %vm7805_vm13, %v4080_v31, %v7702_v16  ;;  %v7879_v7 = vsel %vm7827_vm15, %v4079_v34, %v7713_v35  ;;  %v7882_v15 = vsub.s32 %v7657_v36, %v3817_v63  ;;  %v2240_v32 = vadd.f32 %v2157_v22, %v7180_v25 }
 0x1e4   : > { %v7884_v19 = vadd.f32 %v5645_v45, %v2241_v18  ;;  %v7890_v55 = vsel %vm7848_vm0, %v4082_v58, %v7730_v20  ;;  %v3827_v16 = vshrl.u32 %v7774_v57, 4  ;;  %v2491_v6 = vpop.f32.mrf.mxu0  ;;  %v5562_v31 = vpop.f32.mrf.mxu1  ;;  %v7894_v40 = vsel %vm4045_vm1, %v4081_v49, %v7745_v3 }
 0x1e5   : > { %v7897_v35 = vsub.s32 %v7684_v61, %v3806_v24  ;;  %v7900_v36 = vadd.s32 208, %v7093_v59  ;;  %v7903_v25 = vadd.s32 232, %v7093_v59  ;;  %v7905_v34 = vadd.f32 %v2491_v6, %v2240_v32 }
 0x1e6   : > { %8899 = vst [vmem:[#allocation2_spill] sm:$0xff] %v7884_v19  ;;  %v2243_v20 = vadd.f32 %v5562_v31, %v7187_v43  ;;  %v7909_v57 = vsub.s32 %v7691_v9, %v3839_v38  ;;  %v7912_v29 = vadd.s32 224, %v7093_v59  ;;  %v5648_v3 = vpop.f32.mrf.mxu0  ;;  %v2167_v33 = vpop.f32.mrf.mxu1  ;;  %vm3976_vm2 = vcmp.ne.s32.totalorder %v7882_v15, 0  ;;  %v8905_v31 = vld [vmem:[#allocation4_spill] sm:$0xff] }
 0x1e7   : > { %8900 = vst [vmem:[#allocation28_spill] sm:$0xff] %v7905_v34  ;;  %vm4012_vm3 = vcmp.lt.s32.totalorder %v7882_v15, 0  ;;  %v4084_v61 = vadd.s32 18, %v7882_v15  ;;  %v3860_v63 = vshrl.u32 %v7812_v30, 4  ;;  %v2242_v43 = vadd.f32 %v2167_v33, %v7197_v26  ;;  %v8903_v30 = vld [vmem:[#allocation3_spill] sm:$0xff] }
 0x1e8   : > { %v7918_v5 = vadd.f32 %v5648_v3, %v2243_v20  ;;  %v3828_v58 = vmul.u32 18, %v3827_v16  ;;  %v7922_v9 = vadd.s32 248, %v7093_v59  ;;  %v2501_v8 = vpop.f32.mrf.mxu0  ;;  %v5565_v46 = vpop.f32.mrf.mxu1  ;;  %vm3975_vm4 = vcmp.ne.s32.totalorder %v7897_v35, 0  ;;  %vm7966_vm8 = vmand %vm4012_vm3, %vm3976_vm2 }
 0x1e9   : > { %vm4011_vm5 = vcmp.lt.s32.totalorder %v7897_v35, 0  ;;  %v7927_v11 = vmul.u32.u64.low 3817748708, %v7900_v36  ;;  %v7928_v49 = vmul.u32.u64.high 3817748708, %v7900_v36, %v7927_v11  ;;  %v7930_v24 = vadd.f32 %v2501_v8, %v2242_v43 }
 0x1ea   : > { %8901 = vst [vmem:[#allocation29_spill] sm:$0xff] %v7918_v5  ;;  %v2245_v18 = vadd.f32 %v5565_v46, %v8903_v30  ;;  %v4083_v26 = vadd.s32 18, %v7897_v35  ;;  %vm3978_vm6 = vcmp.ne.s32.totalorder %v7909_v57, 0  ;;  %v5651_v38 = vpop.f32.mrf.mxu0  ;;  %v2177_v45 = vpop.f32.mrf.mxu1  ;;  %vm4014_vm7 = vcmp.lt.s32.totalorder %v7909_v57, 0  ;;  %vm7986_vm9 = vmand %vm4011_vm5, %vm3975_vm4 }
 0x1eb   : > { %8902 = vst [vmem:[#allocation30_spill] sm:$0xff] %v7930_v24  ;;  %v7937_v22 = vmul.u32.u64.low 3817748708, %v7903_v25  ;;  %v7938_v32 = vmul.u32.u64.high 3817748708, %v7903_v25, %v7937_v22  ;;  %v7941_v16 = vadd.s32 240, %v7093_v59  ;;  %v2244_v20 = vadd.f32 %v2177_v45, %v8905_v31  ;;  %vm8003_vm12 = vmand %vm4014_vm7, %vm3978_vm6 }
 0x1ec   : > { %v7943_v6 = vadd.f32 %v5651_v38, %v2245_v18  ;;  %v3829_v3 = vsub.s32 %v7724_v50, %v3828_v58  ;;  %v3861_v33 = vmul.u32 18, %v3860_v63  ;;  %v2511_v43 = vpop.f32.mrf.mxu0  ;;  %v5568_v8 = vpop.f32.mrf.mxu1  ;;  %v3849_v46 = vshrl.u32 %v7928_v49, 4  ;;  %v8907_v18 = vld [vmem:[#allocation5_spill] sm:$0xff] }
 0x1ed   : > { %v7949_v11 = vmul.u32.u64.low 3817748708, %v7912_v29  ;;  %v7950_v30 = vmul.u32.u64.high 3817748708, %v7912_v29, %v7949_v11  ;;  %v7953_v22 = vadd.s32 264, %v7093_v59  ;;  %v7955_v24 = vadd.f32 %v2511_v43, %v2244_v20 }
 0x1ee   : > { %8904 = vst [vmem:[#allocation3_spill] sm:$0xff] %v7943_v6  ;;  %v2247_v38 = vadd.f32 %v5568_v8, %v8907_v18  ;;  %v7959_v45 = vmul.u32.u64.low 3817748708, %v7922_v9  ;;  %v7960_v31 = vmul.u32.u64.high 3817748708, %v7922_v9, %v7959_v45  ;;  %v5654_v50 = vpop.f32.mrf.mxu0  ;;  %v2187_v63 = vpop.f32.mrf.mxu1  ;;  %v3850_v49 = vmul.u32 18, %v3849_v46  ;;  %v8911_v18 = vld [vmem:[#allocation6_spill] sm:$0xff] }
 0x1ef   : > { %8906 = vst [vmem:[#allocation4_spill] sm:$0xff] %v7955_v24  ;;  %v3882_v20 = vshrl.u32 %v7938_v32, 4  ;;  %v7972_v43 = vmul.u32.u64.low 3817748708, %v7941_v16  ;;  %v7973_v8 = vmul.u32.u64.high 3817748708, %v7941_v16, %v7972_v43  ;;  %v2246_v45 = vadd.f32 %v2187_v63, %v8911_v18  ;;  %v8915_v63 = vld [vmem:[#allocation7_spill] sm:$0xff] }
 0x1f0   : > { %v7975_v11 = vadd.f32 %v5654_v50, %v2247_v38  ;;  %v4086_v24 = vadd.s32 18, %v7909_v57  ;;  %v7980_v6 = vsub.s32 %v7759_v52, %v3861_v33  ;;  %v2521_v5 = vpop.f32.mrf.mxu0  ;;  %v5571_v34 = vpop.f32.mrf.mxu1  ;;  %vm3977_vm10 = vcmp.ne.s32.totalorder %v3829_v3, 0 }
 0x1f1   : > { %vm4013_vm11 = vcmp.lt.s32.totalorder %v3829_v3, 0  ;;  %v3883_v46 = vmul.u32 18, %v3882_v20  ;;  %v3871_v38 = vshrl.u32 %v7950_v30, 4  ;;  %v7991_v50 = vadd.f32 %v2521_v5, %v2246_v45  ;;  %v8919_v45 = vld [vmem:[#allocation8_spill] sm:$0xff] }
 0x1f2   : > { %8910 = vst [vmem:[#allocation5_spill] sm:$0xff] %v7975_v11  ;;  %v2249_v52 = vadd.f32 %v5571_v34, %v8915_v63  ;;  %v7997_v33 = vsel %vm7966_vm8, %v4084_v61, %v7882_v15  ;;  %v3904_v20 = vshrl.u32 %v7960_v31, 4  ;;  %v5657_v30 = vpop.f32.mrf.mxu0  ;;  %v2197_v5 = vpop.f32.mrf.mxu1  ;;  %v4085_v18 = vadd.s32 18, %v3829_v3  ;;  %vm4049_vm13 = vmand %vm4013_vm11, %vm3977_vm10 }
 0x1f3   : > { %8914 = vst [vmem:[#allocation6_spill] sm:$0xff] %v7991_v50  ;;  %v8009_v34 = vsub.s32 %v7900_v36, %v3850_v49  ;;  %v8012_v58 = vmul.u32.u64.low 3817748708, %v7953_v22  ;;  %v8013_v15 = vmul.u32.u64.high 3817748708, %v7953_v22, %v8012_v58  ;;  %v2248_v63 = vadd.f32 %v2197_v5, %v8919_v45  ;;  %v8929_v45 = vld [vmem:[#allocation10_spill] sm:$0xff] }
 0x1f4   : > { %v8015_v61 = vadd.f32 %v5657_v30, %v2249_v52  ;;  %v3872_v50 = vmul.u32 18, %v3871_v38  ;;  %v3905_v11 = vmul.u32 18, %v3904_v20  ;;  %v2531_v31 = vpop.f32.mrf.mxu0  ;;  %v5574_v19 = vpop.f32.mrf.mxu1  ;;  %v8023_v36 = vsel %vm7986_vm9, %v4083_v26, %v7897_v35  ;;  %v8922_v20 = vld [vmem:[#allocation9_spill] sm:$0xff] }
 0x1f5   : > { %v8028_v49 = vsel %vm8003_vm12, %v4086_v24, %v7909_v57  ;;  %vm3980_vm14 = vcmp.ne.s32.totalorder %v7980_v6, 0  ;;  %v8032_v52 = vsub.s32 %v7903_v25, %v3883_v46  ;;  %v8034_v38 = vadd.f32 %v2531_v31, %v2248_v63 }
 0x1f6   : > { %8918 = vst [vmem:[#allocation7_spill] sm:$0xff] %v8015_v61  ;;  %8920 = vst [vmem:[#allocation8_spill] sm:$0xff] %v8028_v49  ;;  %v2251_v30 = vadd.f32 %v5574_v19, %v8922_v20  ;;  %vm4016_vm15 = vcmp.lt.s32.totalorder %v7980_v6, 0  ;;  %v4088_v35 = vadd.s32 18, %v7980_v6  ;;  %v5660_v26 = vpop.f32.mrf.mxu0  ;;  %v2207_v32 = vpop.f32.mrf.mxu1  ;;  %v8039_v5 = vsel %vm4049_vm13, %v4085_v18, %v3829_v3  ;;  %v8078_v18 = vld [vmem:[%s8814_s2] ss:$0 sm:$0xff] }
 0x1f7   : > { %8921 = vst [vmem:[#allocation31_spill] sm:$0xff] %v8034_v38  ;;  %8923 = vst [vmem:[#allocation9_spill] sm:$0xff] %v8039_v5  ;;  %v8042_v57 = vsub.s32 %v7912_v29, %v3872_v50  ;;  %v8045_v24 = vsub.s32 %v7922_v9, %v3905_v11  ;;  %v3893_v25 = vshrl.u32 %v7973_v8, 4  ;;  %v2250_v19 = vadd.f32 %v2207_v32, %v7335_v12  ;;  %v3341_v61 = vld [vmem:[%s8098_s12 + $0x8] sm:$0xff] }
 0x1f8   : > { %v8048_v46 = vadd.f32 %v5660_v26, %v2251_v30  ;;  %vm3979_vm0 = vcmp.ne.s32.totalorder %v8009_v34, 0  ;;  %vm4015_vm1 = vcmp.lt.s32.totalorder %v8009_v34, 0  ;;  %v2541_v43 = vpop.f32.mrf.mxu0  ;;  %v5695_v3 = vpop.f32.mrf.mxu1  ;;  %vm4134_vm2 = vcmp.ge.s32.totalorder %v7342_v47, 1  ;;  %vm8060_vm4 = vmand %vm4016_vm15, %vm3980_vm14 }
 0x1f9   : > { %vm4170_vm3 = vcmp.le.s32.totalorder %v7342_v47, 16  ;;  %v4087_v12 = vadd.s32 18, %v8009_v34  ;;  %vm3982_vm5 = vcmp.ne.s32.totalorder %v8032_v52, 0  ;;  %vm4018_vm6 = vcmp.lt.s32.totalorder %v8032_v52, 0  ;;  %vm8086_vm11 = vmand %vm4015_vm1, %vm3979_vm0 }
 0x1fa   : > { %8924 = vst [vmem:[#allocation32_spill] sm:$0xff] %v8048_v46  ;;  %v8068_v9 = vadd.s32 256, %v7093_v59  ;;  %v8070_v8 = vadd.f32 %v2541_v43, %v2250_v19  ;;  %v2885_v11 = vadd.f32 %v5695_v3, %v7374_v37  ;;  %vm3981_vm7 = vcmp.ne.s32.totalorder %v8042_v57, 0  ;;  %v5781_v50 = vpop.f32.mrf.mxu0  ;;  %v2705_v58 = vpop.f32.mrf.mxu1  ;;  %vm8110_vm14 = vmand %vm4018_vm6, %vm3982_vm5  ;;  %v8948_v46 = vld [vmem:[#allocation18_spill] sm:$0xff] }
 0x1fb   : > { %vm4017_vm8 = vcmp.lt.s32.totalorder %v8042_v57, 0  ;;  %vm4133_vm9 = vcmp.ge.s32.totalorder %v8929_v45, 1  ;;  %vm4169_vm10 = vcmp.le.s32.totalorder %v8929_v45, 16  ;;  %vm3984_vm12 = vcmp.ne.s32.totalorder %v8045_v24, 0 }
 0x1fc   : > { %8927 = vst [vmem:[#allocation33_spill] sm:$0xff] %v8068_v9  ;;  %8928 = vst [vmem:[#allocation34_spill] sm:$0xff] %v8070_v8  ;;  %vm4020_vm13 = vcmp.lt.s32.totalorder %v8045_v24, 0  ;;  %v3894_v63 = vmul.u32 18, %v3893_v25  ;;  %v3926_v31 = vshrl.u32 %v8013_v15, 4  ;;  %v3219_v20 = vadd.f32 %v5781_v50, %v2885_v11  ;;  %v3039_v25 = vpop.f32.mrf.mxu0 }
 0x1fd   : > { %v2884_v30 = vadd.f32 %v2705_v58, %v7401_v10  ;;  %v8104_v26 = vsel %vm8060_vm4, %v4088_v35, %v7980_v6  ;;  %v8115_v32 = vadd.s32 280, %v7093_v59  ;;  %v8120_v10 = vld [vmem:[%s8815_s3] ss:$0 sm:$0xff]  ;;  %v5698_v6 = vpop.f32.mrf.mxu1  ;;  %v8936_v35 = vld [vmem:[#allocation11_spill] sm:$0xff]  ;;  %v4090_v19 = vadd.s32 18, %v8032_v52  ;;  %vm8129_vm1 = vmand %vm4017_vm8, %vm3981_vm7 }
 0x1fe   : > { %8932 = vst [vmem:[#allocation10_spill] sm:$0xff] %v8104_v26  ;;  %vm4136_vm15 = vcmp.ge.s32.totalorder %v8936_v35, 1  ;;  %vm4172_vm0 = vcmp.le.s32.totalorder %v8936_v35, 16  ;;  %v4089_v3 = vadd.s32 18, %v8042_v57  ;;  %v4092_v29 = vadd.s32 18, %v8045_v24  ;;  %vm8142_vm4 = vmand %vm4020_vm13, %vm3984_vm12  ;;  %v5784_v26 = vpop.f32.mrf.mxu0 }
 0x1ff   : > { %8935 = vst [vmem:[#allocation35_spill] sm:$0xff] %v8115_v32  ;;  %v3895_v11 = vsub.s32 %v7941_v16, %v3894_v63  ;;  %v3262_v50 = vmul.f32 %v8078_v18, %v3219_v20  ;;  %v3218_v58 = vadd.f32 %v3039_v25, %v2884_v30  ;;  %v8939_v32 = vld [vmem:[#allocation16_spill] sm:$0xff]  ;;  %v8147_v38 = vadd.s32 272, %v7093_v59  ;;  %v2715_v16 = vpop.f32.mrf.mxu1 }
 0x200   : > { %v2887_v8 = vadd.f32 %v5698_v6, %v8939_v32  ;;  %v8153_v63 = vsel %vm8086_vm11, %v4087_v12, %v8009_v34  ;;  %v3927_v20 = vmul.u32 18, %v3926_v31  ;;  %v8943_v6 = vld [vmem:[#allocation17_spill] sm:$0xff]  ;;  %v8944_v59 = vld [vmem:[#allocation12_spill] sm:$0xff]  ;;  %v3049_v49 = vpop.f32.mrf.mxu0  ;;  %v8164_v34 = vsel %vm8110_vm14, %v4090_v19, %v8032_v52 }
 0x201   : > { %8942 = vst [vmem:[#allocation11_spill] sm:$0xff] %v8147_v38  ;;  %vm3983_vm5 = vcmp.ne.s32.totalorder %v3895_v11, 0  ;;  %vm4019_vm6 = vcmp.lt.s32.totalorder %v3895_v11, 0  ;;  %v3305_v30 = vadd.f32 %v8120_v10, %v3262_v50  ;;  %v3261_v32 = vmul.f32 %v8078_v18, %v3218_v58  ;;  %v3340_v38 = vld [vmem:[%s8098_s12] sm:$0xff]  ;;  %v5701_v37 = vpop.f32.mrf.mxu1  ;;  %v8945_v52 = vld [vmem:[#allocation13_spill] sm:$0xff] }
 0x202   : > { %v3221_v25 = vadd.f32 %v5784_v26, %v2887_v8  ;;  %v2886_v5 = vadd.f32 %v2715_v16, %v8943_v6  ;;  %vm4135_vm7 = vcmp.ge.s32.totalorder %v8944_v59, 1  ;;  %vm4171_vm8 = vcmp.le.s32.totalorder %v8944_v59, 16  ;;  %vm8182_vm13 = vmand %vm4019_vm6, %vm3983_vm5 }
 0x203   : > { %v8169_v12 = vsel %vm8129_vm1, %v4089_v3, %v8042_v57  ;;  %v8174_v8 = vsel %vm8142_vm4, %v4092_v29, %v8045_v24  ;;  %v4091_v31 = vadd.s32 18, %v3895_v11  ;;  %v3377_v26 = vadd.f32 %v3341_v61, %v3305_v30  ;;  %v3343_v24 = vld [vmem:[%s8098_s12 + $0x18] sm:$0xff]  ;;  %v5787_v61 = vpop.f32.mrf.mxu0  ;;  %v2725_v43 = vpop.f32.mrf.mxu1  ;;  %vm8200_vm1 = vmand %vm4134_vm2, %vm4170_vm3 }
 0x204   : > { %v3304_v50 = vadd.f32 %v8120_v10, %v3261_v32  ;;  %v3264_v58 = vmul.f32 %v8078_v18, %v3221_v25  ;;  %v3220_v15 = vadd.f32 %v3049_v49, %v2886_v5  ;;  %vm4138_vm11 = vcmp.ge.s32.totalorder %v8945_v52, 1  ;;  %v8952_v25 = vld [vmem:[#allocation19_spill] sm:$0xff]  ;;  %vm8224_vm5 = vmand %vm4133_vm9, %vm4169_vm10 }
 0x205   : > { %vm4174_vm12 = vcmp.le.s32.totalorder %v8945_v52, 16  ;;  %v2889_v19 = vadd.f32 %v5701_v37, %v8948_v46  ;;  %v8189_v3 = vsub.s32 %v7953_v22, %v3927_v20  ;;  %vm3413_vm14 = vcmp.gt.f32.partialorder %v3377_v26, 0.0  ;;  %v3059_v47 = vpop.f32.mrf.mxu0  ;;  %v8953_v37 = vld [vmem:[#allocation14_spill] sm:$0xff] }
 0x206   : > { %v8192_v49 = vmul.u32.u64.low 3817748708, %v8068_v9  ;;  %v8193_v5 = vmul.u32.u64.high 3817748708, %v8068_v9, %v8192_v49  ;;  %v3449_v29 = vmul.f32 0.02, %v3377_v26  ;;  %v3376_v30 = vadd.f32 %v3340_v38, %v3304_v50  ;;  %v5704_v38 = vpop.f32.mrf.mxu1  ;;  %v8960_v9 = vld [vmem:[#allocation21_spill] sm:$0xff] }
 0x207   : > { %v3307_v22 = vadd.f32 %v8120_v10, %v3264_v58  ;;  %v3263_v20 = vmul.f32 %v8078_v18, %v3220_v15  ;;  %v3223_v32 = vadd.f32 %v5787_v61, %v2889_v19  ;;  %v2888_v6 = vadd.f32 %v2725_v43, %v8952_v25  ;;  %v3342_v61 = vld [vmem:[%s8098_s12 + $0x10] sm:$0xff]  ;;  %v5790_v43 = vpop.f32.mrf.mxu0  ;;  %v8956_v49 = vld [vmem:[#allocation15_spill] sm:$0xff] }
 0x208   : > { %8949 = vst [vmem:[#allocation16_spill] sm:$0xff] %v8193_v5  ;;  %vm4137_vm2 = vcmp.ge.s32.totalorder %v8953_v37, 1  ;;  %vm4173_vm3 = vcmp.le.s32.totalorder %v8953_v37, 16  ;;  %v8218_v50 = vsel %vm8182_vm13, %v4091_v31, %v3895_v11  ;;  %v3485_v58 = vsel %vm3413_vm14, %v3377_v26, %v3449_v29  ;;  %v2735_v45 = vpop.f32.mrf.mxu1  ;;  %vm8240_vm13 = vmand %vm4136_vm15, %vm4172_vm0 }
 0x209   : > { %vm3412_vm4 = vcmp.gt.f32.partialorder %v3376_v30, 0.0  ;;  %v3448_v46 = vmul.f32 0.02, %v3376_v30  ;;  %v3379_v19 = vadd.f32 %v3343_v24, %v3307_v22  ;;  %v4242_v57 = vsel %vm8200_vm1, %v3485_v58, 0.0  ;;  %v3345_v22 = vld [vmem:[%s8098_s12 + $0x28] sm:$0xff]  ;;  %v3069_v58 = vpop.f32.mrf.mxu0  ;;  %vm8261_vm1 = vmand %vm4135_vm7, %vm4171_vm8 }
 0x20a   : > { %v3306_v11 = vadd.f32 %v8120_v10, %v3263_v20  ;;  %v3266_v31 = vmul.f32 %v8078_v18, %v3223_v32  ;;  %v3222_v26 = vadd.f32 %v3059_v47, %v2888_v6  ;;  %vm4140_vm6 = vcmp.ge.s32.totalorder %v8956_v49, 1  ;;  %4278 = vst [vmem:[%s8210_s17 + $0x8] sm:$0xff] %v4242_v57  ;;  %v8959_v20 = vld [vmem:[#allocation20_spill] sm:$0xff]  ;;  %vm8275_vm8 = vmand %vm4138_vm11, %vm4174_vm12 }
 0x20b   : > { %vm4176_vm9 = vcmp.le.s32.totalorder %v8956_v49, 16  ;;  %v3484_v29 = vsel %vm3412_vm4, %v3376_v30, %v3448_v46  ;;  %vm3415_vm10 = vcmp.gt.f32.partialorder %v3379_v19, 0.0  ;;  %v3451_v24 = vmul.f32 0.02, %v3379_v19  ;;  %v5707_v46 = vpop.f32.mrf.mxu1  ;;  %vm8296_vm12 = vmand %vm4137_vm2, %vm4173_vm3 }
 0x20c   : > { %v2891_v32 = vadd.f32 %v5704_v38, %v8959_v20  ;;  %v4241_v25 = vsel %vm8224_vm5, %v3484_v29, 0.0  ;;  %v3378_v6 = vadd.f32 %v3342_v61, %v3306_v11  ;;  %v3309_v47 = vadd.f32 %v8120_v10, %v3266_v31  ;;  %v8961_v38 = vld [vmem:[#allocation22_spill] sm:$0xff]  ;;  %vm8312_vm3 = vmand %vm4140_vm6, %vm4176_vm9 }
 0x20d   : > { %v3265_v30 = vmul.f32 %v8078_v18, %v3222_v26  ;;  %4277 = vst [vmem:[%s8210_s17] sm:$0xff] %v4241_v25  ;;  %v3487_v35 = vsel %vm3415_vm10, %v3379_v19, %v3451_v24  ;;  %v2890_v5 = vadd.f32 %v2735_v45, %v8960_v9  ;;  %vm4139_vm15 = vcmp.ge.s32.totalorder %v7596_v0, 1  ;;  %v3344_v31 = vld [vmem:[%s8098_s12 + $0x20] sm:$0xff]  ;;  %v5793_v26 = vpop.f32.mrf.mxu0  ;;  %v8966_v25 = vld [vmem:[#allocation23_spill] sm:$0xff] }
 0x20e   : > { %v3225_v57 = vadd.f32 %v5790_v43, %v2891_v32  ;;  %vm4175_vm0 = vcmp.le.s32.totalorder %v7596_v0, 16  ;;  %v2893_v15 = vadd.f32 %v5707_v46, %v8961_v38  ;;  %v4244_v61 = vsel %vm8240_vm13, %v3487_v35, 0.0  ;;  %v2745_v43 = vpop.f32.mrf.mxu1  ;;  %v3347_v32 = vld [vmem:[%s8098_s12 + $0x38] sm:$0xff] }
 0x20f   : > { %vm3414_vm14 = vcmp.gt.f32.partialorder %v3378_v6, 0.0  ;;  %v3450_v11 = vmul.f32 0.02, %v3378_v6  ;;  %v3381_v9 = vadd.f32 %v3345_v22, %v3309_v47  ;;  %vm4142_vm4 = vcmp.ge.s32.totalorder %v7602_v62, 1  ;;  %4280 = vst [vmem:[%s8210_s17 + $0x18] sm:$0xff] %v4244_v61  ;;  %vm8332_vm9 = vmand %vm4139_vm15, %vm4175_vm0 }
 0x210   : > { %vm4178_vm5 = vcmp.le.s32.totalorder %v7602_v62, 16  ;;  %v3308_v45 = vadd.f32 %v8120_v10, %v3265_v30  ;;  %v3268_v29 = vmul.f32 %v8078_v18, %v3225_v57  ;;  %v3224_v24 = vadd.f32 %v3069_v58, %v2890_v5  ;;  %v3079_v30 = vpop.f32.mrf.mxu0  ;;  %v5710_v5 = vpop.f32.mrf.mxu1 }
 0x211   : > { %v3227_v59 = vadd.f32 %v5793_v26, %v2893_v15  ;;  %v3486_v16 = vsel %vm3414_vm14, %v3378_v6, %v3450_v11  ;;  %vm3417_vm7 = vcmp.gt.f32.partialorder %v3381_v9, 0.0  ;;  %v3453_v20 = vmul.f32 0.02, %v3381_v9  ;;  %v8967_v15 = vld [vmem:[#allocation24_spill] sm:$0xff] }
 0x212   : > { %v2892_v47 = vadd.f32 %v2745_v43, %v8966_v25  ;;  %vm4141_vm10 = vcmp.ge.s32.totalorder %v7608_v53, 1  ;;  %vm4177_vm13 = vcmp.le.s32.totalorder %v7608_v53, 16  ;;  %v4243_v6 = vsel %vm8261_vm1, %v3486_v16, 0.0  ;;  %v5796_v11 = vpop.f32.mrf.mxu0  ;;  %v2755_v26 = vpop.f32.mrf.mxu1 }
 0x213   : > { %v3380_v58 = vadd.f32 %v3344_v31, %v3308_v45  ;;  %v3311_v52 = vadd.f32 %v8120_v10, %v3268_v29  ;;  %v3267_v46 = vmul.f32 %v8078_v18, %v3224_v24  ;;  %4279 = vst [vmem:[%s8210_s17 + $0x10] sm:$0xff] %v4243_v6  ;;  %v3489_v35 = vsel %vm3417_vm7, %v3381_v9, %v3453_v20  ;;  %v3346_v45 = vld [vmem:[%s8098_s12 + $0x30] sm:$0xff]  ;;  %v3349_v29 = vld [vmem:[%s8098_s12 + $0x48] sm:$0xff] }
 0x214   : > { %v3270_v57 = vmul.f32 %v8078_v18, %v3227_v59  ;;  %v3226_v38 = vadd.f32 %v3079_v30, %v2892_v47  ;;  %v2895_v61 = vadd.f32 %v5710_v5, %v8967_v15  ;;  %v4246_v19 = vsel %vm8275_vm8, %v3489_v35, 0.0  ;;  %v3089_v20 = vpop.f32.mrf.mxu0  ;;  %v5713_v22 = vpop.f32.mrf.mxu1  ;;  %v3350_v47 = vld [vmem:[%s8098_s12 + $0x50] sm:$0xff] }
 0x215   : > { %vm3416_vm11 = vcmp.gt.f32.partialorder %v3380_v58, 0.0  ;;  %v3452_v31 = vmul.f32 0.02, %v3380_v58  ;;  %v3383_v9 = vadd.f32 %v3347_v32, %v3311_v52  ;;  %vm4144_vm14 = vcmp.ge.s32.totalorder %v7631_v48, 1  ;;  %4282 = vst [vmem:[%s8210_s17 + $0x28] sm:$0xff] %v4246_v19 }
 0x216   : > { %vm4180_vm1 = vcmp.le.s32.totalorder %v7631_v48, 16  ;;  %v3310_v24 = vadd.f32 %v8120_v10, %v3267_v46  ;;  %v3313_v59 = vadd.f32 %v8120_v10, %v3270_v57  ;;  %v3269_v16 = vmul.f32 %v8078_v18, %v3226_v38  ;;  %v3348_v46 = vld [vmem:[%s8098_s12 + $0x40] sm:$0xff]  ;;  %v5799_v35 = vpop.f32.mrf.mxu0  ;;  %v2765_v49 = vpop.f32.mrf.mxu1 }
 0x217   : > { %v3229_v37 = vadd.f32 %v5796_v11, %v2895_v61  ;;  %v3488_v25 = vsel %vm3416_vm11, %v3380_v58, %v3452_v31  ;;  %vm3419_vm2 = vcmp.gt.f32.partialorder %v3383_v9, 0.0  ;;  %v3455_v32 = vmul.f32 0.02, %v3383_v9 }
 0x218   : > { %v2894_v30 = vadd.f32 %v2755_v26, %v7579_v54  ;;  %vm4143_vm7 = vcmp.ge.s32.totalorder %v7636_v28, 1  ;;  %vm4179_vm8 = vcmp.le.s32.totalorder %v7636_v28, 16  ;;  %v4245_v5 = vsel %vm8296_vm12, %v3488_v25, 0.0  ;;  %v3099_v19 = vpop.f32.mrf.mxu0 }
 0x219   : > { %v3382_v6 = vadd.f32 %v3346_v45, %v3310_v24  ;;  %v3385_v58 = vadd.f32 %v3349_v29, %v3313_v59  ;;  %v3312_v52 = vadd.f32 %v8120_v10, %v3269_v16  ;;  %4281 = vst [vmem:[%s8210_s17 + $0x20] sm:$0xff] %v4245_v5  ;;  %v3491_v57 = vsel %vm3419_vm2, %v3383_v9, %v3455_v32  ;;  %v3351_v45 = vld [vmem:[%s8098_s12 + $0x58] sm:$0xff] }
 0x21a   : > { %v3272_v38 = vmul.f32 %v8078_v18, %v3229_v37  ;;  %v3228_v54 = vadd.f32 %v3089_v20, %v2894_v30  ;;  %v2897_v15 = vadd.f32 %v5713_v22, %v7621_v51  ;;  %v4248_v61 = vsel %vm8312_vm3, %v3491_v57, 0.0  ;;  %v5716_v51 = vpop.f32.mrf.mxu1  ;;  %vm8343_vm3 = vmand %vm4142_vm4, %vm4178_vm5  ;;  %v5802_v37 = vpop.f32.mrf.mxu0 }
 0x21b   : > { %vm3418_vm6 = vcmp.gt.f32.partialorder %v3382_v6, 0.0  ;;  %v3454_v11 = vmul.f32 0.02, %v3382_v6  ;;  %vm3421_vm11 = vcmp.gt.f32.partialorder %v3385_v58, 0.0  ;;  %vm4146_vm12 = vcmp.ge.s32.totalorder %v7648_v1, 1  ;;  %4284 = vst [vmem:[%s8210_s17 + $0x38] sm:$0xff] %v4248_v61  ;;  %vm8361_vm5 = vmand %vm4141_vm10, %vm4177_vm13 }
 0x21c   : > { %vm4182_vm2 = vcmp.le.s32.totalorder %v7648_v1, 16  ;;  %v3457_v31 = vmul.f32 0.02, %v3385_v58  ;;  %v3384_v0 = vadd.f32 %v3348_v46, %v3312_v52  ;;  %v3315_v9 = vadd.f32 %v8120_v10, %v3272_v38  ;;  %v2775_v20 = vpop.f32.mrf.mxu1  ;;  %v3109_v53 = vpop.f32.mrf.mxu0 }
 0x21d   : > { %v3271_v29 = vmul.f32 %v8078_v18, %v3228_v54  ;;  %v3490_v24 = vsel %vm3418_vm6, %v3382_v6, %v3454_v11  ;;  %v3231_v59 = vadd.f32 %v5799_v35, %v2897_v15  ;;  %v2896_v16 = vadd.f32 %v2765_v49, %v7642_v13 }
 0x21e   : > { %vm4181_vm0 = vcmp.le.s32.totalorder %v7821_v42, 16  ;;  %v2899_v62 = vadd.f32 %v5716_v51, %v7659_v2  ;;  %v4247_v22 = vsel %vm8332_vm9, %v3490_v24, 0.0  ;;  %v3493_v25 = vsel %vm3421_vm11, %v3385_v58, %v3457_v31  ;;  %v5719_v58 = vpop.f32.mrf.mxu1  ;;  %vm8383_vm11 = vmand %vm4144_vm14, %vm4180_vm1  ;;  %v5805_v61 = vpop.f32.mrf.mxu0 }
 0x21f   : > { %vm3420_vm4 = vcmp.gt.f32.partialorder %v3384_v0, 0.0  ;;  %v3456_v32 = vmul.f32 0.02, %v3384_v0  ;;  %vm4148_vm6 = vcmp.ge.s32.totalorder %v7836_v17, 1  ;;  %vm4184_vm15 = vcmp.le.s32.totalorder %v7836_v17, 16  ;;  %4283 = vst [vmem:[%s8210_s17 + $0x30] sm:$0xff] %v4247_v22  ;;  %vm8396_vm14 = vmand %vm4143_vm7, %vm4179_vm8 }
 0x220   : > { %v4250_v2 = vsel %vm8343_vm3, %v3493_v25, 0.0  ;;  %v3387_v30 = vadd.f32 %v3351_v45, %v3315_v9  ;;  %v3314_v5 = vadd.f32 %v8120_v10, %v3271_v29  ;;  %v3274_v6 = vmul.f32 %v8078_v18, %v3231_v59  ;;  %v2785_v11 = vpop.f32.mrf.mxu1  ;;  %v3352_v9 = vld [vmem:[%s8098_s12 + $0x60] sm:$0xff]  ;;  %v3119_v29 = vpop.f32.mrf.mxu0 }
 0x221   : > { %4286 = vst [vmem:[%s8210_s17 + $0x48] sm:$0xff] %v4250_v2  ;;  %v3492_v52 = vsel %vm3420_vm4, %v3384_v0, %v3456_v32  ;;  %v3230_v46 = vadd.f32 %v3099_v19, %v2896_v16  ;;  %v3233_v35 = vadd.f32 %v5802_v37, %v2899_v62  ;;  %v2898_v49 = vadd.f32 %v2775_v20, %v7677_v60  ;;  %v3353_v60 = vld [vmem:[%s8098_s12 + $0x68] sm:$0xff]  ;;  %v3355_v37 = vld [vmem:[%s8098_s12 + $0x78] sm:$0xff] }
 0x222   : > { %vm4147_vm10 = vcmp.ge.s32.totalorder %v7842_v56, 1  ;;  %vm4183_vm13 = vcmp.le.s32.totalorder %v7842_v56, 16  ;;  %v4249_v57 = vsel %vm8361_vm5, %v3492_v52, 0.0  ;;  %vm3423_vm9 = vcmp.gt.f32.partialorder %v3387_v30, 0.0  ;;  %v5722_v24 = vpop.f32.mrf.mxu1  ;;  %v5808_v32 = vpop.f32.mrf.mxu0 }
 0x223   : > { %v3459_v38 = vmul.f32 0.02, %v3387_v30  ;;  %v3386_v15 = vadd.f32 %v3350_v47, %v3314_v5  ;;  %4285 = vst [vmem:[%s8210_s17 + $0x40] sm:$0xff] %v4249_v57  ;;  %v3317_v26 = vadd.f32 %v8120_v10, %v3274_v6  ;;  %v3273_v19 = vmul.f32 %v8078_v18, %v3230_v46  ;;  %v3354_v5 = vld [vmem:[%s8098_s12 + $0x70] sm:$0xff] }
 0x224   : > { %v3276_v51 = vmul.f32 %v8078_v18, %v3233_v35  ;;  %v3232_v31 = vadd.f32 %v3109_v53, %v2898_v49  ;;  %v2901_v45 = vadd.f32 %v5719_v58, %v7693_v4  ;;  %vm4150_vm1 = vcmp.ge.s32.totalorder %v7860_v14, 1  ;;  %v2795_v13 = vpop.f32.mrf.mxu1  ;;  %v3129_v46 = vpop.f32.mrf.mxu0 }
 0x225   : > { %v3495_v43 = vsel %vm3423_vm9, %v3387_v30, %v3459_v38  ;;  %vm3422_vm3 = vcmp.gt.f32.partialorder %v3386_v15, 0.0  ;;  %v3458_v48 = vmul.f32 0.02, %v3386_v15  ;;  %vm4186_vm4 = vcmp.le.s32.totalorder %v7860_v14, 16  ;;  %vm8420_vm9 = vmand %vm4146_vm12, %vm4182_vm2  ;;  %v3362_v14 = vld [vmem:[%s8098_s12 + $0xb0] sm:$0xff] }
 0x226   : > { %v4252_v59 = vsel %vm8383_vm11, %v3495_v43, 0.0  ;;  %v3389_v16 = vadd.f32 %v3353_v60, %v3317_v26  ;;  %v3316_v62 = vadd.f32 %v8120_v10, %v3273_v19  ;;  %v3319_v28 = vadd.f32 %v8120_v10, %v3276_v51  ;;  %v5725_v35 = vpop.f32.mrf.mxu1 }
 0x227   : > { %4288 = vst [vmem:[%s8210_s17 + $0x58] sm:$0xff] %v4252_v59  ;;  %v3494_v20 = vsel %vm3422_vm3, %v3386_v15, %v3458_v48  ;;  %v3275_v4 = vmul.f32 %v8078_v18, %v3232_v31  ;;  %v3235_v22 = vadd.f32 %v5805_v61, %v2901_v45  ;;  %v2900_v25 = vadd.f32 %v2785_v11, %v7704_v41  ;;  %v5811_v61 = vpop.f32.mrf.mxu0 }
 0x228   : > { %vm4149_vm7 = vcmp.ge.s32.totalorder %v7869_v23, 1  ;;  %vm4185_vm8 = vcmp.le.s32.totalorder %v7869_v23, 16  ;;  %v4251_v47 = vsel %vm8396_vm14, %v3494_v20, 0.0  ;;  %vm3425_vm5 = vcmp.gt.f32.partialorder %v3389_v16, 0.0  ;;  %v2805_v11 = vpop.f32.mrf.mxu1  ;;  %v8992_v20 = vld [vmem:[#allocation26_spill] sm:$0xff] }
 0x229   : > { %v3461_v2 = vmul.f32 0.02, %v3389_v16  ;;  %v3388_v41 = vadd.f32 %v3352_v9, %v3316_v62  ;;  %4287 = vst [vmem:[%s8210_s17 + $0x50] sm:$0xff] %v4251_v47  ;;  %v3391_v6 = vadd.f32 %v3355_v37, %v3319_v28  ;;  %v3318_v53 = vadd.f32 %v8120_v10, %v3275_v4  ;;  %v3356_v9 = vld [vmem:[%s8098_s12 + $0x80] sm:$0xff]  ;;  %v3139_v45 = vpop.f32.mrf.mxu0  ;;  %v8991_v28 = vld [vmem:[#allocation25_spill] sm:$0xff] }
 0x22a   : > { %v3278_v58 = vmul.f32 %v8078_v18, %v3235_v22  ;;  %v3234_v52 = vadd.f32 %v3119_v29, %v2900_v25  ;;  %vm8984_vm12 = vcmp.ge.s32.totalorder %v7821_v42, 1  ;;  %v2903_v38 = vadd.f32 %v5722_v24, %v7719_v44  ;;  %v3357_v44 = vld [vmem:[%s8098_s12 + $0x88] sm:$0xff]  ;;  %v5728_v29 = vpop.f32.mrf.mxu1 }
 0x22b   : > { %v3497_v49 = vsel %vm3425_vm5, %v3389_v16, %v3461_v2  ;;  %vm3424_vm11 = vcmp.gt.f32.partialorder %v3388_v41, 0.0  ;;  %v3460_v1 = vmul.f32 0.02, %v3388_v41  ;;  %vm8432_vm2 = vmand %vm8984_vm12, %vm4181_vm0  ;;  %vm4152_vm3 = vcmp.ge.s32.totalorder %v7874_v21, 1  ;;  %v8993_v22 = vld [vmem:[#allocation27_spill] sm:$0xff] }
 0x22c   : > { %vm4188_vm14 = vcmp.le.s32.totalorder %v7874_v21, 16  ;;  %v4254_v54 = vsel %vm8420_vm9, %v3497_v49, 0.0  ;;  %vm3427_vm5 = vcmp.gt.f32.partialorder %v3391_v6, 0.0  ;;  %v3463_v15 = vmul.f32 0.02, %v3391_v6  ;;  %vm8445_vm0 = vmand %vm4148_vm6, %vm4184_vm15  ;;  %v2815_v47 = vpop.f32.mrf.mxu1 }
 0x22d   : > { %v3390_v60 = vadd.f32 %v3354_v5, %v3318_v53  ;;  %4290 = vst [vmem:[%s8210_s17 + $0x68] sm:$0xff] %v4254_v54  ;;  %v3496_v26 = vsel %vm3424_vm11, %v3388_v41, %v3460_v1  ;;  %v3321_v19 = vadd.f32 %v8120_v10, %v3278_v58  ;;  %v3277_v51 = vmul.f32 %v8078_v18, %v3234_v52  ;;  %vm8459_vm6 = vmand %vm4147_vm10, %vm4183_vm13  ;;  %v3359_v5 = vld [vmem:[%s8098_s12 + $0x98] sm:$0xff] }
 0x22e   : > { %v3237_v31 = vadd.f32 %v5808_v32, %v2903_v38  ;;  %v4253_v17 = vsel %vm8432_vm2, %v3496_v26, 0.0  ;;  %v3499_v43 = vsel %vm3427_vm5, %v3391_v6, %v3463_v15  ;;  %vm4151_vm9 = vcmp.ge.s32.totalorder %v7879_v7, 1  ;;  %v5814_v32 = vpop.f32.mrf.mxu0  ;;  %v5731_v49 = vpop.f32.mrf.mxu1 }
 0x22f   : > { %vm3426_vm15 = vcmp.gt.f32.partialorder %v3390_v60, 0.0  ;;  %v3462_v48 = vmul.f32 0.02, %v3390_v60  ;;  %vm4187_vm11 = vcmp.le.s32.totalorder %v7879_v7, 16  ;;  %4289 = vst [vmem:[%s8210_s17 + $0x60] sm:$0xff] %v4253_v17  ;;  %v4256_v24 = vsel %vm8445_vm0, %v3499_v43, 0.0  ;;  %vm8486_vm0 = vmand %vm4150_vm1, %vm4186_vm4 }
 0x230   : > { %v3393_v59 = vadd.f32 %v3357_v44, %v3321_v19  ;;  %v3320_v16 = vadd.f32 %v8120_v10, %v3277_v51  ;;  %v3280_v56 = vmul.f32 %v8078_v18, %v3237_v31  ;;  %vm4154_vm10 = vcmp.ge.s32.totalorder %v7890_v55, 1  ;;  %4292 = vst [vmem:[%s8210_s17 + $0x78] sm:$0xff] %v4256_v24  ;;  %vm8497_vm1 = vmand %vm4149_vm7, %vm4185_vm8  ;;  %v3361_v43 = vld [vmem:[%s8098_s12 + $0xa8] sm:$0xff] }
 0x231   : > { %vm4190_vm13 = vcmp.le.s32.totalorder %v7890_v55, 16  ;;  %v3498_v62 = vsel %vm3426_vm15, %v3390_v60, %v3462_v48  ;;  %v2902_v37 = vadd.f32 %v2795_v13, %v8991_v28  ;;  %v2905_v4 = vadd.f32 %v5725_v35, %v8992_v20  ;;  %v3149_v35 = vpop.f32.mrf.mxu0  ;;  %v2825_v60 = vpop.f32.mrf.mxu1  ;;  %vm8518_vm8 = vmand %vm4152_vm3, %vm4188_vm14  ;;  %v3360_v48 = vld [vmem:[%s8098_s12 + $0xa0] sm:$0xff]  ;;  %v9002_v28 = vld [vmem:[#allocation28_spill] sm:$0xff] }
 0x232   : > { %v2904_v25 = vadd.f32 %v2805_v11, %v8993_v22  ;;  %vm4153_vm12 = vcmp.ge.s32.totalorder %v7894_v40, 1  ;;  %vm4189_vm2 = vcmp.le.s32.totalorder %v7894_v40, 16  ;;  %v4255_v2 = vsel %vm8459_vm6, %v3498_v62, 0.0  ;;  %v9001_v62 = vld [vmem:[#allocation8_spill] sm:$0xff] }
 0x233   : > { %vm3429_vm5 = vcmp.gt.f32.partialorder %v3393_v59, 0.0  ;;  %v3465_v30 = vmul.f32 0.02, %v3393_v59  ;;  %v3392_v41 = vadd.f32 %v3356_v9, %v3320_v16  ;;  %4291 = vst [vmem:[%s8210_s17 + $0x70] sm:$0xff] %v4255_v2  ;;  %v3323_v6 = vadd.f32 %v8120_v10, %v3280_v56  ;;  %v5817_v42 = vpop.f32.mrf.mxu0  ;;  %v5734_v0 = vpop.f32.mrf.mxu1  ;;  %v9000_v16 = vld [vmem:[#allocation2_spill] sm:$0xff] }
 0x234   : > { %v3236_v53 = vadd.f32 %v3129_v46, %v2902_v37  ;;  %v3239_v58 = vadd.f32 %v5811_v61, %v2905_v4  ;;  %v3238_v52 = vadd.f32 %v3139_v45, %v2904_v25  ;;  %v2907_v38 = vadd.f32 %v5728_v29, %v7814_v39  ;;  %v3358_v39 = vld [vmem:[%s8098_s12 + $0x90] sm:$0xff] }
 0x235   : > { %v3501_v1 = vsel %vm3429_vm5, %v3393_v59, %v3465_v30  ;;  %vm3428_vm15 = vcmp.gt.f32.partialorder %v3392_v41, 0.0  ;;  %v3464_v57 = vmul.f32 0.02, %v3392_v41  ;;  %vm4156_vm4 = vcmp.ge.s32.totalorder %v7997_v33, 1  ;;  %v2835_v4 = vpop.f32.mrf.mxu1  ;;  %v3363_v30 = vld [vmem:[%s8098_s12 + $0xb8] sm:$0xff] }
 0x236   : > { %vm4192_vm6 = vcmp.le.s32.totalorder %v7997_v33, 16  ;;  %v4258_v46 = vsel %vm8486_vm0, %v3501_v1, 0.0  ;;  %v3395_v54 = vadd.f32 %v3359_v5, %v3323_v6  ;;  %v3279_v15 = vmul.f32 %v8078_v18, %v3236_v53  ;;  %v9013_v33 = vld [vmem:[#allocation29_spill] sm:$0xff] }
 0x237   : > { %v3282_v23 = vmul.f32 %v8078_v18, %v3239_v58  ;;  %4294 = vst [vmem:[%s8210_s17 + $0x88] sm:$0xff] %v4258_v46  ;;  %v3500_v44 = vsel %vm3428_vm15, %v3392_v41, %v3464_v57  ;;  %v3281_v61 = vmul.f32 %v8078_v18, %v3238_v52  ;;  %v3241_v11 = vadd.f32 %v5814_v32, %v2907_v38  ;;  %vm8543_vm15 = vmand %vm4151_vm9, %vm4187_vm11  ;;  %v5737_v53 = vpop.f32.mrf.mxu1 }
 0x238   : > { %v2906_v26 = vadd.f32 %v2815_v47, %v7853_v27  ;;  %v4257_v19 = vsel %vm8497_vm1, %v3500_v44, 0.0  ;;  %vm3431_vm7 = vcmp.gt.f32.partialorder %v3395_v54, 0.0  ;;  %v3467_v51 = vmul.f32 0.02, %v3395_v54  ;;  %v3159_v27 = vpop.f32.mrf.mxu0 }
 0x239   : > { %v3322_v17 = vadd.f32 %v8120_v10, %v3279_v15  ;;  %vm4155_vm5 = vcmp.ge.s32.totalorder %v8023_v36, 1  ;;  %vm4191_vm0 = vcmp.le.s32.totalorder %v8023_v36, 16  ;;  %4293 = vst [vmem:[%s8210_s17 + $0x80] sm:$0xff] %v4257_v19  ;;  %v3325_v9 = vadd.f32 %v8120_v10, %v3282_v23 }
 0x23a   : > { %v3324_v45 = vadd.f32 %v8120_v10, %v3281_v61  ;;  %v3284_v21 = vmul.f32 %v8078_v18, %v3241_v11  ;;  %v3240_v29 = vadd.f32 %v3149_v35, %v2906_v26  ;;  %v3503_v24 = vsel %vm3431_vm7, %v3395_v54, %v3467_v51  ;;  %v8535_v20 = vpop.f32.mrf.mxu0  ;;  %vm8554_vm7 = vmand %vm4154_vm10, %vm4190_vm13  ;;  %v9009_v35 = vld [vmem:[#allocation9_spill] sm:$0xff]  ;;  %v2845_v54 = vpop.f32.mrf.mxu1  ;;  %v3365_v11 = vld [vmem:[%s8098_s12 + $0xc8] sm:$0xff] }
 0x23b   : > { %v3394_v59 = vadd.f32 %v3358_v39, %v3322_v17  ;;  %v2909_v56 = vadd.f32 %v5731_v49, %v9000_v16  ;;  %vm4158_vm3 = vcmp.ge.s32.totalorder %v9001_v62, 1  ;;  %vm4194_vm14 = vcmp.le.s32.totalorder %v9001_v62, 16  ;;  %v9012_v26 = vld [vmem:[#allocation10_spill] sm:$0xff] }
 0x23c   : > { %v2908_v37 = vadd.f32 %v2825_v60, %v9002_v28  ;;  %v4260_v22 = vsel %vm8518_vm8, %v3503_v24, 0.0  ;;  %v3397_v32 = vadd.f32 %v3361_v43, %v3325_v9  ;;  %v3396_v47 = vadd.f32 %v3360_v48, %v3324_v45  ;;  %v3169_v6 = vpop.f32.mrf.mxu0  ;;  %vm8563_vm8 = vmand %vm4153_vm12, %vm4189_vm2  ;;  %v5740_v51 = vpop.f32.mrf.mxu1  ;;  %v9014_v9 = vld [vmem:[#allocation30_spill] sm:$0xff]  ;;  %v9016_v24 = vld [vmem:[#allocation4_spill] sm:$0xff] }
 0x23d   : > { %v3327_v2 = vadd.f32 %v8120_v10, %v3284_v21  ;;  %4296 = vst [vmem:[%s8210_s17 + $0x98] sm:$0xff] %v4260_v22  ;;  %vm3430_vm1 = vcmp.gt.f32.partialorder %v3394_v59, 0.0  ;;  %v3466_v13 = vmul.f32 0.02, %v3394_v59  ;;  %v3283_v7 = vmul.f32 %v8078_v18, %v3240_v29  ;;  %vm8583_vm2 = vmand %vm4156_vm4, %vm4192_vm6  ;;  %v9015_v21 = vld [vmem:[#allocation3_spill] sm:$0xff] }
 0x23e   : > { %v3243_v5 = vadd.f32 %v5817_v42, %v2909_v56  ;;  %vm3433_vm9 = vcmp.gt.f32.partialorder %v3397_v32, 0.0  ;;  %v3469_v58 = vmul.f32 0.02, %v3397_v32  ;;  %vm3432_vm11 = vcmp.gt.f32.partialorder %v3396_v47, 0.0  ;;  %v5823_v46 = vpop.f32.mrf.mxu0 }
 0x23f   : > { %v3468_v52 = vmul.f32 0.02, %v3396_v47  ;;  %vm4157_vm10 = vcmp.ge.s32.totalorder %v9009_v35, 1  ;;  %vm4193_vm13 = vcmp.le.s32.totalorder %v9009_v35, 16  ;;  %v3502_v49 = vsel %vm3430_vm1, %v3394_v59, %v3466_v13 }
 0x240   : > { %v3399_v1 = vadd.f32 %v3363_v30, %v3327_v2  ;;  %v3326_v57 = vadd.f32 %v8120_v10, %v3283_v7  ;;  %v3286_v38 = vmul.f32 %v8078_v18, %v3243_v5  ;;  %v4259_v40 = vsel %vm8543_vm15, %v3502_v49, 0.0  ;;  %v3179_v19 = vpop.f32.mrf.mxu0  ;;  %v9021_v49 = vld [vmem:[#allocation5_spill] sm:$0xff] }
 0x241   : > { %v3505_v15 = vsel %vm3433_vm9, %v3397_v32, %v3469_v58  ;;  %v3504_v23 = vsel %vm3432_vm11, %v3396_v47, %v3468_v52  ;;  %v3242_v42 = vadd.f32 %v3159_v27, %v2908_v37  ;;  %4295 = vst [vmem:[%s8210_s17 + $0x90] sm:$0xff] %v4259_v40  ;;  %vm4160_vm15 = vcmp.ge.s32.totalorder %v9012_v26, 1  ;;  %v3364_v37 = vld [vmem:[%s8098_s12 + $0xc0] sm:$0xff]  ;;  %v3366_v58 = vld [vmem:[%s8098_s12 + $0xd0] sm:$0xff]  ;;  %v3369_v40 = vld [vmem:[%s8098_s12 + $0xe8] sm:$0xff] }
 0x242   : > { %v4262_v60 = vsel %vm8554_vm7, %v3505_v15, 0.0  ;;  %v4261_v44 = vsel %vm8563_vm8, %v3504_v23, 0.0  ;;  %vm3435_vm12 = vcmp.gt.f32.partialorder %v3399_v1, 0.0  ;;  %v3471_v39 = vmul.f32 0.02, %v3399_v1  ;;  %vm8609_vm8 = vmand %vm4155_vm5, %vm4191_vm0  ;;  %v5826_v47 = vpop.f32.mrf.mxu0  ;;  %v3368_v15 = vld [vmem:[%s8098_s12 + $0xe0] sm:$0xff] }
 0x243   : > { %vm4196_vm1 = vcmp.le.s32.totalorder %v9012_v26, 16  ;;  %4298 = vst [vmem:[%s8210_s17 + $0xa8] sm:$0xff] %v4262_v60  ;;  %4297 = vst [vmem:[%s8210_s17 + $0xa0] sm:$0xff] %v4261_v44  ;;  %v3398_v31 = vadd.f32 %v3362_v14, %v3326_v57  ;;  %v3329_v17 = vadd.f32 %v8120_v10, %v3286_v38  ;;  %v3285_v43 = vmul.f32 %v8078_v18, %v3242_v42 }
 0x244   : > { %v2911_v48 = vadd.f32 %v5734_v0, %v9013_v33  ;;  %vm4159_vm4 = vcmp.ge.s32.totalorder %v8153_v63, 1  ;;  %vm4195_vm6 = vcmp.le.s32.totalorder %v8153_v63, 16  ;;  %v3507_v27 = vsel %vm3435_vm12, %v3399_v1, %v3471_v39  ;;  %vm8623_vm0 = vmand %vm4158_vm3, %vm4194_vm14  ;;  %v3189_v23 = vpop.f32.mrf.mxu0 }
 0x245   : > { %v2910_v45 = vadd.f32 %v2835_v4, %v9014_v9  ;;  %v2913_v29 = vadd.f32 %v5737_v53, %v9015_v21  ;;  %vm4198_vm9 = vcmp.le.s32.totalorder %v8164_v34, 16  ;;  %v2912_v59 = vadd.f32 %v2845_v54, %v9016_v24  ;;  %v2855_v4 = vpop.f32.mrf.mxu1  ;;  %v3367_v53 = vld [vmem:[%s8098_s12 + $0xd8] sm:$0xff] }
 0x246   : > { %v4264_v0 = vsel %vm8583_vm2, %v3507_v27, 0.0  ;;  %vm3434_vm11 = vcmp.gt.f32.partialorder %v3398_v31, 0.0  ;;  %v3470_v16 = vmul.f32 0.02, %v3398_v31  ;;  %v3401_v28 = vadd.f32 %v3365_v11, %v3329_v17  ;;  %v9024_v11 = vld [vmem:[#allocation6_spill] sm:$0xff]  ;;  %v9049_v9 = vld [vmem:[#allocation33_spill] sm:$0xff] }
 0x247   : > { %vm4197_vm7 = vcmp.le.s32.totalorder %v8169_v12, 16  ;;  %4300 = vst [vmem:[%s8210_s17 + $0xb8] sm:$0xff] %v4264_v0  ;;  %v3328_v22 = vadd.f32 %v8120_v10, %v3285_v43  ;;  %v3245_v25 = vadd.f32 %v8535_v20, %v2911_v48  ;;  %v3244_v32 = vadd.f32 %v3169_v6, %v2910_v45  ;;  %v8641_v57 = vpop.f32.mrf.mxu1  ;;  %v3371_v45 = vld [vmem:[%s8098_s12 + $0xf8] sm:$0xff] }
 0x248   : > { %v3247_v36 = vadd.f32 %v5823_v46, %v2913_v29  ;;  %v3506_v2 = vsel %vm3434_vm11, %v3398_v31, %v3470_v16  ;;  %vm3437_vm5 = vcmp.gt.f32.partialorder %v3401_v28, 0.0  ;;  %v3473_v30 = vmul.f32 0.02, %v3401_v28  ;;  %v5829_v29 = vpop.f32.mrf.mxu0 }
 0x249   : > { %v3246_v41 = vadd.f32 %v3179_v19, %v2912_v59  ;;  %vm3986_vm2 = vcmp.ne.s32.totalorder %v8189_v3, 0  ;;  %vm4022_vm12 = vcmp.lt.s32.totalorder %v8189_v3, 0  ;;  %v4263_v20 = vsel %vm8609_vm8, %v3506_v2, 0.0  ;;  %vm8649_vm8 = vmand %vm4157_vm10, %vm4193_vm13  ;;  %v2865_v48 = vpop.f32.mrf.mxu1 }
 0x24a   : > { %v3400_v7 = vadd.f32 %v3364_v37, %v3328_v22  ;;  %v3288_v5 = vmul.f32 %v8078_v18, %v3245_v25  ;;  %v3287_v6 = vmul.f32 %v8078_v18, %v3244_v32  ;;  %4299 = vst [vmem:[%s8210_s17 + $0xb0] sm:$0xff] %v4263_v20  ;;  %v3509_v62 = vsel %vm3437_vm5, %v3401_v28, %v3473_v30  ;;  %vm8669_vm5 = vmand %vm4160_vm15, %vm4196_vm1  ;;  %v3199_v30 = vpop.f32.mrf.mxu0 }
 0x24b   : > { %v3290_v52 = vmul.f32 %v8078_v18, %v3247_v36  ;;  %v3289_v55 = vmul.f32 %v8078_v18, %v3246_v41  ;;  %v2915_v1 = vadd.f32 %v5740_v51, %v9021_v49  ;;  %vm4164_vm3 = vcmp.ge.s32.totalorder %v8174_v8, 1  ;;  %v5746_v22 = vpop.f32.mrf.mxu1  ;;  %v8730_v41 = vld [vmem:[%s8815_s3] ss:$0 sm:$0xff] }
 0x24c   : > { %vm4200_vm14 = vcmp.le.s32.totalorder %v8174_v8, 16  ;;  %v4266_v14 = vsel %vm8623_vm0, %v3509_v62, 0.0  ;;  %vm3436_vm11 = vcmp.gt.f32.partialorder %v3400_v7, 0.0  ;;  %v3472_v38 = vmul.f32 0.02, %v3400_v7 }
 0x24d   : > { %v3331_v54 = vadd.f32 %v8120_v10, %v3288_v5  ;;  %4302 = vst [vmem:[%s8210_s17 + $0xc8] sm:$0xff] %v4266_v14  ;;  %v3330_v42 = vadd.f32 %v8120_v10, %v3287_v6  ;;  %v3333_v60 = vadd.f32 %v8120_v10, %v3290_v52  ;;  %v3332_v44 = vadd.f32 %v8120_v10, %v3289_v55  ;;  %v9041_v55 = vld [vmem:[#allocation16_spill] sm:$0xff] }
 0x24e   : > { %v3249_v39 = vadd.f32 %v5826_v47, %v2915_v1  ;;  %v3508_v61 = vsel %vm3436_vm11, %v3400_v7, %v3472_v38  ;;  %v2914_v19 = vadd.f32 %v2855_v4, %v9024_v11  ;;  %vm8678_vm11 = vmand %vm4159_vm4, %vm4195_vm6  ;;  %vm9032_vm6 = vcmp.ge.s32.totalorder %v8169_v12, 1  ;;  %v8706_v4 = vld [vmem:[%s8814_s2] ss:$0 sm:$0xff]  ;;  %v3370_v47 = vld [vmem:[%s8098_s12 + $0xf0] sm:$0xff] }
 0x24f   : > { %v3403_v35 = vadd.f32 %v3367_v53, %v3331_v54  ;;  %v4265_v51 = vsel %vm8649_vm8, %v3508_v61, 0.0  ;;  %v3402_v17 = vadd.f32 %v3366_v58, %v3330_v42  ;;  %v3405_v43 = vadd.f32 %v3369_v40, %v3333_v60  ;;  %vm8696_vm13 = vmand %vm9032_vm6, %vm4197_vm7  ;;  %v9037_v7 = vld [vmem:[#allocation7_spill] sm:$0xff]  ;;  %v9042_v38 = vld [vmem:[#allocation32_spill] sm:$0xff]  ;;  %v2875_v54 = vpop.f32.mrf.mxu1 }
 0x250   : > { %v3404_v33 = vadd.f32 %v3368_v15, %v3332_v44  ;;  %4301 = vst [vmem:[%s8210_s17 + $0xc0] sm:$0xff] %v4265_v51  ;;  %v3292_v26 = vmul.f32 %v8078_v18, %v3249_v39  ;;  %v3248_v21 = vadd.f32 %v3189_v23, %v2914_v19  ;;  %vm9029_vm8 = vcmp.ge.s32.totalorder %v8164_v34, 1  ;;  %vm8719_vm7 = vmand %vm4022_vm12, %vm3986_vm2  ;;  %v9040_v58 = vld [vmem:[#allocation31_spill] sm:$0xff]  ;;  %v5832_v15 = vpop.f32.mrf.mxu0  ;;  %v9047_v11 = vld [vmem:[#allocation34_spill] sm:$0xff] }
 0x251   : > { %vm3439_vm0 = vcmp.gt.f32.partialorder %v3403_v35, 0.0  ;;  %v3475_v27 = vmul.f32 0.02, %v3403_v35  ;;  %vm3438_vm15 = vcmp.gt.f32.partialorder %v3402_v17, 0.0  ;;  %v3474_v24 = vmul.f32 0.02, %v3402_v17  ;;  %vm8688_vm10 = vmand %vm9029_vm8, %vm4198_vm9 }
 0x252   : > { %vm3441_vm1 = vcmp.gt.f32.partialorder %v3405_v43, 0.0  ;;  %v3477_v59 = vmul.f32 0.02, %v3405_v43  ;;  %vm3440_vm4 = vcmp.gt.f32.partialorder %v3404_v33, 0.0  ;;  %v3476_v18 = vmul.f32 0.02, %v3404_v33  ;;  %vm8741_vm12 = vmand %vm4164_vm3, %vm4200_vm14 }
 0x253   : > { %v3511_v0 = vsel %vm3439_vm0, %v3403_v35, %v3475_v27  ;;  %v3335_v56 = vadd.f32 %v8120_v10, %v3292_v26  ;;  %v3510_v28 = vsel %vm3438_vm15, %v3402_v17, %v3474_v24  ;;  %v3291_v12 = vmul.f32 %v8706_v4, %v3248_v21  ;;  %v3373_v44 = vld [vmem:[%s8098_s12 + $0x108] sm:$0xff]  ;;  %v3372_v17 = vld [vmem:[%s8098_s12 + $0x100] sm:$0xff]  ;;  %v3209_v21 = vpop.f32.mrf.mxu0 }
 0x254   : > { %v4268_v34 = vsel %vm8669_vm5, %v3511_v0, 0.0  ;;  %v3513_v37 = vsel %vm3441_vm1, %v3405_v43, %v3477_v59  ;;  %v4267_v25 = vsel %vm8678_vm11, %v3510_v28, 0.0  ;;  %v3512_v32 = vsel %vm3440_vm4, %v3404_v33, %v3476_v18  ;;  %v9050_v59 = vld [vmem:[#allocation11_spill] sm:$0xff] }
 0x255   : > { %4304 = vst [vmem:[%s8210_s17 + $0xd8] sm:$0xff] %v4268_v34  ;;  %v4270_v10 = vsel %vm8688_vm10, %v3513_v37, 0.0  ;;  %v3407_v36 = vadd.f32 %v3371_v45, %v3335_v56  ;;  %4303 = vst [vmem:[%s8210_s17 + $0xd0] sm:$0xff] %v4267_v25  ;;  %v4269_v13 = vsel %vm8696_vm13, %v3512_v32, 0.0  ;;  %v3334_v20 = vadd.f32 %v8730_v41, %v3291_v12  ;;  %v3375_v34 = vld [vmem:[%s8098_s12 + $0x118] sm:$0xff] }
 0x256   : > { %4306 = vst [vmem:[%s8210_s17 + $0xe8] sm:$0xff] %v4270_v10  ;;  %v2917_v5 = vadd.f32 %v8641_v57, %v9037_v7  ;;  %v4094_v6 = vadd.s32 18, %v8189_v3  ;;  %4305 = vst [vmem:[%s8210_s17 + $0xe0] sm:$0xff] %v4269_v13  ;;  %v2916_v52 = vadd.f32 %v2865_v48, %v9040_v58  ;;  %v3915_v49 = vshrl.u32 %v9041_v55, 4 }
 0x257   : > { %vm3443_vm9 = vcmp.gt.f32.partialorder %v3407_v36, 0.0  ;;  %v3479_v62 = vmul.f32 0.02, %v3407_v36  ;;  %v3406_v1 = vadd.f32 %v3370_v47, %v3334_v20  ;;  %v2919_v46 = vadd.f32 %v5746_v22, %v9042_v38  ;;  %v3374_v47 = vld [vmem:[%s8098_s12 + $0x110] sm:$0xff] }
 0x258   : > { %v3251_v57 = vadd.f32 %v5829_v29, %v2917_v5  ;;  %v4130_v14 = vsel %vm8719_vm7, %v4094_v6, %v8189_v3  ;;  %v3250_v40 = vadd.f32 %v3199_v30, %v2916_v52  ;;  %vm9043_vm10 = vcmp.le.s32.totalorder %v8218_v50, 16 }
 0x259   : > { %v3515_v8 = vsel %vm3443_vm9, %v3407_v36, %v3479_v62  ;;  %vm4166_vm2 = vcmp.ge.s32.totalorder %v4130_v14, 1  ;;  %vm4202_vm3 = vcmp.le.s32.totalorder %v4130_v14, 16  ;;  %vm3442_vm14 = vcmp.gt.f32.partialorder %v3406_v1, 0.0 }
 0x25a   : > { %v4272_v23 = vsel %vm8741_vm12, %v3515_v8, 0.0  ;;  %v3478_v42 = vmul.f32 0.02, %v3406_v1  ;;  %vm9044_vm13 = vcmp.ge.s32.totalorder %v8218_v50, 1  ;;  %v3294_v60 = vmul.f32 %v8706_v4, %v3251_v57  ;;  %v9048_v50 = vld [vmem:[#allocation35_spill] sm:$0xff]  ;;  %vm8784_vm0 = vmand %vm4166_vm2, %vm4202_vm3 }
 0x25b   : > { %vm8757_vm5 = vmand %vm9044_vm13, %vm9043_vm10  ;;  %4308 = vst [vmem:[%s8210_s17 + $0xf8] sm:$0xff] %v4272_v23  ;;  %v3293_v39 = vmul.f32 %v8706_v4, %v3250_v40  ;;  %v3916_v61 = vmul.u32 18, %v3915_v49  ;;  %v3253_v35 = vadd.f32 %v5832_v15, %v2919_v46  ;;  %v2918_v19 = vadd.f32 %v2875_v54, %v9047_v11 }
 0x25c   : > { %v3514_v51 = vsel %vm3442_vm14, %v3406_v1, %v3478_v42  ;;  %v3337_v31 = vadd.f32 %v8730_v41, %v3294_v60  ;;  %v8769_v43 = vmul.u32.u64.low 3817748708, %v9048_v50  ;;  %v8770_v33 = vmul.u32.u64.high 3817748708, %v9048_v50, %v8769_v43 }
 0x25d   : > { %v4271_v48 = vsel %vm8757_vm5, %v3514_v51, 0.0  ;;  %v3336_v27 = vadd.f32 %v8730_v41, %v3293_v39  ;;  %v3917_v26 = vsub.s32 %v9049_v9, %v3916_v61  ;;  %v3296_v45 = vmul.f32 %v8706_v4, %v3253_v35 }
 0x25e   : > { %4307 = vst [vmem:[%s8210_s17 + $0xf0] sm:$0xff] %v4271_v48  ;;  %v3409_v29 = vadd.f32 %v3373_v44, %v3337_v31  ;;  %v3252_v24 = vadd.f32 %v3209_v21, %v2918_v19  ;;  %v8779_v63 = vmul.u32.u64.low 3817748708, %v9050_v59  ;;  %v8780_v0 = vmul.u32.u64.high 3817748708, %v9050_v59, %v8779_v63 }
 0x25f   : > { %v3408_v16 = vadd.f32 %v3372_v17, %v3336_v27  ;;  %vm3985_vm11 = vcmp.ne.s32.totalorder %v3917_v26, 0  ;;  %vm4021_vm15 = vcmp.lt.s32.totalorder %v3917_v26, 0  ;;  %v4093_v56 = vadd.s32 18, %v3917_v26 }
 0x260   : > { %vm3445_vm1 = vcmp.gt.f32.partialorder %v3409_v29, 0.0  ;;  %v3481_v28 = vmul.f32 0.02, %v3409_v29  ;;  %vm4057_vm8 = vmand %vm4021_vm15, %vm3985_vm11  ;;  %v3339_v37 = vadd.f32 %v8730_v41, %v3296_v45  ;;  %v3948_v12 = vshrl.u32 %v8770_v33, 4 }
 0x261   : > { %vm3444_vm4 = vcmp.gt.f32.partialorder %v3408_v16, 0.0  ;;  %v3480_v22 = vmul.f32 0.02, %v3408_v16  ;;  %v4129_v25 = vsel %vm4057_vm8, %v4093_v56, %v3917_v26  ;;  %v3295_v10 = vmul.f32 %v8706_v4, %v3252_v24 }
 0x262   : > { %v3517_v32 = vsel %vm3445_vm1, %v3409_v29, %v3481_v28  ;;  %vm4165_vm6 = vcmp.ge.s32.totalorder %v4129_v25, 1  ;;  %vm4201_vm7 = vcmp.le.s32.totalorder %v4129_v25, 16  ;;  %v3411_v36 = vadd.f32 %v3375_v34, %v3339_v37 }
 0x263   : > { %v4274_v2 = vsel %vm8784_vm0, %v3517_v32, 0.0  ;;  %v3516_v30 = vsel %vm3444_vm4, %v3408_v16, %v3480_v22  ;;  %vm4237_vm9 = vmand %vm4165_vm6, %vm4201_vm7  ;;  %v3949_v13 = vmul.u32 18, %v3948_v12  ;;  %v3338_v20 = vadd.f32 %v8730_v41, %v3295_v10 }
 0x264   : > { %4310 = vst [vmem:[%s8210_s17 + $0x108] sm:$0xff] %v4274_v2  ;;  %v4273_v7 = vsel %vm4237_vm9, %v3516_v30, 0.0  ;;  %v3937_v5 = vshrl.u32 %v8780_v0, 4  ;;  %v3483_v6 = vmul.f32 0.02, %v3411_v36  ;;  %vm3447_vm12 = vcmp.gt.f32.partialorder %v3411_v36, 0.0 }
 0x265   : > { %4309 = vst [vmem:[%s8210_s17 + $0x100] sm:$0xff] %v4273_v7  ;;  %v3950_v4 = vsub.s32 %v9048_v50, %v3949_v13  ;;  %v3410_v62 = vadd.f32 %v3374_v47, %v3338_v20 }
 0x266   : > { %v3938_v53 = vmul.u32 18, %v3937_v5  ;;  %v3519_v55 = vsel %vm3447_vm12, %v3411_v36, %v3483_v6 }
 0x267   : > { %vm3988_vm2 = vcmp.ne.s32.totalorder %v3950_v4, 0  ;;  %vm4024_vm3 = vcmp.lt.s32.totalorder %v3950_v4, 0  ;;  %v4096_v58 = vadd.s32 18, %v3950_v4  ;;  %v3482_v49 = vmul.f32 0.02, %v3410_v62 }
 0x268   : > { %vm4060_vm14 = vmand %vm4024_vm3, %vm3988_vm2  ;;  %v3939_v52 = vsub.s32 %v9050_v59, %v3938_v53  ;;  %vm3446_vm5 = vcmp.gt.f32.partialorder %v3410_v62, 0.0 }
 0x269   : > { %v4132_v41 = vsel %vm4060_vm14, %v4096_v58, %v3950_v4  ;;  %v3518_v14 = vsel %vm3446_vm5, %v3410_v62, %v3482_v49 }
 0x26a   : > { %vm4168_vm10 = vcmp.ge.s32.totalorder %v4132_v41, 1  ;;  %vm4204_vm13 = vcmp.le.s32.totalorder %v4132_v41, 16  ;;  %vm3987_vm0 = vcmp.ne.s32.totalorder %v3939_v52, 0  ;;  %vm4023_vm15 = vcmp.lt.s32.totalorder %v3939_v52, 0 }
 0x26b   : > { %vm4240_vm11 = vmand %vm4168_vm10, %vm4204_vm13  ;;  %v4095_v1 = vadd.s32 18, %v3939_v52 }
 0x26c   : > { %v4276_v57 = vsel %vm4240_vm11, %v3519_v55, 0.0  ;;  %vm4059_vm1 = vmand %vm4023_vm15, %vm3987_vm0 }
 0x26d   : > { %4312 = vst [vmem:[%s8210_s17 + $0x118] sm:$0xff] %v4276_v57  ;;  %v4131_v38 = vsel %vm4059_vm1, %v4095_v1, %v3939_v52 }
 0x26e   : > { %vm4167_vm8 = vcmp.ge.s32.totalorder %v4131_v38, 1  ;;  %vm4203_vm4 = vcmp.le.s32.totalorder %v4131_v38, 16 }
 0x26f   : > { %vm4239_vm6 = vmand %vm4167_vm8, %vm4203_vm4 }
 0x270   : > { %v4275_v46 = vsel %vm4239_vm6, %v3518_v14, 0.0 }
 0x271   : > { %4311 = vst [vmem:[%s8210_s17 + $0x110] sm:$0xff] %v4275_v46 }
 0x272 PF: > { %s15_s20 = sadd.s32 1, %s5987_s20   ;;  %s9053_s18 = smov %s5983_s19 }
 0x273   : > { %p12_p5 = scmp.ge.s32.totalorder %s15_s20, 4   ;;  %s9054_s19 = smov %s9056_s21 }
 0x275   :  { %14 = sbr.rel (!%p12_p5) target bundleno = 2 (0x2), region = 90 }

</bundles_post_ra>
